<compile_context>
chip_gen: v6e
topology: v6e:2x2x1
jax: 0.10.0
libtpu: 0.0.40
codegen_flags: <defaults>
</compile_context>

<pallas_src>
import functools

import jax
import jax.numpy as jnp
from jax import lax
from jax.experimental import pallas as pl
from jax.experimental.pallas import tpu as pltpu

EPS = 1e-5
LANE = 128
SUB = 8


def _round_up(x, m):
    return (x + m - 1) // m * m


def _vmem_tile_bytes(rows, cols, itemsize):
    """VMEM footprint of one 2-D buffer, incl. (8, 128) sublane/lane padding."""
    return (_round_up(max(int(rows), 1), SUB)
            * _round_up(max(int(cols), 1), LANE) * itemsize)


# ------------------------------ Pallas kernels ------------------------------ #
def conv_stats_kernel(*refs, wp2, mt, cin, w_img, h_img, th, fuse_act):
    """3x3 conv tile as ONE im2col-in-VMEM matmul + bias, plus per-tile BN sums.

    fuse_act=False refs: x, w, b, oidx | y, stats | col
    fuse_act=True  refs: x, w, b, oidx, iidx, scale, shift | y, stats | col, act

      x_ref       : (1, R_pad, cin) bf16  flattened, zero-padded, haloed row tile
      w_ref       : (9*cin, Cpad)   bf16  weights, tap-major rows, resident
      b_ref       : (1, Cpad)       f32   conv bias, resident
      oidx_ref    : (Mt, 2)         i32   [col, row] of each output position
      iidx_ref    : (R_pad, 2)      i32   [padded col (-1 on slack), tile row]
      sc/sh_ref   : (1, cin)        f32   previous stage's BN affine, resident
      y_ref       : (1, Mt, Cpad)   bf16  pre-BN conv output tile (lane-dense)
      st_ref      : (1, 2, Cpad)    f32   per-tile [sum, sum-of-squares]
      col_ref     : (Mt, 9*cin)     bf16  VMEM im2col slab (taps folded into K)
      act_ref     : (R_pad, cin)    bf16  VMEM activated-input scratch (fused)
    """
    if fuse_act:
        (x_ref, w_ref, b_ref, oidx_ref, iidx_ref, sc_ref, sh_ref,
         y_ref, st_ref, col_ref, act_ref) = refs
    else:
        (x_ref, w_ref, b_ref, oidx_ref, y_ref, st_ref, col_ref) = refs
        act_ref = None

    t = pl.program_id(1)                      # row-tile index within the image

    if fuse_act:
        # Fused BN affine + ReLU of the PREVIOUS stage, applied to the loaded
        # pre-BN bf16 halo tile.  Border padding / out-of-image halo rows must
        # be exact zeros for this conv, so they are masked here (the affine
        # would otherwise map zero padding to relu(shift)).
        cc = iidx_ref[:, 0:1]                 # padded-image column (-1 on slack)
        grow = t * th + iidx_ref[:, 1:2]      # global padded-image row
        keep = (cc >= 1) & (cc <= w_img) & (grow >= 1) & (grow <= h_img)
        a = jnp.maximum(
            x_ref[0].astype(jnp.float32) * sc_ref[...] + sh_ref[...], 0.0)
        act_ref[...] = jnp.where(keep, a, 0.0).astype(act_ref.dtype)

    # Fold the 9 taps into the contraction dim: nine shifted slice copies into
    # the VMEM im2col slab, then ONE K=9*cin matmul (instead of nine K=cin
    # matmuls + 8 accumulator round trips through VMEM).
    for k in range(9):
        kh, kw = divmod(k, 3)
        s = kh * wp2 + kw
        if fuse_act:
            col_ref[:, k * cin:(k + 1) * cin] = act_ref[s:s + mt, :]
        else:
            col_ref[:, k * cin:(k + 1) * cin] = x_ref[0, s:s + mt, :]

    y = jnp.dot(col_ref[...], w_ref[...], preferred_element_type=jnp.float32)
    y = y + b_ref[...]                         # (Mt, Cpad) f32
    y_ref[0] = y.astype(y_ref.dtype)           # bf16 inter-stage activation

    # BN partial statistics from the f32 accumulator (before the bf16 cast).
    # Wrap-around output columns and (for ragged H) rows past the image are
    # excluded; the cross-sublane sums ride the otherwise-idle XLU slot.
    ocol = oidx_ref[:, 0:1]
    orow = oidx_ref[:, 1:2]
    valid = ((ocol < w_img) & (t * th + orow < h_img)).astype(jnp.float32)
    yv = y * valid
    st_ref[0, 0:1, :] = jnp.sum(yv, axis=0, keepdims=True)
    st_ref[0, 1:2, :] = jnp.sum(yv * yv, axis=0, keepdims=True)


def bn_relu_out_kernel(y_ref, sc_ref, sh_ref, o_ref, *, w_img, cout):
    """Final epilogue: BN affine + ReLU, written directly in stripped
    (tile, TH, W, Cout) layout (wrap columns / channel padding removed here)."""
    y = y_ref[0, :, :w_img, :cout].astype(jnp.float32)       # (TH, W, Cout)
    o_ref[0] = jnp.maximum(y * sc_ref[:, :cout] + sh_ref[:, :cout], 0.0)


# --------------------------- tiling / VMEM planning -------------------------- #
def _pass1_vmem_bytes(th, wp2, cin, cpad, fuse_act):
    mt = th * wp2
    r_pad = _round_up((th + 2) * wp2 + 2, SUB)
    b = 2 * _vmem_tile_bytes(r_pad, cin, 2)        # haloed x tile, double-buffered
    b += 2 * _vmem_tile_bytes(mt, cpad, 2)         # y output, double-buffered
    b += 2 * _vmem_tile_bytes(2, cpad, 4)          # per-tile stats
    b += _vmem_tile_bytes(mt, 9 * cin, 2)          # im2col scratch
    b += _vmem_tile_bytes(9 * cin, cpad, 2)        # resident weight slab
    b += _vmem_tile_bytes(r_pad, 2, 4) + _vmem_tile_bytes(mt, 2, 4)  # idx tables
    b += 4 * _vmem_tile_bytes(1, cpad, 4)          # bias / scale / shift
    if fuse_act:
        b += _vmem_tile_bytes(r_pad, cin, 2)       # activated-tile scratch
    return b


def _vmem_capacity_bytes():
    try:
        return int(pltpu.get_tpu_info().vmem_capacity_bytes)
    except Exception:
        return 64 << 20                            # conservative: v7x per-core VMEM


def _choose_row_tile(N, H, wp2, cin1, cpad, cap_bytes):
    """Largest row tile whose pass-1 working set fits the VMEM budget, with a
    mild preference for an even grid size (v7x has two TensorCores)."""
    budget = max(int(cap_bytes * 0.45), 4 << 20)

    def fits(th):
        return max(_pass1_vmem_bytes(th, wp2, cin1, cpad, False),
                   _pass1_vmem_bytes(th, wp2, cpad, cpad, True)) <= budget

    chosen = None
    for nt in range(1, H + 1):
        th = -(-H // nt)
        if not fits(th):
            continue
        if chosen is None:
            chosen = th
        if (N * nt) % 2 == 0 and 2 * th >= chosen:
            return th
        if 2 * th < chosen:
            break
    return chosen if chosen is not None else 1


# ------------------------------ stage wrappers ------------------------------- #
def _halo_row_tiles(img_padded, th, nt, r_pad):
    """(N, Hp+2, W+2, C) zero-padded image -> (N*nt, R_pad, C) flattened haloed
    row tiles in bf16 (~(TH+2)/TH duplication, never 9x im2col in HBM).
    TODO(synk): replace with overlapping-window BlockSpecs / in-kernel DMA."""
    n, _, wp2, c = img_padded.shape
    tiles = jnp.stack([img_padded[:, t * th: t * th + th + 2]
                       for t in range(nt)], axis=1)        # (N, nt, TH+2, W+2, C)
    flat = tiles.reshape(n * nt, (th + 2) * wp2, c)
    flat = jnp.pad(flat, ((0, 0), (0, r_pad - (th + 2) * wp2), (0, 0)))
    return flat.astype(jnp.bfloat16)


def _conv_stats_call(xt, wslab, bias, oidx, iidx, scale, shift, *, N, nt, mt,
                     r_pad, cin, cpad, wp2, w_img, h_img, th, fuse_act,
                     vmem_limit):
    G = N * nt
    kernel = functools.partial(conv_stats_kernel, wp2=wp2, mt=mt, cin=cin,
                               w_img=w_img, h_img=h_img, th=th,
                               fuse_act=fuse_act)
    tile_map = lambda n, t: (n * nt + t, 0, 0)
    const2 = lambda n, t: (0, 0)
    in_specs = [
        pl.BlockSpec((1, r_pad, cin), tile_map),
        pl.BlockSpec((9 * cin, cpad), const2),              # resident weights
        pl.BlockSpec((1, cpad), const2),                    # resident bias
        pl.BlockSpec((mt, 2), const2),                      # resident out-index
    ]
    inputs = [xt, wslab, bias, oidx]
    scratch = [pltpu.VMEM((mt, 9 * cin), jnp.bfloat16)]     # im2col slab
    if fuse_act:
        in_specs += [pl.BlockSpec((r_pad, 2), const2),      # resident in-index
                     pl.BlockSpec((1, cin), const2),        # resident scale
                     pl.BlockSpec((1, cin), const2)]        # resident shift
        inputs += [iidx, scale, shift]
        scratch += [pltpu.VMEM((r_pad, cin), jnp.bfloat16)]

    flops = 2 * G * mt * 9 * cin * cpad
    bytes_accessed = (xt.size * 2 + wslab.size * 2
                      + G * mt * cpad * 2 + G * 2 * cpad * 4)
    return pl.pallas_call(
        kernel,
        grid=(N, nt),
        in_specs=in_specs,
        out_specs=[pl.BlockSpec((1, mt, cpad), tile_map),
                   pl.BlockSpec((1, 2, cpad), tile_map)],
        out_shape=[jax.ShapeDtypeStruct((G, mt, cpad), jnp.bfloat16),
                   jax.ShapeDtypeStruct((G, 2, cpad), jnp.float32)],
        scratch_shapes=scratch,
        compiler_params=pltpu.CompilerParams(
            dimension_semantics=("parallel", "parallel"),
            vmem_limit_bytes=vmem_limit),
        cost_estimate=pl.CostEstimate(flops=flops, transcendentals=0,
                                      bytes_accessed=bytes_accessed),
    )(*inputs)


def _bn_scale_shift(stats, gamma, beta, count, cpad):
    """Combine per-tile sums into train-mode BN scale/shift (tiny XLA reduce)."""
    ssum = jnp.sum(stats[:, 0, :], axis=0)
    ssq = jnp.sum(stats[:, 1, :], axis=0)
    mean = ssum / count
    # TODO(synk): Welford-style combination would avoid E[x^2]-E[x]^2
    # cancellation for very large N*H*W.
    var = jnp.maximum(ssq / count - mean * mean, 0.0)
    g = jnp.pad(gamma, (0, cpad - gamma.shape[0]))
    b = jnp.pad(beta, (0, cpad - beta.shape[0]))
    scale = g * lax.rsqrt(var + EPS)
    shift = b - mean * scale
    return (scale.reshape(1, cpad).astype(jnp.float32),
            shift.reshape(1, cpad).astype(jnp.float32))


def _double_conv_nhwc(x_nhwc, p, row_tile=None):
    N, H, W, Cin = x_nhwc.shape
    Cout = p["w1"].shape[-1]
    cpad = _round_up(Cout, LANE)
    wp2 = W + 2

    cap = _vmem_capacity_bytes()
    th = row_tile if row_tile is not None else _choose_row_tile(
        N, H, wp2, Cin, cpad, cap)
    th = max(1, min(int(th), H))
    nt = -(-H // th)                    # last tile may be ragged (masked in-kernel)
    hp = nt * th
    G = N * nt
    mt = th * wp2
    r_pad = _round_up((th + 2) * wp2 + 2, SUB)

    need = max(_pass1_vmem_bytes(th, wp2, Cin, cpad, False),
               _pass1_vmem_bytes(th, wp2, cpad, cpad, True))
    vmem_limit = int(max(min(need * 1.3 + (8 << 20), cap * 0.8), 16 << 20))

    # lane-dense parameter slabs (tap-major rows match the in-kernel im2col)
    w1 = jnp.pad(p["w1"], ((0, 0), (0, 0), (0, 0), (0, cpad - Cout)))
    w1 = w1.reshape(9 * Cin, cpad).astype(jnp.bfloat16)
    b1 = jnp.pad(p["b1"], (0, cpad - Cout)).reshape(1, cpad).astype(jnp.float32)
    w2 = jnp.pad(p["w2"], ((0, 0), (0, 0), (0, cpad - Cout), (0, cpad - Cout)))
    w2 = w2.reshape(9 * cpad, cpad).astype(jnp.bfloat16)
    b2 = jnp.pad(p["b2"], (0, cpad - Cout)).reshape(1, cpad).astype(jnp.float32)

    # tiny resident index tables (flat position -> padded col / row), so the
    # kernels need no vector integer division and no per-tile mask DMA
    q = jnp.arange(r_pad, dtype=jnp.int32)
    iidx = jnp.stack([jnp.where(q < (th + 2) * wp2, q % wp2, -1), q // wp2],
                     axis=1)                                   # (R_pad, 2)
    m = jnp.arange(mt, dtype=jnp.int32)
    oidx = jnp.stack([m % wp2, m // wp2], axis=1)              # (Mt, 2)

    count = float(N * H * W)
    common = dict(N=N, nt=nt, mt=mt, r_pad=r_pad, cpad=cpad, wp2=wp2, w_img=W,
                  h_img=H, th=th, vmem_limit=vmem_limit)

    # ---------------- stage 1: conv1 + bias + BN1 statistics -----------------
    xp = jnp.pad(x_nhwc.astype(jnp.float32),
                 ((0, 0), (1, 1 + hp - H), (1, 1), (0, 0)))    # (N, hp+2, W+2, Cin)
    xt = _halo_row_tiles(xp, th, nt, r_pad)
    y1, st1 = _conv_stats_call(xt, w1, b1, oidx, None, None, None,
                               cin=Cin, fuse_act=False, **common)
    scale1, shift1 = _bn_scale_shift(st1, p["g1"], p["be1"], count, cpad)

    # --- stage 2: fused BN1 affine + ReLU (in kernel) + conv2 + BN2 stats -----
    # y1 is the PRE-BN conv-1 output; the halo regather below is pure bf16 data
    # movement, the BN affine + ReLU + padding masks run inside the kernel.
    y1_img = y1.reshape(N, hp, wp2, cpad)[:, :, :W, :]
    y1p = jnp.pad(y1_img, ((0, 0), (1, 1), (1, 1), (0, 0)))    # (N, hp+2, W+2, C)
    y1t = _halo_row_tiles(y1p, th, nt, r_pad)
    y2, st2 = _conv_stats_call(y1t, w2, b2, oidx, iidx, scale1, shift1,
                               cin=cpad, fuse_act=True, **common)
    scale2, shift2 = _bn_scale_shift(st2, p["g2"], p["be2"], count, cpad)

    # ---------- final epilogue: BN2 affine + ReLU, stripped NHWC output -------
    y2v = y2.reshape(G, th, wp2, cpad)                         # free (metadata)
    tile_map4 = lambda n, t: (n * nt + t, 0, 0, 0)
    out = pl.pallas_call(
        functools.partial(bn_relu_out_kernel, w_img=W, cout=Cout),
        grid=(N, nt),
        in_specs=[pl.BlockSpec((1, th, wp2, cpad), tile_map4),
                  pl.BlockSpec((1, cpad), lambda n, t: (0, 0)),
                  pl.BlockSpec((1, cpad), lambda n, t: (0, 0))],
        out_specs=pl.BlockSpec((1, th, W, Cout), tile_map4),
        out_shape=jax.ShapeDtypeStruct((G, th, W, Cout), jnp.float32),
        compiler_params=pltpu.CompilerParams(
            dimension_semantics=("parallel", "parallel"),
            vmem_limit_bytes=vmem_limit),
    )(y2v, scale2, shift2)

    return out.reshape(N, hp, W, Cout)[:, :H]                  # drop ragged rows


def double_conv(x_nchw, params, row_tile=None):
    """Forward pass of Double_Conv.  Input/output are NCHW like PyTorch."""
    x = jnp.transpose(x_nchw, (0, 2, 3, 1)).astype(jnp.float32)   # -> NHWC
    y = _double_conv_nhwc(x, params, row_tile)
    return jnp.transpose(y, (0, 3, 1, 2))                         # -> NCHW


# ------------------------------ parameter init ------------------------------ #
def init_params(key, in_channels, out_channels):
    k1, k2, k3, k4 = jax.random.split(key, 4)
    fan1 = 9 * in_channels
    fan2 = 9 * out_channels
    w1 = jax.random.uniform(k1, (3, 3, in_channels, out_channels),
                            jnp.float32, -1.0, 1.0) / jnp.sqrt(fan1)
    b1 = jax.random.uniform(k2, (out_channels,), jnp.float32,
                            -1.0, 1.0) / jnp.sqrt(fan1)
    w2 = jax.random.uniform(k3, (3, 3, out_channels, out_channels),
                            jnp.float32, -1.0, 1.0) / jnp.sqrt(fan2)
    b2 = jax.random.uniform(k4, (out_channels,), jnp.float32,
                            -1.0, 1.0) / jnp.sqrt(fan2)
    return {
        "w1": w1, "b1": b1,
        "g1": jnp.ones((out_channels,), jnp.float32),
        "be1": jnp.zeros((out_channels,), jnp.float32),
        "w2": w2, "b2": b2,
        "g2": jnp.ones((out_channels,), jnp.float32),
        "be2": jnp.zeros((out_channels,), jnp.float32),
    }


# --------------------------------- reference -------------------------------- #
def reference(x_nchw, p, *, match_kernel=False):
    """Pure-JAX reference (lax conv + train-mode BatchNorm + ReLU).

    match_kernel=True mirrors the kernel's quantization points (bf16 MXU inputs
    and bf16 storage of the inter-stage pre-BN activation) for a tight check;
    match_kernel=False is the strict-f32 PyTorch-semantics reference.
    """
    x = jnp.transpose(x_nchw, (0, 2, 3, 1)).astype(jnp.float32)
    mm_dt = jnp.bfloat16 if match_kernel else jnp.float32

    def block(x, w, b, g, be, last):
        y = jax.lax.conv_general_dilated(
            x.astype(mm_dt), w.astype(mm_dt), (1, 1), "SAME",
            dimension_numbers=("NHWC", "HWIO", "NHWC"),
            preferred_element_type=jnp.float32) + b
        m = jnp.mean(y, axis=(0, 1, 2))
        v = jnp.mean((y - m) ** 2, axis=(0, 1, 2))
        scale = g * lax.rsqrt(v + EPS)
        shift = be - m * scale
        if match_kernel and not last:
            y = y.astype(jnp.bfloat16).astype(jnp.float32)   # bf16 inter-stage
        return jnp.maximum(y * scale + shift, 0.0)

    y = block(x, p["w1"], p["b1"], p["g1"], p["be1"], last=False)
    y = block(y, p["w2"], p["b2"], p["g2"], p["be2"], last=True)
    return jnp.transpose(y, (0, 3, 1, 2))


# ----------------------------------- main ------------------------------------ #
if __name__ == "__main__":
    key = jax.random.PRNGKey(0)
    kx, kp = jax.random.split(key)

    N, Cin, Cout, H, W = 2, 4, 8, 16, 16
    x = jax.random.normal(kx, (N, Cin, H, W), jnp.float32)
    params = init_params(kp, Cin, Cout)

    # row_tile=6 -> 3 ragged row tiles per image: exercises the haloed row
    # tiling, the masked ragged last tile and the cross-tile BN reduction.
    fwd = jax.jit(functools.partial(double_conv, row_tile=6))
    out = jax.block_until_ready(fwd(x, params))
    assert out.shape == (N, Cout, H, W), out.shape

    # Tight check vs. a quantization-matched reference.
    ref_match = jax.block_until_ready(reference(x, params, match_kernel=True))
    err = float(jnp.max(jnp.abs(out - ref_match)))
    assert jnp.allclose(out, ref_match, atol=1e-2, rtol=1e-2), err

    # Loose sanity check vs. the strict-f32 PyTorch-semantics reference (the
    # only deviations are bf16 MXU inputs / bf16 inter-stage storage).
    ref_f32 = jax.block_until_ready(reference(x, params, match_kernel=False))
    err32 = float(jnp.max(jnp.abs(out - ref_f32)))
    assert jnp.allclose(out, ref_f32, atol=1e-1, rtol=1e-1), err32

    # Auto-chosen row tile (whole-image tiles at this size, even grid for v7x).
    out2 = jax.block_until_ready(jax.jit(double_conv)(x, params))
    assert jnp.allclose(out2, ref_match, atol=1e-2, rtol=1e-2), \
        float(jnp.max(jnp.abs(out2 - ref_match)))

    print("KERNEL_OK")
</pallas_src>

<mosaic_0001>
module attributes {stable_mosaic.version = 11 : i64} {
  func.func @conv_stats_kernel(%arg0: i32, %arg1: i32, %arg2: memref<1x152x4xbf16, #tpu.memory_space<vmem>>, %arg3: memref<36x128xbf16, #tpu.memory_space<vmem>>, %arg4: memref<1x128xf32, #tpu.memory_space<vmem>>, %arg5: memref<108x2xi32, #tpu.memory_space<vmem>>, %arg6: memref<1x108x128xbf16, #tpu.memory_space<vmem>>, %arg7: memref<1x2x128xf32, #tpu.memory_space<vmem>>, %arg8: memref<108x36xbf16, #tpu.memory_space<vmem>>) attributes {dimension_semantics = [#tpu.dimension_semantics<parallel>, #tpu.dimension_semantics<parallel>], iteration_bounds = array<i64: 2, 3>, scalar_prefetch = 0 : i64, scratch_operands = 1 : i64, tpu.core_type = #tpu.core_type<tc>, window_params = [{transform_indices = @transform_0, window_bounds = array<i64: 1, 152, 4>}, {pipeline_mode = #tpu.pipeline_mode<synchronous>, transform_indices = @transform_1, window_bounds = array<i64: 36, 128>}, {pipeline_mode = #tpu.pipeline_mode<synchronous>, transform_indices = @transform_2, window_bounds = array<i64: 1, 128>}, {pipeline_mode = #tpu.pipeline_mode<synchronous>, transform_indices = @transform_3, window_bounds = array<i64: 108, 2>}, {transform_indices = @transform_4, window_bounds = array<i64: 1, 108, 128>}, {transform_indices = @transform_5, window_bounds = array<i64: 1, 2, 128>}]} {
    %c0 = arith.constant 0 : index
    %c0_0 = arith.constant 0 : index
    %c0_1 = arith.constant 0 : index
    %0 = vector.load %arg2[%c0, %c0_0, %c0_1] : memref<1x152x4xbf16, #tpu.memory_space<vmem>>, vector<1x108x4xbf16>
    %1 = vector.shape_cast %0 : vector<1x108x4xbf16> to vector<108x4xbf16>
    %c0_2 = arith.constant 0 : index
    %c0_3 = arith.constant 0 : index
    %2 = vector.load %arg8[%c0_2, %c0_3] : memref<108x36xbf16, #tpu.memory_space<vmem>>, vector<108x4xbf16>
    tpu.vector_store %arg8[%c0_2, %c0_3], %1 {strides = array<i32>} : memref<108x36xbf16, #tpu.memory_space<vmem>>, vector<108x4xbf16>,
    %c0_4 = arith.constant 0 : index
    %c1 = arith.constant 1 : index
    %c0_5 = arith.constant 0 : index
    %3 = vector.load %arg2[%c0_4, %c1, %c0_5] : memref<1x152x4xbf16, #tpu.memory_space<vmem>>, vector<1x108x4xbf16>
    %4 = vector.shape_cast %3 : vector<1x108x4xbf16> to vector<108x4xbf16>
    %c0_6 = arith.constant 0 : index
    %c4 = arith.constant 4 : index
    %5 = vector.load %arg8[%c0_6, %c4] : memref<108x36xbf16, #tpu.memory_space<vmem>>, vector<108x4xbf16>
    tpu.vector_store %arg8[%c0_6, %c4], %4 {strides = array<i32>} : memref<108x36xbf16, #tpu.memory_space<vmem>>, vector<108x4xbf16>,
    %c0_7 = arith.constant 0 : index
    %c2 = arith.constant 2 : index
    %c0_8 = arith.constant 0 : index
    %6 = vector.load %arg2[%c0_7, %c2, %c0_8] : memref<1x152x4xbf16, #tpu.memory_space<vmem>>, vector<1x108x4xbf16>
    %7 = vector.shape_cast %6 : vector<1x108x4xbf16> to vector<108x4xbf16>
    %c0_9 = arith.constant 0 : index
    %c8 = arith.constant 8 : index
    %8 = vector.load %arg8[%c0_9, %c8] : memref<108x36xbf16, #tpu.memory_space<vmem>>, vector<108x4xbf16>
    tpu.vector_store %arg8[%c0_9, %c8], %7 {strides = array<i32>} : memref<108x36xbf16, #tpu.memory_space<vmem>>, vector<108x4xbf16>,
    %c0_10 = arith.constant 0 : index
    %c18 = arith.constant 18 : index
    %c0_11 = arith.constant 0 : index
    %9 = vector.load %arg2[%c0_10, %c18, %c0_11] : memref<1x152x4xbf16, #tpu.memory_space<vmem>>, vector<1x108x4xbf16>
    %10 = vector.shape_cast %9 : vector<1x108x4xbf16> to vector<108x4xbf16>
    %c0_12 = arith.constant 0 : index
    %c12 = arith.constant 12 : index
    %11 = vector.load %arg8[%c0_12, %c12] : memref<108x36xbf16, #tpu.memory_space<vmem>>, vector<108x4xbf16>
    tpu.vector_store %arg8[%c0_12, %c12], %10 {strides = array<i32>} : memref<108x36xbf16, #tpu.memory_space<vmem>>, vector<108x4xbf16>,
    %c0_13 = arith.constant 0 : index
    %c19 = arith.constant 19 : index
    %c0_14 = arith.constant 0 : index
    %12 = vector.load %arg2[%c0_13, %c19, %c0_14] : memref<1x152x4xbf16, #tpu.memory_space<vmem>>, vector<1x108x4xbf16>
    %13 = vector.shape_cast %12 : vector<1x108x4xbf16> to vector<108x4xbf16>
    %c0_15 = arith.constant 0 : index
    %c16 = arith.constant 16 : index
    %14 = vector.load %arg8[%c0_15, %c16] : memref<108x36xbf16, #tpu.memory_space<vmem>>, vector<108x4xbf16>
    tpu.vector_store %arg8[%c0_15, %c16], %13 {strides = array<i32>} : memref<108x36xbf16, #tpu.memory_space<vmem>>, vector<108x4xbf16>,
    %c0_16 = arith.constant 0 : index
    %c20 = arith.constant 20 : index
    %c0_17 = arith.constant 0 : index
    %15 = vector.load %arg2[%c0_16, %c20, %c0_17] : memref<1x152x4xbf16, #tpu.memory_space<vmem>>, vector<1x108x4xbf16>
    %16 = vector.shape_cast %15 : vector<1x108x4xbf16> to vector<108x4xbf16>
    %c0_18 = arith.constant 0 : index
    %c20_19 = arith.constant 20 : index
    %17 = vector.load %arg8[%c0_18, %c20_19] : memref<108x36xbf16, #tpu.memory_space<vmem>>, vector<108x4xbf16>
    tpu.vector_store %arg8[%c0_18, %c20_19], %16 {strides = array<i32>} : memref<108x36xbf16, #tpu.memory_space<vmem>>, vector<108x4xbf16>,
    %c0_20 = arith.constant 0 : index
    %c36 = arith.constant 36 : index
    %c0_21 = arith.constant 0 : index
    %18 = vector.load %arg2[%c0_20, %c36, %c0_21] : memref<1x152x4xbf16, #tpu.memory_space<vmem>>, vector<1x108x4xbf16>
    %19 = vector.shape_cast %18 : vector<1x108x4xbf16> to vector<108x4xbf16>
    %c0_22 = arith.constant 0 : index
    %c24 = arith.constant 24 : index
    %20 = vector.load %arg8[%c0_22, %c24] : memref<108x36xbf16, #tpu.memory_space<vmem>>, vector<108x4xbf16>
    tpu.vector_store %arg8[%c0_22, %c24], %19 {strides = array<i32>} : memref<108x36xbf16, #tpu.memory_space<vmem>>, vector<108x4xbf16>,
    %c0_23 = arith.constant 0 : index
    %c37 = arith.constant 37 : index
    %c0_24 = arith.constant 0 : index
    %21 = vector.load %arg2[%c0_23, %c37, %c0_24] : memref<1x152x4xbf16, #tpu.memory_space<vmem>>, vector<1x108x4xbf16>
    %22 = vector.shape_cast %21 : vector<1x108x4xbf16> to vector<108x4xbf16>
    %c0_25 = arith.constant 0 : index
    %c28 = arith.constant 28 : index
    %23 = vector.load %arg8[%c0_25, %c28] : memref<108x36xbf16, #tpu.memory_space<vmem>>, vector<108x4xbf16>
    tpu.vector_store %arg8[%c0_25, %c28], %22 {strides = array<i32>} : memref<108x36xbf16, #tpu.memory_space<vmem>>, vector<108x4xbf16>,
    %c0_26 = arith.constant 0 : index
    %c38 = arith.constant 38 : index
    %c0_27 = arith.constant 0 : index
    %24 = vector.load %arg2[%c0_26, %c38, %c0_27] : memref<1x152x4xbf16, #tpu.memory_space<vmem>>, vector<1x108x4xbf16>
    %25 = vector.shape_cast %24 : vector<1x108x4xbf16> to vector<108x4xbf16>
    %c0_28 = arith.constant 0 : index
    %c32 = arith.constant 32 : index
    %26 = vector.load %arg8[%c0_28, %c32] : memref<108x36xbf16, #tpu.memory_space<vmem>>, vector<108x4xbf16>
    tpu.vector_store %arg8[%c0_28, %c32], %25 {strides = array<i32>} : memref<108x36xbf16, #tpu.memory_space<vmem>>, vector<108x4xbf16>,
    %c0_29 = arith.constant 0 : index
    %c0_30 = arith.constant 0 : index
    %27 = vector.load %arg8[%c0_29, %c0_30] : memref<108x36xbf16, #tpu.memory_space<vmem>>, vector<108x36xbf16>
    %c0_31 = arith.constant 0 : index
    %c0_32 = arith.constant 0 : index
    %28 = vector.load %arg3[%c0_31, %c0_32] : memref<36x128xbf16, #tpu.memory_space<vmem>>, vector<36x128xbf16>
    %cst = arith.constant dense<0.000000e+00> : vector<108x128xf32>
    %29 = tpu.matmul %27, %28, %cst {dimension_numbers = #tpu.dot_dimension_numbers<[1], [0], [0], [1], [0, 0, 1, 1], [], []>} : vector<108x36xbf16>, vector<36x128xbf16>, vector<108x128xf32> -> vector<108x128xf32>
    %c0_33 = arith.constant 0 : index
    %c0_34 = arith.constant 0 : index
    %30 = vector.load %arg4[%c0_33, %c0_34] : memref<1x128xf32, #tpu.memory_space<vmem>>, vector<1x128xf32>
    %31 = vector.broadcast %30 : vector<1x128xf32> to vector<108x128xf32>
    %32 = arith.addf %29, %31 : vector<108x128xf32>
    %33 = arith.truncf %32 : vector<108x128xf32> to vector<108x128xbf16>
    %c0_35 = arith.constant 0 : index
    %c0_36 = arith.constant 0 : index
    %c0_37 = arith.constant 0 : index
    %34 = vector.load %arg6[%c0_35, %c0_36, %c0_37] : memref<1x108x128xbf16, #tpu.memory_space<vmem>>, vector<1x108x128xbf16>
    %35 = vector.shape_cast %34 : vector<1x108x128xbf16> to vector<108x128xbf16>
    %36 = vector.shape_cast %33 : vector<108x128xbf16> to vector<1x108x128xbf16>
    tpu.vector_store %arg6[%c0_35, %c0_36, %c0_37], %36 {strides = array<i32>} : memref<1x108x128xbf16, #tpu.memory_space<vmem>>, vector<1x108x128xbf16>,
    %c0_38 = arith.constant 0 : index
    %c0_39 = arith.constant 0 : index
    %37 = vector.load %arg5[%c0_38, %c0_39] : memref<108x2xi32, #tpu.memory_space<vmem>>, vector<108x1xi32>
    %c0_40 = arith.constant 0 : index
    %c1_41 = arith.constant 1 : index
    %38 = vector.load %arg5[%c0_40, %c1_41] : memref<108x2xi32, #tpu.memory_space<vmem>>, vector<108x1xi32>
    %c16_i32 = arith.constant 16 : i32
    %39 = vector.broadcast %c16_i32 : i32 to vector<108x1xi32>
    %40 = arith.cmpi slt, %37, %39 : vector<108x1xi32>
    %c6_i32 = arith.constant 6 : i32
    %41 = arith.muli %arg1, %c6_i32 : i32
    %42 = vector.broadcast %41 : i32 to vector<108x1xi32>
    %43 = arith.addi %42, %38 : vector<108x1xi32>
    %c16_i32_42 = arith.constant 16 : i32
    %44 = vector.broadcast %c16_i32_42 : i32 to vector<108x1xi32>
    %45 = arith.cmpi slt, %43, %44 : vector<108x1xi32>
    %46 = arith.andi %40, %45 : vector<108x1xi1>
    %47 = arith.extui %46 : vector<108x1xi1> to vector<108x1xi32>
    %48 = arith.sitofp %47 : vector<108x1xi32> to vector<108x1xf32>
    %49 = vector.broadcast %48 : vector<108x1xf32> to vector<108x128xf32>
    %50 = arith.mulf %32, %49 : vector<108x128xf32>
    %cst_43 = arith.constant dense<0.000000e+00> : vector<128xf32>
    %51 = vector.multi_reduction <add>, %50, %cst_43 [0] : vector<108x128xf32> to vector<128xf32>
    %52 = vector.shape_cast %51 : vector<128xf32> to vector<1x128xf32>
    %c0_44 = arith.constant 0 : index
    %c0_45 = arith.constant 0 : index
    %c0_46 = arith.constant 0 : index
    %53 = vector.load %arg7[%c0_44, %c0_45, %c0_46] : memref<1x2x128xf32, #tpu.memory_space<vmem>>, vector<1x1x128xf32>
    %54 = vector.shape_cast %53 : vector<1x1x128xf32> to vector<1x128xf32>
    %55 = vector.shape_cast %52 : vector<1x128xf32> to vector<1x1x128xf32>
    tpu.vector_store %arg7[%c0_44, %c0_45, %c0_46], %55 {strides = array<i32>} : memref<1x2x128xf32, #tpu.memory_space<vmem>>, vector<1x1x128xf32>,
    %56 = arith.mulf %50, %50 : vector<108x128xf32>
    %cst_47 = arith.constant dense<0.000000e+00> : vector<128xf32>
    %57 = vector.multi_reduction <add>, %56, %cst_47 [0] : vector<108x128xf32> to vector<128xf32>
    %58 = vector.shape_cast %57 : vector<128xf32> to vector<1x128xf32>
    %c0_48 = arith.constant 0 : index
    %c1_49 = arith.constant 1 : index
    %c0_50 = arith.constant 0 : index
    %59 = vector.load %arg7[%c0_48, %c1_49, %c0_50] : memref<1x2x128xf32, #tpu.memory_space<vmem>>, vector<1x1x128xf32>
    %60 = vector.shape_cast %59 : vector<1x1x128xf32> to vector<1x128xf32>
    %61 = vector.shape_cast %58 : vector<1x128xf32> to vector<1x1x128xf32>
    tpu.vector_store %arg7[%c0_48, %c1_49, %c0_50], %61 {strides = array<i32>} : memref<1x2x128xf32, #tpu.memory_space<vmem>>, vector<1x1x128xf32>,
    return
  }
  func.func @transform_0(%arg0: i32, %arg1: i32) -> (i32, i32, i32) {
    %c3_i32 = arith.constant 3 : i32
    %0 = arith.muli %arg0, %c3_i32 : i32
    %1 = arith.addi %0, %arg1 : i32
    %c0_i32 = arith.constant 0 : i32
    %c0_i32_0 = arith.constant 0 : i32
    %c0_i32_1 = arith.constant 0 : i32
    return %1, %c0_i32, %c0_i32_0 : i32, i32, i32
  }
  func.func @transform_1(%arg0: i32, %arg1: i32) -> (i32, i32) {
    %c0_i32 = arith.constant 0 : i32
    %c0_i32_0 = arith.constant 0 : i32
    %c0_i32_1 = arith.constant 0 : i32
    return %c0_i32, %c0_i32_0 : i32, i32
  }
  func.func @transform_2(%arg0: i32, %arg1: i32) -> (i32, i32) {
    %c0_i32 = arith.constant 0 : i32
    %c0_i32_0 = arith.constant 0 : i32
    %c0_i32_1 = arith.constant 0 : i32
    return %c0_i32, %c0_i32_0 : i32, i32
  }
  func.func @transform_3(%arg0: i32, %arg1: i32) -> (i32, i32) {
    %c0_i32 = arith.constant 0 : i32
    %c0_i32_0 = arith.constant 0 : i32
    %c0_i32_1 = arith.constant 0 : i32
    return %c0_i32, %c0_i32_0 : i32, i32
  }
  func.func @transform_4(%arg0: i32, %arg1: i32) -> (i32, i32, i32) {
    %c3_i32 = arith.constant 3 : i32
    %0 = arith.muli %arg0, %c3_i32 : i32
    %1 = arith.addi %0, %arg1 : i32
    %c0_i32 = arith.constant 0 : i32
    %c0_i32_0 = arith.constant 0 : i32
    %c0_i32_1 = arith.constant 0 : i32
    return %1, %c0_i32, %c0_i32_0 : i32, i32, i32
  }
  func.func @transform_5(%arg0: i32, %arg1: i32) -> (i32, i32, i32) {
    %c3_i32 = arith.constant 3 : i32
    %0 = arith.muli %arg0, %c3_i32 : i32
    %1 = arith.addi %0, %arg1 : i32
    %c0_i32 = arith.constant 0 : i32
    %c0_i32_0 = arith.constant 0 : i32
    %c0_i32_1 = arith.constant 0 : i32
    return %1, %c0_i32, %c0_i32_0 : i32, i32, i32
  }
}

module attributes {stable_mosaic.version = 11 : i64} {
  func.func @bn_relu_out_kernel(%arg0: i32, %arg1: i32, %arg2: memref<1x6x18x128xbf16, #tpu.memory_space<vmem>>, %arg3: memref<1x128xf32, #tpu.memory_space<vmem>>, %arg4: memref<1x128xf32, #tpu.memory_space<vmem>>, %arg5: memref<1x6x16x8xf32, #tpu.memory_space<vmem>>) attributes {dimension_semantics = [#tpu.dimension_semantics<parallel>, #tpu.dimension_semantics<parallel>], iteration_bounds = array<i64: 2, 3>, scalar_prefetch = 0 : i64, scratch_operands = 0 : i64, tpu.core_type = #tpu.core_type<tc>, window_params = [{transform_indices = @transform_0, window_bounds = array<i64: 1, 6, 18, 128>}, {pipeline_mode = #tpu.pipeline_mode<synchronous>, transform_indices = @transform_1, window_bounds = array<i64: 1, 128>}, {pipeline_mode = #tpu.pipeline_mode<synchronous>, transform_indices = @transform_2, window_bounds = array<i64: 1, 128>}, {transform_indices = @transform_3, window_bounds = array<i64: 1, 6, 16, 8>}]} {
    %c0 = arith.constant 0 : index
    %c0_0 = arith.constant 0 : index
    %c0_1 = arith.constant 0 : index
    %c0_2 = arith.constant 0 : index
    %0 = vector.load %arg2[%c0, %c0_0, %c0_1, %c0_2] : memref<1x6x18x128xbf16, #tpu.memory_space<vmem>>, vector<1x6x16x8xbf16>
    %1 = vector.shape_cast %0 : vector<1x6x16x8xbf16> to vector<6x16x8xbf16>
    %2 = arith.extf %1 : vector<6x16x8xbf16> to vector<6x16x8xf32>
    %c0_3 = arith.constant 0 : index
    %c0_4 = arith.constant 0 : index
    %3 = vector.load %arg3[%c0_3, %c0_4] : memref<1x128xf32, #tpu.memory_space<vmem>>, vector<1x8xf32>
    %4 = vector.shape_cast %3 : vector<1x8xf32> to vector<1x1x8xf32>
    %5 = vector.broadcast %4 : vector<1x1x8xf32> to vector<6x16x8xf32>
    %6 = arith.mulf %2, %5 : vector<6x16x8xf32>
    %c0_5 = arith.constant 0 : index
    %c0_6 = arith.constant 0 : index
    %7 = vector.load %arg4[%c0_5, %c0_6] : memref<1x128xf32, #tpu.memory_space<vmem>>, vector<1x8xf32>
    %8 = vector.shape_cast %7 : vector<1x8xf32> to vector<1x1x8xf32>
    %9 = vector.broadcast %8 : vector<1x1x8xf32> to vector<6x16x8xf32>
    %10 = arith.addf %6, %9 : vector<6x16x8xf32>
    %cst = arith.constant 0.000000e+00 : f32
    %11 = vector.broadcast %cst : f32 to vector<6x16x8xf32>
    %12 = arith.maximumf %10, %11 : vector<6x16x8xf32>
    %c0_7 = arith.constant 0 : index
    %c0_8 = arith.constant 0 : index
    %c0_9 = arith.constant 0 : index
    %c0_10 = arith.constant 0 : index
    %13 = vector.load %arg5[%c0_7, %c0_8, %c0_9, %c0_10] : memref<1x6x16x8xf32, #tpu.memory_space<vmem>>, vector<1x6x16x8xf32>
    %14 = vector.shape_cast %13 : vector<1x6x16x8xf32> to vector<6x16x8xf32>
    %15 = vector.shape_cast %12 : vector<6x16x8xf32> to vector<1x6x16x8xf32>
    tpu.vector_store %arg5[%c0_7, %c0_8, %c0_9, %c0_10], %15 {strides = array<i32>} : memref<1x6x16x8xf32, #tpu.memory_space<vmem>>, vector<1x6x16x8xf32>,
    return
  }
  func.func @transform_0(%arg0: i32, %arg1: i32) -> (i32, i32, i32, i32) {
    %c3_i32 = arith.constant 3 : i32
    %0 = arith.muli %arg0, %c3_i32 : i32
    %1 = arith.addi %0, %arg1 : i32
    %c0_i32 = arith.constant 0 : i32
    %c0_i32_0 = arith.constant 0 : i32
    %c0_i32_1 = arith.constant 0 : i32
    %c0_i32_2 = arith.constant 0 : i32
    return %1, %c0_i32, %c0_i32_0, %c0_i32_1 : i32, i32, i32, i32
  }
  func.func @transform_1(%arg0: i32, %arg1: i32) -> (i32, i32) {
    %c0_i32 = arith.constant 0 : i32
    %c0_i32_0 = arith.constant 0 : i32
    %c0_i32_1 = arith.constant 0 : i32
    return %c0_i32, %c0_i32_0 : i32, i32
  }
  func.func @transform_2(%arg0: i32, %arg1: i32) -> (i32, i32) {
    %c0_i32 = arith.constant 0 : i32
    %c0_i32_0 = arith.constant 0 : i32
    %c0_i32_1 = arith.constant 0 : i32
    return %c0_i32, %c0_i32_0 : i32, i32
  }
  func.func @transform_3(%arg0: i32, %arg1: i32) -> (i32, i32, i32, i32) {
    %c3_i32 = arith.constant 3 : i32
    %0 = arith.muli %arg0, %c3_i32 : i32
    %1 = arith.addi %0, %arg1 : i32
    %c0_i32 = arith.constant 0 : i32
    %c0_i32_0 = arith.constant 0 : i32
    %c0_i32_1 = arith.constant 0 : i32
    %c0_i32_2 = arith.constant 0 : i32
    return %1, %c0_i32, %c0_i32_0, %c0_i32_1 : i32, i32, i32, i32
  }
}

module attributes {stable_mosaic.version = 11 : i64} {
  func.func @conv_stats_kernel(%arg0: i32, %arg1: i32, %arg2: memref<1x152x128xbf16, #tpu.memory_space<vmem>>, %arg3: memref<1152x128xbf16, #tpu.memory_space<vmem>>, %arg4: memref<1x128xf32, #tpu.memory_space<vmem>>, %arg5: memref<108x2xi32, #tpu.memory_space<vmem>>, %arg6: memref<152x2xi32, #tpu.memory_space<vmem>>, %arg7: memref<1x128xf32, #tpu.memory_space<vmem>>, %arg8: memref<1x128xf32, #tpu.memory_space<vmem>>, %arg9: memref<1x108x128xbf16, #tpu.memory_space<vmem>>, %arg10: memref<1x2x128xf32, #tpu.memory_space<vmem>>, %arg11: memref<108x1152xbf16, #tpu.memory_space<vmem>>, %arg12: memref<152x128xbf16, #tpu.memory_space<vmem>>) attributes {dimension_semantics = [#tpu.dimension_semantics<parallel>, #tpu.dimension_semantics<parallel>], iteration_bounds = array<i64: 2, 3>, scalar_prefetch = 0 : i64, scratch_operands = 2 : i64, tpu.core_type = #tpu.core_type<tc>, window_params = [{transform_indices = @transform_0, window_bounds = array<i64: 1, 152, 128>}, {pipeline_mode = #tpu.pipeline_mode<synchronous>, transform_indices = @transform_1, window_bounds = array<i64: 1152, 128>}, {pipeline_mode = #tpu.pipeline_mode<synchronous>, transform_indices = @transform_2, window_bounds = array<i64: 1, 128>}, {pipeline_mode = #tpu.pipeline_mode<synchronous>, transform_indices = @transform_3, window_bounds = array<i64: 108, 2>}, {pipeline_mode = #tpu.pipeline_mode<synchronous>, transform_indices = @transform_4, window_bounds = array<i64: 152, 2>}, {pipeline_mode = #tpu.pipeline_mode<synchronous>, transform_indices = @transform_5, window_bounds = array<i64: 1, 128>}, {pipeline_mode = #tpu.pipeline_mode<synchronous>, transform_indices = @transform_6, window_bounds = array<i64: 1, 128>}, {transform_indices = @transform_7, window_bounds = array<i64: 1, 108, 128>}, {transform_indices = @transform_8, window_bounds = array<i64: 1, 2, 128>}]} {
    %c0 = arith.constant 0 : index
    %c0_0 = arith.constant 0 : index
    %0 = vector.load %arg6[%c0, %c0_0] : memref<152x2xi32, #tpu.memory_space<vmem>>, vector<152x1xi32>
    %c6_i32 = arith.constant 6 : i32
    %1 = arith.muli %arg1, %c6_i32 : i32
    %c0_1 = arith.constant 0 : index
    %c1 = arith.constant 1 : index
    %2 = vector.load %arg6[%c0_1, %c1] : memref<152x2xi32, #tpu.memory_space<vmem>>, vector<152x1xi32>
    %3 = vector.broadcast %1 : i32 to vector<152x1xi32>
    %4 = arith.addi %3, %2 : vector<152x1xi32>
    %c1_i32 = arith.constant 1 : i32
    %5 = vector.broadcast %c1_i32 : i32 to vector<152x1xi32>
    %6 = arith.cmpi sge, %0, %5 : vector<152x1xi32>
    %c16_i32 = arith.constant 16 : i32
    %7 = vector.broadcast %c16_i32 : i32 to vector<152x1xi32>
    %8 = arith.cmpi sle, %0, %7 : vector<152x1xi32>
    %9 = arith.andi %6, %8 : vector<152x1xi1>
    %c1_i32_2 = arith.constant 1 : i32
    %10 = vector.broadcast %c1_i32_2 : i32 to vector<152x1xi32>
    %11 = arith.cmpi sge, %4, %10 : vector<152x1xi32>
    %12 = arith.andi %9, %11 : vector<152x1xi1>
    %c16_i32_3 = arith.constant 16 : i32
    %13 = vector.broadcast %c16_i32_3 : i32 to vector<152x1xi32>
    %14 = arith.cmpi sle, %4, %13 : vector<152x1xi32>
    %15 = arith.andi %12, %14 : vector<152x1xi1>
    %c0_4 = arith.constant 0 : index
    %c0_5 = arith.constant 0 : index
    %c0_6 = arith.constant 0 : index
    %16 = vector.load %arg2[%c0_4, %c0_5, %c0_6] : memref<1x152x128xbf16, #tpu.memory_space<vmem>>, vector<1x152x128xbf16>
    %17 = vector.shape_cast %16 : vector<1x152x128xbf16> to vector<152x128xbf16>
    %18 = arith.extf %17 : vector<152x128xbf16> to vector<152x128xf32>
    %c0_7 = arith.constant 0 : index
    %c0_8 = arith.constant 0 : index
    %19 = vector.load %arg7[%c0_7, %c0_8] : memref<1x128xf32, #tpu.memory_space<vmem>>, vector<1x128xf32>
    %20 = vector.broadcast %19 : vector<1x128xf32> to vector<152x128xf32>
    %21 = arith.mulf %18, %20 : vector<152x128xf32>
    %c0_9 = arith.constant 0 : index
    %c0_10 = arith.constant 0 : index
    %22 = vector.load %arg8[%c0_9, %c0_10] : memref<1x128xf32, #tpu.memory_space<vmem>>, vector<1x128xf32>
    %23 = vector.broadcast %22 : vector<1x128xf32> to vector<152x128xf32>
    %24 = arith.addf %21, %23 : vector<152x128xf32>
    %cst = arith.constant 0.000000e+00 : f32
    %25 = vector.broadcast %cst : f32 to vector<152x128xf32>
    %26 = arith.maximumf %24, %25 : vector<152x128xf32>
    %cst_11 = arith.constant 0.000000e+00 : f32
    %27 = vector.shape_cast %15 : vector<152x1xi1> to vector<152x1xi1>
    %28 = vector.broadcast %27 : vector<152x1xi1> to vector<152x128xi1>
    %29 = vector.broadcast %cst_11 : f32 to vector<152x128xf32>
    %30 = arith.select %28, %26, %29 : vector<152x128xi1>, vector<152x128xf32>
    %31 = arith.truncf %30 : vector<152x128xf32> to vector<152x128xbf16>
    %c0_12 = arith.constant 0 : index
    %c0_13 = arith.constant 0 : index
    %32 = vector.load %arg12[%c0_12, %c0_13] : memref<152x128xbf16, #tpu.memory_space<vmem>>, vector<152x128xbf16>
    tpu.vector_store %arg12[%c0_12, %c0_13], %31 {strides = array<i32>} : memref<152x128xbf16, #tpu.memory_space<vmem>>, vector<152x128xbf16>,
    %c0_14 = arith.constant 0 : index
    %c0_15 = arith.constant 0 : index
    %33 = vector.load %arg12[%c0_14, %c0_15] : memref<152x128xbf16, #tpu.memory_space<vmem>>, vector<108x128xbf16>
    %c0_16 = arith.constant 0 : index
    %c0_17 = arith.constant 0 : index
    %34 = vector.load %arg11[%c0_16, %c0_17] : memref<108x1152xbf16, #tpu.memory_space<vmem>>, vector<108x128xbf16>
    tpu.vector_store %arg11[%c0_16, %c0_17], %33 {strides = array<i32>} : memref<108x1152xbf16, #tpu.memory_space<vmem>>, vector<108x128xbf16>,
    %c1_18 = arith.constant 1 : index
    %c0_19 = arith.constant 0 : index
    %35 = vector.load %arg12[%c1_18, %c0_19] : memref<152x128xbf16, #tpu.memory_space<vmem>>, vector<108x128xbf16>
    %c0_20 = arith.constant 0 : index
    %c128 = arith.constant 128 : index
    %36 = vector.load %arg11[%c0_20, %c128] : memref<108x1152xbf16, #tpu.memory_space<vmem>>, vector<108x128xbf16>
    tpu.vector_store %arg11[%c0_20, %c128], %35 {strides = array<i32>} : memref<108x1152xbf16, #tpu.memory_space<vmem>>, vector<108x128xbf16>,
    %c2 = arith.constant 2 : index
    %c0_21 = arith.constant 0 : index
    %37 = vector.load %arg12[%c2, %c0_21] : memref<152x128xbf16, #tpu.memory_space<vmem>>, vector<108x128xbf16>
    %c0_22 = arith.constant 0 : index
    %c256 = arith.constant 256 : index
    %38 = vector.load %arg11[%c0_22, %c256] : memref<108x1152xbf16, #tpu.memory_space<vmem>>, vector<108x128xbf16>
    tpu.vector_store %arg11[%c0_22, %c256], %37 {strides = array<i32>} : memref<108x1152xbf16, #tpu.memory_space<vmem>>, vector<108x128xbf16>,
    %c18 = arith.constant 18 : index
    %c0_23 = arith.constant 0 : index
    %39 = vector.load %arg12[%c18, %c0_23] : memref<152x128xbf16, #tpu.memory_space<vmem>>, vector<108x128xbf16>
    %c0_24 = arith.constant 0 : index
    %c384 = arith.constant 384 : index
    %40 = vector.load %arg11[%c0_24, %c384] : memref<108x1152xbf16, #tpu.memory_space<vmem>>, vector<108x128xbf16>
    tpu.vector_store %arg11[%c0_24, %c384], %39 {strides = array<i32>} : memref<108x1152xbf16, #tpu.memory_space<vmem>>, vector<108x128xbf16>,
    %c19 = arith.constant 19 : index
    %c0_25 = arith.constant 0 : index
    %41 = vector.load %arg12[%c19, %c0_25] : memref<152x128xbf16, #tpu.memory_space<vmem>>, vector<108x128xbf16>
    %c0_26 = arith.constant 0 : index
    %c512 = arith.constant 512 : index
    %42 = vector.load %arg11[%c0_26, %c512] : memref<108x1152xbf16, #tpu.memory_space<vmem>>, vector<108x128xbf16>
    tpu.vector_store %arg11[%c0_26, %c512], %41 {strides = array<i32>} : memref<108x1152xbf16, #tpu.memory_space<vmem>>, vector<108x128xbf16>,
    %c20 = arith.constant 20 : index
    %c0_27 = arith.constant 0 : index
    %43 = vector.load %arg12[%c20, %c0_27] : memref<152x128xbf16, #tpu.memory_space<vmem>>, vector<108x128xbf16>
    %c0_28 = arith.constant 0 : index
    %c640 = arith.constant 640 : index
    %44 = vector.load %arg11[%c0_28, %c640] : memref<108x1152xbf16, #tpu.memory_space<vmem>>, vector<108x128xbf16>
    tpu.vector_store %arg11[%c0_28, %c640], %43 {strides = array<i32>} : memref<108x1152xbf16, #tpu.memory_space<vmem>>, vector<108x128xbf16>,
    %c36 = arith.constant 36 : index
    %c0_29 = arith.constant 0 : index
    %45 = vector.load %arg12[%c36, %c0_29] : memref<152x128xbf16, #tpu.memory_space<vmem>>, vector<108x128xbf16>
    %c0_30 = arith.constant 0 : index
    %c768 = arith.constant 768 : index
    %46 = vector.load %arg11[%c0_30, %c768] : memref<108x1152xbf16, #tpu.memory_space<vmem>>, vector<108x128xbf16>
    tpu.vector_store %arg11[%c0_30, %c768], %45 {strides = array<i32>} : memref<108x1152xbf16, #tpu.memory_space<vmem>>, vector<108x128xbf16>,
    %c37 = arith.constant 37 : index
    %c0_31 = arith.constant 0 : index
    %47 = vector.load %arg12[%c37, %c0_31] : memref<152x128xbf16, #tpu.memory_space<vmem>>, vector<108x128xbf16>
    %c0_32 = arith.constant 0 : index
    %c896 = arith.constant 896 : index
    %48 = vector.load %arg11[%c0_32, %c896] : memref<108x1152xbf16, #tpu.memory_space<vmem>>, vector<108x128xbf16>
    tpu.vector_store %arg11[%c0_32, %c896], %47 {strides = array<i32>} : memref<108x1152xbf16, #tpu.memory_space<vmem>>, vector<108x128xbf16>,
    %c38 = arith.constant 38 : index
    %c0_33 = arith.constant 0 : index
    %49 = vector.load %arg12[%c38, %c0_33] : memref<152x128xbf16, #tpu.memory_space<vmem>>, vector<108x128xbf16>
    %c0_34 = arith.constant 0 : index
    %c1024 = arith.constant 1024 : index
    %50 = vector.load %arg11[%c0_34, %c1024] : memref<108x1152xbf16, #tpu.memory_space<vmem>>, vector<108x128xbf16>
    tpu.vector_store %arg11[%c0_34, %c1024], %49 {strides = array<i32>} : memref<108x1152xbf16, #tpu.memory_space<vmem>>, vector<108x128xbf16>,
    %c0_35 = arith.constant 0 : index
    %c0_36 = arith.constant 0 : index
    %51 = vector.load %arg11[%c0_35, %c0_36] : memref<108x1152xbf16, #tpu.memory_space<vmem>>, vector<108x1152xbf16>
    %c0_37 = arith.constant 0 : index
    %c0_38 = arith.constant 0 : index
    %52 = vector.load %arg3[%c0_37, %c0_38] : memref<1152x128xbf16, #tpu.memory_space<vmem>>, vector<1152x128xbf16>
    %cst_39 = arith.constant dense<0.000000e+00> : vector<108x128xf32>
    %53 = tpu.matmul %51, %52, %cst_39 {dimension_numbers = #tpu.dot_dimension_numbers<[1], [0], [0], [1], [0, 0, 1, 1], [], []>} : vector<108x1152xbf16>, vector<1152x128xbf16>, vector<108x128xf32> -> vector<108x128xf32>
    %c0_40 = arith.constant 0 : index
    %c0_41 = arith.constant 0 : index
    %54 = vector.load %arg4[%c0_40, %c0_41] : memref<1x128xf32, #tpu.memory_space<vmem>>, vector<1x128xf32>
    %55 = vector.broadcast %54 : vector<1x128xf32> to vector<108x128xf32>
    %56 = arith.addf %53, %55 : vector<108x128xf32>
    %57 = arith.truncf %56 : vector<108x128xf32> to vector<108x128xbf16>
    %c0_42 = arith.constant 0 : index
    %c0_43 = arith.constant 0 : index
    %c0_44 = arith.constant 0 : index
    %58 = vector.load %arg9[%c0_42, %c0_43, %c0_44] : memref<1x108x128xbf16, #tpu.memory_space<vmem>>, vector<1x108x128xbf16>
    %59 = vector.shape_cast %58 : vector<1x108x128xbf16> to vector<108x128xbf16>
    %60 = vector.shape_cast %57 : vector<108x128xbf16> to vector<1x108x128xbf16>
    tpu.vector_store %arg9[%c0_42, %c0_43, %c0_44], %60 {strides = array<i32>} : memref<1x108x128xbf16, #tpu.memory_space<vmem>>, vector<1x108x128xbf16>,
    %c0_45 = arith.constant 0 : index
    %c0_46 = arith.constant 0 : index
    %61 = vector.load %arg5[%c0_45, %c0_46] : memref<108x2xi32, #tpu.memory_space<vmem>>, vector<108x1xi32>
    %c0_47 = arith.constant 0 : index
    %c1_48 = arith.constant 1 : index
    %62 = vector.load %arg5[%c0_47, %c1_48] : memref<108x2xi32, #tpu.memory_space<vmem>>, vector<108x1xi32>
    %c16_i32_49 = arith.constant 16 : i32
    %63 = vector.broadcast %c16_i32_49 : i32 to vector<108x1xi32>
    %64 = arith.cmpi slt, %61, %63 : vector<108x1xi32>
    %c6_i32_50 = arith.constant 6 : i32
    %65 = arith.muli %arg1, %c6_i32_50 : i32
    %66 = vector.broadcast %65 : i32 to vector<108x1xi32>
    %67 = arith.addi %66, %62 : vector<108x1xi32>
    %c16_i32_51 = arith.constant 16 : i32
    %68 = vector.broadcast %c16_i32_51 : i32 to vector<108x1xi32>
    %69 = arith.cmpi slt, %67, %68 : vector<108x1xi32>
    %70 = arith.andi %64, %69 : vector<108x1xi1>
    %71 = arith.extui %70 : vector<108x1xi1> to vector<108x1xi32>
    %72 = arith.sitofp %71 : vector<108x1xi32> to vector<108x1xf32>
    %73 = vector.broadcast %72 : vector<108x1xf32> to vector<108x128xf32>
    %74 = arith.mulf %56, %73 : vector<108x128xf32>
    %cst_52 = arith.constant dense<0.000000e+00> : vector<128xf32>
    %75 = vector.multi_reduction <add>, %74, %cst_52 [0] : vector<108x128xf32> to vector<128xf32>
    %76 = vector.shape_cast %75 : vector<128xf32> to vector<1x128xf32>
    %c0_53 = arith.constant 0 : index
    %c0_54 = arith.constant 0 : index
    %c0_55 = arith.constant 0 : index
    %77 = vector.load %arg10[%c0_53, %c0_54, %c0_55] : memref<1x2x128xf32, #tpu.memory_space<vmem>>, vector<1x1x128xf32>
    %78 = vector.shape_cast %77 : vector<1x1x128xf32> to vector<1x128xf32>
    %79 = vector.shape_cast %76 : vector<1x128xf32> to vector<1x1x128xf32>
    tpu.vector_store %arg10[%c0_53, %c0_54, %c0_55], %79 {strides = array<i32>} : memref<1x2x128xf32, #tpu.memory_space<vmem>>, vector<1x1x128xf32>,
    %80 = arith.mulf %74, %74 : vector<108x128xf32>
    %cst_56 = arith.constant dense<0.000000e+00> : vector<128xf32>
    %81 = vector.multi_reduction <add>, %80, %cst_56 [0] : vector<108x128xf32> to vector<128xf32>
    %82 = vector.shape_cast %81 : vector<128xf32> to vector<1x128xf32>
    %c0_57 = arith.constant 0 : index
    %c1_58 = arith.constant 1 : index
    %c0_59 = arith.constant 0 : index
    %83 = vector.load %arg10[%c0_57, %c1_58, %c0_59] : memref<1x2x128xf32, #tpu.memory_space<vmem>>, vector<1x1x128xf32>
    %84 = vector.shape_cast %83 : vector<1x1x128xf32> to vector<1x128xf32>
    %85 = vector.shape_cast %82 : vector<1x128xf32> to vector<1x1x128xf32>
    tpu.vector_store %arg10[%c0_57, %c1_58, %c0_59], %85 {strides = array<i32>} : memref<1x2x128xf32, #tpu.memory_space<vmem>>, vector<1x1x128xf32>,
    return
  }
  func.func @transform_0(%arg0: i32, %arg1: i32) -> (i32, i32, i32) {
    %c3_i32 = arith.constant 3 : i32
    %0 = arith.muli %arg0, %c3_i32 : i32
    %1 = arith.addi %0, %arg1 : i32
    %c0_i32 = arith.constant 0 : i32
    %c0_i32_0 = arith.constant 0 : i32
    %c0_i32_1 = arith.constant 0 : i32
    return %1, %c0_i32, %c0_i32_0 : i32, i32, i32
  }
  func.func @transform_1(%arg0: i32, %arg1: i32) -> (i32, i32) {
    %c0_i32 = arith.constant 0 : i32
    %c0_i32_0 = arith.constant 0 : i32
    %c0_i32_1 = arith.constant 0 : i32
    return %c0_i32, %c0_i32_0 : i32, i32
  }
  func.func @transform_2(%arg0: i32, %arg1: i32) -> (i32, i32) {
    %c0_i32 = arith.constant 0 : i32
    %c0_i32_0 = arith.constant 0 : i32
    %c0_i32_1 = arith.constant 0 : i32
    return %c0_i32, %c0_i32_0 : i32, i32
  }
  func.func @transform_3(%arg0: i32, %arg1: i32) -> (i32, i32) {
    %c0_i32 = arith.constant 0 : i32
    %c0_i32_0 = arith.constant 0 : i32
    %c0_i32_1 = arith.constant 0 : i32
    return %c0_i32, %c0_i32_0 : i32, i32
  }
  func.func @transform_4(%arg0: i32, %arg1: i32) -> (i32, i32) {
    %c0_i32 = arith.constant 0 : i32
    %c0_i32_0 = arith.constant 0 : i32
    %c0_i32_1 = arith.constant 0 : i32
    return %c0_i32, %c0_i32_0 : i32, i32
  }
  func.func @transform_5(%arg0: i32, %arg1: i32) -> (i32, i32) {
    %c0_i32 = arith.constant 0 : i32
    %c0_i32_0 = arith.constant 0 : i32
    %c0_i32_1 = arith.constant 0 : i32
    return %c0_i32, %c0_i32_0 : i32, i32
  }
  func.func @transform_6(%arg0: i32, %arg1: i32) -> (i32, i32) {
    %c0_i32 = arith.constant 0 : i32
    %c0_i32_0 = arith.constant 0 : i32
    %c0_i32_1 = arith.constant 0 : i32
    return %c0_i32, %c0_i32_0 : i32, i32
  }
  func.func @transform_7(%arg0: i32, %arg1: i32) -> (i32, i32, i32) {
    %c3_i32 = arith.constant 3 : i32
    %0 = arith.muli %arg0, %c3_i32 : i32
    %1 = arith.addi %0, %arg1 : i32
    %c0_i32 = arith.constant 0 : i32
    %c0_i32_0 = arith.constant 0 : i32
    %c0_i32_1 = arith.constant 0 : i32
    return %1, %c0_i32, %c0_i32_0 : i32, i32, i32
  }
  func.func @transform_8(%arg0: i32, %arg1: i32) -> (i32, i32, i32) {
    %c3_i32 = arith.constant 3 : i32
    %0 = arith.muli %arg0, %c3_i32 : i32
    %1 = arith.addi %0, %arg1 : i32
    %c0_i32 = arith.constant 0 : i32
    %c0_i32_0 = arith.constant 0 : i32
    %c0_i32_1 = arith.constant 0 : i32
    return %1, %c0_i32, %c0_i32_0 : i32, i32, i32
  }
}

</mosaic_0001>

<bundles_post_ra>
// kernel: double_conv.3
= control target key start
LH: loop header
LB: loop body
LE: loop exit
PB: predicated region body
PF: predicated region fallthrough
CT: control target
= control target key end

     0   :  { %s2620_s18 = smov 0   ;;  %s2622_s19 = smov 0   ;;  %s3843_s0 = inlined_call_operand.vmem [shape: bf16[6,152,4], index: 0, kind: input, shape index: {}]   ;;  %s3844_s1 = inlined_call_operand.vmem [shape: bf16[36,128], index: 1, kind: input, shape index: {}]   ;;  %s3845_s2 = inlined_call_operand.vmem [shape: f32[1,128], index: 2, kind: input, shape index: {}]   ;;  %s3846_s3 = inlined_call_operand.vmem [shape: s32[108,2], index: 3, kind: input, shape index: {}]   ;;  %s3847_s4 = inlined_call_operand.vmem [shape: bf16[6,108,128], index: 4, kind: output, shape index: {0}]   ;;  %s3848_s5 = inlined_call_operand.vmem [shape: f32[6,2,128], index: 5, kind: output, shape index: {1}]  }
   0x1   :  { %s2624_s20 = smov 0   ;;  %s2626_s21 = smov 0  }
   0x2   :  { %s2628_s22 = smov 0  }
   0x3 LB: > { %s25_s23 = sadd.s32 1, %s2568_s20  ;;  %s28_s24 = sadd.s32 1, %s2572_s21  ;;  %s2576_s22 = sphi %s2628_s22, %s16_s22   ;;  %s2572_s21 = sphi %s2626_s21, %s3887_s21   ;;  %s2568_s20 = sphi %s2624_s20, %s3886_s20   ;;  %s2564_s19 = sphi %s2622_s19, %s3885_s19   ;;  %s2560_s18 = sphi %s2620_s18, %s3884_s18  }
   0x4   : > { %p26_p0 = scmp.ge.s32.totalorder %s25_s23, 3  ;;  %p2281_p1 = scmp.ge.s32.totalorder %s2576_s22, 1 }
   0x5   : > { %p218_p2 = scmp.lt.s32.totalorder %s2576_s22, 7 }
   0x6   : > { %s3889_s23 = smov (%p26_p0, %s25_s23), 0  ;;  %s3891_s24 = smov (!%p26_p0, %s28_s24), %s2572_s21 }
   0x7   : > { %p219_p3 = pnand %p2281_p1, %p218_p2  ;;  %p30_p4 = scmp.ge.s32.totalorder %s3891_s24, 2 }
   0x8   : > { %s256_s25 = smul.u32 (!%p219_p3), 3, %s2564_s19  ;;  %s2578_s6 = smov (!%p219_p3), 12  }
   0x9   : > { %s3893_s24 = smov (%p30_p4, %s3891_s24), 0  ;;  %222 = sbr.rel (%p219_p3) target bundleno = 585 (0x249), region = 36 }
   0xa   : > { %s257_s26 = sadd.s32 (!%p219_p3), %s2560_s18, %s256_s25  ;;  %s2579_s7 = smov (!%p219_p3), 8  }
   0xb   : > { %p258_p5 = scmp.lt.s32.totalorder (!%p219_p3), %s257_s26, 5  ;;  %s2580_s8 = smov (!%p219_p3), 20  }
   0xc   : > { %s2581_s9 = smov (!%p219_p3), 24   ;;  %s2582_s10 = smov (!%p219_p3), 4  }
   0xd   : > { %s2583_s11 = smov (!%p219_p3), 16   ;;  %s2584_s12 = smov (!%p219_p3), 28  }
   0xe   : > { %s3895_s26 = smov (!%p258_p5, %s257_s26), 5  ;;  %vm555_vm0 = vcmask 1042432   ;;  %vm556_vm1 = vcmask 1046532   ;;  %vm1026_vm3 = vcmask 1041408   ;;  %vm1027_vm4 = vcmask 1045508   ;;  %s2585_s13 = smov 32  }
   0xf   : > { %s2437_s27 = smul.u32 76, %s3895_s26  ;;  %vm2661_vm2 = vmor %vm555_vm0, %vm556_vm1  ;;  %vm327_vm5 = vsmask.f32 3328  ;;  %vm328_vm6 = vsmask.f32 7440  ;;  %vm1505_vm12 = vcmask 1040384  }
  0x10   : > { %vm2672_vm7 = vmor %vm1026_vm3, %vm1027_vm4  ;;  %vm798_vm8 = vsmask.f32 2304  ;;  %vm799_vm9 = vsmask.f32 6416  ;;  %vm1270_vm11 = vsmask.f32 1280 }
  0x11   : > { %s2659_s30 = scalar_lea.vmem %s3843_s0, %s2437_s27  ;;  %vm2734_vm10 = vmor %vm327_vm5, %vm328_vm6  ;;  %vm1271_vm14 = vsmask.f32 5392  ;;  %vm1506_vm0 = vcmask 1044484   ;;  %vm3850_vm4 = vcmask 27648   ;;  %vm511_vm5 = vcmask 60448   ;;  %s1898_s27 = smul.u32 6, %s2560_s18 }
  0x12   : > { %v657_v1 = vld [vmem:[%s2659_s30 + $0x8] sm:$0xe]  ;;  %v658_v2 = vld [vmem:[%s2659_s30 + $0xc] sm:$0xf]  ;;  %v527_v3 = vld [vmem:[%s2659_s30] sm:$0xe] }
  0x13   : > { %v2286_v4 = vrot.slane %v657_v1, 9  ;;  %v687_v5 = vrot.slane %v658_v2, 5  ;;  %v528_v6 = vld [vmem:[%s2659_s30 + $0x4] sm:$0xf]  ;;  %v2285_v7 = vrot.slane %v527_v3, 9  ;;  %vm2755_vm13 = vmor %vm798_vm8, %vm799_vm9  ;;  %vm641_vm6 = vcmask 93248  }
  0x14   : > { %v560_v8 = vrot.slane %v528_v6, 5  ;;  %v998_v9 = vld [vmem:[%s2659_s30 + $0x8] sm:$0xc]  ;;  %v999_v10 = vld [vmem:[%s2659_s30 + $0xc] sm:$0xf]  ;;  %vm2774_vm15 = vmor %vm1270_vm11, %vm1271_vm14  ;;  %vm768_vm8 = vcmask 126048  }
  0x15   : > { %v688_v12 = vsel %vm2661_vm2, %v2286_v4, %v687_v5  ;;  %v2287_v13 = vrot.slane %v998_v9, 10  ;;  %v1031_v14 = vrot.slane %v999_v10, 6  ;;  %v2679_v15 = vld [vmem:[%s2659_s30 + $0x8] sm:$0xf]  ;;  %v1128_v16 = vld [vmem:[%s2659_s30 + $0x10] sm:$0xc]  ;;  %vm2792_vm1 = vmor %vm1505_vm12, %vm1506_vm0 }
  0x16   : > { %726 = vrot.lane.b32.xlu0 %v688_v12, %s2578_s6  ;;  %v561_v17 = vsel %vm2661_vm2, %v2285_v7, %v560_v8  ;;  %v562_v18 = vrot.slane %v560_v8, 4  ;;  %v563_v19 = vrot.slane %v2679_v15, 5  ;;  %v1129_v20 = vld [vmem:[%s2659_s30 + $0x14] sm:$0xf]  ;;  %v2288_v21 = vrot.slane %v1128_v16, 10  ;;  %v3557_v11 = vld [vmem:[%s3846_s3 + $0x8] sm:$0xff] }
  0x17   : > { %599 = vrot.lane.b32.xlu1 %v561_v17, %s2579_s7  ;;  %v1032_v22 = vsel %vm2672_vm7, %v2287_v13, %v1031_v14  ;;  %v1158_v23 = vrot.slane %v1129_v20, 6  ;;  %v2691_v24 = vld [vmem:[%s2659_s30 + $0x10] sm:$0xf]  ;;  %v689_v25 = vrot.slane %v687_v5, 4  ;;  %v1033_v29 = vrot.slane %v1031_v14, 4  ;;  %s2438_s15 = smul.u32 56, %s3895_s26 }
  0x18   : > { %v2694_v26 = vld [vmem:[%s2659_s30 + $0x10] sm:$0xf]  ;;  %v564_v27 = vsel %vm2661_vm2, %v562_v18, %v563_v19  ;;  %v690_v28 = vrot.slane %v2691_v24, 5  ;;  %v313_v31 = vld [vmem:[%s2659_s30] sm:$0xf]  ;;  %vm982_vm9 = vcmask 158848  }
  0x19   : > { %v1034_v30 = vrot.slane %v2694_v26, 6  ;;  %v314_v32 = vld [vmem:[%s2659_s30 + $0x4] sm:$0xf]  ;;  %v331_v33 = vshrl.u32 %v313_v31, 16  ;;  %v334_v34 = vshll.u32 %v313_v31, 16  ;;  %v1159_v36 = vsel %vm2672_vm7, %v2288_v21, %v1158_v23  ;;  %s3784_s17 = scalar_lea.vmem %s3847_s4, %s2438_s15  ;;  %s2284_s19 = sshll.u32 %s3895_s26, 1 }
  0x1a   : > { %v2705_v35 = vld [vmem:[%s2659_s30 + $0x18] sm:$0xf]  ;;  %1070 = vrot.lane.b32.xlu0 %v1032_v22, %s2580_s8  ;;  %v691_v37 = vsel %vm2661_vm2, %v689_v25, %v690_v28  ;;  %v340_v38 = vshll.u32 %v314_v32, 16  ;;  %v344_v39 = vshrl.u32 %v314_v32, 16  ;;  %v2715_v40 = vld [vmem:[%s2659_s30 + $0x8] sm:$0xf]  ;;  %s279_s18 = scalar_lea.vmem %s3848_s5, %s2284_s19 }
  0x1b   : > { %v785_v41 = vld [vmem:[%s2659_s30 + $0xc] sm:$0xf]  ;;  %601 = vrot.lane.b32.xlu1 %v564_v27, %s2579_s7  ;;  %v333_v42 = vrot.slane %v331_v33, 4  ;;  %v336_v43 = vrot.slane %v334_v34, 5  ;;  %v1160_v44 = vrot.slane %v1158_v23, 4  ;;  %v1161_v45 = vrot.slane %v2705_v35, 6 }
  0x1c   : > { %v786_v46 = vld [vmem:[%s2659_s30 + $0x10] sm:$0xf]  ;;  %v1035_v47 = vsel %vm2672_vm7, %v1033_v29, %v1034_v30  ;;  %v342_v48 = vrot.slane %v340_v38, 5  ;;  %v346_v49 = vrot.slane %v344_v39, 4  ;;  %v350_v50 = vshll.u32 %v2715_v40, 16 }
  0x1d   : > { %v784_v51 = vld [vmem:[%s2659_s30 + $0x8] sm:$0xe]  ;;  %v337_v52 = vor.u32 %v336_v43, %v333_v42  ;;  %v1162_v53 = vsel %vm2672_vm7, %v1160_v44, %v1161_v45  ;;  %v811_v54 = vshrl.u32 %v785_v41, 16  ;;  %v814_v55 = vshll.u32 %v785_v41, 16  ;;  %v1256_v61 = vld [vmem:[%s2659_s30 + $0x14] sm:$0xf] }
  0x1e   : > { %1197 = vrot.lane.b32.xlu0 %v1159_v36, %s2581_s9  ;;  %v347_v57 = vor.u32 %v346_v49, %v342_v48  ;;  %v2738_v58 = vrot.slane %v350_v50, 5  ;;  %v821_v59 = vshrl.u32 %v786_v46, 16  ;;  %v824_v60 = vshll.u32 %v786_v46, 16  ;;  %v1257_v7 = vld [vmem:[%s2659_s30 + $0x18] sm:$0xf] }
  0x1f   : > { %728 = vrot.lane.b32.xlu1 %v691_v37, %s2578_s6  ;;  %v338_v62 = vrot.slane %v337_v52, 4  ;;  %v813_v63 = vrot.slane %v811_v54, 5  ;;  %v816_v1 = vrot.slane %v814_v55, 6  ;;  %v802_v2 = vshrl.u32 %v784_v51, 16  ;;  %v1255_v13 = vld [vmem:[%s2659_s30 + $0x10] sm:$0xc] }
  0x20   : > { %v348_v3 = vrot.slane %v347_v57, 4  ;;  %v823_v4 = vrot.slane %v821_v59, 5  ;;  %v826_v5 = vrot.slane %v824_v60, 6  ;;  %v805_v6 = vshll.u32 %v784_v51, 16  ;;  %v1476_v33 = vld [vmem:[%s2659_s30 + $0x14] sm:$0xf] }
  0x21   : > { %v343_v8 = vsel %vm2734_vm10, %v338_v62, %v342_v48  ;;  %v817_v9 = vor.u32 %v816_v1, %v813_v63  ;;  %v804_v10 = vrot.slane %v802_v2, 5  ;;  %v1283_v12 = vshrl.u32 %v1256_v61, 16  ;;  %v316_v37 = vld [vmem:[%s2659_s30 + $0xc] sm:$0xf]  ;;  %v1475_v51 = vld [vmem:[%s2659_s30 + $0x10] sm:$0x8] }
  0x22   : > { %469 = vrot.lane.b32.xlu0 %v343_v8, %s2582_s10  ;;  %v353_v14 = vsel %vm2734_vm10, %v348_v3, %v2738_v58  ;;  %v2750_v16 = vor.u32 %v826_v5, %v823_v4  ;;  %v807_v17 = vrot.slane %v805_v6, 6  ;;  %v1286_v18 = vshll.u32 %v1256_v61, 16  ;;  %v2782_v54 = vld [vmem:[%s2659_s30 + $0x10] sm:$0xf]  ;;  %v530_v6 = vld [vmem:[%s2659_s30 + $0xc] sm:$0xf] }
  0x23   : > { %1072 = vrot.lane.b32.xlu1 %v1035_v47, %s2580_s8  ;;  %v819_v20 = vrot.slane %v817_v9, 4  ;;  %v1285_v21 = vrot.slane %v1283_v12, 6  ;;  %v1293_v22 = vshrl.u32 %v1257_v7, 16  ;;  %v1296_v23 = vshll.u32 %v1257_v7, 16  ;;  %v787_v7 = vld [vmem:[%s2659_s30 + $0x14] sm:$0xf] }
  0x24   : > { %v808_v27 = vor.u32 %v807_v17, %v804_v10  ;;  %v1288_v29 = vrot.slane %v1286_v18, 7  ;;  %v1274_v31 = vshrl.u32 %v1255_v13, 16  ;;  %v1277_v32 = vshll.u32 %v1255_v13, 16  ;;  %v2806_v13 = vld [vmem:[%s2659_s30 + $0x10] sm:$0xf]  ;;  %v3603_v3 = vld [vmem:[%s3846_s3 + $0x28] sm:$0xff] }
  0x25   : > { %v1295_v34 = vrot.slane %v1293_v22, 6  ;;  %v1298_v36 = vrot.slane %v1296_v23, 7  ;;  %v354_v43 = vshrl.u32 %v2715_v40, 16  ;;  %v828_v44 = vsel %vm2755_vm13, %v819_v20, %v2750_v16  ;;  %v2779_v40 = vld [vmem:[%s2659_s30 + $0x18] sm:$0xf] }
  0x26   : > { %471 = vrot.lane.b32.xlu0 %v353_v14, %s2582_s10  ;;  %v809_v38 = vrot.slane %v808_v27, 4  ;;  %v1289_v39 = vor.u32 %v1288_v29, %v1285_v21  ;;  %v1276_v41 = vrot.slane %v1274_v31, 6  ;;  %v1279_v42 = vrot.slane %v1277_v32, 7  ;;  %v660_v21 = vld [vmem:[%s2659_s30 + $0x14] sm:$0xf] }
  0x27   : > { %1199 = vrot.lane.b32.xlu1 %v1162_v53, %s2581_s9  ;;  %v2767_v46 = vor.u32 %v1298_v36, %v1295_v34  ;;  %v1510_v47 = vrot.slane %v1476_v33, 7  ;;  %v360_v52 = vshll.u32 %v316_v37, 16  ;;  %v364_v55 = vshrl.u32 %v316_v37, 16  ;;  %v788_v23 = vld [vmem:[%s2659_s30 + $0x18] sm:$0xf] }
  0x28   : > { %v818_v48 = vsel %vm2755_vm13, %v809_v38, %v817_v9  ;;  %v1291_v49 = vrot.slane %v1289_v39, 4  ;;  %v1280_v50 = vor.u32 %v1279_v42, %v1276_v41  ;;  %v2289_v61 = vrot.slane %v1475_v51, 11  ;;  %v2827_v37 = vld [vmem:[%s2659_s30 + $0x18] sm:$0xf]  ;;  %v1258_v51 = vld [vmem:[%s2659_s30 + $0x1c] sm:$0xf] }
  0x29   : > { %v362_v59 = vrot.slane %v360_v52, 5  ;;  %v1512_v60 = vrot.slane %v1510_v47, 4  ;;  %v366_v62 = vrot.slane %v364_v55, 4  ;;  %v356_v63 = vrot.slane %v354_v43, 4  ;;  %v2852_v55 = vld [vmem:[%s2659_s30 + $0x18] sm:$0xf] }
  0x2a   : > { %940 = vrot.lane.b32.xlu0 %v818_v48, %s2583_s11  ;;  %v1281_v57 = vrot.slane %v1280_v50, 4  ;;  %v1300_v1 = vsel %vm2774_vm15, %v1291_v49, %v2767_v46  ;;  %v1513_v4 = vrot.slane %v2779_v40, 7  ;;  %v370_v5 = vshll.u32 %v2782_v54, 16  ;;  %v1001_v50 = vld [vmem:[%s2659_s30 + $0x14] sm:$0xf]  ;;  %v3581_v53 = vld [vmem:[%s3846_s3 + $0x18] sm:$0xff] }
  0x2b   : > { %942 = vrot.lane.b32.xlu1 %v828_v44, %s2583_s11  ;;  %v367_v8 = vor.u32 %v366_v62, %v362_v59  ;;  %v357_v9 = vor.u32 %v356_v63, %v2738_v58  ;;  %v1511_v10 = vsel %vm2792_vm1, %v2289_v61, %v1510_v47  ;;  %v566_v14 = vrot.slane %v530_v6, 5  ;;  %v1259_v62 = vld [vmem:[%s2659_s30 + $0x20] sm:$0xf]  ;;  %v318_v26 = vld [vmem:[%s2659_s30 + $0x14] sm:$0xf] }
  0x2c   : > { %v1290_v2 = vsel %vm2774_vm15, %v1281_v57, %v1289_v39  ;;  %v831_v17 = vshrl.u32 %v787_v7, 16  ;;  %v1514_v18 = vsel %vm2792_vm1, %v1512_v60, %v1513_v4  ;;  %v2812_v20 = vrot.slane %v370_v5, 5 }
  0x2d   : > { %v358_v12 = vrot.slane %v357_v9, 4  ;;  %v368_v58 = vrot.slane %v367_v8, 4  ;;  %v834_v22 = vshll.u32 %v787_v7, 16  ;;  %v569_v27 = vrot.slane %v2806_v13, 5  ;;  %v2866_v7 = vld [vmem:[%s2659_s30 + $0x20] sm:$0xf] }
  0x2e   : > { %1417 = vrot.lane.b32.xlu0 %v1290_v2, %s2584_s12  ;;  %v565_v29 = vrot.slane %v563_v19, 4  ;;  %v568_v32 = vrot.slane %v566_v14, 4  ;;  %v693_v33 = vrot.slane %v660_v21, 5  ;;  %v833_v34 = vrot.slane %v831_v17, 5 }
  0x2f   : > { %1419 = vrot.lane.b32.xlu1 %v1300_v1, %s2584_s12  ;;  %v363_v31 = vsel %vm2734_vm10, %v358_v12, %v362_v59  ;;  %v373_v36 = vsel %vm2734_vm10, %v368_v58, %v2812_v20  ;;  %v836_v38 = vrot.slane %v834_v22, 6  ;;  %v841_v39 = vshrl.u32 %v788_v23, 16  ;;  %v1131_v59 = vld [vmem:[%s2659_s30 + $0x1c] sm:$0xf] }
  0x30   : > { %v844_v15 = vshll.u32 %v788_v23, 16  ;;  %v567_v19 = vsel %vm2661_vm2, %v565_v29, %v566_v14  ;;  %v695_v41 = vrot.slane %v693_v33, 4  ;;  %v696_v42 = vrot.slane %v2827_v37, 5 }
  0x31   : > { %v692_v43 = vrot.slane %v690_v28, 4  ;;  %v570_v44 = vsel %vm2661_vm2, %v568_v32, %v569_v27  ;;  %v837_v47 = vor.u32 %v836_v38, %v833_v34  ;;  %v843_v48 = vrot.slane %v841_v39, 5  ;;  %v1478_v32 = vld [vmem:[%s2659_s30 + $0x1c] sm:$0xf] }
  0x32   : > { %1551 = vrot.lane.b32.xlu0 %v1511_v10, %s2585_s13  ;;  %v846_v49 = vrot.slane %v844_v15, 6  ;;  %v697_v24 = vsel %vm2661_vm2, %v695_v41, %v696_v42  ;;  %v829_v52 = vrot.slane %v2750_v16, 4  ;;  %v1037_v57 = vrot.slane %v1001_v50, 6  ;;  %v2897_v41 = vld [vmem:[%s2659_s30 + $0x20] sm:$0xf] }
  0x33   : > { %1553 = vrot.lane.b32.xlu1 %v1514_v18, %s2585_s13  ;;  %v694_v28 = vsel %vm2661_vm2, %v692_v43, %v693_v33  ;;  %v839_v60 = vrot.slane %v837_v47, 4  ;;  %v1303_v63 = vshrl.u32 %v1258_v51, 16  ;;  %v1306_v1 = vshll.u32 %v1258_v51, 16 }
  0x34   : > { %v2855_v61 = vor.u32 %v846_v49, %v843_v48  ;;  %v1040_v2 = vrot.slane %v2852_v55, 6  ;;  %v1036_v5 = vrot.slane %v1034_v30, 4  ;;  %v838_v16 = vsel %vm2755_vm13, %v829_v52, %v837_v47  ;;  %v2900_v47 = vld [vmem:[%s2659_s30 + $0x18] sm:$0xf]  ;;  %v283_v48 = vld [vmem:[%s2659_s30] sm:$0xf] }
  0x35   : > { %v1039_v6 = vrot.slane %v1037_v57, 4  ;;  %v1164_v8 = vrot.slane %v1131_v59, 6  ;;  %v1313_v9 = vshrl.u32 %v1259_v62, 16  ;;  %v1305_v12 = vrot.slane %v1303_v63, 6  ;;  %298 = vst.msk [vmem:[#allocation2] sm:$0xf] %vm3850_vm4, %v283_v48 }
  0x36   : > { %473 = vrot.lane.b32.xlu0 %v363_v31, %s2582_s10  ;;  %v848_v10 = vsel %vm2755_vm13, %v839_v60, %v2855_v61  ;;  %v1308_v14 = vrot.slane %v1306_v1, 7  ;;  %v1316_v17 = vshll.u32 %v1259_v62, 16  ;;  %v374_v30 = vshrl.u32 %v2782_v54, 16  ;;  %v284_v59 = vld [vmem:[%s2659_s30 + $0x4] sm:$0xf] }
  0x37   : > { %475 = vrot.lane.b32.xlu1 %v373_v36, %s2582_s10  ;;  %v1167_v18 = vrot.slane %v2866_v7, 6  ;;  %v1163_v58 = vrot.slane %v1161_v45, 4  ;;  %v1041_v21 = vsel %vm2672_vm7, %v1039_v6, %v1040_v2  ;;  %v1038_v22 = vsel %vm2672_vm7, %v1036_v5, %v1037_v57  ;;  %v321_v57 = vld [vmem:[%s2659_s30 + $0x20] sm:$0xf]  ;;  %299 = vst.msk [vmem:[#allocation2 + $0x4] sm:$0xf] %vm3850_vm4, %v284_v59 }
  0x38   : > { %v1166_v23 = vrot.slane %v1164_v8, 4  ;;  %v1315_v29 = vrot.slane %v1313_v9, 6  ;;  %v1309_v54 = vor.u32 %v1308_v14, %v1305_v12  ;;  %v1318_v31 = vrot.slane %v1316_v17, 7  ;;  %v2925_v63 = vld [vmem:[%s2659_s30 + $0x18] sm:$0xf] }
  0x39   : > { %v380_v33 = vshll.u32 %v318_v26, 16  ;;  %v384_v35 = vshrl.u32 %v318_v26, 16  ;;  %v376_v45 = vrot.slane %v374_v30, 4  ;;  %v1165_v36 = vsel %vm2672_vm7, %v1163_v58, %v1164_v8  ;;  %v662_v5 = vld [vmem:[%s2659_s30 + $0x1c] sm:$0xf] }
  0x3a   : > { %603 = vrot.lane.b32.xlu0 %v567_v19, %s2579_s7  ;;  %v1168_v34 = vsel %vm2672_vm7, %v1166_v23, %v1167_v18  ;;  %v1301_v38 = vrot.slane %v2767_v46, 4  ;;  %v1516_v39 = vrot.slane %v1478_v32, 7  ;;  %v1311_v15 = vrot.slane %v1309_v54, 4  ;;  %v789_v26 = vld [vmem:[%s2659_s30 + $0x1c] sm:$0xf] }
  0x3b   : > { %605 = vrot.lane.b32.xlu1 %v570_v44, %s2579_s7  ;;  %v2894_v19 = vor.u32 %v1318_v31, %v1315_v29  ;;  %v382_v43 = vrot.slane %v380_v33, 5  ;;  %v386_v44 = vrot.slane %v384_v35, 4  ;;  %v1515_v46 = vrot.slane %v1513_v4, 4  ;;  %v2944_v23 = vld [vmem:[%s2659_s30 + $0x20] sm:$0xf] }
  0x3c   : > { %v377_v49 = vor.u32 %v376_v45, %v2812_v20  ;;  %v1310_v50 = vsel %vm2774_vm15, %v1301_v38, %v1309_v54  ;;  %v1519_v51 = vrot.slane %v2897_v41, 7  ;;  %v1518_v4 = vrot.slane %v1516_v39, 4  ;;  %v2952_v35 = vld [vmem:[%s2659_s30 + $0x28] sm:$0xf]  ;;  %v3169_v41 = vld [vmem:[%s2659_s30 + $0x38] sm:$0xf] }
  0x3d   : > { %v1320_v40 = vsel %vm2774_vm15, %v1311_v15, %v2894_v19  ;;  %v387_v52 = vor.u32 %v386_v44, %v382_v43  ;;  %v390_v20 = vshll.u32 %v2900_v47, 16  ;;  %v1517_v60 = vsel %vm2792_vm1, %v1515_v46, %v1516_v39 }
  0x3e   : > { %730 = vrot.lane.b32.xlu0 %v694_v28, %s2578_s6  ;;  %v322_v28 = vld [vmem:[%s2659_s30 + $0x24] sm:$0xf]  ;;  %v378_v62 = vrot.slane %v377_v49, 4  ;;  %v410_v8 = vshll.u32 %v321_v57, 16  ;;  %v414_v9 = vshrl.u32 %v321_v57, 16  ;;  %v575_v17 = vrot.slane %v2925_v63, 5 }
  0x3f   : > { %732 = vrot.lane.b32.xlu1 %v697_v24, %s2578_s6  ;;  %v532_v24 = vld [vmem:[%s2659_s30 + $0x14] sm:$0xf]  ;;  %v424_v6 = vshrl.u32 %v322_v28, 16  ;;  %v388_v12 = vrot.slane %v387_v52, 4  ;;  %v2933_v14 = vrot.slane %v390_v20, 5  ;;  %v851_v45 = vshrl.u32 %v789_v26, 16 }
  0x40   : > { %v572_v1 = vrot.slane %v532_v24, 5  ;;  %v383_v30 = vsel %vm2734_vm10, %v378_v62, %v382_v43  ;;  %v2946_v31 = vrot.slane %v410_v8, 5  ;;  %v416_v32 = vrot.slane %v414_v9, 4  ;;  %v2983_v20 = vld [vmem:[%s2659_s30 + $0x20] sm:$0xf] }
  0x41   : > { %v426_v54 = vrot.slane %v424_v6, 4  ;;  %v393_v33 = vsel %vm2734_vm10, %v388_v12, %v2933_v14  ;;  %v854_v13 = vshll.u32 %v789_v26, 16  ;;  %v702_v15 = vrot.slane %v2944_v23, 5  ;;  %v288_v8 = vld [vmem:[%s2659_s30 + $0x14] sm:$0xf] }
  0x42   : > { %944 = vrot.lane.b32.xlu0 %v838_v16, %s2583_s11  ;;  %v420_v16 = vshll.u32 %v322_v28, 16  ;;  %v574_v58 = vrot.slane %v572_v1, 4  ;;  %v698_v43 = vrot.slane %v696_v42, 4  ;;  %v430_v46 = vshll.u32 %v2952_v35, 16  ;;  %303 = vst.msk [vmem:[#allocation2 + $0x14] sm:$0xf] %vm3850_vm4, %v288_v8 }
  0x43   : > { %946 = vrot.lane.b32.xlu1 %v848_v10, %s2583_s11  ;;  %v1520_v10 = vsel %vm2792_vm1, %v1518_v4, %v1519_v51  ;;  %v417_v49 = vor.u32 %v416_v32, %v2946_v31  ;;  %v856_v24 = vrot.slane %v854_v13, 6  ;;  %v849_v6 = vrot.slane %v2855_v61, 4  ;;  %v1003_v61 = vld [vmem:[%s2659_s30 + $0x1c] sm:$0xf]  ;;  %v3018_v32 = vld [vmem:[%s2659_s30 + $0x28] sm:$0xf] }
  0x44   : > { %v422_v29 = vrot.slane %v420_v16, 5  ;;  %v576_v44 = vsel %vm2661_vm2, %v574_v58, %v575_v17  ;;  %v2980_v4 = vrot.slane %v430_v46, 5  ;;  %v3001_v58 = vld [vmem:[%s2659_s30 + $0x28] sm:$0xf]  ;;  %v708_v46 = vrot.slane %v3018_v32, 5 }
  0x45   : > { %v418_v52 = vrot.slane %v417_v49, 4  ;;  %v794_v49 = vld [vmem:[%s2659_s30 + $0x30] sm:$0xf]  ;;  %vm1112_vm11 = vcmask 191648   ;;  %vm1239_vm12 = vcmask 224448   ;;  %vm3851_vm14 = vcmask 257248  }
  0x46   : > { %1074 = vrot.lane.b32.xlu0 %v1038_v22, %s2580_s8  ;;  %v699_v22 = vrot.slane %v662_v5, 5  ;;  %v427_v48 = vor.u32 %v426_v54, %v422_v29  ;;  %v581_v5 = vrot.slane %v2983_v20, 5  ;;  %v3015_v54 = vld [vmem:[%s2659_s30 + $0x20] sm:$0xf]  ;;  %v901_v8 = vshrl.u32 %v794_v49, 16 }
  0x47   : > { %1076 = vrot.lane.b32.xlu1 %v1041_v21, %s2580_s8  ;;  %v571_v21 = vrot.slane %v569_v27, 4  ;;  %v790_v27 = vld [vmem:[%s2659_s30 + $0x20] sm:$0xf]  ;;  %v423_v16 = vsel %vm2734_vm10, %v418_v52, %v422_v29  ;;  %v1046_v52 = vrot.slane %v3015_v54, 6  ;;  %vm3852_vm0 = vcmask 290048  }
  0x48   : > { %v701_v39 = vrot.slane %v699_v22, 4  ;;  %v861_v37 = vshrl.u32 %v790_v27, 16  ;;  %v864_v42 = vshll.u32 %v790_v27, 16  ;;  %v428_v57 = vrot.slane %v427_v48, 4  ;;  %v796_v54 = vld [vmem:[%s2659_s30 + $0x38] sm:$0xf] }
  0x49   : > { %v573_v38 = vsel %vm2661_vm2, %v571_v21, %v572_v1  ;;  %v536_v1 = vld [vmem:[%s2659_s30 + $0x24] sm:$0xf]  ;;  %v583_v21 = vrot.slane %v581_v5, 4  ;;  %v1043_v27 = vrot.slane %v1003_v61, 6  ;;  %v1042_v48 = vrot.slane %v1040_v2, 4 }
  0x4a   : > { %1201 = vrot.lane.b32.xlu0 %v1165_v36, %s2581_s9  ;;  %v285_v36 = vld [vmem:[%s2659_s30 + $0x8] sm:$0xf]  ;;  %v703_v28 = vsel %vm2661_vm2, %v701_v39, %v702_v15  ;;  %v866_v62 = vrot.slane %v864_v42, 6  ;;  %v433_v9 = vsel %vm2734_vm10, %v428_v57, %v2980_v4  ;;  %v584_v26 = vrot.slane %v536_v1, 5  ;;  %v1260_v1 = vld [vmem:[%s2659_s30 + $0x24] sm:$0xf] }
  0x4b   : > { %1203 = vrot.lane.b32.xlu1 %v1168_v34, %s2581_s9  ;;  %v286_v34 = vld [vmem:[%s2659_s30 + $0xc] sm:$0xf]  ;;  %300 = vst.msk [vmem:[#allocation2 + $0x8] sm:$0xf] %vm3850_vm4, %v285_v36  ;;  %v792_v36 = vld [vmem:[%s2659_s30 + $0x28] sm:$0xf] }
  0x4c   : > { %301 = vst.msk [vmem:[#allocation2 + $0xc] sm:$0xf] %vm3850_vm4, %v286_v34  ;;  %v586_v13 = vrot.slane %v584_v26, 4  ;;  %v587_v34 = vrot.slane %v3001_v58, 5  ;;  %v881_v42 = vshrl.u32 %v792_v36, 16  ;;  %v1045_v2 = vrot.slane %v1043_v27, 4 }
  0x4d   : > { %v3050_v57 = vld [vmem:[%s2659_s30 + $0x28] sm:$0xf]  ;;  %v1048_v58 = vrot.slane %v1046_v52, 4 }
  0x4e   : > { %1421 = vrot.lane.b32.xlu0 %v1310_v50, %s2584_s12  ;;  %v853_v50 = vrot.slane %v851_v45, 5  ;;  %v588_v55 = vsel %vm2661_vm2, %v586_v13, %v587_v34  ;;  %v883_v61 = vrot.slane %v881_v42, 5  ;;  %v1169_v13 = vrot.slane %v1167_v18, 4 }
  0x4f   : > { %1423 = vrot.lane.b32.xlu1 %v1320_v40, %s2584_s12  ;;  %v700_v40 = vsel %vm2661_vm2, %v698_v43, %v699_v22  ;;  %v3009_v22 = vld [vmem:[%s2659_s30 + $0x2c] sm:$0xf]  ;;  %v3031_v43 = vld [vmem:[%s2659_s30 + $0x24] sm:$0xf] }
  0x50   : > { %v857_v59 = vor.u32 %v856_v24, %v853_v50  ;;  %v711_v39 = vrot.slane %v3009_v22, 5  ;;  %v292_v50 = vld [vmem:[%s2659_s30 + $0x24] sm:$0xf]  ;;  %v1047_v22 = vsel %vm2672_vm7, %v1045_v2, %v1046_v52 }
  0x51   : > { %307 = vst.msk [vmem:[#allocation2 + $0x24] sm:$0xf] %vm3850_vm4, %v292_v50 }
  0x52   : > { %1555 = vrot.lane.b32.xlu0 %v1517_v60, %s2585_s13  ;;  %v863_v60 = vrot.slane %v861_v37, 5  ;;  %v858_v29 = vsel %vm2755_vm13, %v849_v6, %v857_v59  ;;  %v710_v6 = vrot.slane %v708_v46, 4 }
  0x53   : > { %1557 = vrot.lane.b32.xlu1 %v1520_v10, %s2585_s13  ;;  %v859_v10 = vrot.slane %v857_v59, 4  ;;  %v713_v59 = vrot.slane %v711_v39, 4 }
  0x54   : > { %v2996_v12 = vor.u32 %v866_v62, %v863_v60  ;;  %v1170_v62 = vrot.slane %v3031_v43, 6  ;;  %v712_v7 = vsel %vm2661_vm2, %v710_v6, %v711_v39 }
  0x56   : > { %477 = vrot.lane.b32.xlu0 %v383_v30, %s2582_s10  ;;  %v287_v30 = vld [vmem:[%s2659_s30 + $0x10] sm:$0xf]  ;;  %v868_v45 = vsel %vm2755_vm13, %v859_v10, %v2996_v12  ;;  %v1172_v43 = vrot.slane %v1170_v62, 4  ;;  %v1171_v39 = vsel %vm2672_vm7, %v1169_v13, %v1170_v62  ;;  %v1007_v62 = vld [vmem:[%s2659_s30 + $0x2c] sm:$0xf] }
  0x57   : > { %479 = vrot.lane.b32.xlu1 %v393_v33, %s2582_s10  ;;  %302 = vst.msk [vmem:[#allocation2 + $0x10] sm:$0xf] %vm3850_vm4, %v287_v30  ;;  %v793_v33 = vld [vmem:[%s2659_s30 + $0x2c] sm:$0xf]  ;;  %v1055_v13 = vrot.slane %v1007_v62, 6 }
  0x58   : > { %v891_v24 = vshrl.u32 %v793_v33, 16  ;;  %v894_v37 = vshll.u32 %v793_v33, 16  ;;  %v2528_v10 = vld [vmem:[%s3844_s1 + $0x10] ss:$0 sps:$4 sm:$0x33]   ;;  %v1326_v33 = vshll.u32 %v1260_v1, 16 }
  0x5a   : > { %607 = vrot.lane.b32.xlu0 %v573_v38, %s2579_s7  ;;  %v3027_v38 = vld [vmem:[%s2659_s30 + $0x30] sm:$0xf]  ;;  %v896_v30 = vrot.slane %v894_v37, 6  ;;  %v2529_v37 = vld [vmem:[%s3844_s1 + $0x8] sm:$0xff]  }
  0x5b   : > { %609 = vrot.lane.b32.xlu1 %v576_v44, %s2579_s7  ;;  %v585_v44 = vsel %vm2661_vm2, %v583_v21, %v584_v26  ;;  %v714_v60 = vrot.slane %v3027_v38, 5  ;;  %v893_v26 = vrot.slane %v891_v24, 5 }
  0x5d   : > { %v897_v18 = vor.u32 %v896_v30, %v893_v26  ;;  %v3108_v26 = vld [vmem:[%s2659_s30 + $0x28] sm:$0xf]  ;;  %v320_v30 = vld [vmem:[%s2659_s30 + $0x1c] sm:$0xf] }
  0x5e   : > { %734 = vrot.lane.b32.xlu0 %v700_v40, %s2578_s6  ;;  %v291_v40 = vld [vmem:[%s2659_s30 + $0x20] sm:$0xf] }
  0x5f   : > { %736 = vrot.lane.b32.xlu1 %v703_v28, %s2578_s6  ;;  %v884_v28 = vshll.u32 %v792_v36, 16  ;;  %306 = vst.msk [vmem:[#allocation2 + $0x20] sm:$0xf] %vm3850_vm4, %v291_v40  ;;  %v715_v36 = vsel %vm2661_vm2, %v713_v59, %v714_v60  ;;  %v899_v2 = vrot.slane %v897_v18, 4 }
  0x61   : > { %v886_v21 = vrot.slane %v884_v28, 6  ;;  %v1328_v28 = vrot.slane %v1326_v33, 7  ;;  %v3126_v33 = vld [vmem:[%s2659_s30 + $0x30] sm:$0xf] }
  0x62   : > { %485 = vrot.lane.b32.xlu0 %v423_v16, %s2582_s10  ;;  %v1044_v16 = vsel %vm2672_vm7, %v1042_v48, %v1043_v27  ;;  %v1261_v27 = vld [vmem:[%s2659_s30 + $0x28] sm:$0xf]  ;;  %v2586_v48 = vmov 0.0  }
  0x63   : > { %487 = vrot.lane.b32.xlu1 %v433_v9, %s2582_s10  ;;  %v904_v9 = vshll.u32 %v794_v49, 16  ;;  %2397 = vmatprep.subr.bf16.mxu0 %v2586_v48  ;;  %v1709_v49 = vsel %vm1026_vm3, %v2528_v10, 0  ;;  %v3083_v24 = vor.u32 %v886_v21, %v883_v61  ;;  %v1333_v40 = vshrl.u32 %v1261_v27, 16 }
  0x64   : > { %2398 = vmatpush3.bf16.msra.mxu0 %v1709_v49  ;;  %2431 = vmatprep.subr.bf16.mxu1 %v2586_v48  ;;  %vm2587_vm3 = vmmov 0   ;;  %v394_v61 = vshrl.u32 %v2900_v47, 16  ;;  %v1321_v21 = vrot.slane %v2894_v19, 4  ;;  %v1052_v47 = vrot.slane %v3108_v26, 6 }
  0x65   : > { %v906_v50 = vrot.slane %v904_v9, 6  ;;  %2399 = vmatprep.subr.bf16.mxu0 %v2586_v48  ;;  %2434 = vmatpush3.bf16.msra.mxu1 %v1709_v49  ;;  %v1335_v9 = vrot.slane %v1333_v40, 6  ;;  %v400_v19 = vshll.u32 %v320_v30, 16  ;;  %v1058_v49 = vrot.slane %v3126_v33, 6 }
  0x66   : > { %948 = vrot.lane.b32.xlu0 %v858_v29, %s2583_s11  ;;  %v1323_v29 = vshrl.u32 %v1260_v1, 16  ;;  %2403 = vmatprep.mubr.msk.bf16.mxu0 %vm2587_vm3, %v2586_v48  ;;  %v889_v1 = vrot.slane %v3083_v24, 4 }
  0x67   : > { %950 = vrot.lane.b32.xlu1 %v868_v45, %s2583_s11  ;;  %v1173_v45 = vrot.slane %v3050_v57, 6  ;;  %2432 = vmatprep.subr.bf16.mxu1 %v2586_v48  ;;  %v402_v40 = vrot.slane %v400_v19, 5  ;;  %v534_v19 = vld [vmem:[%s2659_s30 + $0x1c] sm:$0xf] }
  0x68   : > { %v1325_v42 = vrot.slane %v1323_v29, 6  ;;  %2400 = vmatpush3.bf16.msra.mxu0 %v2529_v37  ;;  %2419 = vmatprep.mubr.msk.bf16.mxu1 %vm2587_vm3, %v2586_v48  ;;  %v898_v29 = vsel %vm2755_vm13, %v889_v1, %v897_v18  ;;  %v1057_v18 = vrot.slane %v1055_v13, 4  ;;  %v289_v1 = vld [vmem:[%s2659_s30 + $0x18] sm:$0xf] }
  0x69   : > { %v1174_v6 = vsel %vm2672_vm7, %v1172_v43, %v1173_v45  ;;  %2401 = vmatprep.subr.bf16.mxu0 %v2586_v48  ;;  %2435 = vmatpush3.bf16.msra.mxu1 %v2529_v37  ;;  %v404_v43 = vshrl.u32 %v320_v30, 16  ;;  %v396_v37 = vrot.slane %v394_v61, 4  ;;  %304 = vst.msk [vmem:[#allocation2 + $0x18] sm:$0xf] %vm3850_vm4, %v289_v1  ;;  %v578_v1 = vrot.slane %v534_v19, 5 }
  0x6a   : > { %615 = vrot.lane.b32.xlu0 %v585_v44, %s2579_s7  ;;  %v903_v44 = vrot.slane %v901_v8, 5  ;;  %v1329_v8 = vor.u32 %v1328_v28, %v1325_v42  ;;  %2433 = vmatprep.subr.bf16.mxu1 %v2586_v48  ;;  %v1059_v62 = vsel %vm2672_vm7, %v1057_v18, %v1058_v49  ;;  %v577_v19 = vrot.slane %v575_v17, 4  ;;  %v3212_v17 = vld [vmem:[%s2659_s30 + $0x34] sm:$0xf] }
  0x6b   : > { %617 = vrot.lane.b32.xlu1 %v588_v55, %s2579_s7  ;;  %v1336_v55 = vshll.u32 %v1261_v27, 16  ;;  %v1534_v20 = vrot.slane %v3212_v17, 7 }
  0x6c   : > { %v3096_v59 = vor.u32 %v906_v50, %v903_v44  ;;  %v1331_v27 = vrot.slane %v1329_v8, 4  ;;  %v1480_v44 = vld [vmem:[%s2659_s30 + $0x24] sm:$0xf]  ;;  %v1054_v50 = vrot.slane %v1052_v47, 4 }
  0x6d   : > { %v1338_v10 = vrot.slane %v1336_v55, 7  ;;  %v1522_v28 = vrot.slane %v1480_v44, 7  ;;  %v406_v55 = vrot.slane %v404_v43, 4 }
  0x6e   : > { %1078 = vrot.lane.b32.xlu0 %v1044_v16, %s2580_s8  ;;  %v2530_v16 = vld [vmem:[%s3844_s1] sm:$0xff]  }
  0x6f   : > { %1080 = vrot.lane.b32.xlu1 %v1047_v22, %s2580_s8  ;;  %v908_v22 = vsel %vm2755_vm13, %v899_v2, %v3096_v59  ;;  %2402 = vmatpush3.bf16.msra.mxu0 %v2530_v16  ;;  %v3144_v2 = vld [vmem:[%s2659_s30 + $0x28] sm:$0xf]  ;;  %v1524_v30 = vrot.slane %v1522_v28, 4 }
  0x70   : > { %2436 = vmatpush3.bf16.msra.mxu1 %v2530_v16  ;;  %v1056_v16 = vsel %vm2672_vm7, %v1054_v50, %v1055_v13  ;;  %v1525_v61 = vrot.slane %v3144_v2, 7  ;;  %v1265_v50 = vld [vmem:[%s2659_s30 + $0x38] sm:$0xf] }
  0x72   : > { %742 = vrot.lane.b32.xlu0 %v712_v7, %s2578_s6  ;;  %v1330_v7 = vsel %vm2774_vm15, %v1321_v21, %v1329_v8  ;;  %v397_v8 = vor.u32 %v396_v37, %v2933_v14  ;;  %v407_v21 = vor.u32 %v406_v55, %v402_v40  ;;  %v1527_v33 = vrot.slane %v1525_v61, 4 }
  0x73   : > { %744 = vrot.lane.b32.xlu1 %v715_v36, %s2578_s6  ;;  %v3129_v36 = vor.u32 %v1338_v10, %v1335_v9  ;;  %v1137_v9 = vld [vmem:[%s2659_s30 + $0x34] sm:$0xf]  ;;  %v3158_v10 = vld [vmem:[%s2659_s30 + $0x30] sm:$0xf] }
  0x74   : > { %v1179_v14 = vrot.slane %v3158_v10, 6  ;;  %v408_v18 = vrot.slane %v407_v21, 4 }
  0x75   : > { %v1340_v42 = vsel %vm2774_vm15, %v1331_v27, %v3129_v36  ;;  %v398_v27 = vrot.slane %v397_v8, 4  ;;  %v1341_v10 = vrot.slane %v3129_v36, 4 }
  0x76   : > { %1205 = vrot.lane.b32.xlu0 %v1171_v39, %s2581_s9  ;;  %v290_v39 = vld [vmem:[%s2659_s30 + $0x1c] sm:$0xf] }
  0x77   : > { %1207 = vrot.lane.b32.xlu1 %v1174_v6, %s2581_s9  ;;  %305 = vst.msk [vmem:[#allocation2 + $0x1c] sm:$0xf] %vm3850_vm4, %v290_v39  ;;  %v1521_v6 = vrot.slane %v1519_v51, 4  ;;  %v1182_v51 = vrot.slane %v1137_v9, 6  ;;  %v3849_v39 = vrot.slane %v3169_v41, 6 }
  0x79   : > { %v1523_v13 = vsel %vm2792_vm1, %v1521_v6, %v1522_v28  ;;  %v1184_v55 = vrot.slane %v1182_v51, 4  ;;  %v1181_v28 = vrot.slane %v1179_v14, 4  ;;  %v1373_v6 = vshrl.u32 %v1265_v50, 16 }
  0x7a   : > { %956 = vrot.lane.b32.xlu0 %v898_v29, %s2583_s11  ;;  %v1264_v29 = vld [vmem:[%s2659_s30 + $0x34] sm:$0xf] }
  0x7b   : > { %958 = vrot.lane.b32.xlu1 %v908_v22, %s2583_s11  ;;  %v1263_v22 = vld [vmem:[%s2659_s30 + $0x30] sm:$0xf]  ;;  %v1363_v37 = vshrl.u32 %v1264_v29, 16 }
  0x7c   : > { %v1353_v43 = vshrl.u32 %v1263_v22, 16  ;;  %v1356_v44 = vshll.u32 %v1263_v22, 16 }
  0x7d   : > { %v1365_v21 = vrot.slane %v1363_v37, 6 }
  0x7e   : > { %1425 = vrot.lane.b32.xlu0 %v1330_v7, %s2584_s12  ;;  %v1526_v7 = vsel %vm2792_vm1, %v1524_v30, %v1525_v61  ;;  %v1355_v8 = vrot.slane %v1353_v43, 6  ;;  %v1358_v9 = vrot.slane %v1356_v44, 7  ;;  %v413_v30 = vsel %vm2734_vm10, %v408_v18, %v2946_v31  ;;  %v664_v31 = vld [vmem:[%s2659_s30 + $0x24] sm:$0xf] }
  0x7f   : > { %1427 = vrot.lane.b32.xlu1 %v1340_v42, %s2584_s12  ;;  %v1366_v42 = vshll.u32 %v1264_v29, 16  ;;  %v1376_v29 = vshll.u32 %v1265_v50, 16  ;;  %v1375_v50 = vrot.slane %v1373_v6, 6  ;;  %v705_v63 = vrot.slane %v664_v31, 5  ;;  %v3239_v31 = vld [vmem:[%s2659_s30 + $0x38] sm:$0xf] }
  0x80   : > { %v3199_v43 = vor.u32 %v1358_v9, %v1355_v8  ;;  %v3219_v8 = vld [vmem:[%s2659_s30 + $0x30] sm:$0xf] }
  0x81   : > { %v1368_v22 = vrot.slane %v1366_v42, 7  ;;  %v1378_v37 = vrot.slane %v1376_v29, 7  ;;  %v324_v42 = vld [vmem:[%s2659_s30 + $0x2c] sm:$0xf] }
  0x82   : > { %1086 = vrot.lane.b32.xlu0 %v1056_v16, %s2580_s8  ;;  %v403_v16 = vsel %vm2734_vm10, %v398_v27, %v402_v40  ;;  %v1183_v40 = vsel %vm2672_vm7, %v1181_v28, %v1182_v51  ;;  %v580_v27 = vrot.slane %v578_v1, 4  ;;  %v434_v28 = vshrl.u32 %v2952_v35, 16 }
  0x83   : > { %1088 = vrot.lane.b32.xlu1 %v1059_v62, %s2580_s8  ;;  %v1369_v18 = vor.u32 %v1368_v22, %v1365_v21  ;;  %v440_v6 = vshll.u32 %v324_v42, 16  ;;  %v444_v9 = vshrl.u32 %v324_v42, 16  ;;  %v3227_v22 = vor.u32 %v1378_v37, %v1375_v50 }
  0x84   : > { %v582_v35 = vsel %vm2661_vm2, %v580_v27, %v581_v5  ;;  %v1531_v5 = vrot.slane %v3219_v8, 7  ;;  %v2588_v50 = vmov 0   ;;  %v1486_v8 = vld [vmem:[%s2659_s30 + $0x3c] sm:$0xf] }
  0x85   : > { %v1371_v21 = vrot.slane %v1369_v18, 4  ;;  %v3241_v23 = vrot.slane %v440_v6, 5  ;;  %2491 = vset.pattern.permute.xlu0 %v2588_v50  ;;  %2497 = vset.pattern.permute.xlu1 %v2588_v50 }
  0x86   : > { %1559 = vrot.lane.b32.xlu0 %v1523_v13, %s2585_s13 }
  0x87   : > { %1561 = vrot.lane.b32.xlu1 %v1526_v7, %s2585_s13  ;;  %v1186_v7 = vsel %vm2672_vm7, %v1184_v55, %v3849_v39  ;;  %v1361_v55 = vrot.slane %v3199_v43, 4  ;;  %v1380_v42 = vsel %vm2774_vm15, %v1371_v21, %v3227_v22  ;;  %v293_v39 = vld [vmem:[%s2659_s30 + $0x28] sm:$0xf] }
  0x88   : > { %v3188_v62 = vpop.permute.xlu0 %726  ;;  %308 = vst.msk [vmem:[#allocation2 + $0x28] sm:$0xf] %vm3850_vm4, %v293_v39  ;;  %v1537_v39 = vrot.slane %v3239_v31, 7 }
  0x89   : > { %v600_v13 = vpop.permute.xlu1 %599  ;;  %v1370_v27 = vsel %vm2774_vm15, %v1361_v55, %v1369_v18  ;;  %v3252_v55 = vld [vmem:[%s2659_s30 + $0x30] sm:$0xf] }
  0x8a   : > { %481 = vrot.lane.b32.xlu0 %v403_v16, %s2582_s10  ;;  %v579_v16 = vsel %vm2661_vm2, %v577_v19, %v578_v1  ;;  %v704_v1 = vrot.slane %v702_v15, 4  ;;  %v707_v19 = vrot.slane %v705_v63, 4  ;;  %v446_v15 = vrot.slane %v444_v9, 4 }
  0x8b   : > { %483 = vrot.lane.b32.xlu1 %v413_v30, %s2582_s10  ;;  %v1536_v9 = vrot.slane %v1534_v20, 4 }
  0x8c   : > { %v3202_v44 = vpop.permute.xlu0 %1070  ;;  %v706_v6 = vsel %vm2661_vm2, %v704_v1, %v705_v63 }
  0x8d   : > { %v602_v51 = vpop.permute.xlu1 %601 }
  0x8e   : > { %1213 = vrot.lane.b32.xlu0 %v1183_v40, %s2581_s9  ;;  %v791_v40 = vld [vmem:[%s2659_s30 + $0x24] sm:$0xf] }
  0x8f   : > { %1215 = vrot.lane.b32.xlu1 %v1186_v7, %s2581_s9  ;;  %v436_v7 = vrot.slane %v434_v28, 4  ;;  %v871_v17 = vshrl.u32 %v791_v40, 16  ;;  %v709_v28 = vsel %vm2661_vm2, %v707_v19, %v708_v46  ;;  %v450_v46 = vshll.u32 %v3252_v55, 16 }
  0x90   : > { %v3221_v30 = vpop.permute.xlu0 %1197 }
  0x91   : > { %v729_v29 = vpop.permute.xlu1 %728  ;;  %v437_v21 = vor.u32 %v436_v7, %v2980_v4  ;;  %v873_v19 = vrot.slane %v871_v17, 5  ;;  %v3284_v7 = vrot.slane %v450_v46, 5  ;;  %v869_v17 = vrot.slane %v2996_v12, 4 }
  0x92   : > { %611 = vrot.lane.b32.xlu0 %v579_v16, %s2579_s7  ;;  %v874_v16 = vshll.u32 %v791_v40, 16  ;;  %v447_v40 = vor.u32 %v446_v15, %v3241_v23 }
  0x93   : > { %613 = vrot.lane.b32.xlu1 %v582_v35, %s2579_s7  ;;  %v294_v35 = vld [vmem:[%s2659_s30 + $0x2c] sm:$0xf] }
  0x94   : > { %v470_v37 = vpop.permute.xlu0 %469  ;;  %309 = vst.msk [vmem:[#allocation2 + $0x2c] sm:$0xf] %vm3850_vm4, %v294_v35  ;;  %v876_v63 = vrot.slane %v874_v16, 6  ;;  %v448_v15 = vrot.slane %v447_v40, 4  ;;  %vm1685_vm4 = vcmask 293888  }
  0x95   : > { %v1073_v18 = vpop.permute.xlu1 %1072  ;;  %512 = vst.msk [vmem:[#allocation2] sm:$0xf] %vm511_vm5, %v470_v37 }
  0x96   : > { %642 = vst.msk [vmem:[#allocation2] sm:$0xf] %vm641_vm6, %v600_v13  ;;  %1433 = vrot.lane.b32.xlu0 %v1370_v27, %s2584_s12  ;;  %v1533_v13 = vrot.slane %v1531_v5, 4  ;;  %v877_v37 = vor.u32 %v876_v63, %v873_v19  ;;  %v453_v16 = vsel %vm2734_vm10, %v448_v15, %v3284_v7  ;;  %v795_v19 = vld [vmem:[%s2659_s30 + $0x34] sm:$0xf] }
  0x97   : > { %1435 = vrot.lane.b32.xlu1 %v1380_v42, %s2584_s12  ;;  %769 = vst.msk [vmem:[#allocation2] sm:$0xf] %vm768_vm8, %v3188_v62  ;;  %v438_v62 = vrot.slane %v437_v21, 4  ;;  %v1135_v15 = vld [vmem:[%s2659_s30 + $0x2c] sm:$0xf] }
  0x98   : > { %v472_v32 = vpop.permute.xlu0 %471  ;;  %v1535_v4 = vsel %vm2792_vm1, %v1533_v13, %v1534_v20  ;;  %v879_v35 = vrot.slane %v877_v37, 4  ;;  %v878_v12 = vsel %vm2755_vm13, %v869_v17, %v877_v37  ;;  %v668_v13 = vld [vmem:[%s2659_s30 + $0x34] sm:$0xf]  ;;  %v914_v37 = vshll.u32 %v795_v19, 16 }
  0x99   : > { %v1200_v1 = vpop.permute.xlu1 %1199  ;;  %513 = vst.msk [vmem:[#allocation2 + $0x4] sm:$0xf] %vm511_vm5, %v472_v32  ;;  %v443_v20 = vsel %vm2734_vm10, %v438_v62, %v3241_v23  ;;  %v589_v23 = vrot.slane %v587_v34, 4  ;;  %v717_v34 = vrot.slane %v668_v13, 5  ;;  %v911_v62 = vshrl.u32 %v795_v19, 16 }
  0x9a   : > { %643 = vst.msk [vmem:[#allocation2 + $0x4] sm:$0xf] %vm641_vm6, %v602_v51  ;;  %738 = vrot.lane.b32.xlu0 %v706_v6, %s2578_s6  ;;  %v1538_v51 = vsel %vm2792_vm1, %v1536_v9, %v1537_v39  ;;  %v888_v32 = vsel %vm2755_vm13, %v879_v35, %v3083_v24  ;;  %v1176_v35 = vrot.slane %v1135_v15, 6 }
  0x9b   : > { %740 = vrot.lane.b32.xlu1 %v709_v28, %s2578_s6  ;;  %770 = vst.msk [vmem:[#allocation2 + $0x4] sm:$0xf] %vm768_vm8, %v729_v29  ;;  %v538_v29 = vld [vmem:[%s2659_s30 + $0x2c] sm:$0xf]  ;;  %v1005_v28 = vld [vmem:[%s2659_s30 + $0x24] sm:$0xf] }
  0x9c   : > { %v941_v27 = vpop.permute.xlu0 %940  ;;  %v1049_v9 = vrot.slane %v1005_v28, 6  ;;  %v921_v28 = vshrl.u32 %v796_v54, 16 }
  0x9d   : > { %v943_v42 = vpop.permute.xlu1 %942  ;;  %983 = vst.msk [vmem:[#allocation2] sm:$0xf] %vm982_vm9, %v941_v27 }
  0x9e   : > { %984 = vst.msk [vmem:[#allocation2 + $0x4] sm:$0xf] %vm982_vm9, %v943_v42  ;;  %1567 = vrot.lane.b32.xlu0 %v1535_v4, %s2585_s13  ;;  %v3331_v4 = vld [vmem:[%s2659_s30 + $0x38] sm:$0xf]  ;;  %v1262_v42 = vld [vmem:[%s2659_s30 + $0x2c] sm:$0xf] }
  0x9f   : > { %1113 = vst.msk [vmem:[#allocation2] sm:$0xf] %vm1112_vm11, %v3202_v44  ;;  %1114 = vst.msk [vmem:[#allocation2 + $0x4] sm:$0xf] %vm1112_vm11, %v1073_v18  ;;  %1569 = vrot.lane.b32.xlu1 %v1538_v51, %s2585_s13  ;;  %v590_v18 = vrot.slane %v538_v29, 5  ;;  %v1050_v29 = vsel %vm2672_vm7, %v1048_v58, %v1049_v9  ;;  %v720_v17 = vrot.slane %v3331_v4, 5 }
  0xa0   : > { %1240 = vst.msk [vmem:[#allocation2] sm:$0xf] %vm1239_vm12, %v3221_v30  ;;  %1241 = vst.msk [vmem:[#allocation2 + $0x4] sm:$0xf] %vm1239_vm12, %v1200_v1  ;;  %v1418_v44 = vpop.permute.xlu0 %1417  ;;  %v3307_v30 = vld [vmem:[%s2659_s30 + $0x30] sm:$0xf] }
  0xa1   : > { %v1420_v6 = vpop.permute.xlu1 %1419  ;;  %1460 = vst.msk [vmem:[#allocation2] sm:$0xf] %vm3851_vm14, %v1418_v44  ;;  %v592_v40 = vrot.slane %v590_v18, 4  ;;  %v593_v46 = vrot.slane %v3307_v30, 5  ;;  %v591_v24 = vsel %vm2661_vm2, %v589_v23, %v590_v18  ;;  %v1051_v1 = vrot.slane %v1049_v9, 4 }
  0xa2   : > { %1461 = vst.msk [vmem:[#allocation2 + $0x4] sm:$0xf] %vm3851_vm14, %v1420_v6  ;;  %489 = vrot.lane.b32.xlu0 %v443_v20, %s2582_s10  ;;  %v719_v20 = vrot.slane %v717_v34, 4  ;;  %v716_v44 = vrot.slane %v714_v60, 4  ;;  %v913_v18 = vrot.slane %v911_v62, 5  ;;  %v924_v23 = vshll.u32 %v796_v54, 16 }
  0xa3   : > { %491 = vrot.lane.b32.xlu1 %v453_v16, %s2582_s10  ;;  %v594_v51 = vsel %vm2661_vm2, %v592_v40, %v593_v46  ;;  %v1053_v16 = vsel %vm2672_vm7, %v1051_v1, %v1052_v47  ;;  %v1343_v9 = vshrl.u32 %v1262_v42, 16  ;;  %v1346_v13 = vshll.u32 %v1262_v42, 16 }
  0xa4   : > { %v1552_v21 = vpop.permute.xlu0 %1551  ;;  %v718_v60 = vsel %vm2661_vm2, %v716_v44, %v717_v34  ;;  %v721_v26 = vsel %vm2661_vm2, %v719_v20, %v720_v17  ;;  %v1178_v47 = vrot.slane %v1176_v35, 4  ;;  %v923_v40 = vrot.slane %v921_v28, 5 }
  0xa5   : > { %v1554_v63 = vpop.permute.xlu1 %1553  ;;  %1594 = vst.msk [vmem:[#allocation2] sm:$0xf] %vm3852_vm0, %v1552_v21  ;;  %v926_v58 = vrot.slane %v924_v23, 6  ;;  %v1348_v34 = vrot.slane %v1346_v13, 7 }
  0xa6   : > { %1595 = vst.msk [vmem:[#allocation2 + $0x4] sm:$0xf] %vm3852_vm0, %v1554_v63  ;;  %952 = vrot.lane.b32.xlu0 %v878_v12, %s2583_s11  ;;  %v916_v12 = vrot.slane %v914_v37, 6  ;;  %v1009_v37 = vld [vmem:[%s2659_s30 + $0x34] sm:$0xf] }
  0xa7   : > { %954 = vrot.lane.b32.xlu1 %v888_v32, %s2583_s11  ;;  %v1175_v32 = vrot.slane %v1173_v45, 4  ;;  %v909_v45 = vrot.slane %v3096_v59, 4  ;;  %v3379_v15 = vor.u32 %v926_v58, %v923_v40  ;;  %v1061_v42 = vrot.slane %v1009_v37, 6 }
  0xa8   : > { %v474_v27 = vpop.permute.xlu0 %473  ;;  %v917_v63 = vor.u32 %v916_v12, %v913_v18  ;;  %v1266_v18 = vld [vmem:[%s2659_s30 + $0x3c] sm:$0xf]  ;;  %v1060_v12 = vrot.slane %v1058_v49, 4 }
  0xa9   : > { %v476_v52 = vpop.permute.xlu1 %475  ;;  %514 = vst.msk [vmem:[#allocation2 + $0x8] sm:$0xf] %vm511_vm5, %v474_v27  ;;  %v1177_v57 = vsel %vm2672_vm7, %v1175_v32, %v1176_v35  ;;  %v1180_v27 = vsel %vm2672_vm7, %v1178_v47, %v1179_v14  ;;  %v3390_v14 = vld [vmem:[%s2659_s30 + $0x38] sm:$0xf]  ;;  %v1267_v47 = vld [vmem:[%s2659_s30 + $0x40] sm:$0xf] }
  0xaa   : > { %515 = vst.msk [vmem:[#allocation2 + $0xc] sm:$0xf] %vm511_vm5, %v476_v52  ;;  %619 = vrot.lane.b32.xlu0 %v591_v24, %s2579_s7  ;;  %v1345_v24 = vrot.slane %v1343_v9, 6  ;;  %v918_v59 = vsel %vm2755_vm13, %v909_v45, %v917_v63  ;;  %v1064_v36 = vrot.slane %v3390_v14, 6  ;;  %v1396_v2 = vshll.u32 %v1267_v47, 16 }
  0xab   : > { %621 = vrot.lane.b32.xlu1 %v594_v51, %s2579_s7  ;;  %v919_v51 = vrot.slane %v917_v63, 4  ;;  %v3424_v63 = vld [vmem:[%s2659_s30 + $0x40] sm:$0xf] }
  0xac   : > { %v604_v6 = vpop.permute.xlu0 %603  ;;  %v1349_v54 = vor.u32 %v1348_v34, %v1345_v24  ;;  %v1393_v34 = vshrl.u32 %v1267_v47, 16 }
  0xad   : > { %v606_v21 = vpop.permute.xlu1 %605  ;;  %644 = vst.msk [vmem:[#allocation2 + $0x8] sm:$0xf] %vm641_vm6, %v604_v6  ;;  %v2531_v38 = vld [vmem:[#allocation2] sm:$0xff]   ;;  %v928_v20 = vsel %vm2755_vm13, %v919_v51, %v3379_v15  ;;  %v1063_v6 = vrot.slane %v1061_v42, 4 }
  0xae   : > { %645 = vst.msk [vmem:[#allocation2 + $0xc] sm:$0xf] %vm641_vm6, %v606_v21  ;;  %1082 = vrot.lane.b32.xlu0 %v1050_v29, %s2580_s8  ;;  %2404 = vmatmul.mubr.msk.bf16.vlgmr.msra.gmra.mxu0 %vm1685_vm4, %v2531_v38  ;;  %v1351_v44 = vrot.slane %v1349_v54, 4  ;;  %v1350_v28 = vsel %vm2774_vm15, %v1341_v10, %v1349_v54  ;;  %v1139_v21 = vld [vmem:[%s2659_s30 + $0x3c] sm:$0xf]  ;;  %v1383_v38 = vshrl.u32 %v1266_v18, 16 }
  0xaf   : > { %1084 = vrot.lane.b32.xlu1 %v1053_v16, %s2580_s8  ;;  %2407 = vmatprep.mubr.msk.bf16.mxu0 %vm2587_vm3, %v2586_v48  ;;  %v1482_v16 = vld [vmem:[%s2659_s30 + $0x2c] sm:$0xf]  ;;  %v1065_v49 = vsel %vm2672_vm7, %v1063_v6, %v1064_v36  ;;  %v1188_v40 = vrot.slane %v1139_v21, 6  ;;  %v326_v10 = vld [vmem:[%s2659_s30 + $0x34] sm:$0x7] }
  0xb0   : > { %v731_v19 = vpop.permute.xlu0 %730  ;;  %v1528_v23 = vrot.slane %v1482_v16, 7  ;;  %v1360_v13 = vsel %vm2774_vm15, %v1351_v44, %v3199_v43  ;;  %v1062_v43 = vsel %vm2672_vm7, %v1060_v12, %v1061_v42  ;;  %v1385_v58 = vrot.slane %v1383_v38, 6  ;;  %v296_v6 = vld [vmem:[%s2659_s30 + $0x34] sm:$0x3]  ;;  %v295_v12 = vld [vmem:[%s2659_s30 + $0x30] sm:$0xf] }
  0xb1   : > { %v733_v1 = vpop.permute.xlu1 %732  ;;  %771 = vst.msk [vmem:[#allocation2 + $0x8] sm:$0xf] %vm768_vm8, %v731_v19  ;;  %v1190_v54 = vrot.slane %v1188_v40, 4 }
  0xb2   : > { %772 = vst.msk [vmem:[#allocation2 + $0xc] sm:$0xf] %vm768_vm8, %v733_v1  ;;  %746 = vrot.lane.b32.xlu0 %v718_v60, %s2578_s6  ;;  %v1386_v60 = vshll.u32 %v1266_v18, 16  ;;  %v1530_v32 = vrot.slane %v1528_v23, 4  ;;  %v454_v1 = vshrl.u32 %v3252_v55, 16  ;;  %v1529_v45 = vsel %vm2792_vm1, %v1527_v33, %v1528_v23 }
  0xb3   : > { %748 = vrot.lane.b32.xlu1 %v721_v26, %s2578_s6 }
  0xb4   : > { %v945_v62 = vpop.permute.xlu0 %944  ;;  %v1388_v24 = vrot.slane %v1386_v60, 7  ;;  %v456_v44 = vrot.slane %v454_v1, 4  ;;  %v595_v1 = vrot.slane %v593_v46, 4 }
  0xb5   : > { %v947_v52 = vpop.permute.xlu1 %946  ;;  %985 = vst.msk [vmem:[#allocation2 + $0x8] sm:$0xf] %vm982_vm9, %v945_v62  ;;  %v1191_v62 = vrot.slane %v3424_v63, 6 }
  0xb6   : > { %986 = vst.msk [vmem:[#allocation2 + $0xc] sm:$0xf] %vm982_vm9, %v947_v52  ;;  %1209 = vrot.lane.b32.xlu0 %v1177_v57, %s2581_s9  ;;  %v1532_v57 = vsel %vm2792_vm1, %v1530_v32, %v1531_v5  ;;  %v1389_v37 = vor.u32 %v1388_v24, %v1385_v58  ;;  %v1395_v52 = vrot.slane %v1393_v34, 6  ;;  %v1381_v5 = vrot.slane %v3227_v22, 4  ;;  %v797_v34 = vld [vmem:[%s2659_s30 + $0x3c] sm:$0xf] }
  0xb7   : > { %1211 = vrot.lane.b32.xlu1 %v1180_v27, %s2581_s9  ;;  %v3865_v27 = vrot.slane %v3169_v41, 6  ;;  %v1540_v22 = vrot.slane %v1486_v8, 7 }
  0xb8   : > { %v1075_v29 = vpop.permute.xlu0 %1074  ;;  %v1391_v18 = vrot.slane %v1389_v37, 4  ;;  %v1390_v21 = vsel %vm2774_vm15, %v1381_v5, %v1389_v37  ;;  %v1268_v5 = vld [vmem:[%s2659_s30 + $0x44] sm:$0xf] }
  0xb9   : > { %v1077_v35 = vpop.permute.xlu1 %1076  ;;  %1115 = vst.msk [vmem:[#allocation2 + $0x8] sm:$0xf] %vm1112_vm11, %v1075_v29  ;;  %v1187_v55 = vrot.slane %v3865_v27, 4  ;;  %v460_v29 = vshll.u32 %v326_v10, 16  ;;  %v670_v27 = vld [vmem:[%s2659_s30 + $0x3c] sm:$0x7] }
  0xba   : > { %1116 = vst.msk [vmem:[#allocation2 + $0xc] sm:$0xf] %vm1112_vm11, %v1077_v35  ;;  %960 = vrot.lane.b32.xlu0 %v918_v59, %s2583_s11  ;;  %v1398_v59 = vrot.slane %v1396_v2, 7  ;;  %v1192_v35 = vsel %vm2672_vm7, %v1190_v54, %v1191_v62  ;;  %v723_v46 = vrot.slane %v670_v27, 5 }
  0xbb   : > { %962 = vrot.lane.b32.xlu1 %v928_v20, %s2583_s11  ;;  %v1189_v41 = vsel %vm2672_vm7, %v1187_v55, %v1188_v40  ;;  %v464_v20 = vshrl.u32 %v326_v10, 16  ;;  %v462_v38 = vrot.slane %v460_v29, 5  ;;  %v931_v55 = vshrl.u32 %v797_v34, 16 }
  0xbc   : > { %v1202_v9 = vpop.permute.xlu0 %1201 }
  0xbd   : > { %v1204_v26 = vpop.permute.xlu1 %1203  ;;  %1242 = vst.msk [vmem:[#allocation2 + $0x8] sm:$0xf] %vm1239_vm12, %v1202_v9  ;;  %v3459_v9 = vld [vmem:[%s2659_s30 + $0x40] sm:$0xf]  ;;  %v466_v60 = vrot.slane %v464_v20, 4 }
  0xbe   : > { %1243 = vst.msk [vmem:[#allocation2 + $0xc] sm:$0xf] %vm1239_vm12, %v1204_v26  ;;  %1429 = vrot.lane.b32.xlu0 %v1350_v28, %s2584_s12  ;;  %v3453_v28 = vor.u32 %v1398_v59, %v1395_v52  ;;  %v457_v26 = vor.u32 %v456_v44, %v3284_v7  ;;  %v1543_v31 = vrot.slane %v3459_v9, 7  ;;  %v722_v52 = vrot.slane %v720_v17, 4  ;;  %v1011_v44 = vld [vmem:[%s2659_s30 + $0x3c] sm:$0xf] }
  0xbf   : > { %1431 = vrot.lane.b32.xlu1 %v1360_v13, %s2584_s12  ;;  %v1539_v13 = vrot.slane %v1537_v39, 4  ;;  %v467_v32 = vor.u32 %v466_v60, %v462_v38  ;;  %v933_v59 = vrot.slane %v931_v55, 5  ;;  %v929_v17 = vrot.slane %v3379_v15, 4  ;;  %v1269_v60 = vld [vmem:[%s2659_s30 + $0x48] sm:$0x1]  ;;  %v3574_v9 = vld [vmem:[%s3846_s3 + $0x10] sm:$0xff] }
  0xc0   : > { %v1422_v19 = vpop.permute.xlu0 %1421  ;;  %v1400_v33 = vsel %vm2774_vm15, %v1391_v18, %v3453_v28  ;;  %v458_v40 = vrot.slane %v457_v26, 4  ;;  %v724_v29 = vsel %vm2661_vm2, %v722_v52, %v723_v46  ;;  %v1066_v15 = vrot.slane %v1064_v36, 4 }
  0xc1   : > { %v1424_v61 = vpop.permute.xlu1 %1423  ;;  %1462 = vst.msk [vmem:[#allocation2 + $0x8] sm:$0xf] %vm3851_vm14, %v1422_v19  ;;  %v1541_v7 = vsel %vm2792_vm1, %v1539_v13, %v1540_v22  ;;  %v540_v19 = vld [vmem:[%s2659_s30 + $0x34] sm:$0x7]  ;;  %v1193_v26 = vrot.slane %v1191_v62, 4  ;;  %v1401_v62 = vrot.slane %v3453_v28, 4 }
  0xc2   : > { %1463 = vst.msk [vmem:[#allocation2 + $0xc] sm:$0xf] %vm3851_vm14, %v1424_v61  ;;  %1090 = vrot.lane.b32.xlu0 %v1062_v43, %s2580_s8  ;;  %vm311_vm14 = vcmask 25600   ;;  %v596_v61 = vrot.slane %v540_v19, 5 }
  0xc3   : > { %1092 = vrot.lane.b32.xlu1 %v1065_v49, %s2580_s8  ;;  %312 = vst.msk [vmem:[#allocation2 + $0x34] sm:$0x3] %vm311_vm14, %v296_v6  ;;  %v1542_v49 = vrot.slane %v1540_v22, 4  ;;  %v1067_v6 = vrot.slane %v1011_v44, 6 }
  0xc4   : > { %v1556_v51 = vpop.permute.xlu0 %1555  ;;  %v598_v30 = vrot.slane %v596_v61, 4  ;;  %v597_v56 = vsel %vm2661_vm2, %v595_v1, %v596_v61  ;;  %v3550_v61 = vld [vmem:[%s3846_s3] sm:$0xff]  ;;  %v1545_v1 = vrot.slane %v1543_v31, 4 }
  0xc5   : > { %v1558_v42 = vpop.permute.xlu1 %1557  ;;  %1596 = vst.msk [vmem:[#allocation2 + $0x8] sm:$0xf] %vm3852_vm0, %v1556_v51  ;;  %v1544_v24 = vsel %vm2792_vm1, %v1542_v49, %v1543_v31  ;;  %v934_v51 = vshll.u32 %v797_v34, 16  ;;  %v1069_v25 = vrot.slane %v1067_v6, 4  ;;  %v1068_v14 = vsel %vm2672_vm7, %v1066_v15, %v1067_v6  ;;  %v1489_v34 = vld [vmem:[%s2659_s30 + $0x48] sm:$0x1] }
  0xc6   : > { %1597 = vst.msk [vmem:[#allocation2 + $0xc] sm:$0xf] %vm3852_vm0, %v1558_v42  ;;  %1563 = vrot.lane.b32.xlu0 %v1529_v45, %s2585_s13  ;;  %vm3866_vm0 = vcmask 27648   ;;  %v463_v45 = vsel %vm2734_vm10, %v458_v40, %v462_v38  ;;  %v1413_v49 = vshll.u32 %v1269_v60, 16  ;;  %v1549_v55 = vrot.slane %v1489_v34, 7  ;;  %v3636_v6 = vld [vmem:[%s3846_s3 + $0x40] sm:$0xff] }
  0xc7   : > { %1565 = vrot.lane.b32.xlu1 %v1532_v57, %s2585_s13  ;;  %310 = vst.msk [vmem:[#allocation2 + $0x30] sm:$0xf] %vm3866_vm0, %v295_v12  ;;  %v468_v57 = vrot.slane %v467_v32, 4  ;;  %v936_v10 = vrot.slane %v934_v51, 6  ;;  %vm3869_vm0 = vcmask 290048   ;;  %v3643_v15 = vld [vmem:[%s3846_s3 + $0x48] sm:$0xff] }
  0xc8   : > { %v478_v16 = vpop.permute.xlu0 %477  ;;  %v1415_v19 = vrot.slane %v1413_v49, 7 }
  0xc9   : > { %v480_v23 = vpop.permute.xlu1 %479  ;;  %516 = vst.msk [vmem:[#allocation2 + $0x10] sm:$0xf] %vm511_vm5, %v478_v16  ;;  %v937_v4 = vor.u32 %v936_v10, %v933_v59  ;;  %v1403_v16 = vshrl.u32 %v1268_v5, 16  ;;  %v3596_v10 = vld [vmem:[%s3846_s3 + $0x20] sm:$0xff] }
  0xca   : > { %517 = vst.msk [vmem:[#allocation2 + $0x14] sm:$0xf] %vm511_vm5, %v480_v23  ;;  %1217 = vrot.lane.b32.xlu0 %v1189_v41, %s2581_s9  ;;  %v725_v41 = vrot.slane %v723_v46, 4  ;;  %v1141_v23 = vld [vmem:[%s2659_s30 + $0x44] sm:$0xf] }
  0xcb   : > { %1219 = vrot.lane.b32.xlu1 %v1192_v35, %s2581_s9  ;;  %v1406_v35 = vshll.u32 %v1268_v5, 16  ;;  %v939_v0 = vrot.slane %v937_v4, 4  ;;  %v938_v22 = vsel %vm2755_vm13, %v929_v17, %v937_v4  ;;  %v1405_v13 = vrot.slane %v1403_v16, 6  ;;  %v3616_v17 = vld [vmem:[%s3846_s3 + $0x30] sm:$0xff] }
  0xcc   : > { %v608_v47 = vpop.permute.xlu0 %607  ;;  %v1194_v36 = vrot.slane %v1141_v23, 6 }
  0xcd   : > { %v610_v39 = vpop.permute.xlu1 %609  ;;  %646 = vst.msk [vmem:[#allocation2 + $0x10] sm:$0xf] %vm641_vm6, %v608_v47  ;;  %v2532_v43 = vld [vmem:[#allocation2 + $0x8] sm:$0xff]  }
  0xce   : > { %647 = vst.msk [vmem:[#allocation2 + $0x14] sm:$0xf] %vm641_vm6, %v610_v39  ;;  %1437 = vrot.lane.b32.xlu0 %v1390_v21, %s2584_s12  ;;  %2408 = vmatmul.mubr.msk.bf16.gmra.mxu0 %vm1685_vm4, %v2532_v43  ;;  %v1408_v21 = vrot.slane %v1406_v35, 7  ;;  %v1488_v43 = vld [vmem:[%s2659_s30 + $0x44] sm:$0xf]  ;;  %v1195_v63 = vsel %vm2672_vm7, %v1193_v26, %v1194_v36  ;;  %vm3867_vm7 = vcmask 257248  }
  0xcf   : > { %1439 = vrot.lane.b32.xlu1 %v1400_v33, %s2584_s12  ;;  %2411 = vmatprep.mubr.msk.bf16.mxu0 %vm2587_vm3, %v2586_v48  ;;  %vm3868_vm13 = vmmov %vm3867_vm7 }
  0xd0   : > { %v735_v58 = vpop.permute.xlu0 %734  ;;  %v1409_v33 = vor.u32 %v1408_v21, %v1405_v13 }
  0xd1   : > { %v737_v2 = vpop.permute.xlu1 %736  ;;  %773 = vst.msk [vmem:[#allocation2 + $0x10] sm:$0xf] %vm768_vm8, %v735_v58  ;;  %v1546_v58 = vrot.slane %v1488_v43, 7 }
  0xd2   : > { %774 = vst.msk [vmem:[#allocation2 + $0x14] sm:$0xf] %vm768_vm8, %v737_v2  ;;  %1571 = vrot.lane.b32.xlu0 %v1541_v7, %s2585_s13  ;;  %v1196_v7 = vrot.slane %v1194_v36, 4  ;;  %v1411_v40 = vrot.slane %v1409_v33, 4  ;;  %v3545_v2 = vstv %s1898_s27  ;;  %v1410_v28 = vsel %vm2774_vm15, %v1401_v62, %v1409_v33 }
  0xd3   : > { %1573 = vrot.lane.b32.xlu1 %v1544_v24, %s2585_s13  ;;  %v1548_v27 = vrot.slane %v1546_v58, 4  ;;  %v1900_v51 = vadd.s32 %v3545_v2, %v3550_v61  ;;  %v1547_v31 = vsel %vm2792_vm1, %v1545_v1, %v1546_v58  ;;  %v1903_v59 = vadd.s32 %v3545_v2, %v3581_v53 }
  0xd4   : > { %v486_v54 = vpop.permute.xlu0 %485  ;;  %v1905_v4 = vadd.s32 %v3545_v2, %v3603_v3  ;;  %v1908_v21 = vadd.s32 %v3545_v2, %v3636_v6  ;;  %v1909_v60 = vadd.s32 %v3545_v2, %v3643_v15 }
  0xd5   : > { %v488_v37 = vpop.permute.xlu1 %487  ;;  %520 = vst.msk [vmem:[#allocation2 + $0x20] sm:$0xf] %vm511_vm5, %v486_v54  ;;  %v1550_v46 = vsel %vm2792_vm1, %v1548_v27, %v1549_v55  ;;  %vm1914_vm2 = vcmp.lt.s32.totalorder %v1900_v51, 16  ;;  %vm1917_vm1 = vcmp.lt.s32.totalorder %v1903_v59, 16 }
  0xd6   : > { %521 = vst.msk [vmem:[#allocation2 + $0x24] sm:$0xf] %vm511_vm5, %v488_v37  ;;  %493 = vrot.lane.b32.xlu0 %v463_v45, %s2582_s10  ;;  %v1416_v45 = vsel %vm2774_vm15, %v1411_v40, %v1415_v19  ;;  %v1901_v37 = vadd.s32 %v3545_v2, %v3557_v11  ;;  %v1931_v35 = vsel %vm1917_vm1, 1, %v2588_v50  ;;  %vm1923_vm1 = vcmp.lt.s32.totalorder %v1909_v60, 16 }
  0xd7   : > { %495 = vrot.lane.b32.xlu1 %v468_v57, %s2582_s10  ;;  %v1937_v40 = vsel %vm1923_vm1, 1, %v2588_v50 }
  0xd8   : > { %v949_v42 = vpop.permute.xlu0 %948  ;;  %vm1915_vm10 = vcmp.lt.s32.totalorder %v1901_v37, 16 }
  0xd9   : > { %v951_v8 = vpop.permute.xlu1 %950  ;;  %987 = vst.msk [vmem:[#allocation2 + $0x10] sm:$0xf] %vm982_vm9, %v949_v42  ;;  %v1928_v42 = vsel %vm1914_vm2, 1, %v2588_v50  ;;  %v1929_v5 = vsel %vm1915_vm10, 1, %v2588_v50  ;;  %vm1919_vm2 = vcmp.lt.s32.totalorder %v1905_v4, 16 }
  0xda   : > { %988 = vst.msk [vmem:[#allocation2 + $0x14] sm:$0xf] %vm982_vm9, %v951_v8  ;;  %623 = vrot.lane.b32.xlu0 %v597_v56, %s2579_s7  ;;  %v1902_v56 = vadd.s32 %v3545_v2, %v3574_v9  ;;  %v1933_v13 = vsel %vm1919_vm2, 1, %v2588_v50 }
  0xdb   : > { %625 = vrot.lane.b32.xlu1 %v598_v30, %s2579_s7 }
  0xdc   : > { %v616_v20 = vpop.permute.xlu0 %615  ;;  %vm1916_vm15 = vcmp.lt.s32.totalorder %v1902_v56, 16 }
  0xdd   : > { %v618_v18 = vpop.permute.xlu1 %617  ;;  %650 = vst.msk [vmem:[#allocation2 + $0x20] sm:$0xf] %vm641_vm6, %v616_v20  ;;  %v3623_v20 = vld [vmem:[%s3846_s3 + $0x38] sm:$0xff]  ;;  %v1930_v44 = vsel %vm1916_vm15, 1, %v2588_v50  ;;  %vm1922_vm15 = vcmp.lt.s32.totalorder %v1908_v21, 16 }
  0xde   : > { %651 = vst.msk [vmem:[#allocation2 + $0x24] sm:$0xf] %vm641_vm6, %v618_v18  ;;  %750 = vrot.lane.b32.xlu0 %v724_v29, %s2578_s6  ;;  %v1906_v18 = vadd.s32 %v3545_v2, %v3616_v17  ;;  %v1936_v62 = vsel %vm1922_vm15, 1, %v2588_v50  ;;  %vm3873_vm15 = vcmask 290048  }
  0xdf   : > { %752 = vrot.lane.b32.xlu1 %v725_v41, %s2578_s6  ;;  %v1904_v41 = vadd.s32 %v3545_v2, %v3596_v10  ;;  %vm3874_vm1 = vmmov %vm3873_vm15 }
  0xe0   : > { %v1079_v12 = vpop.permute.xlu0 %1078  ;;  %vm1920_vm10 = vcmp.lt.s32.totalorder %v1906_v18, 16 }
  0xe1   : > { %v1081_v38 = vpop.permute.xlu1 %1080  ;;  %1117 = vst.msk [vmem:[#allocation2 + $0x10] sm:$0xf] %vm1112_vm11, %v1079_v12  ;;  %vm1918_vm14 = vcmp.lt.s32.totalorder %v1904_v41, 16  ;;  %v1934_v36 = vsel %vm1920_vm10, 1, %v2588_v50 }
  0xe2   : > { %1118 = vst.msk [vmem:[#allocation2 + $0x14] sm:$0xf] %vm1112_vm11, %v1081_v38  ;;  %964 = vrot.lane.b32.xlu0 %v938_v22, %s2583_s11  ;;  %v1907_v22 = vadd.s32 %v3545_v2, %v3623_v20  ;;  %v1932_v12 = vsel %vm1918_vm14, 1, %v2588_v50 }
  0xe3   : > { %966 = vrot.lane.b32.xlu1 %v939_v0, %s2583_s11 }
  0xe4   : > { %v743_v47 = vpop.permute.xlu0 %742 }
  0xe5   : > { %v745_v39 = vpop.permute.xlu1 %744  ;;  %777 = vst.msk [vmem:[#allocation2 + $0x20] sm:$0xf] %vm768_vm8, %v743_v47 }
  0xe6   : > { %778 = vst.msk [vmem:[#allocation2 + $0x24] sm:$0xf] %vm768_vm8, %v745_v39  ;;  %1094 = vrot.lane.b32.xlu0 %v1068_v14, %s2580_s8  ;;  %v3663_v14 = vld [vmem:[%s3846_s3 + $0x58] sm:$0xff] }
  0xe7   : > { %1096 = vrot.lane.b32.xlu1 %v1069_v25, %s2580_s8  ;;  %v3656_v25 = vld [vmem:[%s3846_s3 + $0x50] sm:$0xff]  ;;  %v1911_v43 = vadd.s32 %v3545_v2, %v3663_v14 }
  0xe8   : > { %v1206_v32 = vpop.permute.xlu0 %1205  ;;  %v1910_v33 = vadd.s32 %v3545_v2, %v3656_v25 }
  0xe9   : > { %v1208_v24 = vpop.permute.xlu1 %1207  ;;  %1244 = vst.msk [vmem:[#allocation2 + $0x10] sm:$0xf] %vm1239_vm12, %v1206_v32 }
  0xea   : > { %1245 = vst.msk [vmem:[#allocation2 + $0x14] sm:$0xf] %vm1239_vm12, %v1208_v24  ;;  %1221 = vrot.lane.b32.xlu0 %v1195_v63, %s2581_s9  ;;  %v3683_v63 = vld [vmem:[%s3846_s3 + $0x68] sm:$0xf]  ;;  %vm1924_vm14 = vcmp.lt.s32.totalorder %v1910_v33, 16 }
  0xeb   : > { %1223 = vrot.lane.b32.xlu1 %v1196_v7, %s2581_s9  ;;  %v3676_v7 = vld [vmem:[%s3846_s3 + $0x60] sm:$0xff]  ;;  %v1913_v24 = vadd.s32 %v3545_v2, %v3683_v63  ;;  %v1938_v34 = vsel %vm1924_vm14, 1, %v2588_v50 }
  0xec   : > { %v957_v57 = vpop.permute.xlu0 %956  ;;  %v1912_v19 = vadd.s32 %v3545_v2, %v3676_v7 }
  0xed   : > { %v959_v54 = vpop.permute.xlu1 %958  ;;  %991 = vst.msk [vmem:[#allocation2 + $0x20] sm:$0xf] %vm982_vm9, %v957_v57  ;;  %vm1927_vm10 = vcmp.lt.s32.totalorder %v1913_v24, 16 }
  0xee   : > { %992 = vst.msk [vmem:[#allocation2 + $0x24] sm:$0xf] %vm982_vm9, %v959_v54  ;;  %1441 = vrot.lane.b32.xlu0 %v1410_v28, %s2584_s12  ;;  %vm1926_vm2 = vcmp.lt.s32.totalorder %v1912_v19, 16  ;;  %v1941_v27 = vsel %vm1927_vm10, 1, %v2588_v50 }
  0xef   : > { %1443 = vrot.lane.b32.xlu1 %v1416_v45, %s2584_s12  ;;  %v1940_v2 = vsel %vm1926_vm2, 1, %v2588_v50  ;;  %vm3877_vm2 = vmmov %vm3874_vm1 }
  0xf0   : > { %v1426_v30 = vpop.permute.xlu0 %1425 }
  0xf1   : > { %v1428_v52 = vpop.permute.xlu1 %1427  ;;  %1464 = vst.msk [vmem:[#allocation2 + $0x10] sm:$0xf] %vm3867_vm7, %v1426_v30  ;;  %vm3870_vm7 = vmmov %vm3869_vm0 }
  0xf2   : > { %1465 = vst.msk [vmem:[#allocation2 + $0x14] sm:$0xf] %vm3868_vm13, %v1428_v52  ;;  %1575 = vrot.lane.b32.xlu0 %v1547_v31, %s2585_s13  ;;  %vm1921_vm13 = vcmp.lt.s32.totalorder %v1907_v22, 16 }
  0xf3   : > { %1577 = vrot.lane.b32.xlu1 %v1550_v46, %s2585_s13  ;;  %s2589_s13 = smov 127   ;;  %v1935_v47 = vsel %vm1921_vm13, 1, %v2588_v50 }
  0xf4   : > { %v1087_v8 = vpop.permute.xlu0 %1086 }
  0xf5   : > { %v1089_v29 = vpop.permute.xlu1 %1088  ;;  %1121 = vst.msk [vmem:[#allocation2 + $0x20] sm:$0xf] %vm1112_vm11, %v1087_v8 }
  0xf6   : > { %1122 = vst.msk [vmem:[#allocation2 + $0x24] sm:$0xf] %vm1112_vm11, %v1089_v29  ;;  %1942 = vrot.lane.b32.xlu0 %v1928_v42, %s2589_s13 }
  0xf7   : > { %1944 = vrot.lane.b32.xlu1 %v1929_v5, %s2589_s13 }
  0xf8   : > { %v1560_v16 = vpop.permute.xlu0 %1559 }
  0xf9   : > { %v1562_v0 = vpop.permute.xlu1 %1561  ;;  %1598 = vst.msk [vmem:[#allocation2 + $0x10] sm:$0xf] %vm3869_vm0, %v1560_v16  ;;  %vm1925_vm0 = vcmp.lt.s32.totalorder %v1911_v43, 16 }
  0xfa   : > { %1599 = vst.msk [vmem:[#allocation2 + $0x14] sm:$0xf] %vm3870_vm7, %v1562_v0  ;;  %1946 = vrot.lane.b32.xlu0 %v1930_v44, %s2589_s13  ;;  %v1939_v1 = vsel %vm1925_vm0, 1, %v2588_v50  ;;  %vm3871_vm7 = vcmask 257248  }
  0xfb   : > { %1948 = vrot.lane.b32.xlu1 %v1931_v35, %s2589_s13  ;;  %vm3872_vm13 = vmmov %vm3871_vm7 }
  0xfc   : > { %v482_v23 = vpop.permute.xlu0 %481  ;;  %vm3875_vm14 = vmmov %vm3871_vm7 }
  0xfd   : > { %v484_v38 = vpop.permute.xlu1 %483  ;;  %518 = vst.msk [vmem:[#allocation2 + $0x18] sm:$0xf] %vm511_vm5, %v482_v23  ;;  %vm3876_vm0 = vmmov %vm3871_vm7 }
  0xfe   : > { %519 = vst.msk [vmem:[#allocation2 + $0x1c] sm:$0xf] %vm511_vm5, %v484_v38  ;;  %1950 = vrot.lane.b32.xlu0 %v1932_v12, %s2589_s13  ;;  %vm3879_vm10 = vmmov %vm3876_vm0 }
  0xff   : > { %1952 = vrot.lane.b32.xlu1 %v1933_v13, %s2589_s13 }
 0x100   : > { %v1214_v26 = vpop.permute.xlu0 %1213 }
 0x101   : > { %v1216_v49 = vpop.permute.xlu1 %1215  ;;  %1248 = vst.msk [vmem:[#allocation2 + $0x20] sm:$0xf] %vm1239_vm12, %v1214_v26  ;;  %v2533_v39 = vld [vmem:[#allocation2 + $0x10] sm:$0xff]  }
 0x102   : > { %1249 = vst.msk [vmem:[#allocation2 + $0x24] sm:$0xf] %vm1239_vm12, %v1216_v49  ;;  %1954 = vrot.lane.b32.xlu0 %v1934_v36, %s2589_s13  ;;  %2412 = vmatmul.mubr.msk.bf16.gmra.mxu0 %vm1685_vm4, %v2533_v39 }
 0x103   : > { %1956 = vrot.lane.b32.xlu1 %v1935_v47, %s2589_s13  ;;  %2415 = vmatprep.mubr.msk.bf16.mxu0 %vm2587_vm3, %v2586_v48 }
 0x104   : > { %v612_v32 = vpop.permute.xlu0 %611 }
 0x105   : > { %v614_v58 = vpop.permute.xlu1 %613  ;;  %648 = vst.msk [vmem:[#allocation2 + $0x18] sm:$0xf] %vm641_vm6, %v612_v32 }
 0x106   : > { %649 = vst.msk [vmem:[#allocation2 + $0x1c] sm:$0xf] %vm641_vm6, %v614_v58  ;;  %1958 = vrot.lane.b32.xlu0 %v1936_v62, %s2589_s13 }
 0x107   : > { %1960 = vrot.lane.b32.xlu1 %v1937_v40, %s2589_s13 }
 0x108   : > { %v1434_v28 = vpop.permute.xlu0 %1433 }
 0x109   : > { %v1436_v57 = vpop.permute.xlu1 %1435  ;;  %1468 = vst.msk [vmem:[#allocation2 + $0x20] sm:$0xf] %vm3871_vm7, %v1434_v28  ;;  %vm3878_vm7 = vmmov %vm3874_vm1 }
 0x10a   : > { %1469 = vst.msk [vmem:[#allocation2 + $0x24] sm:$0xf] %vm3872_vm13, %v1436_v57  ;;  %1962 = vrot.lane.b32.xlu0 %v1938_v34, %s2589_s13  ;;  %vm3880_vm13 = vmmov %vm3876_vm0 }
 0x10b   : > { %1964 = vrot.lane.b32.xlu1 %v1939_v1, %s2589_s13 }
 0x10c   : > { %v739_v45 = vpop.permute.xlu0 %738 }
 0x10d   : > { %v741_v55 = vpop.permute.xlu1 %740  ;;  %775 = vst.msk [vmem:[#allocation2 + $0x18] sm:$0xf] %vm768_vm8, %v739_v45 }
 0x10e   : > { %776 = vst.msk [vmem:[#allocation2 + $0x1c] sm:$0xf] %vm768_vm8, %v741_v55  ;;  %1966 = vrot.lane.b32.xlu0 %v1940_v2, %s2589_s13 }
 0x10f   : > { %1968 = vrot.lane.b32.xlu1 %v1941_v27, %s2589_s13 }
 0x110   : > { %v1568_v51 = vpop.permute.xlu0 %1567 }
 0x111   : > { %v1570_v54 = vpop.permute.xlu1 %1569  ;;  %1602 = vst.msk [vmem:[#allocation2 + $0x20] sm:$0xf] %vm3873_vm15, %v1568_v51  ;;  %vm3881_vm15 = vmmov %vm3874_vm1 }
 0x112   : > { %1603 = vst.msk [vmem:[#allocation2 + $0x24] sm:$0xf] %vm3874_vm1, %v1570_v54 }
 0x114   : > { %v490_v37 = vpop.permute.xlu0 %489 }
 0x115   : > { %v492_v31 = vpop.permute.xlu1 %491  ;;  %522 = vst.msk [vmem:[#allocation2 + $0x28] sm:$0xf] %vm511_vm5, %v490_v37 }
 0x116   : > { %523 = vst.msk [vmem:[#allocation2 + $0x2c] sm:$0xf] %vm511_vm5, %v492_v31 }
 0x118   : > { %v953_v50 = vpop.permute.xlu0 %952 }
 0x119   : > { %v955_v30 = vpop.permute.xlu1 %954  ;;  %989 = vst.msk [vmem:[#allocation2 + $0x18] sm:$0xf] %vm982_vm9, %v953_v50  ;;  %v2534_v46 = vld [vmem:[#allocation2 + $0x20] sm:$0xff]  }
 0x11a   : > { %990 = vst.msk [vmem:[#allocation2 + $0x1c] sm:$0xf] %vm982_vm9, %v955_v30  ;;  %2420 = vmatmul.mubr.msk.bf16.vlgmr.msra.gmra.mxu1 %vm1685_vm4, %v2534_v46 }
 0x11b   : > { %2423 = vmatprep.mubr.msk.bf16.mxu1 %vm2587_vm3, %v2586_v48 }
 0x11c   : > { %v620_v56 = vpop.permute.xlu0 %619 }
 0x11d   : > { %v622_v52 = vpop.permute.xlu1 %621  ;;  %652 = vst.msk [vmem:[#allocation2 + $0x28] sm:$0xf] %vm641_vm6, %v620_v56  ;;  %v3768_v56 = vld [vmem:[%s3845_s2] ss:$0 sm:$0xff] }
 0x11e   : > { %653 = vst.msk [vmem:[#allocation2 + $0x2c] sm:$0xf] %vm641_vm6, %v622_v52 }
 0x120   : > { %v1083_v59 = vpop.permute.xlu0 %1082 }
 0x121   : > { %v1085_v42 = vpop.permute.xlu1 %1084  ;;  %1119 = vst.msk [vmem:[#allocation2 + $0x18] sm:$0xf] %vm1112_vm11, %v1083_v59 }
 0x122   : > { %1120 = vst.msk [vmem:[#allocation2 + $0x1c] sm:$0xf] %vm1112_vm11, %v1085_v42 }
 0x124   : > { %v747_v8 = vpop.permute.xlu0 %746 }
 0x125   : > { %v749_v5 = vpop.permute.xlu1 %748  ;;  %779 = vst.msk [vmem:[#allocation2 + $0x28] sm:$0xf] %vm768_vm8, %v747_v8 }
 0x126   : > { %780 = vst.msk [vmem:[#allocation2 + $0x2c] sm:$0xf] %vm768_vm8, %v749_v5 }
 0x128   : > { %v1210_v41 = vpop.permute.xlu0 %1209 }
 0x129   : > { %v1212_v29 = vpop.permute.xlu1 %1211  ;;  %1246 = vst.msk [vmem:[#allocation2 + $0x18] sm:$0xf] %vm1239_vm12, %v1210_v41 }
 0x12a   : > { %1247 = vst.msk [vmem:[#allocation2 + $0x1c] sm:$0xf] %vm1239_vm12, %v1212_v29 }
 0x12c   : > { %v961_v4 = vpop.permute.xlu0 %960 }
 0x12d   : > { %v963_v44 = vpop.permute.xlu1 %962  ;;  %993 = vst.msk [vmem:[#allocation2 + $0x28] sm:$0xf] %vm982_vm9, %v961_v4 }
 0x12e   : > { %994 = vst.msk [vmem:[#allocation2 + $0x2c] sm:$0xf] %vm982_vm9, %v963_v44 }
 0x130   : > { %v1430_v16 = vpop.permute.xlu0 %1429 }
 0x131   : > { %v1432_v35 = vpop.permute.xlu1 %1431  ;;  %1466 = vst.msk [vmem:[#allocation2 + $0x18] sm:$0xf] %vm3875_vm14, %v1430_v16  ;;  %vm525_vm14 = vcmask 58400  }
 0x132   : > { %1467 = vst.msk [vmem:[#allocation2 + $0x1c] sm:$0xf] %vm3876_vm0, %v1432_v35  ;;  %vm655_vm0 = vcmask 91200  }
 0x134   : > { %v1091_v18 = vpop.permute.xlu0 %1090 }
 0x135   : > { %v1093_v0 = vpop.permute.xlu1 %1092  ;;  %1123 = vst.msk [vmem:[#allocation2 + $0x28] sm:$0xf] %vm1112_vm11, %v1091_v18 }
 0x136   : > { %1124 = vst.msk [vmem:[#allocation2 + $0x2c] sm:$0xf] %vm1112_vm11, %v1093_v0 }
 0x138   : > { %v1564_v22 = vpop.permute.xlu0 %1563 }
 0x139   : > { %v1566_v12 = vpop.permute.xlu1 %1565  ;;  %1600 = vst.msk [vmem:[#allocation2 + $0x18] sm:$0xf] %vm3877_vm2, %v1564_v22  ;;  %vm782_vm2 = vcmask 124000  }
 0x13a   : > { %1601 = vst.msk [vmem:[#allocation2 + $0x1c] sm:$0xf] %vm3878_vm7, %v1566_v12  ;;  %vm1253_vm7 = vcmask 222400  }
 0x13c   : > { %v1218_v23 = vpop.permute.xlu0 %1217 }
 0x13d   : > { %v1220_v13 = vpop.permute.xlu1 %1219  ;;  %1250 = vst.msk [vmem:[#allocation2 + $0x28] sm:$0xf] %vm1239_vm12, %v1218_v23 }
 0x13e   : > { %1251 = vst.msk [vmem:[#allocation2 + $0x2c] sm:$0xf] %vm1239_vm12, %v1220_v13 }
 0x140   : > { %v1438_v21 = vpop.permute.xlu0 %1437 }
 0x141   : > { %v1440_v38 = vpop.permute.xlu1 %1439  ;;  %1470 = vst.msk [vmem:[#allocation2 + $0x28] sm:$0xf] %vm3879_vm10, %v1438_v21  ;;  %v2535_v60 = vld [vmem:[#allocation2 + $0x18] sm:$0xff]  }
 0x142   : > { %1471 = vst.msk [vmem:[#allocation2 + $0x2c] sm:$0xf] %vm3880_vm13, %v1440_v38  ;;  %2416 = vmatmul.mubr.msk.bf16.gmra.mxu0 %vm1685_vm4, %v2535_v60  ;;  %vm1885_vm13 = vcmp.lt.s32.totalorder %v3557_v11, 16 }
 0x144   : > { %v1572_v36 = vpop.permute.xlu0 %1571 }
 0x145   : > { %v1574_v26 = vpop.permute.xlu1 %1573  ;;  %1604 = vst.msk [vmem:[#allocation2 + $0x28] sm:$0xf] %vm3881_vm15, %v1572_v36 }
 0x146   : > { %1605 = vst.msk [vmem:[#allocation2 + $0x2c] sm:$0xf] %vm3874_vm1, %v1574_v26 }
 0x148   : > { %v494_v47 = vpop.permute.xlu0 %493 }
 0x149   : > { %v496_v33 = vpop.permute.xlu1 %495  ;;  %524 = vst.msk [vmem:[#allocation2 + $0x30] sm:$0xf] %vm511_vm5, %v494_v47  ;;  %vm996_vm5 = vcmask 156800  }
 0x14a   : > { %526 = vst.msk [vmem:[#allocation2 + $0x34] sm:$0x3] %vm525_vm14, %v496_v33 }
 0x14c   : > { %v624_v49 = vpop.permute.xlu0 %623 }
 0x14d   : > { %v626_v39 = vpop.permute.xlu1 %625  ;;  %654 = vst.msk [vmem:[#allocation2 + $0x30] sm:$0xf] %vm641_vm6, %v624_v49  ;;  %v2536_v43 = vld [vmem:[#allocation2 + $0x28] sm:$0xff]   ;;  %vm1126_vm6 = vcmask 189600  }
 0x14e   : > { %656 = vst.msk [vmem:[#allocation2 + $0x34] sm:$0x3] %vm655_vm0, %v626_v39  ;;  %2424 = vmatmul.mubr.msk.bf16.gmra.mxu1 %vm1685_vm4, %v2536_v43  ;;  %vm1886_vm0 = vcmp.lt.s32.totalorder %v3574_v9, 16 }
 0x14f   : > { %2427 = vmatprep.mubr.msk.bf16.mxu1 %vm2587_vm3, %v2586_v48  ;;  %vm1473_vm3 = vcmask 255200  }
 0x150   : > { %v751_v62 = vpop.permute.xlu0 %750 }
 0x151   : > { %v753_v32 = vpop.permute.xlu1 %752  ;;  %781 = vst.msk [vmem:[#allocation2 + $0x30] sm:$0xf] %vm768_vm8, %v751_v62  ;;  %vm3882_vm8 = vmmov %vm3879_vm10 }
 0x152   : > { %783 = vst.msk [vmem:[#allocation2 + $0x34] sm:$0x3] %vm782_vm2, %v753_v32  ;;  %vm3883_vm10 = vmmov %vm3874_vm1  ;;  %vm1887_vm2 = vcmp.lt.s32.totalorder %v3581_v53, 16 }
 0x154   : > { %v965_v40 = vpop.permute.xlu0 %964 }
 0x155   : > { %v967_v19 = vpop.permute.xlu1 %966  ;;  %995 = vst.msk [vmem:[#allocation2 + $0x30] sm:$0xf] %vm982_vm9, %v965_v40  ;;  %vm1607_vm9 = vcmask 288000  }
 0x156   : > { %997 = vst.msk [vmem:[#allocation2 + $0x34] sm:$0x3] %vm996_vm5, %v967_v19 }
 0x158   : > { %v1095_v58 = vpop.permute.xlu0 %1094 }
 0x159   : > { %v1097_v24 = vpop.permute.xlu1 %1096  ;;  %1125 = vst.msk [vmem:[#allocation2 + $0x30] sm:$0xf] %vm1112_vm11, %v1095_v58  ;;  %vm1884_vm11 = vcmp.lt.s32.totalorder %v3550_v61, 16 }
 0x15a   : > { %1127 = vst.msk [vmem:[#allocation2 + $0x34] sm:$0x3] %vm1126_vm6, %v1097_v24 }
 0x15c   : > { %v1222_v34 = vpop.permute.xlu0 %1221 }
 0x15d   : > { %v1224_v28 = vpop.permute.xlu1 %1223  ;;  %1252 = vst.msk [vmem:[#allocation2 + $0x30] sm:$0xf] %vm1239_vm12, %v1222_v34 }
 0x15e   : > { %1254 = vst.msk [vmem:[#allocation2 + $0x34] sm:$0x3] %vm1253_vm7, %v1224_v28 }
 0x160   : > { %v1442_v1 = vpop.permute.xlu0 %1441 }
 0x161   : > { %v1444_v57 = vpop.permute.xlu1 %1443  ;;  %1472 = vst.msk [vmem:[#allocation2 + $0x30] sm:$0xf] %vm3882_vm8, %v1442_v1  ;;  %vm1888_vm8 = vcmp.lt.s32.totalorder %v3596_v10, 16 }
 0x162   : > { %1474 = vst.msk [vmem:[#allocation2 + $0x34] sm:$0x3] %vm1473_vm3, %v1444_v57 }
 0x164   : > { %v1576_v2 = vpop.permute.xlu0 %1575 }
 0x165   : > { %v1578_v45 = vpop.permute.xlu1 %1577  ;;  %1606 = vst.msk [vmem:[#allocation2 + $0x30] sm:$0xf] %vm3883_vm10, %v1576_v2 }
 0x166   : > { %1608 = vst.msk [vmem:[#allocation2 + $0x34] sm:$0x3] %vm1607_vm9, %v1578_v45  ;;  %vm1889_vm9 = vcmp.lt.s32.totalorder %v3603_v3, 16 }
 0x168   : > { %v1943_v27 = vpop.permute.xlu0 %1942 }
 0x169   : > { %v1945_v55 = vpop.permute.xlu1 %1944  ;;  %vm1970_vm12 = vcmp.ne.s32.totalorder %v1943_v27, 0 }
 0x16a   : > { %vm1971_vm15 = vcmp.ne.s32.totalorder %v1945_v55, 0  ;;  %vm1984_vm1 = vmand %vm1884_vm11, %vm1970_vm12  ;;  %vm1890_vm12 = vcmp.lt.s32.totalorder %v3616_v17, 16 }
 0x16b   : > { %vm1985_vm14 = vmand %vm1885_vm13, %vm1971_vm15  ;;  %v2322_v51 = vsel %vm1984_vm1, 1.0, %v2586_v48  ;;  %vm1891_vm15 = vcmp.lt.s32.totalorder %v3623_v20, 16 }
 0x16c   : > { %v2323_v54 = vsel %vm1985_vm14, 1.0, %v2586_v48  ;;  %v1947_v37 = vpop.permute.xlu0 %1946 }
 0x16d   : > { %v2492_v31 = vpack.i.bf16 %v2323_v54, %v2322_v51  ;;  %v1949_v50 = vpop.permute.xlu1 %1948  ;;  %vm1972_vm5 = vcmp.ne.s32.totalorder %v1947_v37, 0  ;;  %v2537_v61 = vld [vmem:[#allocation2 + $0x30] sm:$0x3f]  }
 0x16e   : > { %vm1973_vm6 = vcmp.ne.s32.totalorder %v1949_v50, 0  ;;  %vm1986_vm7 = vmand %vm1886_vm0, %vm1972_vm5  ;;  %v1745_v30 = vpop.f32.mrf.mxu0  ;;  %2428 = vmatmul.mubr.msk.bf16.gmra.mxu1 %vm1685_vm4, %v2537_v61  ;;  %vm1892_vm5 = vcmp.lt.s32.totalorder %v3636_v6, 16 }
 0x16f   : > { %vm1987_vm3 = vmand %vm1887_vm2, %vm1973_vm6  ;;  %v2324_v11 = vsel %vm1986_vm7, 1.0, %v2586_v48  ;;  %2493 = vperm.xlu0 %2491, %v2492_v31   ;;  %v3774_v3 = vadd.f32 %v3768_v56, %v1745_v30  ;;  %vm1893_vm6 = vcmp.lt.s32.totalorder %v3643_v15, 16 }
 0x170   : > { %v2325_v9 = vsel %vm1987_vm3, 1.0, %v2586_v48  ;;  %v1951_v53 = vpop.permute.xlu0 %1950  ;;  %v2405_v59 = vpop.f32.mrf.mxu0 }
 0x171   : > { %v2498_v46 = vpack.i.bf16 %v2325_v9, %v2324_v11  ;;  %v1953_v52 = vpop.permute.xlu1 %1952  ;;  %vm1974_vm10 = vcmp.ne.s32.totalorder %v1951_v53, 0 }
 0x172   : > { %vm1975_vm11 = vcmp.ne.s32.totalorder %v1953_v52, 0  ;;  %vm1988_vm13 = vmand %vm1888_vm8, %vm1974_vm10  ;;  %v1748_v42 = vpop.f32.mrf.mxu0  ;;  %vm1894_vm10 = vcmp.lt.s32.totalorder %v3656_v25, 16 }
 0x173   : > { %vm1989_vm4 = vmand %vm1889_vm9, %vm1975_vm11  ;;  %v2326_v10 = vsel %vm1988_vm13, 1.0, %v2586_v48  ;;  %2499 = vperm.xlu1 %2497, %v2498_v46   ;;  %v3778_v5 = vadd.f32 %v3768_v56, %v1748_v42  ;;  %vm1895_vm11 = vcmp.lt.s32.totalorder %v3663_v14, 16 }
 0x174   : > { %v2327_v8 = vsel %vm1989_vm4, 1.0, %v2586_v48  ;;  %v1955_v41 = vpop.permute.xlu0 %1954  ;;  %v2406_v17 = vpop.f32.mrf.mxu0 }
 0x175   : > { %v2503_v29 = vpack.i.bf16 %v2327_v8, %v2326_v10  ;;  %v1957_v4 = vpop.permute.xlu1 %1956  ;;  %vm1976_vm1 = vcmp.ne.s32.totalorder %v1955_v41, 0  ;;  %v2355_v44 = vpack.c.bf16 %v3778_v5, %v3774_v3 }
 0x176   : > { %vm1977_vm14 = vcmp.ne.s32.totalorder %v1957_v4, 0  ;;  %vm1990_vm0 = vmand %vm1890_vm12, %vm1976_vm1  ;;  %vm1896_vm1 = vcmp.lt.s32.totalorder %v3676_v7, 16 }
 0x177   : > { %vm1991_vm2 = vmand %vm1891_vm15, %vm1977_vm14  ;;  %v2328_v16 = vsel %vm1990_vm0, 1.0, %v2586_v48  ;;  %2504 = vperm.xlu1 %2497, %v2503_v29   ;;  %2356 = vst [vmem:[%s3784_s17] sm:$0xff] %v2355_v44   ;;  %vm1897_vm14 = vcmp.lt.s32.totalorder %v3683_v63, 16 }
 0x178   : > { %v2329_v20 = vsel %vm1991_vm2, 1.0, %v2586_v48  ;;  %v1959_v35 = vpop.permute.xlu0 %1958 }
 0x179   : > { %v2508_v18 = vpack.i.bf16 %v2329_v20, %v2328_v16  ;;  %v1961_v0 = vpop.permute.xlu1 %1960  ;;  %vm1978_vm7 = vcmp.ne.s32.totalorder %v1959_v35, 0 }
 0x17a   : > { %vm1979_vm3 = vcmp.ne.s32.totalorder %v1961_v0, 0  ;;  %vm1992_vm8 = vmand %vm1892_vm5, %vm1978_vm7  ;;  %vm2122_vm7 = vcmask 1043456  }
 0x17b   : > { %vm1993_vm9 = vmand %vm1893_vm6, %vm1979_vm3  ;;  %v2330_v22 = vsel %vm1992_vm8, 1.0, %v2586_v48  ;;  %2509 = vperm.xlu0 %2491, %v2508_v18  }
 0x17c   : > { %v2331_v12 = vsel %vm1993_vm9, 1.0, %v2586_v48  ;;  %v1963_v6 = vpop.permute.xlu0 %1962 }
 0x17d   : > { %v2513_v23 = vpack.i.bf16 %v2331_v12, %v2330_v22  ;;  %v1965_v13 = vpop.permute.xlu1 %1964  ;;  %vm1980_vm13 = vcmp.ne.s32.totalorder %v1963_v6, 0 }
 0x17e   : > { %vm1981_vm4 = vcmp.ne.s32.totalorder %v1965_v13, 0  ;;  %vm1994_vm12 = vmand %vm1894_vm10, %vm1980_vm13 }
 0x17f   : > { %2514 = vperm.xlu1 %2497, %v2513_v23   ;;  %vm1995_vm15 = vmand %vm1895_vm11, %vm1981_vm4  ;;  %v2332_v15 = vsel %vm1994_vm12, 1.0, %v2586_v48 }
 0x180   : > { %v2333_v21 = vsel %vm1995_vm15, 1.0, %v2586_v48  ;;  %v1967_v25 = vpop.permute.xlu0 %1966 }
 0x181   : > { %v2518_v38 = vpack.i.bf16 %v2333_v21, %v2332_v15  ;;  %v1969_v60 = vpop.permute.xlu1 %1968  ;;  %vm1982_vm0 = vcmp.ne.s32.totalorder %v1967_v25, 0 }
 0x182   : > { %vm1983_vm2 = vcmp.ne.s32.totalorder %v1969_v60, 0  ;;  %vm1996_vm5 = vmand %vm1896_vm1, %vm1982_vm0 }
 0x183   : > { %2519 = vperm.xlu0 %2491, %v2518_v38   ;;  %vm1997_vm6 = vmand %vm1897_vm14, %vm1983_vm2  ;;  %v2334_v14 = vsel %vm1996_vm5, 1.0, %v2586_v48 }
 0x184   : > { %v2335_v36 = vsel %vm1997_vm6, 1.0, %v2586_v48 }
 0x185   : > { %v2523_v26 = vpack.i.bf16 %v2335_v36, %v2334_v14 }
 0x187   : > { %2524 = vperm.xlu1 %2497, %v2523_v26  }
 0x18e   : > { %v1753_v7 = vpop.f32.mrf.mxu0 }
 0x18f   : > { %v1754_v63 = vadd.f32 %v3768_v56, %v1753_v7 }
 0x190   : > { %v2409_v47 = vpop.f32.mrf.mxu0 }
 0x192   : > { %v1756_v33 = vpop.f32.mrf.mxu0 }
 0x193   : > { %v1757_v49 = vadd.f32 %v3768_v56, %v1756_v33 }
 0x194   : > { %v2410_v39 = vpop.f32.mrf.mxu0 }
 0x195   : > { %v2360_v43 = vpack.c.bf16 %v1757_v49, %v1754_v63 }
 0x197   : > { %2382 = vst [vmem:[%s3784_s17 + $0x8] sm:$0xff] %v2360_v43  }
 0x1c2   : > { %v1761_v62 = vpop.f32.mrf.mxu0 }
 0x1c3   : > { %v1762_v19 = vadd.f32 %v3768_v56, %v1761_v62 }
 0x1c4   : > { %v2413_v32 = vpop.f32.mrf.mxu0 }
 0x1c6   : > { %v1764_v40 = vpop.f32.mrf.mxu0 }
 0x1c7   : > { %v1765_v48 = vadd.f32 %v3768_v56, %v1764_v40 }
 0x1c8   : > { %v2414_v58 = vpop.f32.mrf.mxu0 }
 0x1c9   : > { %v2365_v24 = vpack.c.bf16 %v1765_v48, %v1762_v19 }
 0x1cb   : > { %2383 = vst [vmem:[%s3784_s17 + $0x10] sm:$0xff] %v2365_v24  }
 0x1da   : > { %v1777_v34 = vpop.f32.mrf.mxu1 }
 0x1db   : > { %v1778_v57 = vadd.f32 %v3768_v56, %v1777_v34 }
 0x1dc   : > { %v2421_v28 = vpop.f32.mrf.mxu1 }
 0x1de   : > { %v1780_v1 = vpop.f32.mrf.mxu1 }
 0x1df   : > { %v1781_v2 = vadd.f32 %v3768_v56, %v1780_v1 }
 0x1e0   : > { %v2422_v45 = vpop.f32.mrf.mxu1 }
 0x1e1   : > { %v2375_v27 = vpack.c.bf16 %v1781_v2, %v1778_v57 }
 0x1e3   : > { %2385 = vst [vmem:[%s3784_s17 + $0x20] sm:$0xff] %v2375_v27  }
 0x1ea   : > { %v2494_v55 = vpop.permute.xlu0 %2493 }
 0x1eb   : > { %v2496_v51 = vunpack.i.h.bf16 %v2494_v55  ;;  %v2495_v54 = vunpack.i.l.bf16 %v2494_v55 }
 0x1ed   : > { %v2096_v37 = vmul.f32 %v2495_v54, %v3774_v3  ;;  %v2097_v31 = vmul.f32 %v2496_v51, %v3778_v5 }
 0x1ee   : > { %v2500_v50 = vpop.permute.xlu1 %2499 }
 0x1ef   : > { %v2502_v61 = vunpack.i.h.bf16 %v2500_v50  ;;  %v2132_v11 = vmul.f32 %v2096_v37, %v2096_v37  ;;  %v2133_v30 = vmul.f32 %v2097_v31, %v2097_v31  ;;  %v2501_v9 = vunpack.i.l.bf16 %v2500_v50 }
 0x1f0   : > { %v2110_v53 = vadd.f32 %v2097_v31, %v2096_v37 }
 0x1f1   : > { %v2098_v46 = vmul.f32 %v2501_v9, %v1754_v63  ;;  %v2099_v52 = vmul.f32 %v2502_v61, %v1757_v49  ;;  %v2146_v8 = vadd.f32 %v2133_v30, %v2132_v11 }
 0x1f2   : > { %v2505_v59 = vpop.permute.xlu1 %2504 }
 0x1f3   : > { %v2507_v10 = vunpack.i.h.bf16 %v2505_v59  ;;  %v2506_v42 = vunpack.i.l.bf16 %v2505_v59  ;;  %v2111_v41 = vadd.f32 %v2110_v53, %v2098_v46  ;;  %v2134_v29 = vmul.f32 %v2098_v46, %v2098_v46 }
 0x1f4   : > { %v2135_v44 = vmul.f32 %v2099_v52, %v2099_v52 }
 0x1f5   : > { %v2100_v4 = vmul.f32 %v2506_v42, %v1762_v19  ;;  %v2112_v17 = vadd.f32 %v2111_v41, %v2099_v52  ;;  %v2147_v3 = vadd.f32 %v2146_v8, %v2134_v29  ;;  %v2101_v16 = vmul.f32 %v2507_v10, %v1765_v48 }
 0x1f6   : > { %v2510_v6 = vpop.permute.xlu0 %2509 }
 0x1f7   : > { %v2136_v5 = vmul.f32 %v2100_v4, %v2100_v4  ;;  %v2148_v20 = vadd.f32 %v2147_v3, %v2135_v44  ;;  %v2113_v35 = vadd.f32 %v2112_v17, %v2100_v4  ;;  %v2137_v0 = vmul.f32 %v2101_v16, %v2101_v16 }
 0x1f8   : > { %v2511_v23 = vunpack.i.l.bf16 %v2510_v6  ;;  %v2512_v60 = vunpack.i.h.bf16 %v2510_v6 }
 0x1f9   : > { %v2114_v18 = vadd.f32 %v2113_v35, %v2101_v16  ;;  %v2149_v22 = vadd.f32 %v2148_v20, %v2136_v5 }
 0x1fa   : > { %v2515_v13 = vpop.permute.xlu1 %2514 }
 0x1fb   : > { %v2150_v12 = vadd.f32 %v2149_v22, %v2137_v0  ;;  %v2516_v38 = vunpack.i.l.bf16 %v2515_v13  ;;  %v2517_v26 = vunpack.i.h.bf16 %v2515_v13 }
 0x1fd   : > { %v2104_v63 = vmul.f32 %v2516_v38, %v1778_v57  ;;  %v2105_v62 = vmul.f32 %v2517_v26, %v1781_v2 }
 0x1fe   : > { %v2520_v31 = vpop.permute.xlu0 %2519 }
 0x1ff   : > { %v2140_v48 = vmul.f32 %v2104_v63, %v2104_v63  ;;  %v2141_v28 = vmul.f32 %v2105_v62, %v2105_v62  ;;  %v2521_v50 = vunpack.i.l.bf16 %v2520_v31  ;;  %v2522_v61 = vunpack.i.h.bf16 %v2520_v31 }
 0x202   : > { %v1769_v15 = vpop.f32.mrf.mxu0  ;;  %v2525_v30 = vpop.permute.xlu1 %2524 }
 0x203   : > { %v1770_v21 = vadd.f32 %v3768_v56, %v1769_v15  ;;  %v2526_v46 = vunpack.i.l.bf16 %v2525_v30  ;;  %v2527_v17 = vunpack.i.h.bf16 %v2525_v30 }
 0x204   : > { %v2417_v25 = vpop.f32.mrf.mxu0 }
 0x205   : > { %v2102_v14 = vmul.f32 %v2511_v23, %v1770_v21 }
 0x206   : > { %v1772_v36 = vpop.f32.mrf.mxu0 }
 0x207   : > { %v2138_v7 = vmul.f32 %v2102_v14, %v2102_v14  ;;  %v1773_v47 = vadd.f32 %v3768_v56, %v1772_v36  ;;  %v2115_v49 = vadd.f32 %v2114_v18, %v2102_v14 }
 0x208   : > { %v2418_v33 = vpop.f32.mrf.mxu0 }
 0x209   : > { %v2370_v39 = vpack.c.bf16 %v1773_v47, %v1770_v21  ;;  %v2103_v43 = vmul.f32 %v2512_v60, %v1773_v47  ;;  %v2151_v32 = vadd.f32 %v2150_v12, %v2138_v7 }
 0x20b   : > { %2384 = vst [vmem:[%s3784_s17 + $0x18] sm:$0xff] %v2370_v39   ;;  %v2116_v40 = vadd.f32 %v2115_v49, %v2103_v43  ;;  %v2139_v19 = vmul.f32 %v2103_v43, %v2103_v43 }
 0x20d   : > { %v2117_v58 = vadd.f32 %v2116_v40, %v2104_v63  ;;  %v2152_v24 = vadd.f32 %v2151_v32, %v2139_v19 }
 0x20e   : > { %v1785_v34 = vpop.f32.mrf.mxu1 }
 0x20f   : > { %v2153_v1 = vadd.f32 %v2152_v24, %v2140_v48  ;;  %v2118_v45 = vadd.f32 %v2117_v58, %v2105_v62  ;;  %v1786_v57 = vadd.f32 %v3768_v56, %v1785_v34 }
 0x210   : > { %v2425_v27 = vpop.f32.mrf.mxu1 }
 0x211   : > { %v2154_v55 = vadd.f32 %v2153_v1, %v2141_v28  ;;  %v2106_v11 = vmul.f32 %v2521_v50, %v1786_v57 }
 0x212   : > { %v1788_v51 = vpop.f32.mrf.mxu1 }
 0x213   : > { %v1789_v54 = vadd.f32 %v3768_v56, %v1788_v51  ;;  %v2142_v59 = vmul.f32 %v2106_v11, %v2106_v11  ;;  %v2119_v41 = vadd.f32 %v2118_v45, %v2106_v11 }
 0x214   : > { %v2426_v2 = vpop.f32.mrf.mxu1 }
 0x215   : > { %v2380_v37 = vpack.c.bf16 %v1789_v54, %v1786_v57  ;;  %v2107_v9 = vmul.f32 %v2522_v61, %v1789_v54  ;;  %v2155_v3 = vadd.f32 %v2154_v55, %v2142_v59 }
 0x217   : > { %2386 = vst [vmem:[%s3784_s17 + $0x28] sm:$0xff] %v2380_v37   ;;  %v2143_v29 = vmul.f32 %v2107_v9, %v2107_v9  ;;  %v2120_v16 = vadd.f32 %v2119_v41, %v2107_v9 }
 0x219   : > { %v2156_v0 = vadd.f32 %v2155_v3, %v2143_v29 }
 0x22e   : > { %v1793_v53 = vpop.f32.mrf.mxu1 }
 0x22f   : > { %v1794_v52 = vadd.f32 %v3768_v56, %v1793_v53 }
 0x230   : > { %v2429_v10 = vpop.f32.mrf.mxu1 }
 0x231   : > { %v2350_v42 = vpack.c.bf16 %v1794_v52, %v1794_v52  ;;  %v2108_v8 = vmul.f32 %v2526_v46, %v1794_v52 }
 0x232   : > { %v1796_v4 = vpop.f32.mrf.mxu1 }
 0x233   : > { %1868 = vst [vmem:[%s3784_s17 + $0x30] sm:$0xf] %v2350_v42  ;;  %v1797_v44 = vadd.f32 %v3768_v56, %v1796_v4  ;;  %v2144_v5 = vmul.f32 %v2108_v8, %v2108_v8  ;;  %v2121_v22 = vadd.f32 %v2120_v16, %v2108_v8 }
 0x234   : > { %v2430_v20 = vpop.f32.mrf.mxu1 }
 0x235   : > { %v2351_v35 = vpack.c.bf16 %v1797_v44, %v1797_v44  ;;  %v2109_v18 = vmul.f32 %v2527_v17, %v1797_v44  ;;  %v2157_v23 = vadd.f32 %v2156_v0, %v2144_v5 }
 0x237   : > { %1869 = vst [vmem:[%s3784_s17 + $0x34] sm:$0x3] %v2351_v35  ;;  %v2123_v12 = vsel %vm2122_vm7, %v2109_v18, 0.0  ;;  %v2145_v6 = vmul.f32 %v2109_v18, %v2109_v18 }
 0x238   : > { %v2124_v13 = vadd.f32 %v2123_v12, %v2121_v22 }
 0x239   : > { %v2158_v15 = vsel %vm2122_vm7, %v2145_v6, 0.0 }
 0x23a   : > { %v2125_v21 = vrot.slane %v2124_v13, 4  ;;  %v2159_v25 = vadd.f32 %v2158_v15, %v2157_v23 }
 0x23c   : > { %v2126_v38 = vadd.f32 %v2125_v21, %v2124_v13  ;;  %v2160_v56 = vrot.slane %v2159_v25, 4 }
 0x23e   : > { %v2127_v60 = vrot.slane %v2126_v38, 2  ;;  %v2161_v14 = vadd.f32 %v2160_v56, %v2159_v25 }
 0x240   : > { %v2128_v36 = vadd.f32 %v2127_v60, %v2126_v38  ;;  %v2162_v26 = vrot.slane %v2161_v14, 2 }
 0x242   : > { %v2129_v7 = vrot.slane %v2128_v36, 1  ;;  %v2163_v47 = vadd.f32 %v2162_v26, %v2161_v14 }
 0x244   : > { %v2130_v33 = vadd.f32 %v2129_v7, %v2128_v36  ;;  %v2164_v63 = vrot.slane %v2163_v47, 1 }
 0x246   : > { %2131 = vst [vmem:[%s279_s18] sm:$0x1] %v2130_v33  ;;  %v2165_v49 = vadd.f32 %v2164_v63, %v2163_v47 }
 0x248   : > { %2166 = vst [vmem:[%s279_s18 + $0x1] sm:$0x1] %v2165_v49 }
 0x249 PF: > { %s16_s22 = sadd.s32 1, %s2576_s22   ;;  %s3884_s18 = smov %s2568_s20 }
 0x24a   : > { %p13_p6 = scmp.ge.s32.totalorder %s16_s22, 8   ;;  %s3885_s19 = smov %s2572_s21 }
 0x24b   : > { %s3886_s20 = smov %s3889_s23  ;;  %s3887_s21 = smov %s3893_s24 }
 0x24c   :  { %15 = sbr.rel (!%p13_p6) target bundleno = 3 (0x3), region = 78 }

// kernel: double_conv.5
= control target key start
LH: loop header
LB: loop body
LE: loop exit
PB: predicated region body
PF: predicated region fallthrough
CT: control target
= control target key end

     0   :  { %s494_s12 = smov 0   ;;  %s496_s13 = smov 0   ;;  %s589_s0 = inlined_call_operand.vmem [shape: bf16[6,6,18,128], index: 0, kind: input, shape index: {}]   ;;  %s590_s1 = inlined_call_operand.vmem [shape: f32[1,128], index: 1, kind: input, shape index: {}]   ;;  %s591_s2 = inlined_call_operand.vmem [shape: f32[1,128], index: 2, kind: input, shape index: {}]   ;;  %s592_s3 = inlined_call_operand.vmem [shape: f32[6,6,16,8], index: 3, kind: output, shape index: {}]  }
   0x1   :  { %s498_s14 = smov 0   ;;  %s500_s15 = smov 0  }
   0x2   :  { %s502_s16 = smov 0  }
   0x3 LB: > { %s22_s17 = sadd.s32 1, %s464_s14  ;;  %s25_s18 = sadd.s32 1, %s468_s15  ;;  %s472_s16 = sphi %s502_s16, %s13_s16   ;;  %s468_s15 = sphi %s500_s15, %s596_s15   ;;  %s464_s14 = sphi %s498_s14, %s595_s14   ;;  %s460_s13 = sphi %s496_s13, %s594_s13   ;;  %s456_s12 = sphi %s494_s12, %s593_s12  }
   0x4   : > { %p23_p0 = scmp.ge.s32.totalorder %s22_s17, 3  ;;  %p371_p1 = scmp.ge.s32.totalorder %s472_s16, 1 }
   0x5   : > { %p161_p2 = scmp.lt.s32.totalorder %s472_s16, 7 }
   0x6   : > { %s598_s17 = smov (%p23_p0, %s22_s17), 0  ;;  %s600_s18 = smov (!%p23_p0, %s25_s18), %s468_s15 }
   0x7   : > { %p162_p3 = pnand %p371_p1, %p161_p2  ;;  %p27_p4 = scmp.ge.s32.totalorder %s600_s18, 2 }
   0x8   : > { %s189_s19 = smul.u32 (!%p162_p3), 3, %s460_s13 }
   0x9   : > { %s602_s18 = smov (%p27_p4, %s600_s18), 0  ;;  %165 = sbr.rel (%p162_p3) target bundleno = 37 (0x25), region = 32 }
   0xa   : > { %s190_s20 = sadd.s32 (!%p162_p3), %s456_s12, %s189_s19 }
   0xb   : > { %p191_p5 = scmp.lt.s32.totalorder (!%p162_p3), %s190_s20, 5 }
   0xe   : > { %s604_s20 = smov (!%p191_p5, %s190_s20), 5  ;;  %v374_v0 = vld [vmem:[%s590_s1] ss:$0 sm:$0xff]  ;;  %vm281_vm0 = vcmask 64512  }
   0xf   : > { %s392_s21 = smul.u32 72, %s604_s20  ;;  %v375_v9 = vld [vmem:[%s591_s2] ss:$0 sm:$0xff] }
  0x10   : > { %s393_s27 = smul.u32 96, %s604_s20 }
  0x11   : > { %s530_s24 = scalar_lea.vmem %s589_s0, %s392_s21 }
  0x12   : > { %v379_v1 = vld [vmem:[%s530_s24] sm:$0xff]   ;;  %v209_v2 = vld [vmem:[%s530_s24 + $0xc] sm:$0xff]   ;;  %v390_v3 = vld [vmem:[%s530_s24 + $0x18] sm:$0xff]   ;;  %s546_s5 = scalar_lea.vmem %s592_s3, %s393_s27 }
  0x13   : > { %v380_v4 = vunpack.c.l.bf16 %v379_v1  ;;  %v381_v5 = vunpack.c.h.bf16 %v379_v1  ;;  %v221_v6 = vunpack.c.l.bf16 %v209_v2  ;;  %v222_v7 = vunpack.c.h.bf16 %v209_v2  ;;  %v213_v8 = vld [vmem:[%s530_s24 + $0x24] sm:$0xff]   ;;  %v391_v30 = vld [vmem:[%s530_s24 + $0x30] sm:$0xff]   ;;  %v217_v31 = vld [vmem:[%s530_s24 + $0x3c] sm:$0xff]  }
  0x14   : > { %v384_v10 = vunpack.c.l.bf16 %v390_v3  ;;  %v385_v11 = vunpack.c.h.bf16 %v390_v3  ;;  %v225_v12 = vunpack.c.l.bf16 %v213_v8  ;;  %v226_v13 = vunpack.c.h.bf16 %v213_v8 }
  0x15   : > { %v238_v14 = vmul.f32 %v380_v4, %v374_v0  ;;  %v239_v15 = vmul.f32 %v381_v5, %v374_v0  ;;  %v240_v16 = vmul.f32 %v374_v0, %v221_v6  ;;  %v241_v17 = vmul.f32 %v374_v0, %v222_v7 }
  0x16   : > { %v242_v18 = vmul.f32 %v384_v10, %v374_v0  ;;  %v243_v19 = vmul.f32 %v385_v11, %v374_v0  ;;  %v244_v20 = vmul.f32 %v374_v0, %v225_v12  ;;  %v245_v21 = vmul.f32 %v374_v0, %v226_v13 }
  0x17   : > { %v257_v22 = vadd.f32 %v375_v9, %v238_v14  ;;  %v258_v23 = vadd.f32 %v375_v9, %v239_v15  ;;  %v259_v24 = vadd.f32 %v375_v9, %v240_v16  ;;  %v260_v25 = vadd.f32 %v375_v9, %v241_v17 }
  0x18   : > { %v261_v26 = vadd.f32 %v375_v9, %v242_v18  ;;  %v262_v27 = vadd.f32 %v375_v9, %v243_v19  ;;  %v263_v28 = vadd.f32 %v375_v9, %v244_v20  ;;  %v264_v29 = vadd.f32 %v375_v9, %v245_v21 }
  0x19   : > { %v269_v32 = vmax.f32 %v257_v22, 0.0  ;;  %v270_v33 = vmax.f32 %v258_v23, 0.0  ;;  %v271_v34 = vmax.f32 %v259_v24, 0.0  ;;  %v272_v35 = vmax.f32 %v260_v25, 0.0 }
  0x1a   : > { %v273_v36 = vmax.f32 %v261_v26, 0.0  ;;  %v274_v37 = vmax.f32 %v262_v27, 0.0  ;;  %v275_v38 = vmax.f32 %v263_v28, 0.0  ;;  %v276_v39 = vmax.f32 %v264_v29, 0.0 }
  0x1b   : > { %282 = vst.msk [vmem:[%s546_s5] sm:$0xff] %vm281_vm0, %v269_v32  ;;  %283 = vst.msk [vmem:[%s546_s5 + $0x8] sm:$0xff] %vm281_vm0, %v270_v33  ;;  %v388_v40 = vunpack.c.l.bf16 %v391_v30  ;;  %v389_v41 = vunpack.c.h.bf16 %v391_v30  ;;  %v229_v42 = vunpack.c.l.bf16 %v217_v31  ;;  %v230_v43 = vunpack.c.h.bf16 %v217_v31 }
  0x1c   : > { %284 = vst.msk [vmem:[%s546_s5 + $0x10] sm:$0xff] %vm281_vm0, %v271_v34  ;;  %285 = vst.msk [vmem:[%s546_s5 + $0x18] sm:$0xff] %vm281_vm0, %v272_v35 }
  0x1d   : > { %286 = vst.msk [vmem:[%s546_s5 + $0x20] sm:$0xff] %vm281_vm0, %v273_v36  ;;  %287 = vst.msk [vmem:[%s546_s5 + $0x28] sm:$0xff] %vm281_vm0, %v274_v37  ;;  %v246_v44 = vmul.f32 %v388_v40, %v374_v0  ;;  %v247_v45 = vmul.f32 %v389_v41, %v374_v0  ;;  %v248_v46 = vmul.f32 %v374_v0, %v229_v42 }
  0x1e   : > { %288 = vst.msk [vmem:[%s546_s5 + $0x30] sm:$0xff] %vm281_vm0, %v275_v38  ;;  %289 = vst.msk [vmem:[%s546_s5 + $0x38] sm:$0xff] %vm281_vm0, %v276_v39  ;;  %v249_v47 = vmul.f32 %v374_v0, %v230_v43 }
  0x1f   : > { %v265_v48 = vadd.f32 %v375_v9, %v246_v44  ;;  %v266_v49 = vadd.f32 %v375_v9, %v247_v45  ;;  %v267_v50 = vadd.f32 %v375_v9, %v248_v46 }
  0x20   : > { %v268_v51 = vadd.f32 %v375_v9, %v249_v47 }
  0x21   : > { %v277_v52 = vmax.f32 %v265_v48, 0.0  ;;  %v278_v53 = vmax.f32 %v266_v49, 0.0  ;;  %v279_v54 = vmax.f32 %v267_v50, 0.0 }
  0x22   : > { %v280_v55 = vmax.f32 %v268_v51, 0.0 }
  0x23   : > { %290 = vst.msk [vmem:[%s546_s5 + $0x40] sm:$0xff] %vm281_vm0, %v277_v52  ;;  %291 = vst.msk [vmem:[%s546_s5 + $0x48] sm:$0xff] %vm281_vm0, %v278_v53 }
  0x24   : > { %292 = vst.msk [vmem:[%s546_s5 + $0x50] sm:$0xff] %vm281_vm0, %v279_v54  ;;  %293 = vst.msk [vmem:[%s546_s5 + $0x58] sm:$0xff] %vm281_vm0, %v280_v55 }
  0x25 PF: > { %s13_s16 = sadd.s32 1, %s472_s16   ;;  %s593_s12 = smov %s464_s14 }
  0x26   : > { %p10_p6 = scmp.ge.s32.totalorder %s13_s16, 8   ;;  %s594_s13 = smov %s468_s15 }
  0x27   : > { %s595_s14 = smov %s598_s17  ;;  %s596_s15 = smov %s602_s18 }
  0x28   :  { %12 = sbr.rel (!%p10_p6) target bundleno = 3 (0x3), region = 62 }

// kernel: double_conv.4
= control target key start
LH: loop header
LB: loop body
LE: loop exit
PB: predicated region body
PF: predicated region fallthrough
CT: control target
= control target key end

     0   :  { %s4998_s27 = smov 0   ;;  %s5000_s28 = smov 0   ;;  %s7160_s0 = inlined_call_operand.vmem [shape: bf16[6,152,128], index: 0, kind: input, shape index: {}]   ;;  %s7161_s1 = inlined_call_operand.vmem [shape: bf16[1152,128], index: 1, kind: input, shape index: {}]   ;;  %s7162_s2 = inlined_call_operand.vmem [shape: f32[1,128], index: 2, kind: input, shape index: {}]   ;;  %s7163_s3 = inlined_call_operand.vmem [shape: s32[108,2], index: 3, kind: input, shape index: {}]   ;;  %s7164_s4 = inlined_call_operand.vmem [shape: s32[152,2], index: 4, kind: input, shape index: {}]   ;;  %s7165_s5 = inlined_call_operand.vmem [shape: f32[1,128], index: 5, kind: input, shape index: {}]   ;;  %s7166_s6 = inlined_call_operand.vmem [shape: f32[1,128], index: 6, kind: input, shape index: {}]   ;;  %s7167_s7 = inlined_call_operand.vmem [shape: bf16[6,108,128], index: 7, kind: output, shape index: {0}]   ;;  %s7168_s8 = inlined_call_operand.vmem [shape: f32[6,2,128], index: 8, kind: output, shape index: {1}]  }
   0x1   :  { %s5002_s29 = smov 0   ;;  %s5004_s30 = smov 0  }
   0x2   :  { %s5006_s9 = smov 0  }
   0x3 LB: > { %s28_s10 = sadd.s32 1, %s4939_s29  ;;  %s31_s11 = sadd.s32 1, %s4943_s30  ;;  %s4947_s9 = sphi %s5006_s9, %s19_s9   ;;  %s4943_s30 = sphi %s5004_s30, %s7471_s30   ;;  %s4939_s29 = sphi %s5002_s29, %s7470_s29   ;;  %s4935_s28 = sphi %s5000_s28, %s7469_s28   ;;  %s4931_s27 = sphi %s4998_s27, %s7468_s27  }
   0x4   : > { %p29_p0 = scmp.ge.s32.totalorder %s28_s10, 3  ;;  %p3991_p1 = scmp.ge.s32.totalorder %s4947_s9, 1 }
   0x5   : > { %p293_p2 = scmp.lt.s32.totalorder %s4947_s9, 7 }
   0x6   : > { %s7473_s10 = smov (%p29_p0, %s28_s10), 0  ;;  %s7475_s11 = smov (!%p29_p0, %s31_s11), %s4943_s30 }
   0x7   : > { %p294_p3 = pnand %p3991_p1, %p293_p2  ;;  %p33_p4 = scmp.ge.s32.totalorder %s7475_s11, 2 }
   0x9   : > { %s7477_s11 = smov (%p33_p4, %s7475_s11), 0  ;;  %297 = sbr.rel (%p294_p3) target bundleno = 831 (0x33f), region = 48 }
   0xe   : > { %v5035_v0 = vld [vmem:[%s7164_s4 + $0x40] sm:$0xff]  ;;  %s383_s14 = smul.u32 6, %s4931_s27  ;;  %v5041_v1 = vld [vmem:[%s7164_s4 + $0x48] sm:$0xff]  ;;  %v5046_v2 = vld [vmem:[%s7164_s4 + $0x58] sm:$0xff]  ;;  %v7176_v4 = vmov 0   ;;  %s4950_s25 = smov 127  }
   0xf   : > { %v5051_v3 = vld [vmem:[%s7164_s4 + $0x50] sm:$0xff]  ;;  %4705 = vset.pattern.permute.xlu0 %v7176_v4  ;;  %4706 = vset.pattern.permute.xlu1 %v7176_v4  ;;  %v5068_v10 = vld [vmem:[%s7164_s4 + $0x8] sm:$0xff]  ;;  %v5073_v11 = vld [vmem:[%s7164_s4] sm:$0xff]  ;;  %s337_s13 = smul.u32 3, %s4935_s28 }
  0x10   : > { %v5055_v5 = vstv %s383_s14  ;;  %v5096_v22 = vld [vmem:[%s7164_s4 + $0x18] sm:$0xff]  ;;  %v5101_v23 = vld [vmem:[%s7164_s4 + $0x10] sm:$0xff]  ;;  %v5118_v30 = vld [vmem:[%s7164_s4 + $0x28] sm:$0xff] }
  0x11   : > { %7232 = vst [vmem:[#allocation4_spill] sm:$0xff] %v5055_v5  ;;  %v393_v6 = vadd.s32 %v5055_v5, %v5035_v0  ;;  %v394_v7 = vadd.s32 %v5055_v5, %v5041_v1  ;;  %v396_v8 = vadd.s32 %v5055_v5, %v5046_v2  ;;  %v395_v9 = vadd.s32 %v5055_v5, %v5051_v3  ;;  %v5123_v31 = vld [vmem:[%s7164_s4 + $0x20] sm:$0xff]  ;;  %v5138_v36 = vld [vmem:[%s7164_s4 + $0x68] sm:$0xff]  ;;  %v5158_v44 = vld [vmem:[%s7164_s4 + $0x38] sm:$0xff]  ;;  %s338_s14 = sadd.s32 %s4931_s27, %s337_s13 }
  0x12   : > { %v386_v16 = vadd.s32 %v5055_v5, %v5068_v10  ;;  %v385_v17 = vadd.s32 %v5055_v5, %v5073_v11  ;;  %v388_v26 = vadd.s32 %v5055_v5, %v5096_v22  ;;  %v387_v27 = vadd.s32 %v5055_v5, %v5101_v23  ;;  %v5143_v37 = vld [vmem:[%s7164_s4 + $0x60] sm:$0xff]  ;;  %v5163_v45 = vld [vmem:[%s7164_s4 + $0x30] sm:$0xff]  ;;  %v5184_v54 = vld [vmem:[%s7164_s4 + $0x78] sm:$0xff]  ;;  %p339_p5 = scmp.lt.s32.totalorder %s338_s14, 5 }
  0x13   : > { %vm583_vm0 = vcmp.le.s32.totalorder %v393_v6, 16  ;;  %vm469_vm1 = vcmp.ge.s32.totalorder %v393_v6, 1  ;;  %vm584_vm2 = vcmp.le.s32.totalorder %v394_v7, 16  ;;  %vm470_vm3 = vcmp.ge.s32.totalorder %v394_v7, 1  ;;  %v5189_v55 = vld [vmem:[%s7164_s4 + $0x70] sm:$0xff] }
  0x14   : > { %v602_v12 = vsel %vm583_vm0, 1, %v7176_v4  ;;  %v488_v13 = vsel %vm469_vm1, 1, %v7176_v4  ;;  %v603_v14 = vsel %vm584_vm2, 1, %v7176_v4  ;;  %v489_v15 = vsel %vm470_vm3, 1, %v7176_v4  ;;  %s7479_s14 = smov (!%p339_p5, %s338_s14), 5 }
  0x15   : > { %629 = vrot.lane.b32.xlu1 %v602_v12, %s4950_s25  ;;  %515 = vrot.lane.b32.xlu0 %v488_v13, %s4950_s25  ;;  %vm472_vm4 = vcmp.ge.s32.totalorder %v396_v8, 1  ;;  %vm471_vm5 = vcmp.ge.s32.totalorder %v395_v9, 1  ;;  %vm462_vm6 = vcmp.ge.s32.totalorder %v386_v16, 1  ;;  %vm461_vm7 = vcmp.ge.s32.totalorder %v385_v17, 1  ;;  %s4659_s15 = smul.u32 76, %s7479_s14  ;;  %s3994_s21 = sshll.u32 %s7479_s14, 1 }
  0x16   : > { %v491_v18 = vsel %vm472_vm4, 1, %v7176_v4  ;;  %v490_v19 = vsel %vm471_vm5, 1, %v7176_v4  ;;  %v481_v20 = vsel %vm462_vm6, 1, %v7176_v4  ;;  %v480_v21 = vsel %vm461_vm7, 1, %v7176_v4  ;;  %s4660_s27 = smul.u32 56, %s7479_s14  ;;  %s360_s24 = scalar_lea.vmem %s7168_s8, %s3994_s21 }
  0x17   : > { %vm586_vm8 = vcmp.le.s32.totalorder %v396_v8, 16  ;;  %vm585_vm9 = vcmp.le.s32.totalorder %v395_v9, 16  ;;  %vm576_vm10 = vcmp.le.s32.totalorder %v386_v16, 16  ;;  %vm575_vm11 = vcmp.le.s32.totalorder %v385_v17, 16  ;;  %s5366_s18 = scalar_lea.vmem %s7160_s0, %s4659_s15 }
  0x18   : > { %v605_v24 = vsel %vm586_vm8, 1, %v7176_v4  ;;  %v604_v25 = vsel %vm585_vm9, 1, %v7176_v4  ;;  %v595_v28 = vsel %vm576_vm10, 1, %v7176_v4  ;;  %v594_v29 = vsel %vm575_vm11, 1, %v7176_v4  ;;  %v4334_v16 = vld [vmem:[%s5366_s18 + $0x20] sm:$0xff]   ;;  %s7073_s20 = scalar_lea.vmem %s7167_s7, %s4660_s27 }
  0x19   : > { %631 = vrot.lane.b32.xlu1 %v603_v14, %s4950_s25  ;;  %517 = vrot.lane.b32.xlu0 %v489_v15, %s4950_s25  ;;  %vm464_vm12 = vcmp.ge.s32.totalorder %v388_v26, 1  ;;  %vm463_vm13 = vcmp.ge.s32.totalorder %v387_v27, 1  ;;  %vm578_vm14 = vcmp.le.s32.totalorder %v388_v26, 16  ;;  %vm577_vm15 = vcmp.le.s32.totalorder %v387_v27, 16  ;;  %v4755_v15 = vld [vmem:[%s7161_s1 + $0x8] sm:$0xff]  }
  0x1a   : > { %v483_v32 = vsel %vm464_vm12, 1, %v7176_v4  ;;  %v482_v33 = vsel %vm463_vm13, 1, %v7176_v4  ;;  %v390_v34 = vadd.s32 %v5055_v5, %v5118_v30  ;;  %v389_v35 = vadd.s32 %v5055_v5, %v5123_v31 }
  0x1b   : > { %v597_v38 = vsel %vm578_vm14, 1, %v7176_v4  ;;  %v596_v39 = vsel %vm577_vm15, 1, %v7176_v4  ;;  %v398_v42 = vadd.s32 %v5055_v5, %v5138_v36  ;;  %v397_v43 = vadd.s32 %v5055_v5, %v5143_v37 }
  0x1c   : > { %vm466_vm0 = vcmp.ge.s32.totalorder %v390_v34, 1  ;;  %vm465_vm1 = vcmp.ge.s32.totalorder %v389_v35, 1  ;;  %vm580_vm2 = vcmp.le.s32.totalorder %v390_v34, 16  ;;  %vm579_vm3 = vcmp.le.s32.totalorder %v389_v35, 16 }
  0x1d   : > { %521 = vrot.lane.b32.xlu1 %v491_v18, %s4950_s25  ;;  %519 = vrot.lane.b32.xlu0 %v490_v19, %s4950_s25  ;;  %v485_v40 = vsel %vm466_vm0, 1, %v7176_v4  ;;  %v484_v41 = vsel %vm465_vm1, 1, %v7176_v4  ;;  %v599_v46 = vsel %vm580_vm2, 1, %v7176_v4  ;;  %v598_v47 = vsel %vm579_vm3, 1, %v7176_v4 }
  0x1e   : > { %vm474_vm4 = vcmp.ge.s32.totalorder %v398_v42, 1  ;;  %vm473_vm5 = vcmp.ge.s32.totalorder %v397_v43, 1  ;;  %vm588_vm6 = vcmp.le.s32.totalorder %v398_v42, 16  ;;  %vm587_vm7 = vcmp.le.s32.totalorder %v397_v43, 16  ;;  %v4747_v43 = vld [vmem:[%s7161_s1 + $0x28] sm:$0xff]  }
  0x1f   : > { %v493_v48 = vsel %vm474_vm4, 1, %v7176_v4  ;;  %v492_v49 = vsel %vm473_vm5, 1, %v7176_v4  ;;  %v392_v50 = vadd.s32 %v5055_v5, %v5158_v44  ;;  %v391_v51 = vadd.s32 %v5055_v5, %v5163_v45 }
  0x20   : > { %v607_v52 = vsel %vm588_vm6, 1, %v7176_v4  ;;  %v606_v53 = vsel %vm587_vm7, 1, %v7176_v4  ;;  %v5197_v58 = vadd.s32 %v5055_v5, %v5184_v54  ;;  %v5201_v59 = vadd.s32 %v5055_v5, %v5189_v55 }
  0x21   : > { %501 = vrot.lane.b32.xlu1 %v481_v20, %s4950_s25  ;;  %499 = vrot.lane.b32.xlu0 %v480_v21, %s4950_s25  ;;  %vm468_vm8 = vcmp.ge.s32.totalorder %v392_v50, 1  ;;  %vm467_vm9 = vcmp.ge.s32.totalorder %v391_v51, 1  ;;  %vm582_vm10 = vcmp.le.s32.totalorder %v392_v50, 16  ;;  %vm581_vm11 = vcmp.le.s32.totalorder %v391_v51, 16  ;;  %v4742_v20 = vld [vmem:[%s7161_s1 + $0x78] sm:$0xff]   ;;  %v5296_v50 = vld [vmem:[%s7164_s4 + $0x88] sm:$0xff] }
  0x22   : > { %v487_v56 = vsel %vm468_vm8, 1, %v7176_v4  ;;  %v486_v57 = vsel %vm467_vm9, 1, %v7176_v4  ;;  %v601_v60 = vsel %vm582_vm10, 1, %v7176_v4  ;;  %v600_v61 = vsel %vm581_vm11, 1, %v7176_v4  ;;  %v4743_v21 = vld [vmem:[%s7161_s1 + $0x38] sm:$0xff]   ;;  %4643 = vmatprep.subr.bf16.mxu1 %v4742_v20  ;;  %4352 = vmatprep.subr.bf16.mxu0 %v4742_v20 }
  0x23   : > { %vm476_vm12 = vcmp.ge.s32.totalorder %v5197_v58, 1  ;;  %vm475_vm13 = vcmp.ge.s32.totalorder %v5201_v59, 1  ;;  %vm412_vm14 = vcmp.ge.s32.totalorder %v5035_v0, 1  ;;  %vm431_vm15 = vcmp.le.s32.totalorder %v5035_v0, 16  ;;  %4651 = vmatpush3.bf16.msra.mxu1 %v4743_v21  ;;  %4353 = vmatpush3.bf16.msra.mxu0 %v4743_v21 }
  0x24   : > { %v495_v62 = vsel %vm476_vm12, 1, %v7176_v4  ;;  %v494_v63 = vsel %vm475_vm13, 1, %v7176_v4  ;;  %vm413_vm0 = vcmp.ge.s32.totalorder %v5041_v1, 1  ;;  %vm432_vm1 = vcmp.le.s32.totalorder %v5041_v1, 16  ;;  %vm450_vm2 = vmand %vm412_vm14, %vm431_vm15 }
  0x25   : > { %635 = vrot.lane.b32.xlu1 %v605_v24, %s4950_s25  ;;  %633 = vrot.lane.b32.xlu0 %v604_v25, %s4950_s25  ;;  %vm451_vm5 = vmand %vm413_vm0, %vm432_vm1  ;;  %vm415_vm12 = vcmp.ge.s32.totalorder %v5046_v2, 1  ;;  %vm434_vm13 = vcmp.le.s32.totalorder %v5046_v2, 16  ;;  %vm414_vm14 = vcmp.ge.s32.totalorder %v5051_v3, 1  ;;  %vm433_vm15 = vcmp.le.s32.totalorder %v5051_v3, 16 }
  0x26   : > { %vm405_vm0 = vcmp.ge.s32.totalorder %v5068_v10, 1  ;;  %vm424_vm1 = vcmp.le.s32.totalorder %v5068_v10, 16 }
  0x29   : > { %615 = vrot.lane.b32.xlu1 %v595_v28, %s4950_s25  ;;  %613 = vrot.lane.b32.xlu0 %v594_v29, %s4950_s25 }
  0x2d   : > { %505 = vrot.lane.b32.xlu1 %v483_v32, %s4950_s25  ;;  %503 = vrot.lane.b32.xlu0 %v482_v33, %s4950_s25 }
  0x31   : > { %619 = vrot.lane.b32.xlu1 %v597_v38, %s4950_s25  ;;  %617 = vrot.lane.b32.xlu0 %v596_v39, %s4950_s25  ;;  %v4744_v38 = vld [vmem:[%s7161_s1 + $0x70] sm:$0xff]  }
  0x32   : > { %4644 = vmatprep.subr.bf16.mxu1 %v4744_v38  ;;  %4354 = vmatprep.subr.bf16.mxu0 %v4744_v38 }
  0x35   : > { %509 = vrot.lane.b32.xlu1 %v485_v40, %s4950_s25  ;;  %507 = vrot.lane.b32.xlu0 %v484_v41, %s4950_s25  ;;  %v4745_v40 = vld [vmem:[%s7161_s1 + $0x30] sm:$0xff]  }
  0x36   : > { %4652 = vmatpush3.bf16.msra.mxu1 %v4745_v40  ;;  %4355 = vmatpush3.bf16.msra.mxu0 %v4745_v40 }
  0x39   : > { %623 = vrot.lane.b32.xlu1 %v599_v46, %s4950_s25  ;;  %621 = vrot.lane.b32.xlu0 %v598_v47, %s4950_s25 }
  0x3d   : > { %525 = vrot.lane.b32.xlu1 %v493_v48, %s4950_s25  ;;  %523 = vrot.lane.b32.xlu0 %v492_v49, %s4950_s25  ;;  %v4748_v48 = vld [vmem:[%s7161_s1 + $0x60] sm:$0xff]  }
  0x41   : > { %639 = vrot.lane.b32.xlu1 %v607_v52, %s4950_s25  ;;  %637 = vrot.lane.b32.xlu0 %v606_v53, %s4950_s25 }
  0x45   : > { %513 = vrot.lane.b32.xlu1 %v487_v56, %s4950_s25  ;;  %511 = vrot.lane.b32.xlu0 %v486_v57, %s4950_s25  ;;  %v5305_v56 = vld [vmem:[%s7164_s4 + $0x80] sm:$0xff]  ;;  %v402_v57 = vadd.s32 %v5055_v5, %v5296_v50 }
  0x49   : > { %627 = vrot.lane.b32.xlu1 %v601_v60, %s4950_s25  ;;  %625 = vrot.lane.b32.xlu0 %v600_v61, %s4950_s25 }
  0x4d   : > { %529 = vrot.lane.b32.xlu0 %v495_v62, %s4950_s25  ;;  %527 = vrot.lane.b32.xlu1 %v494_v63, %s4950_s25  ;;  %v4752_v63 = vld [vmem:[%s7161_s1 + $0x50] sm:$0xff]  }
  0x87   : > { %v630_v6 = vpop.permute.xlu1 %629  ;;  %v516_v7 = vpop.permute.xlu0 %515 }
  0x88   : > { %vm659_vm3 = vcmp.ne.s32.totalorder %v630_v6, 0  ;;  %vm545_vm4 = vcmp.ne.s32.totalorder %v516_v7, 0  ;;  %v382_v7 = vld [vmem:[%s7164_s4 + $0x90] sm:$0xff] }
  0x89   : > { %vm564_vm6 = vmand %vm450_vm2, %vm545_vm4  ;;  %vm423_vm4 = vcmp.le.s32.totalorder %v5073_v11, 16 }
  0x8a   : > { %vm678_vm7 = vmand %vm564_vm6, %vm659_vm3  ;;  %vm404_vm3 = vcmp.ge.s32.totalorder %v5073_v11, 1 }
  0x8b   : > { %v632_v8 = vpop.permute.xlu1 %631  ;;  %v518_v9 = vpop.permute.xlu0 %517  ;;  %v806_v12 = vsel %vm678_vm7, 1, %v7176_v4  ;;  %vm453_vm2 = vmand %vm415_vm12, %vm434_vm13 }
  0x8c   : > { %vm660_vm8 = vcmp.ne.s32.totalorder %v632_v8, 0  ;;  %vm546_vm9 = vcmp.ne.s32.totalorder %v518_v9, 0  ;;  %842 = vperm.xlu0 %4705, %v806_v12   ;;  %vm452_vm6 = vmand %vm414_vm14, %vm433_vm15  ;;  %v4753_v8 = vld [vmem:[%s7161_s1 + $0x10] sm:$0xff]  }
  0x8d   : > { %vm565_vm10 = vmand %vm451_vm5, %vm546_vm9 }
  0x8e   : > { %vm679_vm11 = vmand %vm565_vm10, %vm660_vm8 }
  0x8f   : > { %v522_v0 = vpop.permute.xlu1 %521  ;;  %v520_v1 = vpop.permute.xlu0 %519  ;;  %v807_v13 = vsel %vm679_vm11, 1, %v7176_v4  ;;  %vm443_vm8 = vmand %vm405_vm0, %vm424_vm1 }
  0x90   : > { %845 = vperm.xlu1 %4706, %v807_v13   ;;  %vm548_vm5 = vcmp.ne.s32.totalorder %v522_v0, 0  ;;  %vm547_vm7 = vcmp.ne.s32.totalorder %v520_v1, 0  ;;  %vm5229_vm10 = vmand %vm404_vm3, %vm423_vm4  ;;  %v5335_v0 = vadd.s32 %v5055_v5, %v382_v7 }
  0x91   : > { %vm567_vm11 = vmand %vm453_vm2, %vm548_vm5 }
  0x92   : > { %vm566_vm12 = vmand %vm452_vm6, %vm547_vm7  ;;  %vm407_vm6 = vcmp.ge.s32.totalorder %v5096_v22, 1  ;;  %vm426_vm7 = vcmp.le.s32.totalorder %v5096_v22, 16 }
  0x93   : > { %v502_v2 = vpop.permute.xlu1 %501  ;;  %v500_v14 = vpop.permute.xlu0 %499 }
  0x94   : > { %vm538_vm9 = vcmp.ne.s32.totalorder %v502_v2, 0  ;;  %vm537_vm0 = vcmp.ne.s32.totalorder %v500_v14, 0  ;;  %v4754_v14 = vld [vmem:[%s7161_s1 + $0x48] sm:$0xff]  }
  0x95   : > { %vm5233_vm13 = vmand %vm443_vm8, %vm538_vm9 }
  0x96   : > { %vm556_vm2 = vmand %vm5229_vm10, %vm537_vm0  ;;  %vm406_vm10 = vcmp.ge.s32.totalorder %v5101_v23, 1 }
  0x97   : > { %v636_v3 = vpop.permute.xlu1 %635  ;;  %v634_v10 = vpop.permute.xlu0 %633 }
  0x98   : > { %vm662_vm14 = vcmp.ne.s32.totalorder %v636_v3, 0  ;;  %vm661_vm15 = vcmp.ne.s32.totalorder %v634_v10, 0  ;;  %v4756_v3 = vld [vmem:[%s7161_s1 + $0x40] sm:$0xff]  }
  0x99   : > { %vm681_vm1 = vmand %vm567_vm11, %vm662_vm14  ;;  %vm425_vm11 = vcmp.le.s32.totalorder %v5101_v23, 16  ;;  %v4757_v10 = vld [vmem:[%s7161_s1] sm:$0xff]  }
  0x9a   : > { %vm680_vm3 = vmand %vm566_vm12, %vm661_vm15  ;;  %v809_v11 = vsel %vm681_vm1, 1, %v7176_v4 }
  0x9b   : > { %v616_v17 = vpop.permute.xlu1 %615  ;;  %851 = vperm.xlu0 %4705, %v809_v11   ;;  %v808_v18 = vsel %vm680_vm3, 1, %v7176_v4  ;;  %v614_v19 = vpop.permute.xlu0 %613  ;;  %vm445_vm12 = vmand %vm407_vm6, %vm426_vm7  ;;  %vm408_vm7 = vcmp.ge.s32.totalorder %v5123_v31, 1  ;;  %v4238_v11 = vunpack.c.l.bf16 %v4334_v16 }
  0x9c   : > { %vm652_vm4 = vcmp.ne.s32.totalorder %v616_v17, 0  ;;  %848 = vperm.xlu1 %4706, %v808_v18   ;;  %vm651_vm5 = vcmp.ne.s32.totalorder %v614_v19, 0  ;;  %vm444_vm14 = vmand %vm406_vm10, %vm425_vm11  ;;  %vm589_vm11 = vcmp.le.s32.totalorder %v5201_v59, 16  ;;  %v4750_v59 = vld [vmem:[%s7161_s1 + $0x58] sm:$0xff]   ;;  %v4239_v17 = vunpack.c.h.bf16 %v4334_v16  ;;  %v3995_v18 = vld [vmem:[%s7165_s5] ss:$0 sm:$0xff] }
  0x9d   : > { %vm671_vm8 = vmand %vm5233_vm13, %vm652_vm4  ;;  %vm409_vm4 = vcmp.ge.s32.totalorder %v5118_v30, 1  ;;  %v742_v20 = vmul.f32 %v4238_v11, %v3995_v18 }
  0x9e   : > { %vm670_vm9 = vmand %vm556_vm2, %vm651_vm5  ;;  %v799_v24 = vsel %vm671_vm8, 1, %v7176_v4  ;;  %vm428_vm5 = vcmp.le.s32.totalorder %v5118_v30, 16  ;;  %vm427_vm8 = vcmp.le.s32.totalorder %v5123_v31, 16  ;;  %v608_v31 = vsel %vm589_vm11, 1, %v7176_v4 }
  0x9f   : > { %v506_v22 = vpop.permute.xlu1 %505  ;;  %821 = vperm.xlu0 %4705, %v799_v24   ;;  %v798_v25 = vsel %vm670_vm9, 1, %v7176_v4  ;;  %v504_v26 = vpop.permute.xlu0 %503  ;;  %vm590_vm9 = vcmp.le.s32.totalorder %v5197_v58, 16  ;;  %v401_v58 = vadd.s32 %v5055_v5, %v5305_v56  ;;  %v743_v21 = vmul.f32 %v4239_v17, %v3995_v18  ;;  %v4764_v24 = vld [vmem:[%s7161_s1 + $0xf8] sm:$0xff]  }
  0xa0   : > { %vm540_vm13 = vcmp.ne.s32.totalorder %v506_v22, 0  ;;  %818 = vperm.xlu1 %4706, %v798_v25   ;;  %vm539_vm15 = vcmp.ne.s32.totalorder %v504_v26, 0  ;;  %v609_v30 = vsel %vm590_vm9, 1, %v7176_v4  ;;  %v5380_v22 = vld [vmem:[%s7166_s6] ss:$0 sm:$0xff]  ;;  %v4335_v25 = vld [vmem:[%s5366_s18 + $0x28] sm:$0xff]  }
  0xa1   : > { %vm559_vm0 = vmand %vm445_vm12, %vm540_vm13  ;;  %v4221_v26 = vld [vmem:[%s5366_s18] sm:$0xff]  }
  0xa2   : > { %vm558_vm1 = vmand %vm444_vm14, %vm539_vm15  ;;  %v4223_v38 = vunpack.c.h.bf16 %v4221_v26 }
  0xa3   : > { %v620_v27 = vpop.permute.xlu1 %619  ;;  %v618_v28 = vpop.permute.xlu0 %617  ;;  %vm447_vm12 = vmand %vm409_vm4, %vm428_vm5  ;;  %vm417_vm4 = vcmp.ge.s32.totalorder %v5138_v36, 1  ;;  %vm436_vm5 = vcmp.le.s32.totalorder %v5138_v36, 16 }
  0xa4   : > { %vm654_vm3 = vcmp.ne.s32.totalorder %v620_v27, 0  ;;  %vm653_vm2 = vcmp.ne.s32.totalorder %v618_v28, 0  ;;  %vm446_vm14 = vmand %vm408_vm7, %vm427_vm8  ;;  %vm416_vm7 = vcmp.ge.s32.totalorder %v5143_v37, 1  ;;  %vm435_vm8 = vcmp.le.s32.totalorder %v5143_v37, 16  ;;  %v4746_v37 = vld [vmem:[%s7161_s1 + $0x68] sm:$0xff]  }
  0xa5   : > { %vm673_vm6 = vmand %vm559_vm0, %vm654_vm3  ;;  %4645 = vmatprep.subr.bf16.mxu1 %v4746_v37  ;;  %4356 = vmatprep.subr.bf16.mxu0 %v4746_v37  ;;  %v768_v28 = vadd.f32 %v5380_v22, %v742_v20 }
  0xa6   : > { %vm672_vm10 = vmand %vm558_vm1, %vm653_vm2  ;;  %v801_v23 = vsel %vm673_vm6, 1, %v7176_v4  ;;  %4653 = vmatpush3.bf16.msra.mxu1 %v4747_v43  ;;  %4357 = vmatpush3.bf16.msra.mxu0 %v4747_v43 }
  0xa7   : > { %v510_v29 = vpop.permute.xlu1 %509  ;;  %827 = vperm.xlu0 %4705, %v801_v23   ;;  %v800_v32 = vsel %vm672_vm10, 1, %v7176_v4  ;;  %v508_v33 = vpop.permute.xlu0 %507  ;;  %vm455_vm10 = vmand %vm417_vm4, %vm436_vm5  ;;  %vm410_vm5 = vcmp.ge.s32.totalorder %v5163_v45, 1  ;;  %4646 = vmatprep.subr.bf16.mxu1 %v4748_v48  ;;  %v769_v23 = vadd.f32 %v5380_v22, %v743_v21 }
  0xa8   : > { %vm542_vm13 = vcmp.ne.s32.totalorder %v510_v29, 0  ;;  %824 = vperm.xlu1 %4706, %v800_v32   ;;  %vm541_vm15 = vcmp.ne.s32.totalorder %v508_v33, 0  ;;  %4358 = vmatprep.subr.bf16.mxu0 %v4748_v48  ;;  %v4331_v29 = vld [vmem:[%s5366_s18 + $0x8] sm:$0xff]   ;;  %v4332_v32 = vld [vmem:[%s5366_s18 + $0x10] sm:$0xff]  }
  0xa9   : > { %vm561_vm0 = vmand %vm447_vm12, %vm542_vm13  ;;  %v4336_v33 = vld [vmem:[%s5366_s18 + $0x30] sm:$0xff]   ;;  %v4227_v40 = vunpack.c.h.bf16 %v4331_v29  ;;  %v4231_v37 = vunpack.c.h.bf16 %v4332_v32 }
  0xaa   : > { %vm560_vm1 = vmand %vm446_vm14, %vm541_vm15  ;;  %v4246_v43 = vunpack.c.l.bf16 %v4336_v33 }
  0xab   : > { %v624_v34 = vpop.permute.xlu1 %623  ;;  %643 = vrot.lane.b32.xlu0 %v609_v30, %s4950_s25  ;;  %v622_v35 = vpop.permute.xlu0 %621  ;;  %vm454_vm12 = vmand %vm416_vm7, %vm435_vm8 }
  0xac   : > { %vm656_vm3 = vcmp.ne.s32.totalorder %v624_v34, 0  ;;  %641 = vrot.lane.b32.xlu1 %v608_v31, %s4950_s25  ;;  %vm655_vm2 = vcmp.ne.s32.totalorder %v622_v35, 0  ;;  %v4242_v31 = vunpack.c.l.bf16 %v4335_v25  ;;  %v4243_v34 = vunpack.c.h.bf16 %v4335_v25 }
  0xad   : > { %vm675_vm6 = vmand %vm561_vm0, %vm656_vm3  ;;  %vm411_vm3 = vcmp.ge.s32.totalorder %v5158_v44, 1  ;;  %v4222_v35 = vunpack.c.l.bf16 %v4221_v26 }
  0xae   : > { %vm674_vm9 = vmand %vm560_vm1, %vm655_vm2  ;;  %v803_v39 = vsel %vm675_vm6, 1, %v7176_v4  ;;  %vm430_vm2 = vcmp.le.s32.totalorder %v5158_v44, 16  ;;  %vm429_vm6 = vcmp.le.s32.totalorder %v5163_v45, 16  ;;  %v4749_v44 = vld [vmem:[%s7161_s1 + $0x20] sm:$0xff]   ;;  %v4751_v45 = vld [vmem:[%s7161_s1 + $0x18] sm:$0xff]  }
  0xaf   : > { %v526_v41 = vpop.permute.xlu1 %525  ;;  %833 = vperm.xlu0 %4705, %v803_v39   ;;  %v802_v36 = vsel %vm674_vm9, 1, %v7176_v4  ;;  %v524_v42 = vpop.permute.xlu0 %523  ;;  %vm449_vm8 = vmand %vm411_vm3, %vm430_vm2  ;;  %4654 = vmatpush3.bf16.msra.mxu1 %v4749_v44  ;;  %vm477_vm2 = vcmp.ge.s32.totalorder %v401_v58, 1  ;;  %v4226_v39 = vunpack.c.l.bf16 %v4331_v29 }
  0xb0   : > { %vm550_vm11 = vcmp.ne.s32.totalorder %v526_v41, 0  ;;  %830 = vperm.xlu1 %4706, %v802_v36   ;;  %vm549_vm13 = vcmp.ne.s32.totalorder %v524_v42, 0  ;;  %4359 = vmatpush3.bf16.msra.mxu0 %v4749_v44  ;;  %v496_v12 = vsel %vm477_vm2, 1, %v7176_v4  ;;  %v4230_v41 = vunpack.c.l.bf16 %v4332_v32 }
  0xb1   : > { %vm569_vm14 = vmand %vm455_vm10, %vm550_vm11  ;;  %4647 = vmatprep.subr.bf16.mxu1 %v4750_v59  ;;  %4360 = vmatprep.subr.bf16.mxu0 %v4750_v59  ;;  %v787_v36 = vmax.f32 %v768_v28, 0.0  ;;  %v788_v42 = vmax.f32 %v769_v23, 0.0  ;;  %v745_v44 = vmul.f32 %v4243_v34, %v3995_v18  ;;  %vm1249_vm2 = vcmask 1046532  }
  0xb2   : > { %vm568_vm15 = vmand %vm454_vm12, %vm549_vm13  ;;  %v738_v59 = vmul.f32 %v4230_v41, %v3995_v18 }
  0xb3   : > { %v640_v46 = vpop.permute.xlu1 %639  ;;  %v638_v47 = vpop.permute.xlu0 %637  ;;  %vm448_vm10 = vmand %vm410_vm5, %vm429_vm6  ;;  %4655 = vmatpush3.bf16.msra.mxu1 %v4751_v45  ;;  %vm591_vm5 = vcmp.le.s32.totalorder %v401_v58, 16  ;;  %vm479_vm6 = vcmp.ge.s32.totalorder %v5335_v0, 1  ;;  %v737_v58 = vmul.f32 %v4227_v40, %v3995_v18 }
  0xb4   : > { %vm664_vm0 = vcmp.ne.s32.totalorder %v640_v46, 0  ;;  %vm663_vm1 = vcmp.ne.s32.totalorder %v638_v47, 0  ;;  %4361 = vmatpush3.bf16.msra.mxu0 %v4751_v45  ;;  %4648 = vmatprep.subr.bf16.mxu1 %v4752_v63  ;;  %v610_v13 = vsel %vm591_vm5, 1, %v7176_v4  ;;  %v498_v2 = vsel %vm479_vm6, 1, %v7176_v4  ;;  %v4772_v46 = vld [vmem:[%s7161_s1 + $0x178] sm:$0xff]  }
  0xb5   : > { %vm683_vm4 = vmand %vm569_vm14, %vm664_vm0  ;;  %4362 = vmatprep.subr.bf16.mxu0 %v4752_v63  ;;  %v4247_v47 = vunpack.c.h.bf16 %v4336_v33  ;;  %v739_v45 = vmul.f32 %v4231_v37, %v3995_v18  ;;  %vm1630_vm5 = vcmask 1045508  }
  0xb6   : > { %vm682_vm7 = vmand %vm568_vm15, %vm663_vm1  ;;  %v811_v49 = vsel %vm683_vm4, 1, %v7176_v4  ;;  %vm478_vm1 = vcmp.ge.s32.totalorder %v402_v57, 1  ;;  %vm592_vm4 = vcmp.le.s32.totalorder %v402_v57, 16  ;;  %v736_v57 = vmul.f32 %v4226_v39, %v3995_v18 }
  0xb7   : > { %v514_v51 = vpop.permute.xlu1 %513  ;;  %857 = vperm.xlu0 %4705, %v811_v49   ;;  %v810_v52 = vsel %vm682_vm7, 1, %v7176_v4  ;;  %v512_v53 = vpop.permute.xlu0 %511  ;;  %v497_v9 = vsel %vm478_vm1, 1, %v7176_v4  ;;  %4656 = vmatpush3.bf16.msra.mxu1 %v4753_v8  ;;  %v611_v1 = vsel %vm592_vm4, 1, %v7176_v4  ;;  %v744_v49 = vmul.f32 %v4242_v31, %v3995_v18 }
  0xb8   : > { %vm544_vm9 = vcmp.ne.s32.totalorder %v514_v51, 0  ;;  %854 = vperm.xlu1 %4706, %v810_v52   ;;  %vm543_vm11 = vcmp.ne.s32.totalorder %v512_v53, 0  ;;  %4363 = vmatpush3.bf16.msra.mxu0 %v4753_v8  ;;  %v734_v51 = vmul.f32 %v4222_v35, %v3995_v18  ;;  %v735_v52 = vmul.f32 %v4223_v38, %v3995_v18  ;;  %v4333_v53 = vld [vmem:[%s5366_s18 + $0x18] sm:$0xff]  }
  0xb9   : > { %vm563_vm12 = vmand %vm449_vm8, %vm544_vm9  ;;  %4649 = vmatprep.subr.bf16.mxu1 %v4754_v14  ;;  %4364 = vmatprep.subr.bf16.mxu0 %v4754_v14  ;;  %v4234_v7 = vunpack.c.l.bf16 %v4333_v53  ;;  %v4235_v8 = vunpack.c.h.bf16 %v4333_v53  ;;  %v5411_v14 = vadd.f32 %v5380_v22, %v737_v58  ;;  %vm593_vm9 = vcmp.le.s32.totalorder %v5335_v0, 16 }
  0xba   : > { %vm562_vm13 = vmand %vm448_vm10, %vm543_vm11  ;;  %vm419_vm10 = vcmp.ge.s32.totalorder %v5184_v54, 1  ;;  %vm438_vm11 = vcmp.le.s32.totalorder %v5184_v54, 16  ;;  %v5441_v32 = vsel %vm593_vm9, 1, %v7176_v4  ;;  %vm1051_vm1 = vsmask.f32 7440 }
  0xbb   : > { %v628_v60 = vpop.permute.xlu1 %627  ;;  %v626_v61 = vpop.permute.xlu0 %625  ;;  %4657 = vmatpush3.bf16.msra.mxu1 %v4755_v15  ;;  %v740_v11 = vmul.f32 %v4234_v7, %v3995_v18  ;;  %v741_v17 = vmul.f32 %v4235_v8, %v3995_v18  ;;  %vm1814_vm4 = vsmask.f32 5392  ;;  %vm5502_vm6 = vmand %vm419_vm10, %vm438_vm11  ;;  %vm7264_vm10 = vsmask.f32 1280 }
  0xbc   : > { %vm658_vm14 = vcmp.ne.s32.totalorder %v628_v60, 0  ;;  %vm657_vm15 = vcmp.ne.s32.totalorder %v626_v61, 0  ;;  %4365 = vmatpush3.bf16.msra.mxu0 %v4755_v15  ;;  %4650 = vmatprep.subr.bf16.mxu1 %v4756_v3  ;;  %v5414_v15 = vadd.f32 %v5380_v22, %v738_v59  ;;  %vm5602_vm11 = vmor %vm7264_vm10, %vm1814_vm4  ;;  %vm7272_vm10 = vcmask 1044484  }
  0xbd   : > { %vm677_vm0 = vmand %vm563_vm12, %vm658_vm14  ;;  %4366 = vmatprep.subr.bf16.mxu0 %v4756_v3  ;;  %v5417_v3 = vadd.f32 %v5380_v22, %v739_v45  ;;  %vm418_vm12 = vcmp.ge.s32.totalorder %v5189_v55, 1  ;;  %v5444_v33 = vadd.f32 %v5380_v22, %v740_v11 }
  0xbe   : > { %vm676_vm3 = vmand %vm562_vm13, %vm657_vm15  ;;  %v805_v62 = vsel %vm677_vm0, 1, %v7176_v4  ;;  %vm437_vm13 = vcmp.le.s32.totalorder %v5189_v55, 16  ;;  %vm1050_vm0 = vsmask.f32 3328 }
  0xbf   : > { %839 = vperm.xlu0 %4705, %v805_v62   ;;  %v804_v6 = vsel %vm676_vm3, 1, %v7176_v4  ;;  %4658 = vmatpush3.bf16.msra.mxu1 %v4757_v10  ;;  %v5372_v19 = vpop.permute.xlu0 %529  ;;  %v5384_v27 = vpop.permute.xlu1 %527  ;;  %v746_v62 = vmul.f32 %v4246_v43, %v3995_v18  ;;  %vm1248_vm3 = vcmask 1042432   ;;  %vm5514_vm9 = vmand %vm418_vm12, %vm437_vm13 }
  0xc0   : > { %836 = vperm.xlu1 %4706, %v804_v6   ;;  %4367 = vmatpush3.bf16.msra.mxu0 %v4757_v10  ;;  %v747_v6 = vmul.f32 %v4247_v47, %v3995_v18  ;;  %v782_v18 = vmax.f32 %v5411_v14, 0.0  ;;  %vm552_vm14 = vcmp.ne.s32.totalorder %v5372_v19, 0  ;;  %vm551_vm15 = vcmp.ne.s32.totalorder %v5384_v27, 0 }
  0xc1   : > { %4410 = vmatprep.subr.bf16.mxu1 %v4764_v24  ;;  %4468 = vmatprep.subr.bf16.mxu0 %v4772_v46  ;;  %v5420_v10 = vadd.f32 %v5380_v22, %v746_v62  ;;  %vm5534_vm13 = vmand %vm5502_vm6, %vm552_vm14 }
  0xc2   : > { %v5423_v16 = vadd.f32 %v5380_v22, %v747_v6  ;;  %vm5551_vm14 = vmand %vm5514_vm9, %vm551_vm15  ;;  %vm7258_vm9 = vcmask 1041408  }
  0xc3   : > { %533 = vrot.lane.b32.xlu0 %v497_v9, %s4950_s25  ;;  %v5396_v9 = vadd.f32 %v5380_v22, %v744_v49  ;;  %vm5566_vm6 = vmor %vm1050_vm0, %vm1051_vm1 }
  0xc4   : > { %531 = vrot.lane.b32.xlu1 %v496_v12, %s4950_s25  ;;  %v5399_v12 = vadd.f32 %v5380_v22, %v745_v44 }
  0xc5   : > { %v789_v20 = vmax.f32 %v5396_v9, 0.0 }
  0xc6   : > { %v790_v21 = vmax.f32 %v5399_v12, 0.0 }
  0xc7   : > { %647 = vrot.lane.b32.xlu0 %v611_v1, %s4950_s25  ;;  %v5402_v1 = vadd.f32 %v5380_v22, %v734_v51 }
  0xc8   : > { %645 = vrot.lane.b32.xlu1 %v610_v13, %s4950_s25  ;;  %v5405_v13 = vadd.f32 %v5380_v22, %v735_v52 }
  0xc9   : > { %v779_v24 = vmax.f32 %v5402_v1, 0.0 }
  0xca   : > { %v780_v25 = vmax.f32 %v5405_v13, 0.0 }
  0xcc   : > { %535 = vrot.lane.b32.xlu1 %v498_v2, %s4950_s25  ;;  %v5408_v2 = vadd.f32 %v5380_v22, %v736_v57 }
  0xce   : > { %v781_v26 = vmax.f32 %v5408_v2, 0.0 }
 0x107   : > { %v843_v30 = vpop.permute.xlu0 %842 }
 0x108   : > { %vm882_vm7 = vcmp.eq.s32.totalorder %v843_v30, 1  ;;  %v5447_v30 = vadd.f32 %v5380_v22, %v741_v17 }
 0x109   : > { %v901_v60 = vsel %vm882_vm7, %v787_v36, 0.0  ;;  %vm1432_vm7 = vsmask.f32 6416 }
 0x10b   : > { %v846_v48 = vpop.permute.xlu1 %845 }
 0x10c   : > { %vm883_vm8 = vcmp.eq.s32.totalorder %v846_v48, 1 }
 0x10d   : > { %v902_v61 = vsel %vm883_vm8, %v788_v42, 0.0 }
 0x10e   : > { %v4279_v63 = vpack.c.bf16 %v902_v61, %v901_v60 }
 0x110   : > { %4342 = vst [vmem:[#allocation3 + $0x20] sm:$0xff] %v4279_v63  }
 0x116   : > { %v5455_v42 = vpop.permute.xlu0 %851 }
 0x117   : > { %v1044_v31 = vld [vmem:[#allocation3 + $0x20] sm:$0xf]  ;;  %v1045_v34 = vld [vmem:[#allocation3 + $0x24] sm:$0xf]  ;;  %v849_v47 = vpop.permute.xlu1 %848  ;;  %vm885_vm12 = vcmp.eq.s32.totalorder %v5455_v42, 1 }
 0x118   : > { %v5450_v35 = vld [vmem:[#allocation3 + $0x20] sm:$0xf]  ;;  %v1133_v38 = vshll.u32 %v1044_v31, 16  ;;  %v1137_v39 = vshrl.u32 %v1044_v31, 16  ;;  %v1143_v40 = vshll.u32 %v1045_v34, 16  ;;  %v1147_v41 = vshrl.u32 %v1045_v34, 16 }
 0x119   : > { %7237 = vst [vmem:[#allocation5_spill] sm:$0xff] %v5450_v35  ;;  %v5453_v36 = vld [vmem:[#allocation3 + $0x24] sm:$0xf]  ;;  %v7169_v37 = vrot.slane %v5450_v35, 5  ;;  %v5459_v43 = vld [vmem:[#allocation3 + $0x20] sm:$0xf] }
 0x11a   : > { %v7173_v22 = vrot.slane %v5453_v36, 5  ;;  %7238 = vst [vmem:[#allocation6_spill] sm:$0xff] %v5459_v43  ;;  %v5461_v46 = vld [vmem:[#allocation3 + $0x24] sm:$0xf]  ;;  %v5463_v48 = vrot.slane %v1133_v38, 5  ;;  %v5465_v49 = vrot.slane %v1137_v39, 4 }
 0x11b   : > { %v1423_v44 = vld [vmem:[#allocation3 + $0x20] sm:$0xf]  ;;  %v5469_v53 = vrot.slane %v1143_v40, 5  ;;  %v5471_v57 = vrot.slane %v1147_v41, 4  ;;  %v7170_v58 = vrot.slane %v5459_v43, 5  ;;  %v7174_v59 = vrot.slane %v5461_v46, 5  ;;  %v822_v41 = vpop.permute.xlu0 %821 }
 0x11c   : > { %7239 = vst [vmem:[#allocation7_spill] sm:$0xff] %v5463_v48  ;;  %v1424_v60 = vld [vmem:[#allocation3 + $0x24] sm:$0xf]  ;;  %v1494_v61 = vshrl.u32 %v1423_v44, 16  ;;  %v1497_v45 = vshll.u32 %v1423_v44, 16  ;;  %v5479_v7 = vrot.slane %v7169_v37, 4 }
 0x11d   : > { %v1504_v62 = vshrl.u32 %v1424_v60, 16  ;;  %v1507_v63 = vshll.u32 %v1424_v60, 16  ;;  %v5475_v6 = vld [vmem:[#allocation3 + $0x20] sm:$0xf]  ;;  %v5483_v8 = vrot.slane %v7173_v22, 4  ;;  %vm884_vm8 = vcmp.eq.s32.totalorder %v849_v47, 1 }
 0x11e   : > { %7240 = vst [vmem:[#allocation8_spill] sm:$0xff] %v5475_v6  ;;  %v5485_v11 = vld [vmem:[#allocation3 + $0x24] sm:$0xf]  ;;  %v7171_v17 = vrot.slane %v5475_v6, 6  ;;  %v5490_v31 = vrot.slane %v7170_v58, 4  ;;  %v5494_v34 = vrot.slane %v7174_v59, 4 }
 0x11f   : > { %v1496_v38 = vrot.slane %v1494_v61, 5  ;;  %v1499_v39 = vrot.slane %v1497_v45, 6  ;;  %v5496_v40 = vld [vmem:[#allocation3 + $0x20] sm:$0xf]  ;;  %v1506_v60 = vrot.slane %v1504_v62, 5  ;;  %v1509_v37 = vrot.slane %v1507_v63, 6  ;;  %v819_v45 = vpop.permute.xlu1 %818 }
 0x120   : > { %7241 = vst [vmem:[#allocation9_spill] sm:$0xff] %v5496_v40  ;;  %v7172_v58 = vrot.slane %v5485_v11, 6  ;;  %v5507_v52 = vld [vmem:[#allocation3 + $0x24] sm:$0xf]  ;;  %v7175_v61 = vrot.slane %v5496_v40, 6  ;;  %v5520_v54 = vrot.slane %v7171_v17, 4 }
 0x121   : > { %v1802_v62 = vld [vmem:[#allocation3 + $0x20] sm:$0xf]  ;;  %v1803_v63 = vld [vmem:[#allocation3 + $0x24] sm:$0xf]  ;;  %v903_v29 = vsel %vm884_vm8, %v789_v20, 0.0  ;;  %v5525_v23 = vor.u32 %v1499_v39, %v1496_v38  ;;  %v5556_v4 = vor.u32 %v1509_v37, %v1506_v60  ;;  %v904_v27 = vsel %vm885_vm12, %v790_v21, 0.0  ;;  %vm5574_vm8 = vmor %vm1248_vm3, %vm1249_vm2 }
 0x122   : > { %v1856_v0 = vshrl.u32 %v1802_v62, 16  ;;  %v1859_v55 = vshll.u32 %v1802_v62, 16  ;;  %v5527_v28 = vld [vmem:[#allocation3 + $0x20] sm:$0xf]  ;;  %v5540_v9 = vrot.slane %v7172_v58, 4  ;;  %v5544_v20 = vrot.slane %v7175_v61, 4  ;;  %v828_v39 = vpop.permute.xlu0 %827  ;;  %vm5583_vm12 = vmor %vm7258_vm9, %vm1630_vm5 }
 0x123   : > { %7246 = vst [vmem:[#allocation10_spill] sm:$0xff] %v5525_v23  ;;  %7247 = vst [vmem:[#allocation11_spill] sm:$0xff] %v5527_v28  ;;  %v1866_v38 = vshrl.u32 %v1803_v63, 16  ;;  %v1869_v58 = vshll.u32 %v1803_v63, 16  ;;  %v7178_v22 = vrot.slane %v5527_v28, 7  ;;  %v825_v59 = vpop.permute.xlu1 %824  ;;  %vm874_vm15 = vcmp.eq.s32.totalorder %v819_v45, 1 }
 0x124   : > { %7250 = vst [vmem:[#allocation12_spill] sm:$0xff] %v5540_v9  ;;  %v1858_v44 = vrot.slane %v1856_v0, 6  ;;  %v1861_v62 = vrot.slane %v1859_v55, 7  ;;  %v1016_v61 = vld [vmem:[#allocation3 + $0x20] sm:$0xf]  ;;  %v4284_v55 = vpack.c.bf16 %v904_v27, %v903_v29  ;;  %v1502_v21 = vrot.slane %v5525_v23, 4 }
 0x125   : > { %v5558_v47 = vld [vmem:[#allocation3 + $0x24] sm:$0xf]  ;;  %1030 = vst [vmem:[#allocation2 + $0x120] sm:$0xf] %v1016_v61  ;;  %v1868_v37 = vrot.slane %v1866_v38, 6  ;;  %v1871_v60 = vrot.slane %v1869_v58, 7 }
 0x126   : > { %v1017_v51 = vld [vmem:[#allocation3 + $0x24] sm:$0xf]  ;;  %v5570_v63 = vor.u32 %v1861_v62, %v1858_v44  ;;  %v893_v42 = vsel %vm874_vm15, %v779_v24, 0.0  ;;  %vm875_vm0 = vcmp.eq.s32.totalorder %v822_v41, 1  ;;  %vm876_vm1 = vcmp.eq.s32.totalorder %v825_v59, 1  ;;  %v644_v61 = vpop.permute.xlu0 %643  ;;  %4343 = vst [vmem:[#allocation3 + $0x28] sm:$0xff] %v4284_v55  }
 0x127   : > { %1031 = vst [vmem:[#allocation2 + $0x144] sm:$0xf] %v1017_v51  ;;  %v2034_v29 = vrot.slane %v7178_v22, 4  ;;  %v2035_v45 = vrot.slane %v5558_v47, 7  ;;  %v894_v38 = vsel %vm875_vm0, %v780_v25, 0.0  ;;  %v895_v1 = vsel %vm876_vm1, %v781_v26, 0.0  ;;  %v642_v24 = vpop.permute.xlu1 %641 }
 0x128   : > { %7255 = vst [vmem:[#allocation13_spill] sm:$0xff] %v5570_v63  ;;  %vm7261_vm3 = vsmask.f32 2304  ;;  %v4259_v41 = vpack.c.bf16 %v894_v38, %v893_v42  ;;  %vm877_vm5 = vcmp.eq.s32.totalorder %v828_v39, 1  ;;  %vm665_vm15 = vcmp.ne.s32.totalorder %v642_v24, 0 }
 0x129   : > { %vm5596_vm2 = vmor %vm7261_vm3, %vm1432_vm7  ;;  %vm666_vm9 = vcmp.ne.s32.totalorder %v644_v61, 0  ;;  %v7265_v44 = vmov 0  ;;  %v1864_v13 = vrot.slane %v5570_v63, 4  ;;  %v5607_v2 = vor.u32 %v1871_v60, %v1868_v37 }
 0x12a   : > { %v7266_v44 = vsel %vm5602_vm11, 4294967295, %v7265_v44  ;;  %v896_v25 = vsel %vm877_vm5, %v782_v18, 0.0  ;;  %vm684_vm7 = vmand %vm5551_vm14, %vm665_vm15  ;;  %v1140_v26 = vor.u32 %v5465_v49, %v5463_v48  ;;  %4260 = vst [vmem:[#allocation3] sm:$0xff] %v4259_v41   ;;  %v7269_v62 = vmov 0   ;;  %v834_v51 = vpop.permute.xlu0 %833 }
 0x12b   : > { %7267 = vst [vmem:[#allocation14_spill] sm:$0xff] %v7266_v44  ;;  %7268 = vst [vmem:[#allocation15_spill] sm:$0xff] %v5607_v2  ;;  %v4264_v39 = vpack.c.bf16 %v896_v25, %v895_v1  ;;  %v812_v27 = vsel %vm684_vm7, 1, %v7269_v62  ;;  %v7270_v37 = vrot.slane %v5461_v46, 5  ;;  %v7271_v18 = vrot.slane %v5453_v36, 5  ;;  %v831_v19 = vpop.permute.xlu1 %830 }
 0x12c   : > { %vm685_vm4 = vmand %vm5534_vm13, %vm666_vm9  ;;  %860 = vperm.xlu0 %4705, %v812_v27   ;;  %vm7273_vm13 = vcmask 1040384   ;;  %v7274_v60 = vmov 0  ;;  %vm879_vm0 = vcmp.eq.s32.totalorder %v834_v51, 1  ;;  %v1141_v46 = vrot.slane %v1140_v26, 4 }
 0x12d   : > { %v1369_v14 = vsel %vm5574_vm8, %v5490_v31, %v7270_v37  ;;  %v1278_v49 = vsel %vm5574_vm8, %v5479_v7, %v7271_v18  ;;  %v813_v17 = vsel %vm685_vm4, 1, %v7269_v62  ;;  %vm5631_vm14 = vmor %vm7273_vm13, %vm7272_vm10  ;;  %v1150_v31 = vor.u32 %v5471_v57, %v5469_v53  ;;  %4339 = vst [vmem:[#allocation3 + $0x8] sm:$0xff] %v4264_v39   ;;  %v1019_v24 = vld [vmem:[#allocation3 + $0x2c] sm:$0xf]  ;;  %v5664_v39 = vld [vmem:[#allocation3 + $0x28] sm:$0xf] }
 0x12e   : > { %v7275_v60 = vsel %vm5631_vm14, 4294967295, %v7274_v60  ;;  %1409 = vst [vmem:[#allocation2 + $0xe4] sm:$0xf] %v1369_v14  ;;  %1314 = vst [vmem:[#allocation2 + $0x128] sm:$0xf] %v1278_v49  ;;  %vm878_vm1 = vcmp.eq.s32.totalorder %v831_v19, 1  ;;  %863 = vperm.xlu1 %4706, %v813_v17   ;;  %v1511_v55 = vsel %vm5596_vm2, %v1502_v21, %v5556_v4  ;;  %v1146_v1 = vsel %vm5566_vm6, %v1141_v46, %v5469_v53 }
 0x12f   : > { %7276 = vst [vmem:[#allocation16_spill] sm:$0xff] %v7275_v60  ;;  %v7277_v36 = vmax.f32 %v5417_v3, 0.0  ;;  %v7278_v42 = vrot.slane %v5485_v11, 6  ;;  %v7279_v57 = vmax.f32 %v5414_v15, 0.0  ;;  %1593 = vst [vmem:[#allocation2 + $0xe8] sm:$0xf] %v1511_v55  ;;  %v1873_v11 = vsel %vm5602_vm11, %v1864_v13, %v5607_v2 }
 0x130   : > { %v7280_v3 = vrot.slane %v5507_v52, 6  ;;  %v1046_v15 = vld [vmem:[#allocation3 + $0x28] sm:$0xf]  ;;  %1214 = vst [vmem:[#allocation2 + $0x124] sm:$0xf] %v1146_v1  ;;  %v2036_v53 = vsel %vm5631_vm14, %v2034_v29, %v2035_v45  ;;  %649 = vrot.lane.b32.xlu0 %v5441_v32, %s4950_s25  ;;  %v7181_v14 = vrot.slane %v5664_v39, 5 }
 0x131   : > { %v898_v7 = vsel %vm879_vm0, %v7277_v36, 0.0  ;;  %v1653_v61 = vsel %vm5583_vm12, %v5520_v54, %v7278_v42  ;;  %v897_v38 = vsel %vm878_vm1, %v7279_v57, 0.0  ;;  %v1018_v54 = vld [vmem:[#allocation3 + $0x28] sm:$0xf]  ;;  %1978 = vst [vmem:[#allocation2 + $0xac] sm:$0xf] %v1873_v11 }
 0x132   : > { %1693 = vst [vmem:[#allocation2 + $0xec] sm:$0xf] %v1653_v61  ;;  %v1744_v21 = vsel %vm5583_vm12, %v5544_v20, %v7280_v3  ;;  %v4269_v41 = vpack.c.bf16 %v898_v7, %v897_v38  ;;  %1032 = vst [vmem:[#allocation2 + $0x168] sm:$0xf] %v1018_v54  ;;  %v1047_v25 = vld [vmem:[#allocation3 + $0x2c] sm:$0xf]  ;;  %v7282_v29 = vmov %v7280_v3 }
 0x133   : > { %1788 = vst [vmem:[#allocation2 + $0xa8] sm:$0xf] %v1744_v21  ;;  %1033 = vst [vmem:[#allocation2 + $0x18c] sm:$0xf] %v1019_v24  ;;  %v1153_v20 = vshll.u32 %v1046_v15, 16  ;;  %v1157_v26 = vshrl.u32 %v1046_v15, 16 }
 0x134   : > { %2082 = vst [vmem:[#allocation2 + $0xb0] sm:$0xf] %v2036_v53  ;;  %v1163_v27 = vshll.u32 %v1047_v25, 16  ;;  %v1167_v51 = vshrl.u32 %v1047_v25, 16  ;;  %v5669_v37 = vld [vmem:[#allocation3 + $0x2c] sm:$0xf] }
 0x135   : > { %7281 = vst [vmem:[#allocation17_spill] sm:$0xff] %v5669_v37  ;;  %4340 = vst [vmem:[#allocation3 + $0x10] sm:$0xff] %v4269_v41   ;;  %v5674_v18 = vrot.slane %v7282_v29, 4  ;;  %v1155_v49 = vrot.slane %v1153_v20, 5  ;;  %v1159_v19 = vrot.slane %v1157_v26, 4  ;;  %v1151_v46 = vrot.slane %v1150_v31, 4 }
 0x136   : > { %v5676_v17 = vld [vmem:[#allocation3 + $0x28] sm:$0xf]  ;;  %v5681_v36 = vrot.slane %v2035_v45, 4  ;;  %v1165_v7 = vrot.slane %v1163_v27, 5  ;;  %v1169_v55 = vrot.slane %v1167_v51, 4  ;;  %v5687_v52 = vrot.slane %v7181_v14, 4 }
 0x137   : > { %7283 = vst [vmem:[#allocation18_spill] sm:$0xff] %v5674_v18  ;;  %v5683_v42 = vld [vmem:[#allocation3 + $0x2c] sm:$0xf]  ;;  %v1160_v61 = vor.u32 %v1159_v19, %v1155_v49  ;;  %v7179_v57 = vrot.slane %v5669_v37, 5  ;;  %v1425_v38 = vld [vmem:[#allocation3 + $0x28] sm:$0xf]  ;;  %v1156_v31 = vsel %vm5566_vm6, %v1151_v46, %v1155_v49 }
 0x138   : > { %7284 = vst [vmem:[#allocation19_spill] sm:$0xff] %v5681_v36  ;;  %7285 = vst [vmem:[#allocation20_spill] sm:$0xff] %v5687_v52  ;;  %v1426_v1 = vld [vmem:[#allocation3 + $0x2c] sm:$0xf]  ;;  %v7183_v47 = vrot.slane %v5676_v17, 5  ;;  %v1514_v45 = vshrl.u32 %v1425_v38, 16  ;;  %v1170_v53 = vor.u32 %v1169_v55, %v1165_v7 }
 0x139   : > { %v1517_v3 = vshll.u32 %v1425_v38, 16  ;;  %v5693_v21 = vld [vmem:[#allocation3 + $0x28] sm:$0xf]  ;;  %1215 = vst [vmem:[#allocation2 + $0x148] sm:$0xf] %v1156_v31  ;;  %v1161_v11 = vrot.slane %v1160_v61, 4 }
 0x13a   : > { %v7180_v54 = vrot.slane %v5683_v42, 5  ;;  %v1524_v24 = vshrl.u32 %v1426_v1, 16  ;;  %v1527_v15 = vshll.u32 %v1426_v1, 16  ;;  %v5696_v41 = vld [vmem:[#allocation3 + $0x2c] sm:$0xf]  ;;  %v1516_v25 = vrot.slane %v1514_v45, 5 }
 0x13b   : > { %7286 = vst [vmem:[#allocation21_spill] sm:$0xff] %v5696_v41  ;;  %v1519_v20 = vrot.slane %v1517_v3, 6  ;;  %v7182_v26 = vrot.slane %v5693_v21, 6  ;;  %v5699_v27 = vld [vmem:[#allocation3 + $0x28] sm:$0xf]  ;;  %v7184_v49 = vrot.slane %v5696_v41, 6  ;;  %v1166_v45 = vsel %vm5566_vm6, %v1161_v11, %v1165_v7 }
 0x13c   : > { %7287 = vst [vmem:[#allocation22_spill] sm:$0xff] %v5699_v27  ;;  %v1526_v51 = vrot.slane %v1524_v24, 5  ;;  %v1529_v29 = vrot.slane %v1527_v15, 6  ;;  %v5702_v19 = vld [vmem:[#allocation3 + $0x2c] sm:$0xf]  ;;  %v7185_v46 = vrot.slane %v5699_v27, 6 }
 0x13d   : > { %7288 = vst [vmem:[#allocation23_spill] sm:$0xff] %v5702_v19  ;;  %v5707_v61 = vrot.slane %v7179_v57, 4  ;;  %v5711_v55 = vrot.slane %v7183_v47, 4  ;;  %v5713_v38 = vor.u32 %v1519_v20, %v1516_v25  ;;  %v1804_v1 = vld [vmem:[#allocation3 + $0x28] sm:$0xf]  ;;  %v5719_v3 = vrot.slane %v7180_v54, 4 }
 0x13e   : > { %v1805_v31 = vld [vmem:[#allocation3 + $0x2c] sm:$0xf]  ;;  %v7189_v24 = vrot.slane %v5702_v19, 6  ;;  %v1876_v15 = vshrl.u32 %v1804_v1, 16  ;;  %v5722_v22 = vld [vmem:[#allocation3 + $0x28] sm:$0xf]  ;;  %v5726_v57 = vor.u32 %v1529_v29, %v1526_v51 }
 0x13f   : > { %7289 = vst [vmem:[#allocation24_spill] sm:$0xff] %v5707_v61  ;;  %7290 = vst [vmem:[#allocation25_spill] sm:$0xff] %v5719_v3  ;;  %v5724_v32 = vrot.slane %v1170_v53, 4  ;;  %v1879_v25 = vshll.u32 %v1804_v1, 16  ;;  %v1886_v20 = vshrl.u32 %v1805_v31, 16  ;;  %v5730_v13 = vrot.slane %v7182_v26, 4 }
 0x140   : > { %7291 = vst [vmem:[#allocation26_spill] sm:$0xff] %v5722_v22  ;;  %1216 = vst [vmem:[#allocation2 + $0x16c] sm:$0xf] %v1166_v45  ;;  %v5734_v7 = vrot.slane %v7184_v49, 4  ;;  %v5738_v11 = vrot.slane %v7185_v46, 4  ;;  %v1889_v54 = vshll.u32 %v1805_v31, 16 }
 0x141   : > { %7292 = vst [vmem:[#allocation27_spill] sm:$0xff] %v5724_v32  ;;  %7293 = vst [vmem:[#allocation28_spill] sm:$0xff] %v5726_v57  ;;  %v1036_v45 = vld [vmem:[#allocation3] sm:$0xf]  ;;  %v1878_v51 = vrot.slane %v1876_v15, 6  ;;  %v1881_v29 = vrot.slane %v1879_v25, 7 }
 0x142   : > { %7294 = vst [vmem:[#allocation29_spill] sm:$0xff] %v5730_v13  ;;  %7295 = vst [vmem:[#allocation30_spill] sm:$0xff] %v5734_v7  ;;  %v7192_v1 = vrot.slane %v5722_v22, 7  ;;  %v1037_v14 = vld [vmem:[#allocation3 + $0x4] sm:$0xf]  ;;  %v5744_v26 = vrot.slane %v7189_v24, 4 }
 0x143   : > { %7296 = vst [vmem:[#allocation31_spill] sm:$0xff] %v5738_v11  ;;  %v5746_v47 = vld [vmem:[#allocation3 + $0x2c] sm:$0xf]  ;;  %v1054_v49 = vshrl.u32 %v1036_v45, 16  ;;  %v1220_v36 = vld [vmem:[#allocation3] sm:$0xe]  ;;  %v5749_v18 = vor.u32 %v1881_v29, %v1878_v51 }
 0x144   : > { %7297 = vst [vmem:[#allocation32_spill] sm:$0xff] %v5744_v26  ;;  %7298 = vst [vmem:[#allocation33_spill] sm:$0xff] %v5746_v47  ;;  %v1888_v11 = vrot.slane %v1886_v20, 6  ;;  %v1057_v31 = vshll.u32 %v1036_v45, 16  ;;  %v1221_v28 = vld [vmem:[#allocation3 + $0x4] sm:$0xf] }
 0x145   : > { %v1891_v2 = vrot.slane %v1889_v54, 7  ;;  %v1063_v53 = vshll.u32 %v1037_v14, 16  ;;  %v4016_v15 = vrot.slane %v1220_v36, 9  ;;  %v1010_v25 = vld [vmem:[#allocation3 + $0x8] sm:$0xf]  ;;  %7299 = vst [vmem:[#allocation34_spill] sm:$0xff] %v5749_v18 }
 0x146   : > { %v5753_v19 = vrot.slane %v7192_v1, 4  ;;  %v1253_v26 = vrot.slane %v1221_v28, 5  ;;  %v1011_v27 = vld [vmem:[#allocation3 + $0xc] sm:$0xf]  ;;  %1024 = vst [vmem:[#allocation2 + $0x48] sm:$0xf] %v1010_v25 }
 0x147   : > { %v5756_v63 = vrot.slane %v1054_v49, 4  ;;  %v1067_v20 = vshrl.u32 %v1037_v14, 16  ;;  %1025 = vst [vmem:[#allocation2 + $0x6c] sm:$0xf] %v1011_v27  ;;  %v1038_v45 = vld [vmem:[#allocation3 + $0x8] sm:$0xf]  ;;  %v5765_v49 = vor.u32 %v1891_v2, %v1888_v11 }
 0x148   : > { %7300 = vst [vmem:[#allocation35_spill] sm:$0xff] %v5753_v19  ;;  %v1039_v54 = vld [vmem:[#allocation3 + $0xc] sm:$0xf]  ;;  %v7301_v36 = vrot.slane %v5676_v17, 5  ;;  %v5763_v29 = vrot.slane %v1057_v31, 5  ;;  %v1073_v1 = vshll.u32 %v1038_v45, 16  ;;  %v855_v19 = vpop.permute.xlu1 %854  ;;  %v1254_v22 = vsel %vm5574_vm8, %v4016_v15, %v1253_v26 }
 0x149   : > { %v1077_v46 = vshrl.u32 %v1038_v45, 16  ;;  %v1083_v24 = vshll.u32 %v1039_v54, 16  ;;  %v1222_v28 = vld [vmem:[#allocation3 + $0x8] sm:$0xf]  ;;  %7302 = vst [vmem:[#allocation36_spill] sm:$0xff] %v5765_v49  ;;  %v5767_v14 = vrot.slane %v1063_v53, 5 }
 0x14a   : > { %v1372_v51 = vsel %vm5574_vm8, %v5494_v34, %v7301_v36  ;;  %v1087_v27 = vshrl.u32 %v1039_v54, 16  ;;  %v5769_v25 = vld [vmem:[#allocation3 + $0xc] sm:$0xf]  ;;  %v1320_v17 = vld [vmem:[#allocation3 + $0x8] sm:$0xe]  ;;  %v5774_v31 = vrot.slane %v1073_v1, 5 }
 0x14b   : > { %1410 = vst [vmem:[#allocation2 + $0x108] sm:$0xf] %v1372_v51  ;;  %v1079_v45 = vrot.slane %v1077_v46, 4  ;;  %v1085_v36 = vrot.slane %v1083_v24, 5  ;;  %v1321_v47 = vld [vmem:[#allocation3 + $0xc] sm:$0xf] }
 0x14c   : > { %1306 = vst [vmem:[#allocation2 + $0x8] sm:$0xf] %v1254_v22  ;;  %v1089_v51 = vrot.slane %v1087_v27, 4  ;;  %v1256_v2 = vrot.slane %v1222_v28, 5  ;;  %v4017_v11 = vrot.slane %v1320_v17, 9  ;;  %vm886_vm3 = vcmp.eq.s32.totalorder %v855_v19, 1 }
 0x14d   : > { %v1417_v53 = vld [vmem:[#allocation3 + $0x8] sm:$0xe]  ;;  %v1080_v54 = vor.u32 %v1079_v45, %v5774_v31  ;;  %v1350_v40 = vrot.slane %v1321_v47, 5  ;;  %v1418_v44 = vld [vmem:[#allocation3 + $0xc] sm:$0xf]  ;;  %v5778_v34 = vrot.slane %v1067_v20, 4 }
 0x14e   : > { %v1435_v61 = vshrl.u32 %v1417_v53, 16  ;;  %v1438_v52 = vshll.u32 %v1417_v53, 16  ;;  %v1444_v1 = vshrl.u32 %v1418_v44, 16  ;;  %v1447_v46 = vshll.u32 %v1418_v44, 16  ;;  %v1012_v45 = vld [vmem:[#allocation3 + $0x10] sm:$0xf]  ;;  %v5788_v44 = vpop.permute.xlu0 %857 }
 0x14f   : > { %v1255_v24 = vrot.slane %v1253_v26, 4  ;;  %v1081_v18 = vrot.slane %v1080_v54, 4  ;;  %v1090_v22 = vor.u32 %v1089_v51, %v1085_v36  ;;  %v7204_v28 = vrot.slane %v5769_v25, 5  ;;  %v1013_v15 = vld [vmem:[#allocation3 + $0x14] sm:$0xf] }
 0x150   : > { %v5781_v27 = vrot.slane %v1256_v2, 4  ;;  %v1437_v17 = vrot.slane %v1435_v61, 5  ;;  %v1440_v37 = vrot.slane %v1438_v52, 6  ;;  %v7303_v47 = vmax.f32 %v5420_v10, 0.0  ;;  %1026 = vst [vmem:[#allocation2 + $0x90] sm:$0xf] %v1012_v45 }
 0x151   : > { %v1040_v20 = vld [vmem:[#allocation3 + $0x10] sm:$0xf]  ;;  %v1041_v49 = vld [vmem:[#allocation3 + $0x14] sm:$0xf]  ;;  %v1086_v26 = vsel %vm5566_vm6, %v1081_v18, %v1085_v36  ;;  %v1257_v51 = vsel %vm5574_vm8, %v1255_v24, %v1256_v2  ;;  %v1351_v52 = vsel %vm5574_vm8, %v4017_v11, %v1350_v40  ;;  %v1446_v61 = vrot.slane %v1444_v1, 5 }
 0x152   : > { %v5786_v53 = vsel %vm886_vm3, %v7303_v47, 0.0  ;;  %v1449_v10 = vrot.slane %v1447_v46, 6  ;;  %v5796_v19 = vld [vmem:[#allocation3 + $0xc] sm:$0xf]  ;;  %1027 = vst [vmem:[#allocation2 + $0xb4] sm:$0xf] %v1013_v15 }
 0x153   : > { %v1093_v54 = vshll.u32 %v1040_v20, 16  ;;  %v1097_v45 = vshrl.u32 %v1040_v20, 16  ;;  %1208 = vst [vmem:[#allocation2 + $0x4c] sm:$0xf] %v1086_v26  ;;  %1307 = vst [vmem:[#allocation2 + $0x2c] sm:$0xf] %v1257_v51 }
 0x154   : > { %1403 = vst [vmem:[#allocation2 + $0xc] sm:$0xf] %v1351_v52  ;;  %v1091_v47 = vrot.slane %v1090_v22, 4  ;;  %v5800_v18 = vrot.slane %v7204_v28, 4  ;;  %v1103_v36 = vshll.u32 %v1041_v49, 16  ;;  %v1107_v2 = vshrl.u32 %v1041_v49, 16  ;;  %v5813_v52 = vpop.permute.xlu1 %836  ;;  %v5815_v28 = vpop.permute.xlu0 %839 }
 0x155   : > { %v5802_v24 = vld [vmem:[#allocation3 + $0x8] sm:$0xc]  ;;  %v1095_v11 = vrot.slane %v1093_v54, 5  ;;  %v1099_v1 = vrot.slane %v1097_v45, 4  ;;  %v5804_v46 = vld [vmem:[#allocation3 + $0x10] sm:$0xf]  ;;  %v1441_v49 = vor.u32 %v1440_v37, %v1437_v17  ;;  %v5819_v54 = vor.u32 %v1449_v10, %v1446_v61 }
 0x156   : > { %v5806_v7 = vld [vmem:[#allocation3 + $0x14] sm:$0xf]  ;;  %v5808_v15 = vrot.slane %v1350_v40, 4  ;;  %v1105_v26 = vrot.slane %v1103_v36, 5  ;;  %v1109_v22 = vrot.slane %v1107_v2, 4  ;;  %vm420_vm5 = vcmp.ge.s32.totalorder %v5305_v56, 1 }
 0x157   : > { %v5811_v51 = vld [vmem:[#allocation3 + $0x10] sm:$0xf]  ;;  %vm439_vm15 = vcmp.le.s32.totalorder %v5305_v56, 16  ;;  %v1100_v45 = vor.u32 %v1099_v1, %v1095_v11  ;;  %v5821_v40 = vld [vmem:[#allocation3 + $0x14] sm:$0xf]  ;;  %vm421_vm9 = vcmp.ge.s32.totalorder %v5296_v50, 1  ;;  %v1096_v36 = vsel %vm5566_vm6, %v1091_v47, %v1095_v11 }
 0x158   : > { %v1419_v6 = vld [vmem:[#allocation3 + $0x10] sm:$0xf]  ;;  %v1420_v20 = vld [vmem:[#allocation3 + $0x14] sm:$0xf]  ;;  %vm440_vm7 = vcmp.le.s32.totalorder %v5296_v50, 16  ;;  %v1110_v5 = vor.u32 %v1109_v22, %v1105_v26  ;;  %v5835_v11 = vrot.slane %v1441_v49, 4  ;;  %v532_v47 = vpop.permute.xlu1 %531  ;;  %v534_v32 = vpop.permute.xlu0 %533  ;;  %vm5902_vm0 = vmand %vm420_vm5, %vm439_vm15 }
 0x159   : > { %v1454_v35 = vshrl.u32 %v1419_v6, 16  ;;  %v1457_v37 = vshll.u32 %v1419_v6, 16  ;;  %v5829_v17 = vld [vmem:[#allocation3 + $0x10] sm:$0xf]  ;;  %1209 = vst [vmem:[#allocation2 + $0x70] sm:$0xf] %v1096_v36  ;;  %vm5917_vm1 = vmand %vm421_vm9, %vm440_vm7 }
 0x15a   : > { %v1101_v61 = vrot.slane %v1100_v45, 4  ;;  %v1464_v1 = vshrl.u32 %v1420_v20, 16  ;;  %v1467_v43 = vshll.u32 %v1420_v20, 16  ;;  %v7304_v23 = vrot.slane %v5796_v19, 6  ;;  %v5841_v45 = vld [vmem:[#allocation3 + $0x14] sm:$0xf] }
 0x15b   : > { %v1456_v2 = vrot.slane %v1454_v35, 5  ;;  %v1459_v36 = vrot.slane %v1457_v37, 6  ;;  %v7305_v20 = vrot.slane %v5804_v46, 5  ;;  %v7306_v22 = vrot.slane %v5806_v7, 5  ;;  %v5852_v49 = vld [vmem:[#allocation3 + $0x14] sm:$0xf] }
 0x15c   : > { %v5839_v6 = vrot.slane %v7304_v23, 4  ;;  %7308 = vst [vmem:[#allocation38_spill] sm:$0xff] %v5852_v49  ;;  %v1106_v23 = vsel %vm5566_vm6, %v1101_v61, %v1105_v26  ;;  %v7309_v35 = vrot.slane %v5811_v51, 5  ;;  %v1466_v10 = vrot.slane %v1464_v1, 5  ;;  %v1988_v41 = vld [vmem:[#allocation3 + $0x10] sm:$0x8] }
 0x15d   : > { %v5846_v48 = vrot.slane %v7305_v20, 4  ;;  %v5850_v3 = vrot.slane %v7306_v22, 4  ;;  %v1469_v13 = vrot.slane %v1467_v43, 6  ;;  %1210 = vst [vmem:[#allocation2 + $0x94] sm:$0xf] %v1106_v23  ;;  %v5860_v20 = vrot.slane %v1110_v5, 4 }
 0x15e   : > { %v5858_v37 = vrot.slane %v7309_v35, 4  ;;  %v7311_v22 = vrot.slane %v5821_v40, 5  ;;  %v7313_v57 = vrot.slane %v5829_v17, 6  ;;  %v5871_v61 = vld [vmem:[#allocation3 + $0x14] sm:$0xf]  ;;  %v4765_v43 = vld [vmem:[%s7161_s1 + $0xb8] sm:$0xff]   ;;  %v5876_v1 = vor.u32 %v1459_v36, %v1456_v2 }
 0x15f   : > { %7307 = vst [vmem:[#allocation37_spill] sm:$0xff] %v5850_v3  ;;  %7310 = vst [vmem:[#allocation39_spill] sm:$0xff] %v5860_v20  ;;  %v5879_v23 = vld [vmem:[#allocation3 + $0x10] sm:$0xc]  ;;  %v4020_v35 = vrot.slane %v1988_v41, 11  ;;  %v2023_v26 = vrot.slane %v5871_v61, 7  ;;  %v1060_v2 = vor.u32 %v5763_v29, %v5756_v63  ;;  %v1070_v36 = vor.u32 %v5778_v34, %v5767_v14 }
 0x160   : > { %v5864_v3 = vrot.slane %v7311_v22, 4  ;;  %v5868_v9 = vrot.slane %v7313_v57, 4  ;;  %v4758_v22 = vld [vmem:[#allocation2 + $0x120] ss:$36 sps:$4 sm:$0xff]   ;;  %v4766_v57 = vld [vmem:[%s7161_s1 + $0xf0] sm:$0xff]   ;;  %vm887_vm4 = vcmp.eq.s32.totalorder %v5788_v44, 1  ;;  %v5892_v5 = vor.u32 %v1469_v13, %v1466_v10  ;;  %v648_v13 = vpop.permute.xlu0 %647 }
 0x161   : > { %v4760_v20 = vld [vmem:[#allocation2 + $0x124] ss:$36 sps:$4 sm:$0xff]   ;;  %v7314_v41 = vmax.f32 %v5423_v16, 0.0  ;;  %vm880_vm10 = vcmp.eq.s32.totalorder %v5813_v52, 1  ;;  %vm881_vm13 = vcmp.eq.s32.totalorder %v5815_v28, 1  ;;  %v2024_v16 = vsel %vm5631_vm14, %v4020_v35, %v2023_v26 }
 0x162   : > { %7312 = vst [vmem:[#allocation40_spill] sm:$0xff] %v5864_v3  ;;  %v5884_v3 = vld [vmem:[#allocation3 + $0x14] sm:$0xf]  ;;  %v1008_v63 = vld [vmem:[#allocation3] sm:$0xf]  ;;  %3131 = vmatprep.mubr.bf16.mxu1 %v4760_v20  ;;  %v1462_v29 = vrot.slane %v5876_v1, 4 }
 0x163   : > { %v906_v49 = vsel %vm887_vm4, %v7314_v41, 0.0  ;;  %v1009_v10 = vld [vmem:[#allocation3 + $0x4] sm:$0xf]  ;;  %1022 = vst [vmem:[#allocation2] sm:$0xf] %v1008_v63  ;;  %v646_v41 = vpop.permute.xlu1 %645  ;;  %3132 = vmatmul.mubr.bf16.vlgmr.msra.gmra.mxu1 %v4758_v22  ;;  %v7319_v35 = vmax.f32 %v5444_v33, 0.0 }
 0x164   : > { %v4289_v34 = vpack.c.bf16 %v906_v49, %v5786_v53  ;;  %2078 = vst [vmem:[#allocation2 + $0x20] sm:$0xf] %v2024_v16  ;;  %v7320_v49 = vmax.f32 %v5447_v30, 0.0  ;;  %vm553_vm3 = vcmp.ne.s32.totalorder %v532_v47, 0  ;;  %1023 = vst [vmem:[#allocation2 + $0x24] sm:$0xf] %v1009_v10  ;;  %4411 = vmatpush3.bf16.msra.mxu1 %v4765_v43 }
 0x165   : > { %v899_v53 = vsel %vm880_vm10, %v7319_v35, 0.0  ;;  %v1826_v20 = vshrl.u32 %v5884_v3, 16  ;;  %vm572_vm5 = vmand %vm5902_vm0, %vm553_vm3  ;;  %vm554_vm15 = vcmp.ne.s32.totalorder %v534_v32, 0  ;;  %v1061_v22 = vrot.slane %v1060_v2, 4  ;;  %v4767_v33 = vld [vmem:[%s7161_s1 + $0xb0] sm:$0xff]   ;;  %4412 = vmatprep.subr.bf16.mxu1 %v4766_v57  ;;  %v4771_v32 = vld [vmem:[%s7161_s1 + $0xe8] sm:$0xff]  }
 0x166   : > { %v900_v50 = vsel %vm881_vm13, %v7320_v49, 0.0  ;;  %4344 = vst [vmem:[#allocation3 + $0x30] sm:$0xff] %v4289_v34   ;;  %vm5938_vm9 = vmand %vm5917_vm1, %vm554_vm15  ;;  %v1071_v28 = vrot.slane %v1070_v36, 4  ;;  %vm667_vm7 = vcmp.ne.s32.totalorder %v646_v41, 0  ;;  %vm668_vm4 = vcmp.ne.s32.totalorder %v648_v13, 0  ;;  %v4777_v41 = vld [vmem:[%s7161_s1 + $0xa0] sm:$0xff]  }
 0x167   : > { %v4274_v63 = vpack.c.bf16 %v900_v50, %v899_v53  ;;  %v7323_v52 = vrot.slane %v5811_v51, 5  ;;  %v1066_v43 = vsel %vm5566_vm6, %v1061_v22, %v5767_v14  ;;  %vm686_vm10 = vmand %vm572_vm5, %vm667_vm7  ;;  %v7324_v2 = vrot.slane %v5769_v25, 5  ;;  %v6020_v10 = vld [vmem:[#allocation3 + $0x10] sm:$0xc]  ;;  %v7361_v60 = vld [vmem:[#allocation37_spill] sm:$0xff] }
 0x168   : > { %v7325_v36 = vrot.slane %v5804_v46, 5  ;;  %v1076_v25 = vsel %vm5566_vm6, %v1071_v28, %v5774_v31  ;;  %1206 = vst [vmem:[#allocation2 + $0x4] sm:$0xf] %v1066_v43  ;;  %vm687_vm13 = vmand %vm5938_vm9, %vm668_vm4  ;;  %v7327_v46 = vrot.slane %v5819_v54, 4  ;;  %4413 = vmatpush3.bf16.msra.mxu1 %v4767_v33  ;;  %v7328_v44 = vrot.slane %v5796_v19, 6  ;;  %v4775_v19 = vld [vmem:[%s7161_s1 + $0xe0] sm:$0xff]  }
 0x169   : > { %v1354_v47 = vsel %vm5574_vm8, %v5808_v15, %v7323_v52  ;;  %4341 = vst [vmem:[#allocation3 + $0x18] sm:$0xff] %v4274_v63   ;;  %v1260_v57 = vsel %vm5574_vm8, %v5781_v27, %v7324_v2  ;;  %v7326_v15 = vrot.slane %v5821_v40, 5  ;;  %v814_v27 = vsel %vm686_vm10, 1, %v7269_v62  ;;  %1207 = vst [vmem:[#allocation2 + $0x28] sm:$0xf] %v1076_v25  ;;  %4414 = vmatprep.subr.bf16.mxu1 %v4771_v32  ;;  %v7337_v53 = vld [vmem:[#allocation12_spill] sm:$0xff] }
 0x16a   : > { %1404 = vst [vmem:[#allocation2 + $0x30] sm:$0xf] %v1354_v47  ;;  %v1263_v51 = vsel %vm5574_vm8, %v5800_v18, %v7325_v36  ;;  %1308 = vst [vmem:[#allocation2 + $0x50] sm:$0xf] %v1260_v57  ;;  %v1451_v18 = vsel %vm5596_vm2, %v5835_v11, %v5819_v54  ;;  %v1461_v31 = vsel %vm5596_vm2, %v7327_v46, %v5876_v1  ;;  %866 = vperm.xlu1 %4706, %v814_v27   ;;  %v7338_v50 = vld [vmem:[#allocation28_spill] sm:$0xff]  ;;  %v7342_v28 = vld [vmem:[#allocation29_spill] sm:$0xff] }
 0x16b   : > { %v1357_v14 = vsel %vm5574_vm8, %v5858_v37, %v7326_v15  ;;  %1309 = vst [vmem:[#allocation2 + $0x74] sm:$0xf] %v1263_v51  ;;  %v815_v40 = vsel %vm687_vm13, 1, %v7269_v62  ;;  %v4773_v37 = vld [vmem:[%s7161_s1 + $0xa8] sm:$0xff]   ;;  %1587 = vst [vmem:[#allocation2 + $0x10] sm:$0xf] %v1451_v18 }
 0x16c   : > { %1405 = vst [vmem:[#allocation2 + $0x54] sm:$0xf] %v1357_v14  ;;  %1588 = vst [vmem:[#allocation2 + $0x34] sm:$0xf] %v1461_v31  ;;  %v7329_v11 = vrot.slane %v5802_v24, 10  ;;  %v7330_v1 = vrot.slane %v5829_v17, 6  ;;  %869 = vperm.xlu0 %4705, %v815_v40   ;;  %v1471_v24 = vsel %vm5596_vm2, %v1462_v29, %v5892_v5  ;;  %4415 = vmatpush3.bf16.msra.mxu1 %v4773_v37 }
 0x16d   : > { %v7331_v16 = vrot.slane %v5806_v7, 5  ;;  %v1829_v56 = vshll.u32 %v5884_v3, 16  ;;  %v7332_v7 = vrot.slane %v5841_v45, 6  ;;  %v7333_v17 = vrot.slane %v5664_v39, 5  ;;  %1589 = vst [vmem:[#allocation2 + $0x58] sm:$0xf] %v1471_v24  ;;  %4416 = vmatprep.subr.bf16.mxu1 %v4775_v19 }
 0x16e   : > { %v1635_v54 = vsel %vm5583_vm12, %v7329_v11, %v7328_v44  ;;  %v1638_v13 = vsel %vm5583_vm12, %v5839_v6, %v7330_v1  ;;  %v7334_v29 = vrot.slane %v5683_v42, 5  ;;  %v7335_v39 = vrot.slane %v5556_v4, 4  ;;  %v1020_v22 = vld [vmem:[#allocation3 + $0x30] sm:$0xf]  ;;  %v4782_v4 = vld [vmem:[%s7161_s1 + $0xd8] sm:$0xff]  }
 0x16f   : > { %v1266_v34 = vsel %vm5574_vm8, %v5846_v48, %v7331_v16  ;;  %1687 = vst [vmem:[#allocation2 + $0x14] sm:$0xf] %v1635_v54  ;;  %1688 = vst [vmem:[#allocation2 + $0x38] sm:$0xf] %v1638_v13  ;;  %v1641_v48 = vsel %vm5583_vm12, %v5868_v9, %v7332_v7  ;;  %v1281_v6 = vsel %vm5574_vm8, %v5483_v8, %v7333_v17  ;;  %v7336_v35 = vrot.slane %v5693_v21, 6  ;;  %v7340_v21 = vld [vmem:[#allocation21_spill] sm:$0xff] }
 0x170   : > { %1310 = vst [vmem:[#allocation2 + $0x98] sm:$0xf] %v1266_v34  ;;  %1689 = vst [vmem:[#allocation2 + $0x5c] sm:$0xf] %v1641_v48  ;;  %v1375_v9 = vsel %vm5574_vm8, %v5711_v55, %v7334_v29  ;;  %v1521_v8 = vsel %vm5596_vm2, %v7335_v39, %v5713_v38  ;;  %v7339_v63 = vrot.slane %v5713_v38, 4  ;;  %v7341_v30 = vrot.slane %v7340_v21, 6  ;;  %4417 = vmatpush3.bf16.msra.mxu1 %v4777_v41 }
 0x171   : > { %1315 = vst [vmem:[#allocation2 + $0x14c] sm:$0xf] %v1281_v6  ;;  %v1656_v49 = vsel %vm5583_vm12, %v7337_v53, %v7336_v35  ;;  %v1021_v55 = vld [vmem:[#allocation3 + $0x34] sm:$0x3]  ;;  %v1048_v33 = vld [vmem:[#allocation3 + $0x30] sm:$0xf]  ;;  %v7345_v40 = vmov %v7332_v7  ;;  %4418 = vmatprep.subr.bf16.mxu1 %v4782_v4 }
 0x172   : > { %v1531_v42 = vsel %vm5596_vm2, %v7339_v63, %v7338_v50  ;;  %1411 = vst [vmem:[#allocation2 + $0x12c] sm:$0xf] %v1375_v9  ;;  %1594 = vst [vmem:[#allocation2 + $0x10c] sm:$0xf] %v1521_v8  ;;  %v1659_v38 = vsel %vm5583_vm12, %v7342_v28, %v7341_v30  ;;  %v7343_v32 = vshrl.u32 %v5879_v23, 16  ;;  %v7344_v47 = vshll.u32 %v5879_v23, 16 }
 0x173   : > { %1694 = vst [vmem:[#allocation2 + $0x110] sm:$0xf] %v1656_v49  ;;  %1595 = vst [vmem:[#allocation2 + $0x130] sm:$0xf] %v1531_v42  ;;  %v1049_v2 = vld [vmem:[#allocation3 + $0x34] sm:$0x7] }
 0x174   : > { %v1819_v52 = vrot.slane %v7343_v32, 6  ;;  %v1822_v43 = vrot.slane %v7344_v47, 7  ;;  %1034 = vst [vmem:[#allocation2 + $0x1b0] sm:$0xf] %v1020_v22  ;;  %1035 = vst [vmem:[#allocation2 + $0x1d4] sm:$0x3] %v1021_v55 }
 0x175   : > { %v1173_v57 = vshll.u32 %v1048_v33, 16  ;;  %v1177_v36 = vshrl.u32 %v1048_v33, 16  ;;  %1695 = vst [vmem:[#allocation2 + $0x134] sm:$0xf] %v1659_v38  ;;  %v1828_v51 = vrot.slane %v1826_v20, 6  ;;  %v1831_v15 = vrot.slane %v1829_v56, 7 }
 0x176   : > { %v1183_v14 = vshll.u32 %v1049_v2, 16  ;;  %v6059_v25 = vld [vmem:[#allocation3 + $0x34] sm:$0x7]  ;;  %v1187_v46 = vshrl.u32 %v1049_v2, 16  ;;  %v4784_v31 = vld [vmem:[%s7161_s1 + $0x98] sm:$0xff]   ;;  %v6067_v37 = vrot.slane %v7345_v40, 4  ;;  %v1823_v24 = vor.u32 %v1822_v43, %v1819_v52 }
 0x177   : > { %v1175_v27 = vrot.slane %v1173_v57, 5  ;;  %v1179_v18 = vrot.slane %v1177_v36, 4  ;;  %v7217_v23 = vrot.slane %v6059_v25, 5  ;;  %v6070_v20 = vld [vmem:[#allocation3 + $0x30] sm:$0xf]  ;;  %v7346_v11 = vld [vmem:[#allocation38_spill] sm:$0xff]  ;;  %v6081_v7 = vor.u32 %v1831_v15, %v1828_v51  ;;  %4419 = vmatpush3.bf16.msra.mxu1 %v4784_v31 }
 0x178   : > { %v1330_v44 = vld [vmem:[#allocation3 + $0x30] sm:$0xf]  ;;  %v7347_v54 = vrot.slane %v7346_v11, 6  ;;  %v1428_v56 = vld [vmem:[#allocation3 + $0x34] sm:$0xf]  ;;  %v7349_v19 = vld [vmem:[#allocation27_spill] sm:$0xff] }
 0x179   : > { %v1180_v13 = vor.u32 %v1179_v18, %v1175_v27  ;;  %v1291_v16 = vrot.slane %v7217_v23, 4  ;;  %v1427_v34 = vld [vmem:[#allocation3 + $0x30] sm:$0xf]  ;;  %v1176_v45 = vsel %vm5566_vm6, %v7349_v19, %v1175_v27  ;;  %7350 = vst [vmem:[#allocation28_spill] sm:$0xff] %v6081_v7  ;;  %v4788_v6 = vld [vmem:[%s7161_s1 + $0xd0] sm:$0xff]   ;;  %v1185_v9 = vrot.slane %v1183_v14, 5 }
 0x17a   : > { %v6074_v1 = vrot.slane %v7347_v54, 4  ;;  %v1534_v48 = vshrl.u32 %v1427_v34, 16  ;;  %v1537_v17 = vshll.u32 %v1427_v34, 16  ;;  %1217 = vst [vmem:[#allocation2 + $0x190] sm:$0xf] %v1176_v45  ;;  %v1189_v39 = vrot.slane %v1187_v46, 4  ;;  %4420 = vmatprep.subr.bf16.mxu1 %v4788_v6 }
 0x17b   : > { %v1181_v29 = vrot.slane %v1180_v13, 4  ;;  %v7218_v41 = vrot.slane %v6070_v20, 5  ;;  %1319 = vst [vmem:[#allocation2 + $0x1dc] sm:$0x3] %v1291_v16  ;;  %v4790_v8 = vld [vmem:[%s7161_s1 + $0x90] sm:$0xff]   ;;  %v1377_v35 = vrot.slane %v1330_v44, 5 }
 0x17c   : > { %7348 = vst [vmem:[#allocation12_spill] sm:$0xff] %v6074_v1  ;;  %v1536_v53 = vrot.slane %v1534_v48, 5  ;;  %v1539_v49 = vrot.slane %v1537_v17, 6  ;;  %v1544_v63 = vshrl.u32 %v1428_v56, 16  ;;  %v6090_v42 = vld [vmem:[#allocation3 + $0x30] sm:$0xf]  ;;  %v1190_v2 = vor.u32 %v1189_v39, %v1185_v9  ;;  %4421 = vmatpush3.bf16.msra.mxu1 %v4790_v8 }
 0x17d   : > { %v6093_v55 = vld [vmem:[#allocation3 + $0x34] sm:$0xf]  ;;  %v1186_v4 = vsel %vm5566_vm6, %v1181_v29, %v1185_v9  ;;  %v6099_v21 = vrot.slane %v1823_v24, 4  ;;  %v6104_v28 = vrot.slane %v2023_v26, 4  ;;  %v1547_v38 = vshll.u32 %v1428_v56, 16  ;;  %v4805_v15 = vld [vmem:[%s7161_s1 + $0xc0] sm:$0xff]  }
 0x17e   : > { %v6095_v33 = vld [vmem:[#allocation3 + $0x34] sm:$0xf]  ;;  %1218 = vst [vmem:[#allocation2 + $0x1b4] sm:$0xf] %v1186_v4  ;;  %v6111_v52 = vrot.slane %v7218_v41, 4  ;;  %v6113_v47 = vor.u32 %v1539_v49, %v1536_v53  ;;  %v7219_v43 = vrot.slane %v6090_v42, 6 }
 0x17f   : > { %7351 = vst [vmem:[#allocation21_spill] sm:$0xff] %v6099_v21  ;;  %v4796_v32 = vld [vmem:[%s7161_s1 + $0xc8] sm:$0xff]   ;;  %v6116_v57 = vrot.slane %v1377_v35, 4  ;;  %v6119_v61 = vrot.slane %v1544_v63, 5  ;;  %v1014_v18 = vld [vmem:[#allocation3 + $0x18] sm:$0xf] }
 0x180   : > { %v4798_v51 = vld [vmem:[%s7161_s1 + $0x88] sm:$0xff]   ;;  %v6132_v46 = vrot.slane %v1547_v38, 6  ;;  %v1015_v40 = vld [vmem:[#allocation3 + $0x1c] sm:$0xf]  ;;  %1028 = vst [vmem:[#allocation2 + $0xd8] sm:$0xf] %v1014_v18  ;;  %4422 = vmatprep.subr.bf16.mxu1 %v4796_v32 }
 0x181   : > { %v6128_v14 = vld [vmem:[#allocation3 + $0x30] sm:$0xf]  ;;  %v6134_v31 = vld [vmem:[#allocation3 + $0x34] sm:$0xf]  ;;  %v6141_v13 = vrot.slane %v7219_v43, 4  ;;  %v1191_v56 = vrot.slane %v1190_v2, 4  ;;  %4423 = vmatpush3.bf16.msra.mxu1 %v4798_v51 }
 0x182   : > { %7352 = vst [vmem:[#allocation29_spill] sm:$0xff] %v6128_v14  ;;  %v6130_v27 = vld [vmem:[#allocation3 + $0x30] sm:$0xf]  ;;  %v7353_v44 = vld [vmem:[#allocation25_spill] sm:$0xff]  ;;  %1029 = vst [vmem:[#allocation2 + $0xfc] sm:$0xf] %v1015_v40  ;;  %4424 = vmatprep.subr.bf16.mxu1 %v4805_v15  ;;  %v6237_v0 = vor.u32 %v6132_v46, %v6119_v61 }
 0x183   : > { %v1378_v54 = vsel %vm5574_vm8, %v7353_v44, %v1377_v35  ;;  %v1042_v16 = vld [vmem:[#allocation3 + $0x18] sm:$0xf]  ;;  %v1043_v34 = vld [vmem:[#allocation3 + $0x1c] sm:$0xf]  ;;  %v4807_v19 = vld [vmem:[%s7161_s1 + $0x80] sm:$0xff]   ;;  %v7354_v45 = vrot.slane %v7338_v50, 4 }
 0x184   : > { %1412 = vst [vmem:[#allocation2 + $0x150] sm:$0xf] %v1378_v54  ;;  %v1896_v17 = vshrl.u32 %v6130_v27, 16  ;;  %v1113_v6 = vshll.u32 %v1042_v16, 16  ;;  %v1117_v29 = vshrl.u32 %v1042_v16, 16  ;;  %v4841_v9 = vld [vmem:[%s7161_s1 + $0x1f8] sm:$0xff]  }
 0x185   : > { %v1541_v24 = vsel %vm5596_vm2, %v7354_v45, %v6113_v47  ;;  %v1123_v35 = vshll.u32 %v1043_v34, 16  ;;  %v1127_v50 = vshrl.u32 %v1043_v34, 16  ;;  %1219 = vst [vmem:[#allocation2 + $0x1d8] sm:$0x3] %v1191_v56  ;;  %v3582_v53 = vld [vmem:[%s7163_s3] sm:$0xff]  ;;  %v3584_v49 = vld [vmem:[%s7163_s3 + $0x10] sm:$0xff]  ;;  %4425 = vmatpush3.bf16.msra.mxu1 %v4807_v19 }
 0x186   : > { %1596 = vst [vmem:[#allocation2 + $0x154] sm:$0xf] %v1541_v24  ;;  %v1115_v38 = vrot.slane %v1113_v6, 5  ;;  %v1119_v32 = vrot.slane %v1117_v29, 4  ;;  %v6166_v2 = vld [vmem:[#allocation3 + $0x18] sm:$0xf]  ;;  %4526 = vmatprep.subr.bf16.mxu1 %v4841_v9 }
 0x187   : > { %v1125_v18 = vrot.slane %v1123_v35, 5  ;;  %v1129_v40 = vrot.slane %v1127_v50, 4  ;;  %v6168_v51 = vld [vmem:[#allocation3 + $0x1c] sm:$0xf]  ;;  %v6170_v44 = vld [vmem:[#allocation3 + $0x18] sm:$0xf] }
 0x188   : > { %v1120_v54 = vor.u32 %v1119_v32, %v1115_v38  ;;  %v6172_v16 = vld [vmem:[#allocation3 + $0x1c] sm:$0xf]  ;;  %v1421_v34 = vld [vmem:[#allocation3 + $0x18] sm:$0xf]  ;;  %v7355_v45 = vld [vmem:[#allocation39_spill] sm:$0xff]  ;;  %v7221_v50 = vrot.slane %v6166_v2, 5 }
 0x189   : > { %v1422_v56 = vld [vmem:[#allocation3 + $0x1c] sm:$0xf]  ;;  %v1116_v24 = vsel %vm5566_vm6, %v7355_v45, %v1115_v38  ;;  %v7356_v6 = vld [vmem:[#allocation4_spill] sm:$0xff]  ;;  %v1130_v35 = vor.u32 %v1129_v40, %v1125_v18  ;;  %v1474_v48 = vshrl.u32 %v1421_v34, 16  ;;  %v1477_v30 = vshll.u32 %v1421_v34, 16  ;;  %v7358_v14 = vld [vmem:[#allocation7_spill] sm:$0xff] }
 0x18a   : > { %v6178_v29 = vadd.s32 %v3582_v53, %v7356_v6  ;;  %v6181_v15 = vadd.s32 %v3584_v49, %v7356_v6  ;;  %v6184_v32 = vld [vmem:[#allocation3 + $0x18] sm:$0xf]  ;;  %1211 = vst [vmem:[#allocation2 + $0xb8] sm:$0xf] %v1116_v24  ;;  %v1121_v3 = vrot.slane %v1120_v54, 4  ;;  %v7220_v36 = vrot.slane %v6168_v51, 5 }
 0x18b   : > { %v1484_v39 = vshrl.u32 %v1422_v56, 16  ;;  %v1487_v38 = vshll.u32 %v1422_v56, 16  ;;  %v6187_v45 = vld [vmem:[#allocation3 + $0x1c] sm:$0xf]  ;;  %v1359_v53 = vrot.slane %v6170_v44, 5  ;;  %v1362_v49 = vrot.slane %v6172_v16, 5 }
 0x18c   : > { %7357 = vst [vmem:[#allocation38_spill] sm:$0xff] %v6181_v15  ;;  %v1476_v40 = vrot.slane %v1474_v48, 5  ;;  %v1479_v23 = vrot.slane %v1477_v30, 6  ;;  %v6191_v26 = vrot.slane %v1896_v17, 6  ;;  %v7225_v19 = vrot.slane %v6184_v32, 6 }
 0x18d   : > { %v1486_v34 = vrot.slane %v1484_v39, 5  ;;  %v1489_v41 = vrot.slane %v1487_v38, 6  ;;  %v1131_v54 = vrot.slane %v1130_v35, 4  ;;  %v7228_v56 = vrot.slane %v6187_v45, 6  ;;  %v1800_v4 = vld [vmem:[#allocation3 + $0x18] sm:$0xf] }
 0x18e   : > { %v6194_v24 = vor.u32 %v1479_v23, %v1476_v40  ;;  %v1801_v63 = vld [vmem:[#allocation3 + $0x1c] sm:$0xf]  ;;  %v1126_v9 = vsel %vm5566_vm6, %v1121_v3, %v1125_v18  ;;  %v1270_v48 = vrot.slane %v7221_v50, 4  ;;  %v1273_v30 = vrot.slane %v7220_v36, 4  ;;  %v6205_v44 = vld [vmem:[#allocation3 + $0x18] sm:$0xf] }
 0x18f   : > { %v6203_v17 = vor.u32 %v1489_v41, %v1486_v34  ;;  %v1836_v39 = vshrl.u32 %v1800_v4, 16  ;;  %1212 = vst [vmem:[#allocation2 + $0xdc] sm:$0xf] %v1126_v9  ;;  %v1361_v23 = vrot.slane %v1359_v53, 4  ;;  %v1364_v16 = vrot.slane %v1362_v49, 4  ;;  %v4774_v3 = vld [vmem:[%s7161_s1 + $0x138] sm:$0xff]  }
 0x190   : > { %v6207_v35 = vld [vmem:[#allocation3 + $0x18] sm:$0xf]  ;;  %v1839_v38 = vshll.u32 %v1800_v4, 16  ;;  %v1846_v40 = vshrl.u32 %v1801_v63, 16  ;;  %v1645_v18 = vrot.slane %v7225_v19, 4  ;;  %v1849_v34 = vshll.u32 %v1801_v63, 16 }
 0x191   : > { %v4768_v43 = vld [vmem:[#allocation2 + $0x4c] ss:$36 sps:$4 sm:$0xff]   ;;  %v1838_v41 = vrot.slane %v1836_v39, 6  ;;  %v7231_v36 = vrot.slane %v6205_v44, 7  ;;  %v4761_v8 = vld [vmem:[#allocation2] ss:$36 sps:$4 sm:$0xff]   ;;  %v1136_v63 = vsel %vm5566_vm6, %v1131_v54, %v7358_v14 }
 0x192   : > { %v4776_v9 = vld [vmem:[%s7161_s1 + $0x170] sm:$0xff]   ;;  %v1482_v4 = vrot.slane %v6194_v24, 4  ;;  %v1648_v22 = vrot.slane %v7228_v56, 4  ;;  %v1841_v6 = vrot.slane %v1839_v38, 7  ;;  %v4763_v15 = vld [vmem:[#allocation2 + $0x4] ss:$36 sps:$4 sm:$0xff]  }
 0x193   : > { %v6221_v50 = vld [vmem:[#allocation3 + $0x1c] sm:$0xf]  ;;  %v1492_v39 = vrot.slane %v6203_v17, 4  ;;  %v1848_v19 = vrot.slane %v1846_v40, 6  ;;  %v2027_v21 = vsel %vm5631_vm14, %v6104_v28, %v7231_v36  ;;  %v4779_v7 = vld [vmem:[#allocation2 + $0x16c] ss:$36 sps:$4 sm:$0xff]   ;;  %3099 = vmatprep.mubr.bf16.mxu0 %v4763_v15 }
 0x194   : > { %v4781_v1 = vld [vmem:[#allocation2 + $0x168] ss:$36 sps:$4 sm:$0xff]   ;;  %1213 = vst [vmem:[#allocation2 + $0x100] sm:$0xf] %v1136_v63  ;;  %v1851_v14 = vrot.slane %v1849_v34, 7  ;;  %v7360_v40 = vrot.slane %v6166_v2, 5  ;;  %v1363_v63 = vsel %vm5574_vm8, %v1361_v23, %v1362_v49  ;;  %v6249_v61 = vor.u32 %v1841_v6, %v1838_v41  ;;  %3100 = vmatmul.mubr.bf16.vlgmr.msra.gmra.mxu0 %v4761_v8  ;;  %3139 = vmatprep.mubr.bf16.mxu1 %v4779_v7 }
 0x195   : > { %v7359_v56 = vld [vmem:[#allocation40_spill] sm:$0xff]  ;;  %2079 = vst [vmem:[#allocation2 + $0x44] sm:$0xf] %v2027_v21  ;;  %v4786_v54 = vld [vmem:[#allocation2 + $0x1b4] ss:$36 sps:$4 sm:$0x3f]   ;;  %3107 = vmatprep.mubr.bf16.mxu0 %v4768_v43  ;;  %4469 = vmatpush3.bf16.msra.mxu0 %v4774_v3 }
 0x196   : > { %v1360_v38 = vsel %vm5574_vm8, %v7359_v56, %v1359_v53  ;;  %v1269_v28 = vsel %vm5574_vm8, %v7361_v60, %v7360_v40  ;;  %v6246_v36 = vld [vmem:[#allocation3 + $0x30] sm:$0xf]  ;;  %v1734_v53 = vrot.slane %v6207_v35, 6  ;;  %v7362_v21 = vld [vmem:[#allocation6_spill] sm:$0xff]  ;;  %1407 = vst [vmem:[#allocation2 + $0x9c] sm:$0xf] %v1363_v63  ;;  %4470 = vmatprep.subr.bf16.mxu0 %v4776_v9  ;;  %3140 = vmatmul.mubr.bf16.gmra.mxu1 %v4781_v1 }
 0x197   : > { %1406 = vst [vmem:[#allocation2 + $0x78] sm:$0xf] %v1360_v38  ;;  %1311 = vst [vmem:[#allocation2 + $0xbc] sm:$0xf] %v1269_v28  ;;  %v7363_v46 = vrot.slane %v7362_v21, 5  ;;  %v7364_v60 = vrot.slane %v5892_v5, 4  ;;  %v6295_v9 = vor.u32 %v1851_v14, %v1848_v19  ;;  %3147 = vmatprep.mubr.bf16.mxu1 %v4786_v54 }
 0x198   : > { %v7365_v49 = vshll.u32 %v6130_v27, 16  ;;  %v6262_v6 = vld [vmem:[#allocation3 + $0x1c] sm:$0xf]  ;;  %v7366_v8 = vrot.slane %v6184_v32, 6  ;;  %v7368_v23 = vld [vmem:[#allocation5_spill] sm:$0xff]  ;;  %v1737_v3 = vrot.slane %v6221_v50, 6 }
 0x199   : > { %v1366_v2 = vsel %vm5574_vm8, %v1364_v16, %v7363_v46  ;;  %v1481_v15 = vsel %vm5596_vm2, %v7364_v60, %v6194_v24  ;;  %v4778_v7 = vld [vmem:[%s7161_s1 + $0x130] sm:$0xff]   ;;  %v7367_v24 = vrot.slane %v6168_v51, 5  ;;  %v7369_v43 = vrot.slane %v7368_v23, 5  ;;  %v4770_v41 = vld [vmem:[#allocation2 + $0x48] ss:$36 sps:$4 sm:$0xff]  }
 0x19a   : > { %v1901_v56 = vrot.slane %v7365_v49, 7  ;;  %1408 = vst [vmem:[#allocation2 + $0xc0] sm:$0xf] %v1366_v2  ;;  %1590 = vst [vmem:[#allocation2 + $0x7c] sm:$0xf] %v1481_v15  ;;  %v1644_v5 = vsel %vm5583_vm12, %v6067_v37, %v7366_v8  ;;  %v4783_v32 = vld [vmem:[%s7161_s1 + $0x168] sm:$0xff]   ;;  %v1491_v37 = vsel %vm5596_vm2, %v1482_v4, %v6203_v17  ;;  %4471 = vmatpush3.bf16.msra.mxu0 %v4778_v7 }
 0x19b   : > { %v1272_v27 = vsel %vm5574_vm8, %v1270_v48, %v7367_v24  ;;  %v1275_v16 = vsel %vm5574_vm8, %v1273_v30, %v7369_v43  ;;  %1690 = vst [vmem:[#allocation2 + $0x80] sm:$0xf] %v1644_v5  ;;  %v7370_v51 = vld [vmem:[#allocation10_spill] sm:$0xff]  ;;  %v7371_v30 = vrot.slane %v6187_v45, 6  ;;  %v2044_v34 = vrot.slane %v6246_v36, 7  ;;  %v7372_v38 = vld [vmem:[#allocation8_spill] sm:$0xff]  ;;  %4472 = vmatprep.subr.bf16.mxu0 %v4783_v32 }
 0x19c   : > { %1312 = vst [vmem:[#allocation2 + $0xe0] sm:$0xf] %v1272_v27  ;;  %1313 = vst [vmem:[#allocation2 + $0x104] sm:$0xf] %v1275_v16  ;;  %v1501_v48 = vsel %vm5596_vm2, %v1492_v39, %v7370_v51  ;;  %v7373_v40 = vrot.slane %v7372_v38, 6  ;;  %v7374_v4 = vrot.slane %v6090_v42, 6  ;;  %v6337_v5 = vor.u32 %v1901_v56, %v6191_v26  ;;  %3108 = vmatmul.mubr.bf16.gmra.mxu0 %v4770_v41 }
 0x19d   : > { %v1647_v1 = vsel %vm5583_vm12, %v1645_v18, %v7371_v30  ;;  %1591 = vst [vmem:[#allocation2 + $0xa0] sm:$0xf] %v1491_v37  ;;  %1592 = vst [vmem:[#allocation2 + $0xc4] sm:$0xf] %v1501_v48  ;;  %v7375_v39 = vld [vmem:[#allocation30_spill] sm:$0xff]  ;;  %v7376_v18 = vshrl.u32 %v6134_v31, 16 }
 0x19e   : > { %v1650_v17 = vsel %vm5583_vm12, %v1648_v22, %v7373_v40  ;;  %1691 = vst [vmem:[#allocation2 + $0xa4] sm:$0xf] %v1647_v1  ;;  %v1662_v45 = vsel %vm5583_vm12, %v7375_v39, %v7374_v4  ;;  %v7377_v19 = vshll.u32 %v6134_v31, 16  ;;  %v1736_v54 = vrot.slane %v1734_v53, 4  ;;  %v4785_v42 = vld [vmem:[%s7161_s1 + $0x128] sm:$0xff]   ;;  %v6517_v36 = vld [vmem:[%s7163_s3 + $0x30] sm:$0xff] }
 0x19f   : > { %v6308_v28 = vrot.slane %v7376_v18, 6  ;;  %v2029_v22 = vrot.slane %v6262_v6, 7  ;;  %1692 = vst [vmem:[#allocation2 + $0xc8] sm:$0xf] %v1650_v17  ;;  %1696 = vst [vmem:[#allocation2 + $0x158] sm:$0xf] %v1662_v45  ;;  %4473 = vmatpush3.bf16.msra.mxu0 %v4785_v42 }
 0x1a0   : > { %v6312_v14 = vrot.slane %v7377_v19, 7  ;;  %v4792_v63 = vld [vmem:[#allocation2 + $0x94] ss:$36 sps:$4 sm:$0xff]   ;;  %vm3624_vm6 = vcmp.lt.s32.totalorder %v6178_v29, 16  ;;  %v7378_v21 = vld [vmem:[#allocation17_spill] sm:$0xff]  ;;  %v7380_v31 = vld [vmem:[#allocation20_spill] sm:$0xff]  ;;  %v1738_v4 = vsel %vm5583_vm12, %v1736_v54, %v1737_v3 }
 0x1a1   : > { %v7379_v46 = vrot.slane %v7378_v21, 5  ;;  %v7381_v60 = vrot.slane %v6070_v20, 5  ;;  %v7382_v15 = vld [vmem:[#allocation24_spill] sm:$0xff]  ;;  %v7383_v7 = vrot.slane %v6093_v55, 5  ;;  %v1739_v24 = vrot.slane %v1737_v3, 4  ;;  %3115 = vmatprep.mubr.bf16.mxu0 %v4792_v63  ;;  %v7392_v38 = vld [vmem:[#allocation21_spill] sm:$0xff] }
 0x1a2   : > { %v1844_v27 = vrot.slane %v6249_v61, 4  ;;  %v4789_v20 = vld [vmem:[%s7161_s1 + $0x160] sm:$0xff]   ;;  %v7384_v23 = vrot.slane %v6059_v25, 5  ;;  %v6350_v26 = vld [vmem:[#allocation3 + $0x34] sm:$0xf]  ;;  %v1854_v56 = vrot.slane %v6295_v9, 4 }
 0x1a3   : > { %v1284_v2 = vsel %vm5574_vm8, %v7380_v31, %v7379_v46  ;;  %v1287_v49 = vsel %vm5574_vm8, %v7382_v15, %v7381_v60  ;;  %v1381_v8 = vsel %vm5574_vm8, %v6116_v57, %v7383_v7  ;;  %v7385_v43 = vrot.slane %v6113_v47, 4  ;;  %v4795_v47 = vld [vmem:[#allocation2 + $0x1b0] ss:$36 sps:$4 sm:$0x3f]   ;;  %v7391_v41 = vld [vmem:[#allocation28_spill] sm:$0xff]  ;;  %4474 = vmatprep.subr.bf16.mxu0 %v4789_v20  ;;  %v4797_v42 = vld [vmem:[%s7161_s1 + $0x158] sm:$0xff]  }
 0x1a4   : > { %1316 = vst [vmem:[#allocation2 + $0x170] sm:$0xf] %v1284_v2  ;;  %1317 = vst [vmem:[#allocation2 + $0x194] sm:$0xf] %v1287_v49  ;;  %v1290_v57 = vsel %vm5574_vm8, %v6111_v52, %v7384_v23  ;;  %v7386_v32 = vrot.slane %v6095_v33, 6  ;;  %v7387_v37 = vrot.slane %v7346_v11, 6  ;;  %v1833_v35 = vsel %vm5602_vm11, %v7392_v38, %v7391_v41  ;;  %3148 = vmatmul.mubr.bf16.gmra.mxu1 %v4795_v47 }
 0x1a5   : > { %1413 = vst [vmem:[#allocation2 + $0x174] sm:$0xf] %v1381_v8  ;;  %1318 = vst [vmem:[#allocation2 + $0x1b8] sm:$0xf] %v1290_v57  ;;  %v1551_v16 = vsel %vm5596_vm2, %v7385_v43, %v6237_v0  ;;  %v7388_v52 = vrot.slane %v6020_v10, 10  ;;  %v7389_v48 = vrot.slane %v6205_v44, 7  ;;  %v1853_v31 = vsel %vm5602_vm11, %v1844_v27, %v6295_v9 }
 0x1a6   : > { %v1665_v25 = vsel %vm5583_vm12, %v6141_v13, %v7386_v32  ;;  %v3638_v1 = vsel %vm3624_vm6, 1, %v7269_v62  ;;  %1597 = vst [vmem:[#allocation2 + $0x178] sm:$0xf] %v1551_v16  ;;  %v7390_v13 = vld [vmem:[#allocation12_spill] sm:$0xff]  ;;  %v2031_v11 = vrot.slane %v2029_v22, 4  ;;  %v7395_v39 = vld [vmem:[#allocation29_spill] sm:$0xff]  ;;  %v6437_v16 = vor.u32 %v6312_v14, %v6308_v28 }
 0x1a7   : > { %v1732_v51 = vsel %vm5583_vm12, %v7388_v52, %v7387_v37  ;;  %v2028_v30 = vrot.slane %v7389_v48, 4  ;;  %1697 = vst [vmem:[#allocation2 + $0x17c] sm:$0xf] %v1665_v25  ;;  %v1735_v10 = vsel %vm5583_vm12, %v7390_v13, %v1734_v53  ;;  %v4791_v44 = vld [vmem:[%s7161_s1 + $0x120] sm:$0xff]   ;;  %v4801_v29 = vld [vmem:[#allocation2 + $0xc] ss:$36 sps:$4 sm:$0xff]   ;;  %3652 = vrot.lane.b32.xlu0 %v3638_v1, %s4950_s25 }
 0x1a8   : > { %1784 = vst [vmem:[#allocation2 + $0x18] sm:$0xf] %v1732_v51  ;;  %1785 = vst [vmem:[#allocation2 + $0x3c] sm:$0xf] %v1735_v10  ;;  %v7394_v53 = vrot.slane %v7391_v41, 4  ;;  %v7396_v45 = vrot.slane %v7395_v39, 6  ;;  %3188 = vmatprep.mubr.bf16.mxu1 %v4801_v29  ;;  %4475 = vmatpush3.bf16.msra.mxu0 %v4791_v44 }
 0x1a9   : > { %v1755_v19 = vrot.slane %v6350_v26, 6  ;;  %v7397_v63 = vld [vmem:[#allocation38_spill] sm:$0xff]  ;;  %1974 = vst [vmem:[#allocation2 + $0x1c] sm:$0xf] %v1833_v35  ;;  %1786 = vst [vmem:[#allocation2 + $0x60] sm:$0xf] %v1738_v4  ;;  %4476 = vmatprep.subr.bf16.mxu0 %v4797_v42 }
 0x1aa   : > { %v1843_v17 = vsel %vm5602_vm11, %v7394_v53, %v6249_v61  ;;  %v1754_v18 = vrot.slane %v7396_v45, 4  ;;  %vm3626_vm0 = vcmp.lt.s32.totalorder %v7397_v63, 16  ;;  %v7398_v61 = vld [vmem:[#allocation9_spill] sm:$0xff]  ;;  %v1904_v54 = vrot.slane %v6337_v5, 4  ;;  %1976 = vst [vmem:[#allocation2 + $0x64] sm:$0xf] %v1853_v31 }
 0x1ab   : > { %1975 = vst [vmem:[#allocation2 + $0x40] sm:$0xf] %v1843_v17  ;;  %v7399_v50 = vrot.slane %v7398_v61, 6  ;;  %v6409_v21 = vld [vmem:[#allocation3 + $0x34] sm:$0xf]  ;;  %v2046_v46 = vrot.slane %v2044_v34, 4  ;;  %v7413_v14 = vmov %v7396_v45 }
 0x1ac   : > { %v7400_v2 = vld [vmem:[#allocation13_spill] sm:$0xff]  ;;  %v3640_v49 = vsel %vm3626_vm0, 1, %v7269_v62  ;;  %v7401_v7 = vld [vmem:[#allocation22_spill] sm:$0xff]  ;;  %v7405_v57 = vld [vmem:[#allocation15_spill] sm:$0xff]  ;;  %v2047_v44 = vrot.slane %v6409_v21, 7  ;;  %v1913_v61 = vsel %vm5602_vm11, %v1904_v54, %v6437_v16  ;;  %v1552_v26 = vrot.slane %v6237_v0, 4 }
 0x1ad   : > { %v1741_v3 = vsel %vm5583_vm12, %v1739_v24, %v7399_v50  ;;  %v1863_v60 = vsel %vm5602_vm11, %v1854_v56, %v7400_v2  ;;  %v4794_v15 = vld [vmem:[#allocation2 + $0x90] ss:$36 sps:$4 sm:$0xff]   ;;  %v7402_v8 = vrot.slane %v7401_v7, 6  ;;  %v7406_v43 = vrot.slane %v7405_v57, 4  ;;  %v4802_v32 = vld [vmem:[%s7161_s1 + $0x118] sm:$0xff]   ;;  %v7417_v29 = vld [vmem:[#allocation36_spill] sm:$0xff]  ;;  %3656 = vrot.lane.b32.xlu0 %v3640_v49, %s4950_s25 }
 0x1ae   : > { %1787 = vst [vmem:[#allocation2 + $0x84] sm:$0xf] %v1741_v3  ;;  %1977 = vst [vmem:[#allocation2 + $0x88] sm:$0xf] %v1863_v60  ;;  %v7403_v24 = vld [vmem:[#allocation18_spill] sm:$0xff]  ;;  %v2030_v56 = vsel %vm5631_vm14, %v2028_v30, %v2029_v22  ;;  %v7408_v37 = vld [vmem:[#allocation11_spill] sm:$0xff]  ;;  %3116 = vmatmul.mubr.bf16.gmra.mxu0 %v4794_v15  ;;  %v2048_v54 = vsel %vm5631_vm14, %v2046_v46, %v2047_v44 }
 0x1af   : > { %v1747_v20 = vsel %vm5583_vm12, %v7403_v24, %v7402_v8  ;;  %v7404_v23 = vld [vmem:[#allocation34_spill] sm:$0xff]  ;;  %v4803_v25 = vld [vmem:[#allocation2 + $0xdc] ss:$36 sps:$4 sm:$0xff]   ;;  %v7409_v52 = vrot.slane %v7408_v37, 7  ;;  %2080 = vst [vmem:[#allocation2 + $0x68] sm:$0xf] %v2030_v56  ;;  %4477 = vmatpush3.bf16.msra.mxu0 %v4802_v32 }
 0x1b0   : > { %v1883_v9 = vsel %vm5602_vm11, %v7406_v43, %v7404_v23  ;;  %1789 = vst [vmem:[#allocation2 + $0xcc] sm:$0xf] %v1747_v20  ;;  %v7410_v51 = vld [vmem:[#allocation23_spill] sm:$0xff]  ;;  %v7414_v30 = vld [vmem:[#allocation32_spill] sm:$0xff]  ;;  %v7415_v1 = vld [vmem:[#allocation33_spill] sm:$0xff]  ;;  %v7418_v41 = vrot.slane %v7404_v23, 4  ;;  %3123 = vmatprep.mubr.bf16.mxu0 %v4803_v25 }
 0x1b1   : > { %1979 = vst [vmem:[#allocation2 + $0xd0] sm:$0xf] %v1883_v9  ;;  %v2033_v6 = vsel %vm5631_vm14, %v2031_v11, %v7409_v52  ;;  %v7411_v22 = vrot.slane %v7410_v51, 6  ;;  %v7412_v48 = vld [vmem:[#allocation31_spill] sm:$0xff]  ;;  %v1753_v47 = vsel %vm5583_vm12, %v7414_v30, %v7413_v14  ;;  %v7416_v13 = vrot.slane %v7415_v1, 7  ;;  %v4806_v11 = vld [vmem:[%s7161_s1 + $0x150] sm:$0xff]  }
 0x1b2   : > { %2081 = vst [vmem:[#allocation2 + $0x8c] sm:$0xf] %v2033_v6  ;;  %1791 = vst [vmem:[#allocation2 + $0x114] sm:$0xf] %v1753_v47  ;;  %v1893_v38 = vsel %vm5602_vm11, %v7418_v41, %v7417_v29  ;;  %v7419_v35 = vrot.slane %v7417_v29, 4  ;;  %v4842_v17 = vld [vmem:[%s7161_s1 + $0x1b8] sm:$0xff]   ;;  %4478 = vmatprep.subr.bf16.mxu0 %v4806_v11 }
 0x1b3   : > { %v1750_v28 = vsel %vm5583_vm12, %v7412_v48, %v7411_v22  ;;  %v2043_v10 = vrot.slane %v7416_v13, 4  ;;  %v6479_v4 = vld [vmem:[%s7163_s3 + $0x20] sm:$0xff]  ;;  %1980 = vst [vmem:[#allocation2 + $0xf4] sm:$0xf] %v1893_v38  ;;  %v7420_v39 = vld [vmem:[#allocation26_spill] sm:$0xff]  ;;  %v7423_v50 = vmov %v7416_v13  ;;  %v4846_v57 = vld [vmem:[%s7161_s1 + $0x1e8] sm:$0xff]  }
 0x1b4   : > { %1790 = vst [vmem:[#allocation2 + $0xf0] sm:$0xf] %v1750_v28  ;;  %v1903_v53 = vsel %vm5602_vm11, %v7419_v35, %v6337_v5  ;;  %v7421_v45 = vrot.slane %v7420_v39, 7  ;;  %v7422_v42 = vld [vmem:[#allocation19_spill] sm:$0xff]  ;;  %v1756_v5 = vsel %vm5583_vm12, %v1754_v18, %v1755_v19  ;;  %v4799_v2 = vld [vmem:[#allocation2 + $0x8] ss:$36 sps:$4 sm:$0xff]   ;;  %v536_v39 = vpop.permute.xlu1 %535 }
 0x1b5   : > { %1981 = vst [vmem:[#allocation2 + $0x118] sm:$0xf] %v1903_v53  ;;  %v7424_v3 = vld [vmem:[#allocation35_spill] sm:$0xff]  ;;  %v4843_v60 = vld [vmem:[%s7161_s1 + $0x1f0] sm:$0xff]   ;;  %v7425_v49 = vld [vmem:[#allocation4_spill] sm:$0xff]  ;;  %v2045_v18 = vsel %vm5631_vm14, %v2043_v10, %v2044_v34  ;;  %3189 = vmatmul.mubr.bf16.vlgmr.msra.gmra.mxu1 %v4799_v2  ;;  %vm555_vm4 = vcmp.ne.s32.totalorder %v536_v39, 0 }
 0x1b6   : > { %v2039_v63 = vsel %vm5631_vm14, %v7422_v42, %v7421_v45  ;;  %v2042_v31 = vsel %vm5631_vm14, %v7424_v3, %v7423_v50  ;;  %v3614_v7 = vadd.s32 %v6479_v4, %v7425_v49  ;;  %1792 = vst [vmem:[#allocation2 + $0x138] sm:$0xf] %v1756_v5  ;;  %1982 = vst [vmem:[#allocation2 + $0x13c] sm:$0xf] %v1913_v61  ;;  %v4808_v15 = vld [vmem:[%s7161_s1 + $0x110] sm:$0xff]   ;;  %v4810_v34 = vld [vmem:[%s7161_s1 + $0x148] sm:$0xff]   ;;  %4527 = vmatpush3.bf16.msra.mxu1 %v4842_v17 }
 0x1b7   : > { %2083 = vst [vmem:[#allocation2 + $0xd4] sm:$0xf] %v2039_v63  ;;  %2084 = vst [vmem:[#allocation2 + $0xf8] sm:$0xf] %v2042_v31  ;;  %v4811_v8 = vld [vmem:[#allocation2 + $0x54] ss:$36 sps:$4 sm:$0xff]   ;;  %v3616_v24 = vadd.s32 %v6517_v36, %v7425_v49  ;;  %4528 = vmatprep.subr.bf16.mxu1 %v4843_v60  ;;  %4479 = vmatpush3.bf16.msra.mxu0 %v4808_v15 }
 0x1b8   : > { %2085 = vst [vmem:[#allocation2 + $0x11c] sm:$0xf] %v2045_v18  ;;  %2086 = vst [vmem:[#allocation2 + $0x140] sm:$0xf] %v2048_v54  ;;  %v4337_v46 = vld [vmem:[%s5366_s18 + $0x38] sm:$0xff]   ;;  %vm3628_vm1 = vcmp.lt.s32.totalorder %v3614_v7, 16  ;;  %3196 = vmatprep.mubr.bf16.mxu1 %v4811_v8  ;;  %4480 = vmatprep.subr.bf16.mxu0 %v4810_v34  ;;  %v861_v8 = vpop.permute.xlu0 %860 }
 0x1b9   : > { %v4844_v20 = vld [vmem:[%s7161_s1 + $0x1b0] sm:$0xff]   ;;  %v3642_v23 = vsel %vm3628_vm1, 1, %v7269_v62  ;;  %v4813_v43 = vld [vmem:[%s7161_s1 + $0x108] sm:$0xff]   ;;  %v4817_v9 = vld [vmem:[%s7161_s1 + $0x140] sm:$0xff]   ;;  %v4250_v56 = vunpack.c.l.bf16 %v4337_v46  ;;  %v4251_v37 = vunpack.c.h.bf16 %v4337_v46  ;;  %vm3630_vm3 = vcmp.lt.s32.totalorder %v3616_v24, 16  ;;  %v864_v46 = vpop.permute.xlu1 %863 }
 0x1ba   : > { %3660 = vrot.lane.b32.xlu0 %v3642_v23, %s4950_s25  ;;  %v4809_v32 = vld [vmem:[#allocation2 + $0xd8] ss:$36 sps:$4 sm:$0xff]   ;;  %v4847_v52 = vld [vmem:[%s7161_s1 + $0x1a8] sm:$0xff]   ;;  %4529 = vmatpush3.bf16.msra.mxu1 %v4844_v20  ;;  %v6545_v6 = vld [vmem:[%s7163_s3 + $0x40] sm:$0xff]  ;;  %v3644_v47 = vsel %vm3630_vm3, 1, %v7269_v62  ;;  %v4951_v42 = vmov 0.0  }
 0x1bb   : > { %v4816_v25 = vld [vmem:[#allocation2 + $0x14] ss:$36 sps:$4 sm:$0xff]   ;;  %3124 = vmatmul.mubr.bf16.gmra.mxu0 %v4809_v32  ;;  %v4818_v51 = vld [vmem:[%s7161_s1 + $0x100] sm:$0xff]   ;;  %4530 = vmatprep.subr.bf16.mxu1 %v4846_v57  ;;  %v3618_v13 = vadd.s32 %v6545_v6, %v7425_v49  ;;  %v6603_v18 = vld [vmem:[%s7163_s3 + $0x8] sm:$0xff]  ;;  %vm888_vm10 = vcmp.eq.s32.totalorder %v861_v8, 1  ;;  %vm889_vm13 = vcmp.eq.s32.totalorder %v864_v46, 1 }
 0x1bc   : > { %v4819_v22 = vld [vmem:[#allocation2 + $0x50] ss:$36 sps:$4 sm:$0xff]   ;;  %v4849_v48 = vld [vmem:[%s7161_s1 + $0x1e0] sm:$0xff]   ;;  %4481 = vmatpush3.bf16.msra.mxu0 %v4813_v43  ;;  %3277 = vmatprep.mubr.bf16.mxu0 %v4816_v25  ;;  %v4845_v11 = vld [vmem:[%s7161_s1 + $0x238] sm:$0xff]   ;;  %v3611_v43 = vadd.s32 %v6603_v18, %v7425_v49 }
 0x1bd   : > { %v4820_v28 = vld [vmem:[#allocation2 + $0x9c] ss:$36 sps:$4 sm:$0xff]   ;;  %4482 = vmatprep.subr.bf16.mxu0 %v4817_v9  ;;  %3197 = vmatmul.mubr.bf16.gmra.mxu1 %v4819_v22  ;;  %v4814_v41 = vld [vmem:[#allocation2 + $0x10] ss:$36 sps:$4 sm:$0xff]   ;;  %vm3632_vm5 = vcmp.lt.s32.totalorder %v3618_v13, 16  ;;  %v4851_v24 = vld [vmem:[%s7161_s1 + $0x228] sm:$0xff]  }
 0x1be   : > { %v6556_v14 = vld [vmem:[%s7165_s5] ss:$0 sm:$0xff]  ;;  %3204 = vmatprep.mubr.bf16.mxu1 %v4820_v28  ;;  %4531 = vmatpush3.bf16.msra.mxu1 %v4847_v52  ;;  %v4855_v29 = vld [vmem:[%s7161_s1 + $0x1d8] sm:$0xff]   ;;  %v4906_v5 = vld [vmem:[%s7164_s4 + $0x90] sm:$0xff]  ;;  %v3646_v60 = vsel %vm3632_vm5, 1, %v7269_v62  ;;  %v650_v28 = vpop.permute.xlu0 %649  ;;  %vm3625_vm5 = vcmp.lt.s32.totalorder %v3611_v43, 16 }
 0x1bf   : > { %v748_v30 = vmul.f32 %v6556_v14, %v4250_v56  ;;  %v749_v1 = vmul.f32 %v6556_v14, %v4251_v37  ;;  %v4850_v10 = vld [vmem:[%s7161_s1 + $0x1a0] sm:$0xff]   ;;  %4532 = vmatprep.subr.bf16.mxu1 %v4849_v48  ;;  %3664 = vrot.lane.b32.xlu0 %v3644_v47, %s4950_s25  ;;  %v4824_v17 = vld [vmem:[#allocation2 + $0x98] ss:$36 sps:$4 sm:$0xff]   ;;  %vm422_vm15 = vcmp.ge.s32.totalorder %v4906_v5, 1  ;;  %v6590_v61 = vld [vmem:[%s7163_s3 + $0x50] sm:$0xff]  ;;  %vm441_vm9 = vcmp.le.s32.totalorder %v4906_v5, 16 }
 0x1c0   : > { %4483 = vmatpush3.bf16.msra.mxu0 %v4818_v51  ;;  %v4822_v38 = vld [vmem:[#allocation2 + $0x5c] ss:$36 sps:$4 sm:$0xff]   ;;  %v4863_v50 = vld [vmem:[%s7161_s1 + $0x1d0] sm:$0xff]   ;;  %v4826_v3 = vld [vmem:[#allocation2 + $0xe4] ss:$36 sps:$4 sm:$0xff]   ;;  %v3620_v54 = vadd.s32 %v6590_v61, %v7425_v49  ;;  %vm669_vm1 = vcmp.ne.s32.totalorder %v650_v28, 0 }
 0x1c1   : > { %v6576_v35 = vld [vmem:[%s7166_s6] ss:$0 sm:$0xff]  ;;  %4599 = vmatprep.subr.bf16.mxu0 %v4951_v42  ;;  %v4858_v63 = vld [vmem:[%s7161_s1 + $0x198] sm:$0xff]   ;;  %v4848_v2 = vld [vmem:[%s7161_s1 + $0x230] sm:$0xff]  }
 0x1c2   : > { %v774_v53 = vadd.f32 %v6576_v35, %v748_v30  ;;  %v775_v45 = vadd.f32 %v6576_v35, %v749_v1  ;;  %4533 = vmatpush3.bf16.msra.mxu1 %v4850_v10  ;;  %vm6609_vm7 = vmand %vm422_vm15, %vm441_vm9  ;;  %v4866_v34 = vld [vmem:[%s7161_s1 + $0x190] sm:$0xff]   ;;  %v6622_v20 = vld [vmem:[%s7163_s3 + $0x18] sm:$0xff]  ;;  %vm3634_vm0 = vcmp.lt.s32.totalorder %v3620_v54, 16 }
 0x1c3   : > { %3278 = vmatmul.mubr.bf16.vlgmr.msra.gmra.mxu0 %v4814_v41  ;;  %4534 = vmatprep.subr.bf16.mxu1 %v4855_v29  ;;  %v4868_v23 = vld [vmem:[%s7161_s1 + $0x1c8] sm:$0xff]   ;;  %v6638_v56 = vld [vmem:[%s7163_s3 + $0x38] sm:$0xff]  ;;  %v6643_v32 = vld [vmem:[%s7163_s3 + $0x60] sm:$0xff]  ;;  %v3613_v30 = vadd.s32 %v6622_v20, %v7425_v49 }
 0x1c4   : > { %3285 = vmatprep.mubr.bf16.mxu0 %v4822_v38  ;;  %v793_v31 = vmax.f32 %v774_v53, 0.0  ;;  %4600 = vmatpush3.bf16.msra.mxu0 %v4845_v11  ;;  %v794_v7 = vmax.f32 %v775_v45, 0.0  ;;  %v6633_v9 = vld [vmem:[%s7163_s3 + $0x28] sm:$0xff]  ;;  %v4825_v25 = vld [vmem:[#allocation2 + $0x58] ss:$36 sps:$4 sm:$0xff]   ;;  %vm6648_vm6 = vmand %vm6609_vm7, %vm555_vm4  ;;  %v3617_v13 = vadd.s32 %v6638_v56, %v7425_v49  ;;  %v3622_v29 = vadd.s32 %v6643_v32, %v7425_v49 }
 0x1c5   : > { %3205 = vmatmul.mubr.bf16.gmra.mxu1 %v4824_v17  ;;  %4601 = vmatprep.subr.bf16.mxu0 %v4951_v42  ;;  %v4828_v51 = vld [vmem:[#allocation2 + $0xa4] ss:$36 sps:$4 sm:$0xff]   ;;  %v4832_v22 = vld [vmem:[#allocation2 + $0x12c] ss:$36 sps:$4 sm:$0xff]   ;;  %v3615_v1 = vadd.s32 %v6633_v9, %v7425_v49  ;;  %vm688_vm3 = vmand %vm6648_vm6, %vm669_vm1  ;;  %v3648_v53 = vsel %vm3634_vm0, 1, %v7269_v62  ;;  %v7430_v17 = vrot.slane %v6093_v55, 5 }
 0x1c6   : > { %3212 = vmatprep.mubr.bf16.mxu1 %v4826_v3  ;;  %4535 = vmatpush3.bf16.msra.mxu1 %v4858_v63  ;;  %v907_v57 = vsel %vm888_vm10, %v793_v31, 0.0  ;;  %v908_v52 = vsel %vm889_vm13, %v794_v7, 0.0  ;;  %v4830_v47 = vld [vmem:[#allocation2 + $0xe0] ss:$36 sps:$4 sm:$0xff]   ;;  %v4869_v10 = vld [vmem:[%s7161_s1 + $0x188] sm:$0xff]   ;;  %v816_v45 = vsel %vm688_vm3, 1, %v7269_v62 }
 0x1c7   : > { %4536 = vmatprep.subr.bf16.mxu1 %v4863_v50  ;;  %3668 = vrot.lane.b32.xlu0 %v3646_v60, %s4950_s25  ;;  %v4294_v48 = vpack.c.bf16 %v908_v52, %v907_v57  ;;  %v6665_v11 = vld [vmem:[%s7163_s3 + $0x48] sm:$0xff]  ;;  %v4859_v41 = vld [vmem:[%s7161_s1 + $0x220] sm:$0xff]   ;;  %v6681_v39 = vrot.slane %v7430_v17, 4  ;;  %v7431_v63 = vrot.slane %v6095_v33, 6  ;;  %v6691_v50 = vrot.slane %v1755_v19, 4  ;;  %v6711_v60 = vld [vmem:[%s7163_s3 + $0x58] sm:$0xff] }
 0x1c8   : > { %4602 = vmatpush3.bf16.msra.mxu0 %v4848_v2  ;;  %v4875_v38 = vld [vmem:[%s7161_s1 + $0x1c0] sm:$0xff]   ;;  %872 = vperm.xlu1 %4706, %v816_v45   ;;  %vm3627_vm15 = vcmp.lt.s32.totalorder %v3613_v30, 16  ;;  %v3619_v55 = vadd.s32 %v6665_v11, %v7425_v49  ;;  %v3639_v3 = vsel %vm3625_vm5, 1, %v7269_v62  ;;  %vm3629_vm9 = vcmp.lt.s32.totalorder %v3615_v1, 16  ;;  %v4834_v31 = vld [vmem:[#allocation2 + $0xec] ss:$36 sps:$4 sm:$0xff]  }
 0x1c9   : > { %4603 = vmatprep.subr.bf16.mxu0 %v4951_v42  ;;  %4345 = vst [vmem:[#allocation3 + $0x38] sm:$0xff] %v4294_v48   ;;  %v6687_v5 = vrot.slane %v7431_v63, 4  ;;  %vm3631_vm7 = vcmp.lt.s32.totalorder %v3617_v13, 16  ;;  %v4876_v33 = vld [vmem:[%s7161_s1 + $0x180] sm:$0xff]   ;;  %vm3636_vm4 = vcmp.lt.s32.totalorder %v3622_v29, 16  ;;  %v6703_v19 = vrot.slane %v2047_v44, 4 }
 0x1ca   : > { %4537 = vmatpush3.bf16.msra.mxu1 %v4866_v34  ;;  %v4867_v2 = vld [vmem:[%s7161_s1 + $0x218] sm:$0xff]   ;;  %v1914_v7 = vrot.slane %v6437_v16, 4  ;;  %v4831_v54 = vld [vmem:[#allocation2 + $0xa0] ss:$36 sps:$4 sm:$0xff]   ;;  %v4836_v15 = vld [vmem:[#allocation2 + $0x128] ss:$36 sps:$4 sm:$0xff]   ;;  %v6733_v43 = vadd.s32 %v6711_v60, %v7425_v49 }
 0x1cb   : > { %3286 = vmatmul.mubr.bf16.gmra.mxu0 %v4825_v25  ;;  %4538 = vmatprep.subr.bf16.mxu1 %v4868_v23  ;;  %v3641_v21 = vsel %vm3627_vm15, 1, %v7269_v62  ;;  %v3643_v44 = vsel %vm3629_vm9, 1, %v7269_v62  ;;  %v6722_v8 = vsel %vm3631_vm7, 1, %v7269_v62  ;;  %v4873_v34 = vld [vmem:[%s7161_s1 + $0x210] sm:$0xff]   ;;  %vm3633_vm10 = vcmp.lt.s32.totalorder %v3619_v55, 16 }
 0x1cc   : > { %3293 = vmatprep.mubr.bf16.mxu0 %v4828_v51  ;;  %4604 = vmatpush3.bf16.msra.mxu0 %v4851_v24  ;;  %v3650_v46 = vsel %vm3636_vm4, 1, %v7269_v62  ;;  %v6739_v48 = vld [vmem:[%s7163_s3 + $0x68] sm:$0xf]  ;;  %vm3635_vm13 = vcmp.lt.s32.totalorder %v6733_v43, 16  ;;  %vm3597_vm7 = vcmp.lt.s32.totalorder %v6603_v18, 16 }
 0x1cd   : > { %3213 = vmatmul.mubr.bf16.gmra.mxu1 %v4830_v47  ;;  %4605 = vmatprep.subr.bf16.mxu0 %v4951_v42 }
 0x1ce   : > { %3220 = vmatprep.mubr.bf16.mxu1 %v4832_v22  ;;  %4539 = vmatpush3.bf16.msra.mxu1 %v4869_v10 }
 0x1cf   : > { %3672 = vrot.lane.b32.xlu0 %v3648_v53, %s4950_s25  ;;  %4540 = vmatprep.subr.bf16.mxu1 %v4875_v38  ;;  %v6749_v38 = vsel %vm3633_vm10, 1, %v7269_v62  ;;  %v4837_v53 = vld [vmem:[#allocation2 + $0xe8] ss:$36 sps:$4 sm:$0xff]  }
 0x1d0   : > { %4606 = vmatpush3.bf16.msra.mxu0 %v4859_v41  ;;  %3654 = vrot.lane.b32.xlu1 %v3639_v3, %s4950_s25  ;;  %v1332_v24 = vld [vmem:[#allocation3 + $0x38] sm:$0xf]  ;;  %v6729_v23 = vld [vmem:[#allocation3 + $0x3c] sm:$0x7] }
 0x1d1   : > { %4607 = vmatprep.subr.bf16.mxu0 %v4951_v42  ;;  %v1429_v57 = vld [vmem:[#allocation3 + $0x38] sm:$0xf]  ;;  %v1383_v25 = vrot.slane %v1332_v24, 5  ;;  %v1386_v37 = vrot.slane %v6729_v23, 5  ;;  %v1430_v52 = vld [vmem:[#allocation3 + $0x3c] sm:$0xf] }
 0x1d2   : > { %4541 = vmatpush3.bf16.msra.mxu1 %v4876_v33  ;;  %v1554_v51 = vshrl.u32 %v1429_v57, 16  ;;  %v1557_v22 = vshll.u32 %v1429_v57, 16  ;;  %v1564_v28 = vshrl.u32 %v1430_v52, 16  ;;  %v1567_v30 = vshll.u32 %v1430_v52, 16  ;;  %v1613_v47 = vld [vmem:[#allocation3 + $0x38] sm:$0xf] }
 0x1d3   : > { %3294 = vmatmul.mubr.bf16.gmra.mxu0 %v4831_v54  ;;  %v6741_v1 = vld [vmem:[#allocation3 + $0x3c] sm:$0xf]  ;;  %v1388_v13 = vrot.slane %v1386_v37, 4  ;;  %v6744_v41 = vld [vmem:[#allocation3 + $0x38] sm:$0xf]  ;;  %3676 = vrot.lane.b32.xlu0 %v3650_v46, %s4950_s25  ;;  %v1667_v63 = vrot.slane %v1613_v47, 6 }
 0x1d4   : > { %3301 = vmatprep.mubr.bf16.mxu0 %v4834_v31  ;;  %4608 = vmatpush3.bf16.msra.mxu0 %v4867_v2  ;;  %v1556_v10 = vrot.slane %v1554_v51, 5  ;;  %v1559_v29 = vrot.slane %v1557_v22, 6  ;;  %v1566_v17 = vrot.slane %v1564_v28, 5  ;;  %v1569_v45 = vrot.slane %v1567_v30, 6  ;;  %v4877_v33 = vld [vmem:[%s7161_s1 + $0x208] sm:$0xff]  }
 0x1d5   : > { %3221 = vmatmul.mubr.bf16.gmra.mxu1 %v4836_v15  ;;  %4609 = vmatprep.subr.bf16.mxu0 %v4951_v42  ;;  %v1670_v3 = vrot.slane %v6741_v1, 6  ;;  %v1385_v31 = vrot.slane %v1383_v25, 4  ;;  %v1758_v54 = vrot.slane %v6744_v41, 6  ;;  %v1808_v15 = vld [vmem:[#allocation3 + $0x38] sm:$0xf]  ;;  %v6766_v51 = vadd.s32 %v6739_v48, %v7425_v49 }
 0x1d6   : > { %3658 = vrot.lane.b32.xlu1 %v3641_v21, %s4950_s25  ;;  %v1560_v2 = vor.u32 %v1559_v29, %v1556_v10  ;;  %v1809_v55 = vld [vmem:[#allocation3 + $0x3c] sm:$0xf]  ;;  %1416 = vst [vmem:[#allocation2 + $0x1e0] sm:$0x3] %v1388_v13  ;;  %v1384_v21 = vsel %vm5574_vm8, %v6681_v39, %v1383_v25  ;;  %v1570_v46 = vor.u32 %v1569_v45, %v1566_v17  ;;  %v1916_v57 = vshrl.u32 %v1808_v15, 16 }
 0x1d7   : > { %v1672_v24 = vrot.slane %v1670_v3, 4  ;;  %v6761_v23 = vld [vmem:[#allocation3 + $0x3c] sm:$0xf]  ;;  %v1998_v52 = vld [vmem:[#allocation3 + $0x38] sm:$0xf]  ;;  %v1669_v30 = vrot.slane %v1667_v63, 4  ;;  %v1387_v41 = vsel %vm5574_vm8, %v1385_v31, %v1386_v37  ;;  %v1668_v12 = vsel %vm5583_vm12, %v6687_v5, %v1667_v63 }
 0x1d8   : > { %4610 = vmatpush3.bf16.msra.mxu0 %v4873_v34  ;;  %1414 = vst [vmem:[#allocation2 + $0x198] sm:$0xf] %v1384_v21  ;;  %v4838_v22 = vld [vmem:[#allocation2 + $0x134] ss:$36 sps:$4 sm:$0xff]   ;;  %v1562_v28 = vrot.slane %v1560_v2, 4  ;;  %v1760_v39 = vrot.slane %v1758_v54, 4  ;;  %v1759_v5 = vsel %vm5583_vm12, %v6691_v50, %v1758_v54 }
 0x1d9   : > { %4611 = vmatprep.subr.bf16.mxu0 %v4951_v42  ;;  %v1919_v34 = vshll.u32 %v1808_v15, 16  ;;  %v1918_v25 = vrot.slane %v1916_v57, 6  ;;  %v1926_v47 = vshrl.u32 %v1809_v55, 16  ;;  %v1929_v1 = vshll.u32 %v1809_v55, 16  ;;  %v6769_v13 = vld [vmem:[#allocation3 + $0x3c] sm:$0xf] }
 0x1da   : > { %3662 = vrot.lane.b32.xlu1 %v3643_v44, %s4950_s25  ;;  %v2050_v10 = vrot.slane %v1998_v52, 7  ;;  %1700 = vst [vmem:[#allocation2 + $0x1e8] sm:$0x3] %v1672_v24  ;;  %v1761_v29 = vrot.slane %v6761_v23, 6  ;;  %v1561_v44 = vsel %vm5596_vm2, %v1552_v26, %v1560_v2  ;;  %1415 = vst [vmem:[#allocation2 + $0x1bc] sm:$0xf] %v1387_v41  ;;  %v1571_v26 = vsel %vm5596_vm2, %v1562_v28, %v1570_v46 }
 0x1db   : > { %3302 = vmatmul.mubr.bf16.gmra.mxu0 %v4837_v53  ;;  %v1921_v49 = vrot.slane %v1919_v34, 7  ;;  %v4880_v53 = vld [vmem:[%s7161_s1 + $0x200] sm:$0xff]   ;;  %v1928_v17 = vrot.slane %v1926_v47, 6  ;;  %v1931_v45 = vrot.slane %v1929_v1, 7  ;;  %1598 = vst [vmem:[#allocation2 + $0x19c] sm:$0xf] %v1561_v44  ;;  %v1671_v2 = vsel %vm5583_vm12, %v1669_v30, %v1670_v3 }
 0x1dc   : > { %3309 = vmatprep.mubr.bf16.mxu0 %v4838_v22  ;;  %4612 = vmatpush3.bf16.msra.mxu0 %v4877_v33  ;;  %v2052_v15 = vrot.slane %v2050_v10, 4  ;;  %v2053_v37 = vrot.slane %v6769_v13, 7  ;;  %1698 = vst [vmem:[#allocation2 + $0x1a0] sm:$0xf] %v1668_v12  ;;  %v1572_v33 = vrot.slane %v1570_v46, 4  ;;  %v1762_v59 = vsel %vm5583_vm12, %v1760_v39, %v1761_v29  ;;  %v4338_v28 = vld [vmem:[%s5366_s18 + $0x40] sm:$0xff]  }
 0x1dd   : > { %4613 = vmatprep.subr.bf16.mxu0 %v4951_v42  ;;  %v1922_v0 = vor.u32 %v1921_v49, %v1918_v25  ;;  %v6790_v31 = vor.u32 %v1931_v45, %v1928_v17  ;;  %1599 = vst [vmem:[#allocation2 + $0x1c0] sm:$0xf] %v1571_v26  ;;  %v4854_v21 = vld [vmem:[#allocation2 + $0x170] ss:$36 sps:$4 sm:$0xff]   ;;  %1699 = vst [vmem:[#allocation2 + $0x1c4] sm:$0xf] %v1671_v2  ;;  %v2051_v50 = vsel %vm5631_vm14, %v6703_v19, %v2050_v10 }
 0x1de   : > { %3666 = vrot.lane.b32.xlu1 %v6722_v8, %s4950_s25  ;;  %1600 = vst [vmem:[#allocation2 + $0x1e4] sm:$0x3] %v1572_v33  ;;  %1793 = vst [vmem:[#allocation2 + $0x15c] sm:$0xf] %v1759_v5  ;;  %v2054_v3 = vsel %vm5631_vm14, %v2052_v15, %v2053_v37  ;;  %v4840_v54 = vld [vmem:[#allocation2 + $0x130] ss:$36 sps:$4 sm:$0xff]   ;;  %v4254_v43 = vunpack.c.l.bf16 %v4338_v28 }
 0x1df   : > { %v1924_v63 = vrot.slane %v1922_v0, 4  ;;  %v4852_v55 = vld [vmem:[#allocation2 + $0x174] ss:$36 sps:$4 sm:$0xff]   ;;  %v1923_v8 = vsel %vm5602_vm11, %v1914_v7, %v1922_v0  ;;  %1794 = vst [vmem:[#allocation2 + $0x180] sm:$0xf] %v1762_v59  ;;  %v3649_v19 = vsel %vm3635_vm13, 1, %v7269_v62 }
 0x1e0   : > { %4614 = vmatpush3.bf16.msra.mxu0 %v4880_v53  ;;  %1983 = vst [vmem:[#allocation2 + $0x160] sm:$0xf] %v1923_v8  ;;  %2087 = vst [vmem:[#allocation2 + $0x164] sm:$0xf] %v2051_v50  ;;  %3228 = vmatprep.mubr.bf16.mxu1 %v4852_v55  ;;  %vm3637_vm8 = vcmp.lt.s32.totalorder %v6766_v51, 16  ;;  %v4255_v51 = vunpack.c.h.bf16 %v4338_v28  ;;  %v750_v34 = vmul.f32 %v6556_v14, %v4254_v43  ;;  %vm4952_vm2 = vmmov 0  }
 0x1e1   : > { %2088 = vst [vmem:[#allocation2 + $0x188] sm:$0xf] %v2054_v3  ;;  %v1933_v16 = vsel %vm5602_vm11, %v1924_v63, %v6790_v31  ;;  %3229 = vmatmul.mubr.bf16.gmra.mxu1 %v4854_v21  ;;  %v4856_v7 = vld [vmem:[#allocation2 + $0x1bc] ss:$36 sps:$4 sm:$0x3f]   ;;  %v3651_v52 = vsel %vm3637_vm8, 1, %v7269_v62 }
 0x1e2   : > { %3670 = vrot.lane.b32.xlu1 %v6749_v38, %s4950_s25  ;;  %1984 = vst [vmem:[#allocation2 + $0x184] sm:$0xf] %v1933_v16  ;;  %v2153_v24 = vld [vmem:[#allocation2 + $0x1b8] sm:$0xff]  ;;  %3236 = vmatprep.mubr.bf16.mxu1 %v4856_v7  ;;  %v751_v1 = vmul.f32 %v6556_v14, %v4255_v51  ;;  %v4878_v10 = vld [vmem:[#allocation2 + $0x64] ss:$36 sps:$4 sm:$0xff]   ;;  %v776_v62 = vadd.f32 %v6576_v35, %v750_v34  ;;  %v1934_v23 = vrot.slane %v6790_v31, 4 }
 0x1e3   : > { %3310 = vmatmul.mubr.bf16.gmra.mxu0 %v4840_v54  ;;  %v4860_v46 = vld [vmem:[#allocation2 + $0x17c] ss:$36 sps:$4 sm:$0xff]   ;;  %v4883_v45 = vld [vmem:[#allocation2 + $0xac] ss:$36 sps:$4 sm:$0xff]   ;;  %v4887_v59 = vld [vmem:[#allocation2 + $0xf4] ss:$36 sps:$4 sm:$0xff]  }
 0x1e4   : > { %v2158_v57 = vld [vmem:[#allocation2 + $0x1dc] sm:$0x33]  ;;  %3317 = vmatprep.mubr.bf16.mxu0 %v4860_v46  ;;  %v4864_v22 = vld [vmem:[#allocation2 + $0x1c4] ss:$36 sps:$4 sm:$0x3f]   ;;  %v777_v49 = vadd.f32 %v6576_v35, %v751_v1  ;;  %v795_v41 = vmax.f32 %v776_v62, 0.0 }
 0x1e5   : > { %v4862_v38 = vld [vmem:[#allocation2 + $0x178] ss:$36 sps:$4 sm:$0xff]   ;;  %v4078_v30 = vcombine.low %v2153_v24, %v2158_v57  ;;  %v4874_v47 = vld [vmem:[#allocation2 + $0x1c0] ss:$36 sps:$4 sm:$0x3f]   ;;  %v867_v15 = vpop.permute.xlu1 %866  ;;  %vm3600_vm8 = vcmp.lt.s32.totalorder %v6479_v4, 16 }
 0x1e6   : > { %3674 = vrot.lane.b32.xlu1 %v3649_v19, %s4950_s25  ;;  %v4872_v39 = vld [vmem:[#allocation2 + $0x1c] ss:$36 sps:$4 sm:$0xff]   ;;  %v796_v17 = vmax.f32 %v777_v49, 0.0  ;;  %vm890_vm6 = vcmp.eq.s32.totalorder %v867_v15, 1  ;;  %v4885_v2 = vld [vmem:[#allocation2 + $0x68] ss:$36 sps:$4 sm:$0xff]  }
 0x1e7   : > { %v4870_v25 = vld [vmem:[#allocation2 + $0x18] ss:$36 sps:$4 sm:$0xff]   ;;  %v4881_v44 = vld [vmem:[#allocation2 + $0x20] ss:$36 sps:$4 sm:$0xff]   ;;  %v870_v12 = vpop.permute.xlu0 %869  ;;  %v909_v0 = vsel %vm890_vm6, %v795_v41, 0.0  ;;  %vm3599_vm6 = vcmp.lt.s32.totalorder %v6622_v20, 16 }
 0x1e8   : > { %v4882_v53 = vld [vmem:[#allocation2 + $0x60] ss:$36 sps:$4 sm:$0xff]   ;;  %vm891_vm0 = vcmp.eq.s32.totalorder %v870_v12, 1  ;;  %v4886_v5 = vld [vmem:[#allocation2 + $0xa8] ss:$36 sps:$4 sm:$0xff]  }
 0x1e9   : > { %3237 = vmatmul.mubr.bf16.gmra.mxu1 %v4078_v30  ;;  %v910_v26 = vsel %vm891_vm0, %v796_v17, 0.0  ;;  %v4889_v63 = vld [vmem:[#allocation2 + $0xb0] ss:$36 sps:$4 sm:$0xff]   ;;  %v4893_v31 = vld [vmem:[#allocation2 + $0xf8] ss:$36 sps:$4 sm:$0xff]  }
 0x1ea   : > { %3678 = vrot.lane.b32.xlu1 %v3651_v52, %s4950_s25  ;;  %3366 = vmatprep.mubr.bf16.mxu1 %v4872_v39  ;;  %v4299_v33 = vpack.c.bf16 %v910_v26, %v909_v0  ;;  %v4890_v55 = vld [vmem:[#allocation2 + $0xf0] ss:$36 sps:$4 sm:$0xff]   ;;  %v1763_v52 = vrot.slane %v1761_v29, 4  ;;  %v2055_v39 = vrot.slane %v2053_v37, 4  ;;  %v4897_v12 = vld [vmem:[#allocation2 + $0x140] ss:$36 sps:$4 sm:$0xff]  }
 0x1eb   : > { %3318 = vmatmul.mubr.bf16.gmra.mxu0 %v4862_v38  ;;  %v4891_v38 = vld [vmem:[#allocation2 + $0x13c] ss:$36 sps:$4 sm:$0xff]   ;;  %v707_v26 = vld [vmem:[%s5366_s18 + $0x48] sm:$0xf] }
 0x1ec   : > { %3325 = vmatprep.mubr.bf16.mxu0 %v4864_v22  ;;  %4346 = vst [vmem:[#allocation3 + $0x40] sm:$0xff] %v4299_v33  }
 0x1f1   : > { %3367 = vmatmul.mubr.bf16.vlgmr.msra.gmra.mxu1 %v4870_v25 }
 0x1f2   : > { %3374 = vmatprep.mubr.bf16.mxu1 %v4878_v10 }
 0x1f3   : > { %3326 = vmatmul.mubr.bf16.gmra.mxu0 %v4874_v47  ;;  %v1713_v21 = vld [vmem:[#allocation3 + $0x40] sm:$0xf]  ;;  %v1714_v8 = vld [vmem:[#allocation3 + $0x44] sm:$0xf] }
 0x1f4   : > { %4615 = vmatprep.mubr.msk.bf16.mxu0 %vm4952_vm2, %v4951_v42  ;;  %v1810_v50 = vld [vmem:[#allocation3 + $0x40] sm:$0xf]  ;;  %v1764_v3 = vrot.slane %v1713_v21, 6  ;;  %v1767_v54 = vrot.slane %v1714_v8, 6  ;;  %v1811_v16 = vld [vmem:[#allocation3 + $0x44] sm:$0xf] }
 0x1f5   : > { %v1936_v19 = vshrl.u32 %v1810_v50, 16  ;;  %v1939_v7 = vshll.u32 %v1810_v50, 16  ;;  %v1946_v46 = vshrl.u32 %v1811_v16, 16  ;;  %v1949_v24 = vshll.u32 %v1811_v16, 16  ;;  %v2000_v57 = vld [vmem:[#allocation3 + $0x40] sm:$0xf] }
 0x1f6   : > { %v1769_v22 = vrot.slane %v1767_v54, 4  ;;  %v6839_v34 = vld [vmem:[#allocation3 + $0x44] sm:$0xf]  ;;  %v2056_v25 = vrot.slane %v2000_v57, 7  ;;  %v1766_v29 = vrot.slane %v1764_v3, 4  ;;  %v1765_v1 = vsel %vm5583_vm12, %v1763_v52, %v1764_v3 }
 0x1f7   : > { %v1938_v28 = vrot.slane %v1936_v19, 6  ;;  %v1941_v30 = vrot.slane %v1939_v7, 7  ;;  %v1948_v43 = vrot.slane %v1946_v46, 6  ;;  %v1951_v51 = vrot.slane %v1949_v24, 7  ;;  %1795 = vst [vmem:[#allocation2 + $0x1a4] sm:$0xf] %v1765_v1 }
 0x1f8   : > { %1797 = vst [vmem:[#allocation2 + $0x1ec] sm:$0x3] %v1769_v22  ;;  %v2058_v10 = vrot.slane %v2056_v25, 4  ;;  %v2057_v13 = vsel %vm5631_vm14, %v2055_v39, %v2056_v25  ;;  %v2059_v49 = vrot.slane %v6839_v34, 7  ;;  %v1768_v17 = vsel %vm5583_vm12, %v1766_v29, %v1767_v54  ;;  %v4907_v7 = vld [vmem:[%s7163_s3] sm:$0xff] }
 0x1f9   : > { %3375 = vmatmul.mubr.bf16.gmra.mxu1 %v4882_v53  ;;  %v1942_v47 = vor.u32 %v1941_v30, %v1938_v28  ;;  %v6848_v62 = vor.u32 %v1951_v51, %v1948_v43  ;;  %2089 = vst [vmem:[#allocation2 + $0x1ac] sm:$0xf] %v2057_v13  ;;  %1796 = vst [vmem:[#allocation2 + $0x1c8] sm:$0xf] %v1768_v17  ;;  %vm3596_vm12 = vcmp.lt.s32.totalorder %v4907_v7, 16 }
 0x1fa   : > { %3382 = vmatprep.mubr.bf16.mxu1 %v4883_v45  ;;  %v2060_v53 = vsel %vm5631_vm14, %v2058_v10, %v2059_v49  ;;  %v2061_v20 = vrot.slane %v2059_v49, 4 }
 0x1fb   : > { %4616 = vmatmul.mubr.bf16.vlgmr.msra.gmra.mxu0 %v4881_v44  ;;  %v1944_v37 = vrot.slane %v1942_v47, 4  ;;  %v1943_v41 = vsel %vm5602_vm11, %v1934_v23, %v1942_v47  ;;  %v4894_v44 = vld [vmem:[#allocation2 + $0x138] ss:$36 sps:$4 sm:$0xff]   ;;  %2090 = vst [vmem:[#allocation2 + $0x1d0] sm:$0xf] %v2060_v53 }
 0x1fc   : > { %4619 = vmatprep.mubr.msk.bf16.mxu0 %vm4952_vm2, %v4951_v42  ;;  %1985 = vst [vmem:[#allocation2 + $0x1a8] sm:$0xf] %v1943_v41 }
 0x1fd   : > { %v1953_v45 = vsel %vm5602_vm11, %v1944_v37, %v6848_v62 }
 0x1fe   : > { %1986 = vst [vmem:[#allocation2 + $0x1cc] sm:$0xf] %v1953_v45  ;;  %v4898_v0 = vld [vmem:[#allocation2 + $0x180] ss:$36 sps:$4 sm:$0xff]  }
 0x200   : > { %v4899_v58 = vld [vmem:[#allocation2 + $0x188] ss:$36 sps:$4 sm:$0xff]  }
 0x201   : > { %3383 = vmatmul.mubr.bf16.gmra.mxu1 %v4886_v5  ;;  %v726_v5 = vunpack.c.l.bf16 %v707_v26 }
 0x202   : > { %3390 = vmatprep.mubr.bf16.mxu1 %v4887_v59 }
 0x203   : > { %4620 = vmatmul.mubr.bf16.gmra.mxu0 %v4885_v2  ;;  %v4895_v15 = vld [vmem:[#allocation2 + $0x184] ss:$36 sps:$4 sm:$0xff]   ;;  %v752_v21 = vmul.f32 %v6556_v14, %v726_v5  ;;  %v4908_v14 = vld [vmem:[%s7163_s3 + $0x10] sm:$0xff] }
 0x204   : > { %4623 = vmatprep.mubr.msk.bf16.mxu0 %vm4952_vm2, %v4951_v42  ;;  %vm3598_vm15 = vcmp.lt.s32.totalorder %v4908_v14, 16 }
 0x205   : > { %v778_v54 = vadd.f32 %v6576_v35, %v752_v21 }
 0x207   : > { %v797_v19 = vmax.f32 %v778_v54, 0.0 }
 0x209   : > { %3391 = vmatmul.mubr.bf16.gmra.mxu1 %v4890_v55 }
 0x20a   : > { %3398 = vmatprep.mubr.bf16.mxu1 %v4891_v38 }
 0x20b   : > { %4624 = vmatmul.mubr.bf16.gmra.mxu0 %v4889_v63 }
 0x20c   : > { %4627 = vmatprep.mubr.msk.bf16.mxu0 %vm4952_vm2, %v4951_v42 }
 0x211   : > { %3399 = vmatmul.mubr.bf16.gmra.mxu1 %v4894_v44 }
 0x212   : > { %3406 = vmatprep.mubr.bf16.mxu1 %v4895_v15 }
 0x213   : > { %4628 = vmatmul.mubr.bf16.gmra.mxu0 %v4893_v31 }
 0x214   : > { %4631 = vmatprep.mubr.msk.bf16.mxu0 %vm4952_vm2, %v4951_v42 }
 0x219   : > { %3407 = vmatmul.mubr.bf16.gmra.mxu1 %v4898_v0  ;;  %v3653_v33 = vpop.permute.xlu0 %3652  ;;  %v4903_v0 = vld [vmem:[#allocation2 + $0x1c8] ss:$36 sps:$4 sm:$0x3f]  }
 0x21a   : > { %vm3680_vm1 = vcmp.ne.s32.totalorder %v3653_v33, 0 }
 0x21b   : > { %4632 = vmatmul.mubr.bf16.gmra.mxu0 %v4897_v12  ;;  %vm3694_vm5 = vmand %vm3596_vm12, %vm3680_vm1 }
 0x21c   : > { %4635 = vmatprep.mubr.msk.bf16.mxu0 %vm4952_vm2, %v4951_v42  ;;  %v4171_v52 = vsel %vm3694_vm5, 1.0, %v4951_v42 }
 0x21f   : > { %v3657_v8 = vpop.permute.xlu0 %3656 }
 0x220   : > { %vm3682_vm9 = vcmp.ne.s32.totalorder %v3657_v8, 0 }
 0x221   : > { %vm3696_vm10 = vmand %vm3598_vm15, %vm3682_vm9  ;;  %vm3601_vm15 = vcmp.lt.s32.totalorder %v6633_v9, 16 }
 0x222   : > { %v4173_v18 = vsel %vm3696_vm10, 1.0, %v4951_v42  ;;  %vm3604_vm10 = vcmp.lt.s32.totalorder %v6545_v6, 16 }
 0x223   : > { %4636 = vmatmul.mubr.bf16.gmra.mxu0 %v4899_v58  ;;  %v4392_v2 = vpop.f32.mrf.mxu1 }
 0x224   : > { %4639 = vmatprep.mubr.msk.bf16.mxu0 %vm4952_vm2, %v4951_v42 }
 0x225   : > { %v4393_v59 = vpop.f32.mrf.mxu1 }
 0x226   : > { %v6869_v63 = vadd.f32 %v4393_v59, %v4392_v2 }
 0x227   : > { %v4395_v55 = vpop.f32.mrf.mxu1 }
 0x229   : > { %v4396_v50 = vpop.f32.mrf.mxu1 }
 0x22a   : > { %v6872_v3 = vadd.f32 %v4396_v50, %v4395_v55 }
 0x22c   : > { %v3661_v16 = vpop.permute.xlu0 %3660 }
 0x22d   : > { %vm3684_vm2 = vcmp.ne.s32.totalorder %v3661_v16, 0 }
 0x22e   : > { %vm6887_vm12 = vmand %vm3600_vm8, %vm3684_vm2  ;;  %vm3603_vm8 = vcmp.lt.s32.totalorder %v6638_v56, 16 }
 0x22f   : > { %v4175_v10 = vsel %vm6887_vm12, 1.0, %v4951_v42  ;;  %vm3606_vm12 = vcmp.lt.s32.totalorder %v6590_v61, 16 }
 0x231   : > { %v3665_v35 = vpop.permute.xlu0 %3664 }
 0x232   : > { %vm3686_vm5 = vcmp.ne.s32.totalorder %v3665_v35, 0 }
 0x239   : > { %v3669_v43 = vpop.permute.xlu0 %3668 }
 0x241   : > { %v3673_v13 = vpop.permute.xlu0 %3672 }
 0x243   : > { %v873_v46 = vpop.permute.xlu1 %872 }
 0x244   : > { %vm892_vm3 = vcmp.eq.s32.totalorder %v873_v46, 1 }
 0x245   : > { %v911_v24 = vsel %vm892_vm3, %v797_v19, 0.0  ;;  %vm3602_vm3 = vcmp.lt.s32.totalorder %v6517_v36, 16  ;;  %v1954_v36 = vrot.slane %v6848_v62, 4  ;;  %v3677_v53 = vpop.permute.xlu0 %3676 }
 0x246   : > { %v4205_v57 = vpack.c.bf16 %v911_v24, %v911_v24 }
 0x247   : > { %v3655_v38 = vpop.permute.xlu1 %3654 }
 0x248   : > { %1007 = vst [vmem:[#allocation3 + $0x48] sm:$0xf] %v4205_v57  ;;  %vm3681_vm4 = vcmp.ne.s32.totalorder %v3655_v38, 0 }
 0x249   : > { %vm3695_vm13 = vmand %vm3597_vm7, %vm3681_vm4 }
 0x24a   : > { %v4172_v22 = vsel %vm3695_vm13, 1.0, %v4951_v42  ;;  %vm3700_vm7 = vmand %vm3602_vm3, %vm3686_vm5  ;;  %vm3688_vm13 = vcmp.ne.s32.totalorder %v3669_v43, 0 }
 0x24b   : > { %v4707_v28 = vpack.i.bf16 %v4172_v22, %v4171_v52  ;;  %v3659_v30 = vpop.permute.xlu1 %3658  ;;  %v4177_v62 = vsel %vm3700_vm7, 1.0, %v4951_v42  ;;  %vm3692_vm7 = vcmp.ne.s32.totalorder %v3677_v53, 0 }
 0x24c   : > { %vm3683_vm0 = vcmp.ne.s32.totalorder %v3659_v30, 0 }
 0x24d   : > { %vm3697_vm1 = vmand %vm3599_vm6, %vm3683_vm0  ;;  %4708 = vperm.xlu0 %4705, %v4707_v28  }
 0x24e   : > { %v4174_v4 = vsel %vm3697_vm1, 1.0, %v4951_v42  ;;  %vm3702_vm6 = vmand %vm3604_vm10, %vm3688_vm13  ;;  %vm3690_vm1 = vcmp.ne.s32.totalorder %v3673_v13, 0 }
 0x24f   : > { %v1812_v51 = vld [vmem:[#allocation3 + $0x48] sm:$0x1]  ;;  %v4712_v23 = vpack.i.bf16 %v4174_v4, %v4173_v18  ;;  %v3663_v29 = vpop.permute.xlu1 %3662  ;;  %v4179_v44 = vsel %vm3702_vm6, 1.0, %v4951_v42  ;;  %vm3704_vm5 = vmand %vm3606_vm12, %vm3690_vm1 }
 0x250   : > { %v2002_v25 = vld [vmem:[#allocation3 + $0x48] sm:$0x1]  ;;  %v1956_v47 = vshll.u32 %v1812_v51, 16  ;;  %vm3685_vm9 = vcmp.ne.s32.totalorder %v3663_v29, 0  ;;  %v4181_v15 = vsel %vm3704_vm5, 1.0, %v4951_v42 }
 0x251   : > { %v2062_v1 = vrot.slane %v2002_v25, 7  ;;  %vm3699_vm4 = vmand %vm3601_vm15, %vm3685_vm9  ;;  %4713 = vperm.xlu1 %4706, %v4712_v23   ;;  %vm3608_vm9 = vcmp.lt.s32.totalorder %v6643_v32, 16 }
 0x252   : > { %v1958_v9 = vrot.slane %v1956_v47, 7  ;;  %v4176_v34 = vsel %vm3699_vm4, 1.0, %v4951_v42  ;;  %vm3706_vm13 = vmand %vm3608_vm9, %vm3692_vm7 }
 0x253   : > { %v2063_v37 = vsel %vm5631_vm14, %v2061_v20, %v2062_v1  ;;  %v4717_v49 = vpack.i.bf16 %v4176_v34, %v4175_v10  ;;  %v3667_v41 = vpop.permute.xlu1 %3666  ;;  %vm3605_vm14 = vcmp.lt.s32.totalorder %v6665_v11, 16  ;;  %v4183_v55 = vsel %vm3706_vm13, 1.0, %v4951_v42 }
 0x254   : > { %2091 = vst [vmem:[#allocation2 + $0x1f4] sm:$0x3] %v2063_v37  ;;  %vm3687_vm2 = vcmp.ne.s32.totalorder %v3667_v41, 0  ;;  %v1959_v6 = vsel %vm5602_vm11, %v1954_v36, %v1958_v9  ;;  %vm3607_vm11 = vcmp.lt.s32.totalorder %v6711_v60, 16  ;;  %v4368_v12 = vpop.f32.mrf.mxu0 }
 0x255   : > { %vm3701_vm0 = vmand %vm3603_vm8, %vm3687_vm2  ;;  %4718 = vperm.xlu0 %4705, %v4717_v49   ;;  %1987 = vst [vmem:[#allocation2 + $0x1f0] sm:$0x3] %v1959_v6  ;;  %vm3609_vm8 = vcmp.lt.s32.totalorder %v6739_v48, 16 }
 0x256   : > { %v4178_v56 = vsel %vm3701_vm0, 1.0, %v4951_v42  ;;  %v4369_v60 = vpop.f32.mrf.mxu0  ;;  %v4398_v26 = vpop.f32.mrf.mxu1  ;;  %vm3832_vm0 = vcmask 1043456  }
 0x257   : > { %v4722_v27 = vpack.i.bf16 %v4178_v56, %v4177_v62  ;;  %v3671_v31 = vpop.permute.xlu1 %3670  ;;  %v6918_v2 = vadd.f32 %v4369_v60, %v4368_v12 }
 0x258   : > { %vm3689_vm3 = vcmp.ne.s32.totalorder %v3671_v31, 0  ;;  %v4371_v5 = vpop.f32.mrf.mxu0  ;;  %v4399_v59 = vpop.f32.mrf.mxu1 }
 0x259   : > { %vm3703_vm15 = vmand %vm3605_vm14, %vm3689_vm3  ;;  %4723 = vperm.xlu1 %4706, %v4722_v27   ;;  %v6921_v21 = vadd.f32 %v4399_v59, %v4398_v26 }
 0x25a   : > { %v4180_v40 = vsel %vm3703_vm15, 1.0, %v4951_v42  ;;  %v4372_v8 = vpop.f32.mrf.mxu0  ;;  %v4401_v50 = vpop.f32.mrf.mxu1 }
 0x25b   : > { %v4900_v61 = vld [vmem:[#allocation2 + $0x1d0] ss:$36 sps:$4 sm:$0x3f]   ;;  %v4727_v17 = vpack.i.bf16 %v4180_v40, %v4179_v44  ;;  %v3675_v45 = vpop.permute.xlu1 %3674  ;;  %v6924_v16 = vadd.f32 %v4372_v8, %v4371_v5 }
 0x25c   : > { %vm3691_vm4 = vcmp.ne.s32.totalorder %v3675_v45, 0  ;;  %4640 = vmatmul.mubr.bf16.gmra.mxu0 %v4900_v61  ;;  %v4901_v11 = vld [vmem:[#allocation2 + $0x1cc] ss:$36 sps:$4 sm:$0x3f]   ;;  %v4374_v19 = vpop.f32.mrf.mxu0  ;;  %v4402_v7 = vpop.f32.mrf.mxu1 }
 0x25d   : > { %vm3705_vm10 = vmand %vm3607_vm11, %vm3691_vm4  ;;  %4728 = vperm.xlu0 %4705, %v4727_v17   ;;  %3414 = vmatprep.mubr.bf16.mxu1 %v4901_v11  ;;  %v6926_v46 = vadd.f32 %v4402_v7, %v4401_v50 }
 0x25e   : > { %v4182_v58 = vsel %vm3705_vm10, 1.0, %v4951_v42  ;;  %3415 = vmatmul.mubr.bf16.gmra.mxu1 %v4903_v0  ;;  %v4375_v24 = vpop.f32.mrf.mxu0 }
 0x25f   : > { %v4732_v33 = vpack.i.bf16 %v4182_v58, %v4181_v15  ;;  %v3679_v32 = vpop.permute.xlu1 %3678  ;;  %7434 = vst [vmem:[#allocation27_spill] sm:$0xff] %v6926_v46  ;;  %v6928_v57 = vadd.f32 %v4375_v24, %v4374_v19 }
 0x260   : > { %vm3693_vm2 = vcmp.ne.s32.totalorder %v3679_v32, 0  ;;  %v4377_v35 = vpop.f32.mrf.mxu0 }
 0x261   : > { %4733 = vperm.xlu1 %4706, %v4732_v33   ;;  %vm3707_vm6 = vmand %vm3609_vm8, %vm3693_vm2 }
 0x262   : > { %v4184_v54 = vsel %vm3707_vm6, 1.0, %v4951_v42  ;;  %v4378_v22 = vpop.f32.mrf.mxu0 }
 0x263   : > { %v4737_v48 = vpack.i.bf16 %v4184_v54, %v4183_v55  ;;  %v6932_v30 = vadd.f32 %v4378_v22, %v4377_v35 }
 0x264   : > { %v4404_v14 = vpop.f32.mrf.mxu1 }
 0x265   : > { %4738 = vperm.xlu0 %4705, %v4737_v48  }
 0x266   : > { %v4405_v38 = vpop.f32.mrf.mxu1 }
 0x267   : > { %v6930_v52 = vadd.f32 %v4405_v38, %v4404_v14 }
 0x268   : > { %v4407_v28 = vpop.f32.mrf.mxu1 }
 0x26a   : > { %v4408_v18 = vpop.f32.mrf.mxu1 }
 0x26b   : > { %v6934_v39 = vadd.f32 %v4408_v18, %v4407_v28 }
 0x26e   : > { %v4380_v42 = vpop.f32.mrf.mxu0 }
 0x270   : > { %v4381_v43 = vpop.f32.mrf.mxu0 }
 0x271   : > { %v6938_v20 = vadd.f32 %v4381_v43, %v4380_v42 }
 0x272   : > { %v4383_v51 = vpop.f32.mrf.mxu0 }
 0x274   : > { %v4384_v23 = vpop.f32.mrf.mxu0 }
 0x275   : > { %v6936_v4 = vpop.f32.mrf.mxu1  ;;  %v6944_v47 = vadd.f32 %v4384_v23, %v4383_v51 }
 0x277   : > { %v6940_v25 = vpop.f32.mrf.mxu1 }
 0x279   : > { %v6942_v29 = vpop.f32.mrf.mxu1 }
 0x27b   : > { %v4386_v1 = vpop.f32.mrf.mxu0  ;;  %v6946_v10 = vpop.f32.mrf.mxu1 }
 0x27d   : > { %v4387_v36 = vpop.f32.mrf.mxu0  ;;  %v6948_v9 = vpop.f32.mrf.mxu1 }
 0x27e   : > { %v6950_v34 = vadd.f32 %v4387_v36, %v4386_v1  ;;  %v7029_v1 = vld [vmem:[%s7162_s2] ss:$0 sm:$0xff] }
 0x27f   : > { %v4389_v13 = vpop.f32.mrf.mxu0  ;;  %v6952_v37 = vpop.f32.mrf.mxu1 }
 0x281   : > { %v4390_v49 = vpop.f32.mrf.mxu0  ;;  %v6954_v41 = vpop.f32.mrf.mxu1 }
 0x282   : > { %v6956_v62 = vadd.f32 %v4390_v49, %v4389_v13  ;;  %v3150_v49 = vadd.f32 %v6930_v52, %v7029_v1  ;;  %v4431_v52 = vadd.f32 %v6946_v10, %v6942_v29 }
 0x283   : > { %v4484_v6 = vpop.f32.mrf.mxu0  ;;  %v6958_v56 = vpop.f32.mrf.mxu1 }
 0x285   : > { %v4485_v27 = vpop.f32.mrf.mxu0  ;;  %v6960_v31 = vpop.f32.mrf.mxu1 }
 0x287   : > { %v4487_v44 = vpop.f32.mrf.mxu0  ;;  %v6962_v53 = vpop.f32.mrf.mxu1 }
 0x289   : > { %v4488_v40 = vpop.f32.mrf.mxu0  ;;  %v6964_v61 = vpop.f32.mrf.mxu1 }
 0x28b   : > { %v6966_v17 = vpop.f32.mrf.mxu0  ;;  %v6968_v45 = vpop.f32.mrf.mxu1 }
 0x28d   : > { %v6970_v15 = vpop.f32.mrf.mxu0  ;;  %v6972_v11 = vpop.f32.mrf.mxu1 }
 0x28f   : > { %v6974_v12 = vpop.f32.mrf.mxu0  ;;  %v6976_v0 = vpop.f32.mrf.mxu1 }
 0x291   : > { %v6978_v58 = vpop.f32.mrf.mxu0  ;;  %v6980_v60 = vpop.f32.mrf.mxu1 }
 0x293   : > { %v6982_v26 = vpop.f32.mrf.mxu0  ;;  %v6984_v33 = vpop.f32.mrf.mxu1 }
 0x295   : > { %v6986_v32 = vpop.f32.mrf.mxu0  ;;  %v6988_v5 = vpop.f32.mrf.mxu1 }
 0x296   : > { %7435 = vst [vmem:[#allocation25_spill] sm:$0xff] %v6988_v5 }
 0x297   : > { %v6990_v59 = vpop.f32.mrf.mxu0  ;;  %v6994_v8 = vpop.f32.mrf.mxu1 }
 0x298   : > { %7436 = vst [vmem:[#allocation39_spill] sm:$0xff] %v6994_v8 }
 0x299   : > { %v6992_v55 = vpop.f32.mrf.mxu0  ;;  %v7000_v48 = vpop.f32.mrf.mxu1 }
 0x29a   : > { %7437 = vst [vmem:[#allocation7_spill] sm:$0xff] %v7000_v48 }
 0x29b   : > { %v6996_v50 = vpop.f32.mrf.mxu0  ;;  %v7004_v7 = vpop.f32.mrf.mxu1 }
 0x29c   : > { %7438 = vst [vmem:[#allocation40_spill] sm:$0xff] %v7004_v7 }
 0x29d   : > { %v6998_v54 = vpop.f32.mrf.mxu0 }
 0x29f   : > { %v7002_v19 = vpop.f32.mrf.mxu0 }
 0x2a1   : > { %v7006_v24 = vpop.f32.mrf.mxu0  ;;  %v7010_v35 = vpop.f32.mrf.mxu1 }
 0x2a2   : > { %7440 = vst [vmem:[#allocation6_spill] sm:$0xff] %v7010_v35 }
 0x2a3   : > { %v7008_v14 = vpop.f32.mrf.mxu0  ;;  %v7014_v22 = vpop.f32.mrf.mxu1 }
 0x2a4   : > { %7439 = vst [vmem:[#allocation37_spill] sm:$0xff] %v7008_v14  ;;  %7442 = vst [vmem:[#allocation10_spill] sm:$0xff] %v7014_v22 }
 0x2a5   : > { %v7012_v38 = vpop.f32.mrf.mxu0  ;;  %v7018_v42 = vpop.f32.mrf.mxu1 }
 0x2a6   : > { %7441 = vst [vmem:[#allocation5_spill] sm:$0xff] %v7012_v38  ;;  %7444 = vst [vmem:[#allocation30_spill] sm:$0xff] %v7018_v42 }
 0x2a7   : > { %v7016_v28 = vpop.f32.mrf.mxu0  ;;  %v7022_v43 = vpop.f32.mrf.mxu1 }
 0x2a8   : > { %7443 = vst [vmem:[#allocation8_spill] sm:$0xff] %v7016_v28  ;;  %7446 = vst [vmem:[#allocation20_spill] sm:$0xff] %v7022_v43 }
 0x2a9   : > { %v7020_v18 = vpop.f32.mrf.mxu0  ;;  %v4462_v23 = vpop.f32.mrf.mxu1 }
 0x2aa   : > { %7445 = vst [vmem:[#allocation17_spill] sm:$0xff] %v7020_v18  ;;  %v3153_v18 = vadd.f32 %v6934_v39, %v7029_v1  ;;  %v4489_v39 = vadd.f32 %v4488_v40, %v4487_v44  ;;  %v4437_v44 = vadd.f32 %v6958_v56, %v6954_v41 }
 0x2ab   : > { %v7024_v51 = vpop.f32.mrf.mxu0  ;;  %v4463_v13 = vpop.f32.mrf.mxu1 }
 0x2ac   : > { %7447 = vst [vmem:[#allocation24_spill] sm:$0xff] %v7024_v51  ;;  %v4464_v46 = vadd.f32 %v4463_v13, %v4462_v23  ;;  %v3102_v13 = vadd.f32 %v6918_v2, %v7029_v1 }
 0x2ad   : > { %v7031_v36 = vpop.f32.mrf.mxu0  ;;  %v4465_v22 = vpop.f32.mrf.mxu1 }
 0x2ae   : > { %7448 = vst [vmem:[#allocation12_spill] sm:$0xff] %v7031_v36  ;;  %v3239_v35 = vadd.f32 %v4464_v46, %v3150_v49  ;;  %v4428_v36 = vadd.f32 %v6940_v25, %v6936_v4 }
 0x2af   : > { %v7035_v42 = vpop.f32.mrf.mxu0  ;;  %v4466_v51 = vpop.f32.mrf.mxu1 }
 0x2b0   : > { %7449 = vst [vmem:[#allocation28_spill] sm:$0xff] %v7035_v42  ;;  %v4467_v28 = vadd.f32 %v4466_v51, %v4465_v22  ;;  %v4486_v42 = vadd.f32 %v4485_v27, %v4484_v6  ;;  %v3191_v48 = vadd.f32 %v4428_v36, %v3102_v13 }
 0x2b1   : > { %v7037_v43 = vpop.f32.mrf.mxu0  ;;  %v4542_v14 = vpop.f32.mrf.mxu1 }
 0x2b2   : > { %7450 = vst [vmem:[#allocation21_spill] sm:$0xff] %v7037_v43  ;;  %v3242_v23 = vadd.f32 %v4467_v28, %v3153_v18  ;;  %v3105_v43 = vadd.f32 %v6924_v16, %v7029_v1  ;;  %v3280_v28 = vadd.f32 %v4486_v42, %v3191_v48  ;;  %v4434_v16 = vadd.f32 %v6952_v37, %v6948_v9 }
 0x2b3   : > { %v4520_v38 = vpop.f32.mrf.mxu0  ;;  %v4543_v49 = vpop.f32.mrf.mxu1  ;;  %v3113_v48 = vadd.f32 %v6932_v30, %v7029_v1  ;;  %v4492_v9 = vadd.f32 %v6970_v15, %v6966_v17  ;;  %v4495_v37 = vadd.f32 %v6978_v58, %v6974_v12 }
 0x2b4   : > { %v3194_v8 = vadd.f32 %v4431_v52, %v3105_v43  ;;  %v4544_v25 = vadd.f32 %v4543_v49, %v4542_v14  ;;  %v3110_v14 = vadd.f32 %v6928_v57, %v7029_v1  ;;  %v4443_v49 = vadd.f32 %v6968_v45, %v6964_v61 }
 0x2b5   : > { %v4521_v46 = vpop.f32.mrf.mxu0  ;;  %v4545_v7 = vpop.f32.mrf.mxu1  ;;  %v3202_v42 = vadd.f32 %v4437_v44, %v3113_v48 }
 0x2b6   : > { %v4522_v22 = vadd.f32 %v4521_v46, %v4520_v38  ;;  %v3283_v2 = vadd.f32 %v4489_v39, %v3194_v8  ;;  %v3199_v41 = vadd.f32 %v4434_v16, %v3110_v14 }
 0x2b7   : > { %v4523_v51 = vpop.f32.mrf.mxu0  ;;  %v4546_v10 = vpop.f32.mrf.mxu1  ;;  %v3291_v52 = vadd.f32 %v4495_v37, %v3202_v42  ;;  %v7453_v42 = vld [vmem:[#allocation7_spill] sm:$0xff] }
 0x2b8   : > { %v7049_v4 = vadd.f32 %v4522_v22, %v3239_v35  ;;  %v4547_v5 = vadd.f32 %v4546_v10, %v4545_v7  ;;  %v3369_v35 = vadd.f32 %v4544_v25, %v3280_v28  ;;  %v3288_v15 = vadd.f32 %v4492_v9, %v3199_v41 }
 0x2b9   : > { %v4524_v29 = vpop.f32.mrf.mxu0  ;;  %v4548_v27 = vpop.f32.mrf.mxu1  ;;  %v3121_v10 = vadd.f32 %v6944_v47, %v7029_v1  ;;  %v4498_v28 = vadd.f32 %v6986_v32, %v6982_v26  ;;  %v4449_v47 = vadd.f32 %v6984_v33, %v6980_v60  ;;  %v3134_v33 = vadd.f32 %v6869_v63, %v7029_v1 }
 0x2ba   : > { %v4525_v18 = vadd.f32 %v4524_v29, %v4523_v51  ;;  %v3372_v38 = vadd.f32 %v4547_v5, %v3283_v2  ;;  %v3118_v51 = vadd.f32 %v6938_v20, %v7029_v1 }
 0x2bb   : > { %v3457_v6 = vpop.f32.mrf.mxu0  ;;  %v4549_v8 = vpop.f32.mrf.mxu1  ;;  %v3210_v45 = vadd.f32 %v4443_v49, %v3121_v10  ;;  %v7459_v10 = vld [vmem:[#allocation6_spill] sm:$0xff] }
 0x2bc   : > { %v7055_v40 = vadd.f32 %v4525_v18, %v3242_v23  ;;  %v7066_v5 = vadd.f32 %v3457_v6, %v3369_v35  ;;  %v4550_v57 = vadd.f32 %v4549_v8, %v4548_v27  ;;  %v4440_v23 = vadd.f32 %v6962_v53, %v6960_v31 }
 0x2bd   : > { %v4617_v43 = vpop.f32.mrf.mxu0  ;;  %v4551_v7 = vpop.f32.mrf.mxu1  ;;  %v4501_v31 = vadd.f32 %v6992_v55, %v6990_v59  ;;  %v4446_v6 = vadd.f32 %v6976_v0, %v6972_v11  ;;  %v3126_v35 = vadd.f32 %v6950_v34, %v7029_v1  ;;  %v4504_v11 = vadd.f32 %v6998_v54, %v6996_v50  ;;  %v7451_v54 = vld [vmem:[#allocation25_spill] sm:$0xff] }
 0x2be   : > { %v3377_v39 = vadd.f32 %v4550_v57, %v3288_v15  ;;  %v3207_v53 = vadd.f32 %v4440_v23, %v3118_v51  ;;  %v3129_v43 = vadd.f32 %v6956_v62, %v7029_v1  ;;  %v4507_v8 = vadd.f32 %v7006_v24, %v7002_v19  ;;  %v7454_v57 = vld [vmem:[#allocation40_spill] sm:$0xff]  ;;  %v7455_v23 = vld [vmem:[#allocation37_spill] sm:$0xff] }
 0x2bf   : > { %v3460_v56 = vpop.f32.mrf.mxu0  ;;  %v4552_v17 = vpop.f32.mrf.mxu1  ;;  %v3299_v44 = vadd.f32 %v4501_v31, %v3210_v45  ;;  %v3137_v34 = vadd.f32 %v6872_v3, %v7029_v1  ;;  %v3142_v62 = vadd.f32 %v6921_v21, %v7029_v1  ;;  %v3215_v37 = vadd.f32 %v4446_v6, %v3126_v35  ;;  %v7456_v21 = vld [vmem:[#allocation5_spill] sm:$0xff]  ;;  %v7457_v51 = vld [vmem:[#allocation8_spill] sm:$0xff] }
 0x2c0   : > { %v7068_v36 = vadd.f32 %v3460_v56, %v3372_v38  ;;  %v4553_v58 = vadd.f32 %v4552_v17, %v4551_v7  ;;  %v3296_v32 = vadd.f32 %v4498_v28, %v3207_v53  ;;  %v3218_v41 = vadd.f32 %v4449_v47, %v3129_v43  ;;  %v7452_v56 = vld [vmem:[#allocation39_spill] sm:$0xff]  ;;  %v7460_v28 = vld [vmem:[#allocation10_spill] sm:$0xff] }
 0x2c1   : > { %v4618_v30 = vpop.f32.mrf.mxu0  ;;  %v4554_v46 = vpop.f32.mrf.mxu1  ;;  %v4452_v7 = vadd.f32 %v7452_v56, %v7451_v54  ;;  %v4455_v63 = vadd.f32 %v7454_v57, %v7453_v42  ;;  %v3304_v15 = vadd.f32 %v4504_v11, %v3215_v37  ;;  %v4458_v31 = vadd.f32 %v7460_v28, %v7459_v10  ;;  %v7461_v43 = vld [vmem:[#allocation27_spill] sm:$0xff]  ;;  %v7463_v57 = vld [vmem:[#allocation12_spill] sm:$0xff] }
 0x2c2   : > { %v4304_v12 = vpack.c.bf16 %v7068_v36, %v7066_v5  ;;  %v3380_v22 = vadd.f32 %v4553_v58, %v3291_v52  ;;  %v3307_v58 = vadd.f32 %v4507_v8, %v3218_v41  ;;  %v3145_v11 = vadd.f32 %v7461_v43, %v7029_v1  ;;  %v7466_v28 = vld [vmem:[#allocation28_spill] sm:$0xff] }
 0x2c3   : > { %v3465_v13 = vpop.f32.mrf.mxu0  ;;  %v4555_v29 = vpop.f32.mrf.mxu1 }
 0x2c4   : > { %4305 = vst [vmem:[%s7073_s20] sm:$0xff] %v4304_v12   ;;  %v7090_v18 = vadd.f32 %v3465_v13, %v3377_v39  ;;  %v4556_v20 = vadd.f32 %v4555_v29, %v4554_v46  ;;  %v4510_v13 = vadd.f32 %v7456_v21, %v7455_v23 }
 0x2c5   : > { %v4621_v25 = vpop.f32.mrf.mxu0  ;;  %v4557_v61 = vpop.f32.mrf.mxu1 }
 0x2c6   : > { %v3385_v0 = vadd.f32 %v4556_v20, %v3296_v32  ;;  %v7458_v25 = vld [vmem:[#allocation17_spill] sm:$0xff]  ;;  %v3223_v32 = vadd.f32 %v4452_v7, %v3134_v33 }
 0x2c7   : > { %v3468_v2 = vpop.f32.mrf.mxu0  ;;  %v4558_v26 = vpop.f32.mrf.mxu1  ;;  %v4513_v29 = vadd.f32 %v7458_v25, %v7457_v51  ;;  %v7465_v51 = vld [vmem:[#allocation20_spill] sm:$0xff] }
 0x2c8   : > { %v3469_v16 = vadd.f32 %v3468_v2, %v3380_v22  ;;  %v4559_v55 = vadd.f32 %v4558_v26, %v4557_v61  ;;  %v4709_v50 = vpop.permute.xlu0 %4708 }
 0x2c9   : > { %v4622_v27 = vpop.f32.mrf.mxu0  ;;  %v4560_v14 = vpop.f32.mrf.mxu1  ;;  %v4711_v19 = vunpack.i.h.bf16 %v4709_v50  ;;  %v4710_v24 = vunpack.i.l.bf16 %v4709_v50 }
 0x2ca   : > { %v4309_v59 = vpack.c.bf16 %v3469_v16, %v7090_v18  ;;  %v3388_v60 = vadd.f32 %v4559_v55, %v3299_v44 }
 0x2cb   : > { %v3473_v38 = vpop.f32.mrf.mxu0  ;;  %v4561_v9 = vpop.f32.mrf.mxu1  ;;  %v3806_v49 = vmul.f32 %v4710_v24, %v7066_v5  ;;  %v3807_v39 = vmul.f32 %v4711_v19, %v7068_v36 }
 0x2cc   : > { %4347 = vst [vmem:[%s7073_s20 + $0x8] sm:$0xff] %v4309_v59   ;;  %v3474_v52 = vadd.f32 %v3473_v38, %v3385_v0  ;;  %v4562_v3 = vadd.f32 %v4561_v9, %v4560_v14  ;;  %v4714_v61 = vpop.permute.xlu1 %4713  ;;  %v3226_v59 = vadd.f32 %v4455_v63, %v3137_v34  ;;  %v3312_v0 = vadd.f32 %v4510_v13, %v3223_v32 }
 0x2cd   : > { %v4625_v48 = vpop.f32.mrf.mxu0  ;;  %v4563_v17 = vpop.f32.mrf.mxu1  ;;  %v3820_v20 = vadd.f32 %v3807_v39, %v3806_v49  ;;  %v3842_v6 = vmul.f32 %v3806_v49, %v3806_v49  ;;  %v3843_v47 = vmul.f32 %v3807_v39, %v3807_v39  ;;  %v4716_v26 = vunpack.i.h.bf16 %v4714_v61 }
 0x2ce   : > { %v3393_v5 = vadd.f32 %v4562_v3, %v3304_v15  ;;  %v4715_v44 = vunpack.i.l.bf16 %v4714_v61  ;;  %v3315_v9 = vadd.f32 %v4513_v29, %v3226_v59 }
 0x2cf   : > { %v3476_v30 = vpop.f32.mrf.mxu0  ;;  %v4564_v22 = vpop.f32.mrf.mxu1  ;;  %v3856_v55 = vadd.f32 %v3843_v47, %v3842_v6  ;;  %v3809_v38 = vmul.f32 %v4716_v26, %v3469_v16  ;;  %v7462_v16 = vld [vmem:[#allocation24_spill] sm:$0xff] }
 0x2d0   : > { %v3477_v12 = vadd.f32 %v3476_v30, %v3388_v60  ;;  %v4565_v2 = vadd.f32 %v4564_v22, %v4563_v17  ;;  %v3231_v60 = vadd.f32 %v4458_v31, %v3142_v62  ;;  %v3808_v8 = vmul.f32 %v4715_v44, %v7090_v18  ;;  %v4719_v48 = vpop.permute.xlu0 %4718  ;;  %v7464_v22 = vld [vmem:[#allocation30_spill] sm:$0xff]  ;;  %v7467_v31 = vld [vmem:[#allocation21_spill] sm:$0xff] }
 0x2d1   : > { %v4626_v46 = vpop.f32.mrf.mxu0  ;;  %v4566_v27 = vpop.f32.mrf.mxu1  ;;  %v4721_v50 = vunpack.i.h.bf16 %v4719_v48  ;;  %v4720_v54 = vunpack.i.l.bf16 %v4719_v48  ;;  %v4516_v63 = vadd.f32 %v7463_v57, %v7462_v16  ;;  %v3845_v30 = vmul.f32 %v3809_v38, %v3809_v38 }
 0x2d2   : > { %v4314_v53 = vpack.c.bf16 %v3477_v12, %v3474_v52  ;;  %v3396_v36 = vadd.f32 %v4565_v2, %v3307_v58  ;;  %v3821_v7 = vadd.f32 %v3820_v20, %v3808_v8  ;;  %v3844_v42 = vmul.f32 %v3808_v8, %v3808_v8 }
 0x2d3   : > { %v3481_v45 = vpop.f32.mrf.mxu0  ;;  %v4567_v14 = vpop.f32.mrf.mxu1  ;;  %v3810_v62 = vmul.f32 %v4720_v54, %v3474_v52  ;;  %v3811_v17 = vmul.f32 %v4721_v50, %v3477_v12  ;;  %v4461_v25 = vadd.f32 %v7465_v51, %v7464_v22  ;;  %v3320_v12 = vadd.f32 %v4516_v63, %v3231_v60 }
 0x2d4   : > { %4348 = vst [vmem:[%s7073_s20 + $0x10] sm:$0xff] %v4314_v53   ;;  %v4568_v33 = vadd.f32 %v4567_v14, %v4566_v27  ;;  %v3482_v56 = vadd.f32 %v3481_v45, %v3393_v5  ;;  %v3822_v24 = vadd.f32 %v3821_v7, %v3809_v38  ;;  %v3857_v15 = vadd.f32 %v3856_v55, %v3844_v42  ;;  %v4724_v58 = vpop.permute.xlu1 %4723 }
 0x2d5   : > { %v4629_v35 = vpop.f32.mrf.mxu0  ;;  %v4569_v41 = vpop.f32.mrf.mxu1  ;;  %v3846_v13 = vmul.f32 %v3810_v62, %v3810_v62  ;;  %v4726_v49 = vunpack.i.h.bf16 %v4724_v58  ;;  %v4725_v39 = vunpack.i.l.bf16 %v4724_v58  ;;  %v4519_v53 = vadd.f32 %v7467_v31, %v7466_v28 }
 0x2d6   : > { %v3401_v23 = vadd.f32 %v4568_v33, %v3312_v0  ;;  %v3858_v29 = vadd.f32 %v3857_v15, %v3845_v30  ;;  %v3823_v10 = vadd.f32 %v3822_v24, %v3810_v62  ;;  %v3847_v47 = vmul.f32 %v3811_v17, %v3811_v17 }
 0x2d7   : > { %v3484_v37 = vpop.f32.mrf.mxu0  ;;  %v4570_v18 = vpop.f32.mrf.mxu1  ;;  %v3812_v61 = vmul.f32 %v4725_v39, %v3482_v56  ;;  %v3234_v60 = vadd.f32 %v4461_v25, %v3145_v11 }
 0x2d8   : > { %v3485_v34 = vadd.f32 %v3484_v37, %v3396_v36  ;;  %v4571_v3 = vadd.f32 %v4570_v18, %v4569_v41  ;;  %v3824_v6 = vadd.f32 %v3823_v10, %v3811_v17  ;;  %v3859_v27 = vadd.f32 %v3858_v29, %v3846_v13  ;;  %v4729_v32 = vpop.permute.xlu0 %4728 }
 0x2d9   : > { %v4630_v1 = vpop.f32.mrf.mxu0  ;;  %v4572_v46 = vpop.f32.mrf.mxu1  ;;  %v3848_v44 = vmul.f32 %v3812_v61, %v3812_v61  ;;  %v4731_v55 = vunpack.i.h.bf16 %v4729_v32  ;;  %v4730_v35 = vunpack.i.l.bf16 %v4729_v32 }
 0x2da   : > { %v4319_v19 = vpack.c.bf16 %v3485_v34, %v3482_v56  ;;  %v3404_v52 = vadd.f32 %v4571_v3, %v3315_v9  ;;  %v3813_v45 = vmul.f32 %v4726_v49, %v3485_v34  ;;  %v3860_v38 = vadd.f32 %v3859_v27, %v3847_v47 }
 0x2db   : > { %v3489_v21 = vpop.f32.mrf.mxu0  ;;  %v4573_v20 = vpop.f32.mrf.mxu1  ;;  %v3825_v43 = vadd.f32 %v3824_v6, %v3812_v61  ;;  %v3323_v34 = vadd.f32 %v4519_v53, %v3234_v60 }
 0x2dc   : > { %4349 = vst [vmem:[%s7073_s20 + $0x18] sm:$0xff] %v4319_v19   ;;  %v4574_v26 = vadd.f32 %v4573_v20, %v4572_v46  ;;  %v3490_v5 = vadd.f32 %v3489_v21, %v3401_v23  ;;  %v3849_v8 = vmul.f32 %v3813_v45, %v3813_v45  ;;  %v3861_v50 = vadd.f32 %v3860_v38, %v3848_v44  ;;  %v4734_v56 = vpop.permute.xlu1 %4733 }
 0x2dd   : > { %v4633_v2 = vpop.f32.mrf.mxu0  ;;  %v4575_v59 = vpop.f32.mrf.mxu1  ;;  %v3826_v41 = vadd.f32 %v3825_v43, %v3813_v45  ;;  %v4735_v57 = vunpack.i.l.bf16 %v4734_v56  ;;  %v4736_v17 = vunpack.i.h.bf16 %v4734_v56 }
 0x2de   : > { %v3409_v0 = vadd.f32 %v4574_v26, %v3320_v12  ;;  %v3814_v9 = vmul.f32 %v4730_v35, %v3490_v5  ;;  %v3862_v63 = vadd.f32 %v3861_v50, %v3849_v8 }
 0x2df   : > { %v3492_v36 = vpop.f32.mrf.mxu0  ;;  %v4576_v37 = vpop.f32.mrf.mxu1 }
 0x2e0   : > { %v3493_v14 = vadd.f32 %v3492_v36, %v3404_v52  ;;  %v3850_v42 = vmul.f32 %v3814_v9, %v3814_v9  ;;  %v4577_v16 = vadd.f32 %v4576_v37, %v4575_v59  ;;  %v3827_v1 = vadd.f32 %v3826_v41, %v3814_v9  ;;  %v4739_v61 = vpop.permute.xlu0 %4738 }
 0x2e1   : > { %v4634_v48 = vpop.f32.mrf.mxu0  ;;  %v4740_v47 = vunpack.i.l.bf16 %v4739_v61  ;;  %v4741_v44 = vunpack.i.h.bf16 %v4739_v61 }
 0x2e2   : > { %v4324_v33 = vpack.c.bf16 %v3493_v14, %v3490_v5  ;;  %v3815_v54 = vmul.f32 %v4731_v55, %v3493_v14  ;;  %v3412_v11 = vadd.f32 %v4577_v16, %v3323_v34  ;;  %v3863_v24 = vadd.f32 %v3862_v63, %v3850_v42 }
 0x2e3   : > { %v3497_v7 = vpop.f32.mrf.mxu0 }
 0x2e4   : > { %4350 = vst [vmem:[%s7073_s20 + $0x20] sm:$0xff] %v4324_v33   ;;  %v3498_v30 = vadd.f32 %v3497_v7, %v3409_v0  ;;  %v3828_v18 = vadd.f32 %v3827_v1, %v3815_v54  ;;  %v3851_v19 = vmul.f32 %v3815_v54, %v3815_v54 }
 0x2e5   : > { %v4637_v62 = vpop.f32.mrf.mxu0 }
 0x2e6   : > { %v3816_v15 = vmul.f32 %v4735_v57, %v3498_v30  ;;  %v3864_v58 = vadd.f32 %v3863_v24, %v3851_v19 }
 0x2e7   : > { %v3500_v3 = vpop.f32.mrf.mxu0 }
 0x2e8   : > { %v3501_v23 = vadd.f32 %v3500_v3, %v3412_v11  ;;  %v3829_v21 = vadd.f32 %v3828_v18, %v3816_v15  ;;  %v3852_v13 = vmul.f32 %v3816_v15, %v3816_v15 }
 0x2e9   : > { %v4638_v46 = vpop.f32.mrf.mxu0 }
 0x2ea   : > { %v4329_v49 = vpack.c.bf16 %v3501_v23, %v3498_v30  ;;  %v3817_v39 = vmul.f32 %v4736_v17, %v3501_v23  ;;  %v3865_v22 = vadd.f32 %v3864_v58, %v3852_v13 }
 0x2ec   : > { %4351 = vst [vmem:[%s7073_s20 + $0x28] sm:$0xff] %v4329_v49   ;;  %v3830_v51 = vadd.f32 %v3829_v21, %v3817_v39  ;;  %v3853_v25 = vmul.f32 %v3817_v39, %v3817_v39 }
 0x2ee   : > { %v3866_v29 = vadd.f32 %v3865_v22, %v3853_v25 }
 0x31c   : > { %v3505_v10 = vpop.f32.mrf.mxu0 }
 0x31e   : > { %v4641_v52 = vpop.f32.mrf.mxu0  ;;  %v4578_v12 = vpop.f32.mrf.mxu1 }
 0x320   : > { %v3508_v28 = vpop.f32.mrf.mxu0  ;;  %v4579_v31 = vpop.f32.mrf.mxu1 }
 0x321   : > { %v4580_v53 = vadd.f32 %v4579_v31, %v4578_v12 }
 0x322   : > { %v4642_v2 = vpop.f32.mrf.mxu0  ;;  %v4581_v45 = vpop.f32.mrf.mxu1 }
 0x323   : > { %v3417_v20 = vadd.f32 %v4580_v53, %v7049_v4 }
 0x324   : > { %v4582_v6 = vpop.f32.mrf.mxu1 }
 0x325   : > { %v3506_v27 = vadd.f32 %v3505_v10, %v3417_v20  ;;  %v4583_v26 = vadd.f32 %v4582_v6, %v4581_v45 }
 0x327   : > { %v4218_v32 = vpack.c.bf16 %v3506_v27, %v3506_v27  ;;  %v3818_v5 = vmul.f32 %v4740_v47, %v3506_v27  ;;  %v3420_v36 = vadd.f32 %v4583_v26, %v7055_v40 }
 0x329   : > { %3580 = vst [vmem:[%s7073_s20 + $0x30] sm:$0xf] %v4218_v32  ;;  %v3831_v59 = vadd.f32 %v3830_v51, %v3818_v5  ;;  %v3854_v55 = vmul.f32 %v3818_v5, %v3818_v5  ;;  %v3509_v35 = vadd.f32 %v3508_v28, %v3420_v36 }
 0x32b   : > { %v3867_v38 = vadd.f32 %v3866_v29, %v3854_v55  ;;  %v4219_v14 = vpack.c.bf16 %v3509_v35, %v3509_v35  ;;  %v3819_v43 = vmul.f32 %v4741_v44, %v3509_v35 }
 0x32d   : > { %3581 = vst [vmem:[%s7073_s20 + $0x34] sm:$0x3] %v4219_v14  ;;  %v3833_v4 = vsel %vm3832_vm0, %v3819_v43, 0.0  ;;  %v3855_v0 = vmul.f32 %v3819_v43, %v3819_v43 }
 0x32e   : > { %v3834_v60 = vadd.f32 %v3833_v4, %v3831_v59 }
 0x32f   : > { %v3868_v8 = vsel %vm3832_vm0, %v3855_v0, 0.0 }
 0x330   : > { %v3835_v48 = vrot.slane %v3834_v60, 4  ;;  %v3869_v9 = vadd.f32 %v3868_v8, %v3867_v38 }
 0x332   : > { %v3836_v37 = vadd.f32 %v3835_v48, %v3834_v60  ;;  %v3870_v33 = vrot.slane %v3869_v9, 4 }
 0x334   : > { %v3837_v40 = vrot.slane %v3836_v37, 2  ;;  %v3871_v41 = vadd.f32 %v3870_v33, %v3869_v9 }
 0x336   : > { %v3838_v50 = vadd.f32 %v3837_v40, %v3836_v37  ;;  %v3872_v54 = vrot.slane %v3871_v41, 2 }
 0x338   : > { %v3839_v56 = vrot.slane %v3838_v50, 1  ;;  %v3873_v34 = vadd.f32 %v3872_v54, %v3871_v41 }
 0x33a   : > { %v3840_v7 = vadd.f32 %v3839_v56, %v3838_v50  ;;  %v3874_v42 = vrot.slane %v3873_v34, 1 }
 0x33c   : > { %3841 = vst [vmem:[%s360_s24] sm:$0x1] %v3840_v7  ;;  %v3875_v16 = vadd.f32 %v3874_v42, %v3873_v34 }
 0x33e   : > { %3876 = vst [vmem:[%s360_s24 + $0x1] sm:$0x1] %v3875_v16 }
 0x33f PF: > { %s19_s9 = sadd.s32 1, %s4947_s9   ;;  %s7468_s27 = smov %s4939_s29 }
 0x340   : > { %p16_p6 = scmp.ge.s32.totalorder %s19_s9, 8   ;;  %s7469_s28 = smov %s4943_s30 }
 0x341   : > { %s7470_s29 = smov %s7473_s10  ;;  %s7471_s30 = smov %s7477_s11 }
 0x342   :  { %18 = sbr.rel (!%p16_p6) target bundleno = 3 (0x3), region = 90 }

</bundles_post_ra>
